<compile_context>
chip_gen: v7x
topology: tpu7x:2x2x1
jax: 0.10.0
libtpu: 0.0.40
codegen_flags: <defaults>
</compile_context>

<pallas_src>
import functools

import jax
import jax.numpy as jnp
import numpy as np
from jax import lax
from jax.experimental import pallas as pl
from jax.experimental.pallas import tpu as pltpu


def hspa_kernel(x_ref, wt_ref, bt_ref, at_ref, o_ref,
                e1_ref, e2_ref, xa_ref, s_ref, p_ref, *,
                cr, l, nb, res_scale, n_bisect):
    # ---- fused 1x1 convs + PReLU: ONE matmul for the whole block ----------
    z = jnp.dot(wt_ref[...], x_ref[...], preferred_element_type=jnp.float32)
    z = z + bt_ref[...]
    proj = jnp.where(z >= 0.0, z, at_ref[...] * z)          # (2Cr+C, nb*L) f32
    e1_ref[...] = proj[0:cr].astype(jnp.bfloat16)           # (Cr, nb*L)
    e2_ref[...] = proj[cr:2 * cr].astype(jnp.bfloat16)      # (Cr, nb*L)
    xa_ref[...] = proj[2 * cr:].astype(jnp.bfloat16)        # (C,  nb*L)

    def lane_off(i):
        off = i * l
        return off if isinstance(off, int) else pl.multiple_of(off, l)

    # ---- per-sample score^T into the stacked (L_k, nb*L_q) scratch --------
    def score_body(i, carry=0):
        off = lane_off(i)
        e1 = e1_ref[:, pl.ds(off, l)]                       # (Cr, Lq) bf16
        e2 = e2_ref[:, pl.ds(off, l)]                       # (Cr, Lk) bf16
        # score^T[k, q] = <e2[:, k], e1[:, q]>; contract dim 0 of both and let
        # Mosaic pick the layout (no explicit lane-sparse (L, Cr) transpose).
        st = lax.dot_general(e2, e1, (((0,), (0,)), ((), ())),
                             preferred_element_type=jnp.float32)  # (Lk, Lq) f32
        # Per-query (per-column) max -> cheap sublane reduction; col max -> 0.
        s_ref[:, pl.ds(off, l)] = st - jnp.max(st, axis=0, keepdims=True)
        return carry

    if nb == 1:
        score_body(0)
    else:
        lax.fori_loop(0, nb, score_body, 0, unroll=False)

    # ---- ONE stacked sparsemax bisection over all nb*L query columns ------
    # f(tau_q) = sum_k relu(s[k, q] - tau_q);  f(-1) >= 1, f(0) = 0,
    # so tau* in [-1, 0).  All per-query state is a lane-dense (1, nb*L) row.
    lo0 = jnp.full((1, nb * l), -1.0, jnp.float32)
    hi0 = jnp.zeros((1, nb * l), jnp.float32)

    def bis_step(_, carry):
        lo, hi = carry
        mid = 0.5 * (lo + hi)
        f = jnp.sum(jnp.maximum(s_ref[...] - mid, 0.0), axis=0, keepdims=True)
        go_up = f >= 1.0
        return jnp.where(go_up, mid, lo), jnp.where(go_up, hi, mid)

    unroll_bis = (nb * l * l) <= (1 << 17)    # keep the unrolled i-stream bounded
    lo, _ = lax.fori_loop(0, n_bisect, bis_step, (lo0, hi0), unroll=unroll_bis)

    # ---- exact tau from the bracketed support; p^T = relu(s - tau) --------
    # Support >= 1 always (each column's max 0 > lo < 0); elements between lo
    # and tau* contribute ~0 either way -> equals the sort-based sparsemax.
    s_all = s_ref[...]
    supp = (s_all > lo).astype(jnp.float32)
    k = jnp.sum(supp, axis=0, keepdims=True)
    ssum = jnp.sum(supp * s_all, axis=0, keepdims=True)
    tau = (ssum - 1.0) / k
    p_ref[...] = jnp.maximum(s_all - tau, 0.0).astype(jnp.bfloat16)

    # ---- per-sample aggregation + residual, lane-dense (C, L) stores ------
    def agg_body(i, carry=0):
        off = lane_off(i)
        out = jnp.dot(xa_ref[:, pl.ds(off, l)], p_ref[:, pl.ds(off, l)],
                      preferred_element_type=jnp.float32)   # (C, Lq) f32
        o_ref[:, pl.ds(off, l)] = res_scale * out + x_ref[:, pl.ds(off, l)]
        return carry

    if nb == 1:
        agg_body(0)
    else:
        lax.fori_loop(0, nb, agg_body, 0, unroll=False)


def _pick_nb(n, l):
    # Per-sample stacked-scratch footprint ~= 6*L^2 bytes (s fp32 + p bf16).
    cap = max(1, min(8, (16 << 20) // max(1, 6 * l * l)))
    cap = min(cap, n)
    # Prefer the largest nb whose grid has >= 2 steps (feeds both v7x TCs),
    # and an even step count so neither TC idles for a whole step.
    for want_even in (True, False):
        for nb in range(cap, 0, -1):
            if n % nb:
                continue
            g = n // nb
            if g >= 2 and (g % 2 == 0 or not want_even):
                return nb
    return 1


def hspa_forward(x_nchw, params, res_scale=1.0, n_bisect=16):
    N, C, H, W = x_nchw.shape
    L = H * W
    Cr = params["w1"].shape[1]
    Ct = 2 * Cr + C

    # Channel-major slab (C, N*L): one bandwidth-pass transpose in XLA; every
    # kernel block is then a contiguous lane-dense (C, nb*L) tile.
    x = jnp.transpose(x_nchw.reshape(N, C, L), (1, 0, 2)).reshape(C, N * L)
    x = x.astype(jnp.float32)

    # Fuse the three 1x1 convs into one transposed weight / bias / alpha.
    wt = jnp.concatenate([params["w1"], params["w2"], params["wa"]], axis=1).T
    bt = jnp.concatenate([params["b1"], params["b2"], params["ba"]], axis=1).T
    a = params["alpha"].astype(jnp.float32)
    at = jnp.concatenate([jnp.broadcast_to(a[0], (Cr,)),
                          jnp.broadcast_to(a[1], (Cr,)),
                          jnp.broadcast_to(a[2], (C,))])[:, None]

    nb = _pick_nb(N, L)
    grid = N // nb

    blk_bytes = C * nb * L * 4
    scratch_bytes = (2 * Cr * nb * L * 2) + (C * nb * L * 2) \
        + (L * nb * L * 4) + (L * nb * L * 2)
    vmem_limit = int(min(max(2 * (scratch_bytes + 4 * blk_bytes) + (8 << 20),
                             16 << 20), 56 << 20))

    kernel = functools.partial(hspa_kernel, cr=Cr, l=L, nb=nb,
                               res_scale=float(res_scale), n_bisect=n_bisect)
    grid_spec = pltpu.PrefetchScalarGridSpec(
        num_scalar_prefetch=0,
        grid=(grid,),
        in_specs=[
            pl.BlockSpec((C, nb * L), lambda n: (0, n)),   # x slab (C, N*L)
            pl.BlockSpec((Ct, C), lambda n: (0, 0)),       # fused weight^T
            pl.BlockSpec((Ct, 1), lambda n: (0, 0)),       # fused bias
            pl.BlockSpec((Ct, 1), lambda n: (0, 0)),       # fused PReLU alpha
        ],
        out_specs=pl.BlockSpec((C, nb * L), lambda n: (0, n)),
        scratch_shapes=[
            pltpu.VMEM((Cr, nb * L), jnp.bfloat16),        # e1 (bf16 MXU operand)
            pltpu.VMEM((Cr, nb * L), jnp.bfloat16),        # e2
            pltpu.VMEM((C, nb * L), jnp.bfloat16),         # xa
            pltpu.VMEM((L, nb * L), jnp.float32),          # stacked score^T (f32)
            pltpu.VMEM((L, nb * L), jnp.bfloat16),         # stacked p^T (bf16)
        ],
    )
    y = pl.pallas_call(
        kernel,
        out_shape=jax.ShapeDtypeStruct((C, N * L), jnp.float32),
        grid_spec=grid_spec,
        compiler_params=pltpu.CompilerParams(
            dimension_semantics=("parallel",),
            vmem_limit_bytes=vmem_limit),
    )(x, wt.astype(jnp.float32), bt.astype(jnp.float32), at)
    return jnp.transpose(y.reshape(C, N, L), (1, 0, 2)).reshape(N, C, H, W)


def init_params(key, channel, reduction):
    Cr = channel // reduction
    ks = jax.random.split(key, 6)
    w1 = jax.random.normal(ks[0], (channel, Cr), jnp.float32) * 0.1
    b1 = jax.random.normal(ks[1], (1, Cr), jnp.float32) * 0.01
    w2 = jax.random.normal(ks[2], (channel, Cr), jnp.float32) * 0.1
    b2 = jax.random.normal(ks[3], (1, Cr), jnp.float32) * 0.01
    wa = jax.random.normal(ks[4], (channel, channel), jnp.float32) * 0.1
    ba = jax.random.normal(ks[5], (1, channel), jnp.float32) * 0.01
    alpha = jnp.array([0.25, 0.25, 0.25], jnp.float32)  # nn.PReLU default init
    return dict(w1=w1, b1=b1, w2=w2, b2=b2, wa=wa, ba=ba, alpha=alpha)


# ----- pure-JAX reference (sort-based, mirrors the PyTorch module) -----
def sparsemax_ref(score):
    s = score - jnp.max(score, axis=-1, keepdims=True)
    k = -jnp.sort(-s, axis=-1)
    cs = jnp.cumsum(k, axis=-1) - 1.0
    ar = jnp.arange(1, s.shape[-1] + 1, dtype=s.dtype)
    supp = ar * k > cs
    K = jnp.sum(supp, axis=-1, keepdims=True).astype(jnp.int32)
    tau = jnp.take_along_axis(cs, K - 1, axis=-1) / K.astype(s.dtype)
    return jnp.maximum(s - tau, 0.0)


def hspa_ref(x_nchw, params, res_scale=1.0):
    N, C, H, W = x_nchw.shape
    L = H * W
    x = jnp.transpose(x_nchw, (0, 2, 3, 1)).reshape(N, L, C).astype(jnp.float32)

    def prelu(v, a):
        return jnp.where(v >= 0, v, a * v)

    hp = "highest"
    e1 = prelu(jnp.einsum("nlc,cd->nld", x, params["w1"], precision=hp)
               + params["b1"], params["alpha"][0])
    e2 = prelu(jnp.einsum("nlc,cd->nld", x, params["w2"], precision=hp)
               + params["b2"], params["alpha"][1])
    xa = prelu(jnp.einsum("nlc,cd->nld", x, params["wa"], precision=hp)
               + params["ba"], params["alpha"][2])
    score = jnp.einsum("nld,nmd->nlm", e1, e2, precision=hp)
    p = sparsemax_ref(score)
    out = jnp.einsum("nlm,nmc->nlc", p, xa, precision=hp)
    y = res_scale * out + x
    return jnp.transpose(y.reshape(N, H, W, C), (0, 3, 1, 2))


if __name__ == "__main__":
    key = jax.random.PRNGKey(0)
    kx, kp = jax.random.split(key)
    # channel=16, reduction=2 -> Cr=8; H=W=16 -> L=256 (lane-dense tiles)
    N, C, H, W = 2, 16, 16, 16
    x = jax.random.normal(kx, (N, C, H, W), jnp.float32)
    params = init_params(kp, C, 2)

    y = hspa_forward(x, params, res_scale=1.0)
    jax.block_until_ready(y)

    y_ref = hspa_ref(x, params, res_scale=1.0)
    np.testing.assert_allclose(np.asarray(y), np.asarray(y_ref),
                               rtol=2e-2, atol=2e-2)
    print("KERNEL_OK")
</pallas_src>

<mosaic_0001>
module attributes {stable_mosaic.version = 11 : i64} {
  func.func @hspa_kernel(%arg0: i32, %arg1: memref<16x256xf32, #tpu.memory_space<vmem>>, %arg2: memref<32x16xf32, #tpu.memory_space<vmem>>, %arg3: memref<32x1xf32, #tpu.memory_space<vmem>>, %arg4: memref<32x1xf32, #tpu.memory_space<vmem>>, %arg5: memref<16x256xf32, #tpu.memory_space<vmem>>, %arg6: memref<8x256xbf16, #tpu.memory_space<vmem>>, %arg7: memref<8x256xbf16, #tpu.memory_space<vmem>>, %arg8: memref<16x256xbf16, #tpu.memory_space<vmem>>, %arg9: memref<256x256xf32, #tpu.memory_space<vmem>>, %arg10: memref<256x256xbf16, #tpu.memory_space<vmem>>) attributes {dimension_semantics = [#tpu.dimension_semantics<parallel>], iteration_bounds = array<i64: 2>, scalar_prefetch = 0 : i64, scratch_operands = 5 : i64, tpu.core_type = #tpu.core_type<tc>, window_params = [{transform_indices = @transform_0, window_bounds = array<i64: 16, 256>}, {pipeline_mode = #tpu.pipeline_mode<synchronous>, transform_indices = @transform_1, window_bounds = array<i64: 32, 16>}, {pipeline_mode = #tpu.pipeline_mode<synchronous>, transform_indices = @transform_2, window_bounds = array<i64: 32, 1>}, {pipeline_mode = #tpu.pipeline_mode<synchronous>, transform_indices = @transform_3, window_bounds = array<i64: 32, 1>}, {transform_indices = @transform_4, window_bounds = array<i64: 16, 256>}]} {
    %c0 = arith.constant 0 : index
    %c0_0 = arith.constant 0 : index
    %0 = vector.load %arg2[%c0, %c0_0] : memref<32x16xf32, #tpu.memory_space<vmem>>, vector<32x16xf32>
    %c0_1 = arith.constant 0 : index
    %c0_2 = arith.constant 0 : index
    %1 = vector.load %arg1[%c0_1, %c0_2] : memref<16x256xf32, #tpu.memory_space<vmem>>, vector<16x256xf32>
    %cst = arith.constant dense<0.000000e+00> : vector<32x256xf32>
    %2 = tpu.matmul %0, %1, %cst {dimension_numbers = #tpu.dot_dimension_numbers<[1], [0], [0], [1], [0, 0, 1, 1], [], []>} : vector<32x16xf32>, vector<16x256xf32>, vector<32x256xf32> -> vector<32x256xf32>
    %c0_3 = arith.constant 0 : index
    %c0_4 = arith.constant 0 : index
    %3 = vector.load %arg3[%c0_3, %c0_4] : memref<32x1xf32, #tpu.memory_space<vmem>>, vector<32x1xf32>
    %4 = vector.broadcast %3 : vector<32x1xf32> to vector<32x256xf32>
    %5 = arith.addf %2, %4 : vector<32x256xf32>
    %cst_5 = arith.constant 0.000000e+00 : f32
    %6 = vector.broadcast %cst_5 : f32 to vector<32x256xf32>
    %7 = arith.cmpf oge, %5, %6 : vector<32x256xf32>
    %c0_6 = arith.constant 0 : index
    %c0_7 = arith.constant 0 : index
    %8 = vector.load %arg4[%c0_6, %c0_7] : memref<32x1xf32, #tpu.memory_space<vmem>>, vector<32x1xf32>
    %9 = vector.broadcast %8 : vector<32x1xf32> to vector<32x256xf32>
    %10 = arith.mulf %9, %5 : vector<32x256xf32>
    %11 = arith.select %7, %5, %10 : vector<32x256xi1>, vector<32x256xf32>
    %12 = vector.extract_strided_slice %11 {offsets = [0, 0], sizes = [8, 256], strides = [1, 1]} : vector<32x256xf32> to vector<8x256xf32>
    %13 = arith.truncf %12 : vector<8x256xf32> to vector<8x256xbf16>
    %c0_8 = arith.constant 0 : index
    %c0_9 = arith.constant 0 : index
    %14 = vector.load %arg6[%c0_8, %c0_9] : memref<8x256xbf16, #tpu.memory_space<vmem>>, vector<8x256xbf16>
    tpu.vector_store %arg6[%c0_8, %c0_9], %13 {strides = array<i32>} : memref<8x256xbf16, #tpu.memory_space<vmem>>, vector<8x256xbf16>,
    %15 = vector.extract_strided_slice %11 {offsets = [8, 0], sizes = [8, 256], strides = [1, 1]} : vector<32x256xf32> to vector<8x256xf32>
    %16 = arith.truncf %15 : vector<8x256xf32> to vector<8x256xbf16>
    %c0_10 = arith.constant 0 : index
    %c0_11 = arith.constant 0 : index
    %17 = vector.load %arg7[%c0_10, %c0_11] : memref<8x256xbf16, #tpu.memory_space<vmem>>, vector<8x256xbf16>
    tpu.vector_store %arg7[%c0_10, %c0_11], %16 {strides = array<i32>} : memref<8x256xbf16, #tpu.memory_space<vmem>>, vector<8x256xbf16>,
    %18 = vector.extract_strided_slice %11 {offsets = [16, 0], sizes = [16, 256], strides = [1, 1]} : vector<32x256xf32> to vector<16x256xf32>
    %19 = arith.truncf %18 : vector<16x256xf32> to vector<16x256xbf16>
    %c0_12 = arith.constant 0 : index
    %c0_13 = arith.constant 0 : index
    %20 = vector.load %arg8[%c0_12, %c0_13] : memref<16x256xbf16, #tpu.memory_space<vmem>>, vector<16x256xbf16>
    tpu.vector_store %arg8[%c0_12, %c0_13], %19 {strides = array<i32>} : memref<16x256xbf16, #tpu.memory_space<vmem>>, vector<16x256xbf16>,
    %c0_14 = arith.constant 0 : index
    %c0_15 = arith.constant 0 : index
    %21 = vector.load %arg6[%c0_14, %c0_15] : memref<8x256xbf16, #tpu.memory_space<vmem>>, vector<8x256xbf16>
    %c0_16 = arith.constant 0 : index
    %c0_17 = arith.constant 0 : index
    %22 = vector.load %arg7[%c0_16, %c0_17] : memref<8x256xbf16, #tpu.memory_space<vmem>>, vector<8x256xbf16>
    %cst_18 = arith.constant dense<0.000000e+00> : vector<256x256xf32>
    %23 = tpu.matmul %22, %21, %cst_18 {dimension_numbers = #tpu.dot_dimension_numbers<[0], [0], [1], [1], [0, 1, 1, 1], [], []>} : vector<8x256xbf16>, vector<8x256xbf16>, vector<256x256xf32> -> vector<256x256xf32>
    %cst_19 = arith.constant dense<0xFF800000> : vector<256xf32>
    %24 = vector.multi_reduction <maximumf>, %23, %cst_19 [0] : vector<256x256xf32> to vector<256xf32>
    %25 = vector.shape_cast %24 : vector<256xf32> to vector<1x256xf32>
    %26 = vector.broadcast %25 : vector<1x256xf32> to vector<256x256xf32>
    %27 = arith.subf %23, %26 : vector<256x256xf32>
    %c0_20 = arith.constant 0 : index
    %c0_21 = arith.constant 0 : index
    %28 = vector.load %arg9[%c0_20, %c0_21] : memref<256x256xf32, #tpu.memory_space<vmem>>, vector<256x256xf32>
    tpu.vector_store %arg9[%c0_20, %c0_21], %27 {strides = array<i32>} : memref<256x256xf32, #tpu.memory_space<vmem>>, vector<256x256xf32>,
    %cst_22 = arith.constant -1.000000e+00 : f32
    %29 = vector.broadcast %cst_22 : f32 to vector<1x256xf32>
    %cst_23 = arith.constant 0.000000e+00 : f32
    %30 = vector.broadcast %cst_23 : f32 to vector<1x256xf32>
    %c0_i32 = arith.constant 0 : i32
    %31 = arith.addf %29, %30 : vector<1x256xf32>
    %cst_24 = arith.constant 5.000000e-01 : f32
    %32 = vector.broadcast %cst_24 : f32 to vector<1x256xf32>
    %33 = arith.mulf %32, %31 : vector<1x256xf32>
    %c0_25 = arith.constant 0 : index
    %c0_26 = arith.constant 0 : index
    %34 = vector.load %arg9[%c0_25, %c0_26] : memref<256x256xf32, #tpu.memory_space<vmem>>, vector<256x256xf32>
    %35 = vector.broadcast %33 : vector<1x256xf32> to vector<256x256xf32>
    %36 = arith.subf %34, %35 : vector<256x256xf32>
    %cst_27 = arith.constant 0.000000e+00 : f32
    %37 = vector.broadcast %cst_27 : f32 to vector<256x256xf32>
    %38 = arith.maximumf %36, %37 : vector<256x256xf32>
    %cst_28 = arith.constant dense<0.000000e+00> : vector<256xf32>
    %39 = vector.multi_reduction <add>, %38, %cst_28 [0] : vector<256x256xf32> to vector<256xf32>
    %40 = vector.shape_cast %39 : vector<256xf32> to vector<1x256xf32>
    %cst_29 = arith.constant 1.000000e+00 : f32
    %41 = vector.broadcast %cst_29 : f32 to vector<1x256xf32>
    %42 = arith.cmpf oge, %40, %41 : vector<1x256xf32>
    %43 = arith.select %42, %33, %29 : vector<1x256xi1>, vector<1x256xf32>
    %44 = arith.select %42, %30, %33 : vector<1x256xi1>, vector<1x256xf32>
    %c1_i32 = arith.constant 1 : i32
    %45 = arith.addf %43, %44 : vector<1x256xf32>
    %cst_30 = arith.constant 5.000000e-01 : f32
    %46 = vector.broadcast %cst_30 : f32 to vector<1x256xf32>
    %47 = arith.mulf %46, %45 : vector<1x256xf32>
    %c0_31 = arith.constant 0 : index
    %c0_32 = arith.constant 0 : index
    %48 = vector.load %arg9[%c0_31, %c0_32] : memref<256x256xf32, #tpu.memory_space<vmem>>, vector<256x256xf32>
    %49 = vector.broadcast %47 : vector<1x256xf32> to vector<256x256xf32>
    %50 = arith.subf %48, %49 : vector<256x256xf32>
    %cst_33 = arith.constant 0.000000e+00 : f32
    %51 = vector.broadcast %cst_33 : f32 to vector<256x256xf32>
    %52 = arith.maximumf %50, %51 : vector<256x256xf32>
    %cst_34 = arith.constant dense<0.000000e+00> : vector<256xf32>
    %53 = vector.multi_reduction <add>, %52, %cst_34 [0] : vector<256x256xf32> to vector<256xf32>
    %54 = vector.shape_cast %53 : vector<256xf32> to vector<1x256xf32>
    %cst_35 = arith.constant 1.000000e+00 : f32
    %55 = vector.broadcast %cst_35 : f32 to vector<1x256xf32>
    %56 = arith.cmpf oge, %54, %55 : vector<1x256xf32>
    %57 = arith.select %56, %47, %43 : vector<1x256xi1>, vector<1x256xf32>
    %58 = arith.select %56, %44, %47 : vector<1x256xi1>, vector<1x256xf32>
    %c2_i32 = arith.constant 2 : i32
    %59 = arith.addf %57, %58 : vector<1x256xf32>
    %cst_36 = arith.constant 5.000000e-01 : f32
    %60 = vector.broadcast %cst_36 : f32 to vector<1x256xf32>
    %61 = arith.mulf %60, %59 : vector<1x256xf32>
    %c0_37 = arith.constant 0 : index
    %c0_38 = arith.constant 0 : index
    %62 = vector.load %arg9[%c0_37, %c0_38] : memref<256x256xf32, #tpu.memory_space<vmem>>, vector<256x256xf32>
    %63 = vector.broadcast %61 : vector<1x256xf32> to vector<256x256xf32>
    %64 = arith.subf %62, %63 : vector<256x256xf32>
    %cst_39 = arith.constant 0.000000e+00 : f32
    %65 = vector.broadcast %cst_39 : f32 to vector<256x256xf32>
    %66 = arith.maximumf %64, %65 : vector<256x256xf32>
    %cst_40 = arith.constant dense<0.000000e+00> : vector<256xf32>
    %67 = vector.multi_reduction <add>, %66, %cst_40 [0] : vector<256x256xf32> to vector<256xf32>
    %68 = vector.shape_cast %67 : vector<256xf32> to vector<1x256xf32>
    %cst_41 = arith.constant 1.000000e+00 : f32
    %69 = vector.broadcast %cst_41 : f32 to vector<1x256xf32>
    %70 = arith.cmpf oge, %68, %69 : vector<1x256xf32>
    %71 = arith.select %70, %61, %57 : vector<1x256xi1>, vector<1x256xf32>
    %72 = arith.select %70, %58, %61 : vector<1x256xi1>, vector<1x256xf32>
    %c3_i32 = arith.constant 3 : i32
    %73 = arith.addf %71, %72 : vector<1x256xf32>
    %cst_42 = arith.constant 5.000000e-01 : f32
    %74 = vector.broadcast %cst_42 : f32 to vector<1x256xf32>
    %75 = arith.mulf %74, %73 : vector<1x256xf32>
    %c0_43 = arith.constant 0 : index
    %c0_44 = arith.constant 0 : index
    %76 = vector.load %arg9[%c0_43, %c0_44] : memref<256x256xf32, #tpu.memory_space<vmem>>, vector<256x256xf32>
    %77 = vector.broadcast %75 : vector<1x256xf32> to vector<256x256xf32>
    %78 = arith.subf %76, %77 : vector<256x256xf32>
    %cst_45 = arith.constant 0.000000e+00 : f32
    %79 = vector.broadcast %cst_45 : f32 to vector<256x256xf32>
    %80 = arith.maximumf %78, %79 : vector<256x256xf32>
    %cst_46 = arith.constant dense<0.000000e+00> : vector<256xf32>
    %81 = vector.multi_reduction <add>, %80, %cst_46 [0] : vector<256x256xf32> to vector<256xf32>
    %82 = vector.shape_cast %81 : vector<256xf32> to vector<1x256xf32>
    %cst_47 = arith.constant 1.000000e+00 : f32
    %83 = vector.broadcast %cst_47 : f32 to vector<1x256xf32>
    %84 = arith.cmpf oge, %82, %83 : vector<1x256xf32>
    %85 = arith.select %84, %75, %71 : vector<1x256xi1>, vector<1x256xf32>
    %86 = arith.select %84, %72, %75 : vector<1x256xi1>, vector<1x256xf32>
    %c4_i32 = arith.constant 4 : i32
    %87 = arith.addf %85, %86 : vector<1x256xf32>
    %cst_48 = arith.constant 5.000000e-01 : f32
    %88 = vector.broadcast %cst_48 : f32 to vector<1x256xf32>
    %89 = arith.mulf %88, %87 : vector<1x256xf32>
    %c0_49 = arith.constant 0 : index
    %c0_50 = arith.constant 0 : index
    %90 = vector.load %arg9[%c0_49, %c0_50] : memref<256x256xf32, #tpu.memory_space<vmem>>, vector<256x256xf32>
    %91 = vector.broadcast %89 : vector<1x256xf32> to vector<256x256xf32>
    %92 = arith.subf %90, %91 : vector<256x256xf32>
    %cst_51 = arith.constant 0.000000e+00 : f32
    %93 = vector.broadcast %cst_51 : f32 to vector<256x256xf32>
    %94 = arith.maximumf %92, %93 : vector<256x256xf32>
    %cst_52 = arith.constant dense<0.000000e+00> : vector<256xf32>
    %95 = vector.multi_reduction <add>, %94, %cst_52 [0] : vector<256x256xf32> to vector<256xf32>
    %96 = vector.shape_cast %95 : vector<256xf32> to vector<1x256xf32>
    %cst_53 = arith.constant 1.000000e+00 : f32
    %97 = vector.broadcast %cst_53 : f32 to vector<1x256xf32>
    %98 = arith.cmpf oge, %96, %97 : vector<1x256xf32>
    %99 = arith.select %98, %89, %85 : vector<1x256xi1>, vector<1x256xf32>
    %100 = arith.select %98, %86, %89 : vector<1x256xi1>, vector<1x256xf32>
    %c5_i32 = arith.constant 5 : i32
    %101 = arith.addf %99, %100 : vector<1x256xf32>
    %cst_54 = arith.constant 5.000000e-01 : f32
    %102 = vector.broadcast %cst_54 : f32 to vector<1x256xf32>
    %103 = arith.mulf %102, %101 : vector<1x256xf32>
    %c0_55 = arith.constant 0 : index
    %c0_56 = arith.constant 0 : index
    %104 = vector.load %arg9[%c0_55, %c0_56] : memref<256x256xf32, #tpu.memory_space<vmem>>, vector<256x256xf32>
    %105 = vector.broadcast %103 : vector<1x256xf32> to vector<256x256xf32>
    %106 = arith.subf %104, %105 : vector<256x256xf32>
    %cst_57 = arith.constant 0.000000e+00 : f32
    %107 = vector.broadcast %cst_57 : f32 to vector<256x256xf32>
    %108 = arith.maximumf %106, %107 : vector<256x256xf32>
    %cst_58 = arith.constant dense<0.000000e+00> : vector<256xf32>
    %109 = vector.multi_reduction <add>, %108, %cst_58 [0] : vector<256x256xf32> to vector<256xf32>
    %110 = vector.shape_cast %109 : vector<256xf32> to vector<1x256xf32>
    %cst_59 = arith.constant 1.000000e+00 : f32
    %111 = vector.broadcast %cst_59 : f32 to vector<1x256xf32>
    %112 = arith.cmpf oge, %110, %111 : vector<1x256xf32>
    %113 = arith.select %112, %103, %99 : vector<1x256xi1>, vector<1x256xf32>
    %114 = arith.select %112, %100, %103 : vector<1x256xi1>, vector<1x256xf32>
    %c6_i32 = arith.constant 6 : i32
    %115 = arith.addf %113, %114 : vector<1x256xf32>
    %cst_60 = arith.constant 5.000000e-01 : f32
    %116 = vector.broadcast %cst_60 : f32 to vector<1x256xf32>
    %117 = arith.mulf %116, %115 : vector<1x256xf32>
    %c0_61 = arith.constant 0 : index
    %c0_62 = arith.constant 0 : index
    %118 = vector.load %arg9[%c0_61, %c0_62] : memref<256x256xf32, #tpu.memory_space<vmem>>, vector<256x256xf32>
    %119 = vector.broadcast %117 : vector<1x256xf32> to vector<256x256xf32>
    %120 = arith.subf %118, %119 : vector<256x256xf32>
    %cst_63 = arith.constant 0.000000e+00 : f32
    %121 = vector.broadcast %cst_63 : f32 to vector<256x256xf32>
    %122 = arith.maximumf %120, %121 : vector<256x256xf32>
    %cst_64 = arith.constant dense<0.000000e+00> : vector<256xf32>
    %123 = vector.multi_reduction <add>, %122, %cst_64 [0] : vector<256x256xf32> to vector<256xf32>
    %124 = vector.shape_cast %123 : vector<256xf32> to vector<1x256xf32>
    %cst_65 = arith.constant 1.000000e+00 : f32
    %125 = vector.broadcast %cst_65 : f32 to vector<1x256xf32>
    %126 = arith.cmpf oge, %124, %125 : vector<1x256xf32>
    %127 = arith.select %126, %117, %113 : vector<1x256xi1>, vector<1x256xf32>
    %128 = arith.select %126, %114, %117 : vector<1x256xi1>, vector<1x256xf32>
    %c7_i32 = arith.constant 7 : i32
    %129 = arith.addf %127, %128 : vector<1x256xf32>
    %cst_66 = arith.constant 5.000000e-01 : f32
    %130 = vector.broadcast %cst_66 : f32 to vector<1x256xf32>
    %131 = arith.mulf %130, %129 : vector<1x256xf32>
    %c0_67 = arith.constant 0 : index
    %c0_68 = arith.constant 0 : index
    %132 = vector.load %arg9[%c0_67, %c0_68] : memref<256x256xf32, #tpu.memory_space<vmem>>, vector<256x256xf32>
    %133 = vector.broadcast %131 : vector<1x256xf32> to vector<256x256xf32>
    %134 = arith.subf %132, %133 : vector<256x256xf32>
    %cst_69 = arith.constant 0.000000e+00 : f32
    %135 = vector.broadcast %cst_69 : f32 to vector<256x256xf32>
    %136 = arith.maximumf %134, %135 : vector<256x256xf32>
    %cst_70 = arith.constant dense<0.000000e+00> : vector<256xf32>
    %137 = vector.multi_reduction <add>, %136, %cst_70 [0] : vector<256x256xf32> to vector<256xf32>
    %138 = vector.shape_cast %137 : vector<256xf32> to vector<1x256xf32>
    %cst_71 = arith.constant 1.000000e+00 : f32
    %139 = vector.broadcast %cst_71 : f32 to vector<1x256xf32>
    %140 = arith.cmpf oge, %138, %139 : vector<1x256xf32>
    %141 = arith.select %140, %131, %127 : vector<1x256xi1>, vector<1x256xf32>
    %142 = arith.select %140, %128, %131 : vector<1x256xi1>, vector<1x256xf32>
    %c8_i32 = arith.constant 8 : i32
    %143 = arith.addf %141, %142 : vector<1x256xf32>
    %cst_72 = arith.constant 5.000000e-01 : f32
    %144 = vector.broadcast %cst_72 : f32 to vector<1x256xf32>
    %145 = arith.mulf %144, %143 : vector<1x256xf32>
    %c0_73 = arith.constant 0 : index
    %c0_74 = arith.constant 0 : index
    %146 = vector.load %arg9[%c0_73, %c0_74] : memref<256x256xf32, #tpu.memory_space<vmem>>, vector<256x256xf32>
    %147 = vector.broadcast %145 : vector<1x256xf32> to vector<256x256xf32>
    %148 = arith.subf %146, %147 : vector<256x256xf32>
    %cst_75 = arith.constant 0.000000e+00 : f32
    %149 = vector.broadcast %cst_75 : f32 to vector<256x256xf32>
    %150 = arith.maximumf %148, %149 : vector<256x256xf32>
    %cst_76 = arith.constant dense<0.000000e+00> : vector<256xf32>
    %151 = vector.multi_reduction <add>, %150, %cst_76 [0] : vector<256x256xf32> to vector<256xf32>
    %152 = vector.shape_cast %151 : vector<256xf32> to vector<1x256xf32>
    %cst_77 = arith.constant 1.000000e+00 : f32
    %153 = vector.broadcast %cst_77 : f32 to vector<1x256xf32>
    %154 = arith.cmpf oge, %152, %153 : vector<1x256xf32>
    %155 = arith.select %154, %145, %141 : vector<1x256xi1>, vector<1x256xf32>
    %156 = arith.select %154, %142, %145 : vector<1x256xi1>, vector<1x256xf32>
    %c9_i32 = arith.constant 9 : i32
    %157 = arith.addf %155, %156 : vector<1x256xf32>
    %cst_78 = arith.constant 5.000000e-01 : f32
    %158 = vector.broadcast %cst_78 : f32 to vector<1x256xf32>
    %159 = arith.mulf %158, %157 : vector<1x256xf32>
    %c0_79 = arith.constant 0 : index
    %c0_80 = arith.constant 0 : index
    %160 = vector.load %arg9[%c0_79, %c0_80] : memref<256x256xf32, #tpu.memory_space<vmem>>, vector<256x256xf32>
    %161 = vector.broadcast %159 : vector<1x256xf32> to vector<256x256xf32>
    %162 = arith.subf %160, %161 : vector<256x256xf32>
    %cst_81 = arith.constant 0.000000e+00 : f32
    %163 = vector.broadcast %cst_81 : f32 to vector<256x256xf32>
    %164 = arith.maximumf %162, %163 : vector<256x256xf32>
    %cst_82 = arith.constant dense<0.000000e+00> : vector<256xf32>
    %165 = vector.multi_reduction <add>, %164, %cst_82 [0] : vector<256x256xf32> to vector<256xf32>
    %166 = vector.shape_cast %165 : vector<256xf32> to vector<1x256xf32>
    %cst_83 = arith.constant 1.000000e+00 : f32
    %167 = vector.broadcast %cst_83 : f32 to vector<1x256xf32>
    %168 = arith.cmpf oge, %166, %167 : vector<1x256xf32>
    %169 = arith.select %168, %159, %155 : vector<1x256xi1>, vector<1x256xf32>
    %170 = arith.select %168, %156, %159 : vector<1x256xi1>, vector<1x256xf32>
    %c10_i32 = arith.constant 10 : i32
    %171 = arith.addf %169, %170 : vector<1x256xf32>
    %cst_84 = arith.constant 5.000000e-01 : f32
    %172 = vector.broadcast %cst_84 : f32 to vector<1x256xf32>
    %173 = arith.mulf %172, %171 : vector<1x256xf32>
    %c0_85 = arith.constant 0 : index
    %c0_86 = arith.constant 0 : index
    %174 = vector.load %arg9[%c0_85, %c0_86] : memref<256x256xf32, #tpu.memory_space<vmem>>, vector<256x256xf32>
    %175 = vector.broadcast %173 : vector<1x256xf32> to vector<256x256xf32>
    %176 = arith.subf %174, %175 : vector<256x256xf32>
    %cst_87 = arith.constant 0.000000e+00 : f32
    %177 = vector.broadcast %cst_87 : f32 to vector<256x256xf32>
    %178 = arith.maximumf %176, %177 : vector<256x256xf32>
    %cst_88 = arith.constant dense<0.000000e+00> : vector<256xf32>
    %179 = vector.multi_reduction <add>, %178, %cst_88 [0] : vector<256x256xf32> to vector<256xf32>
    %180 = vector.shape_cast %179 : vector<256xf32> to vector<1x256xf32>
    %cst_89 = arith.constant 1.000000e+00 : f32
    %181 = vector.broadcast %cst_89 : f32 to vector<1x256xf32>
    %182 = arith.cmpf oge, %180, %181 : vector<1x256xf32>
    %183 = arith.select %182, %173, %169 : vector<1x256xi1>, vector<1x256xf32>
    %184 = arith.select %182, %170, %173 : vector<1x256xi1>, vector<1x256xf32>
    %c11_i32 = arith.constant 11 : i32
    %185 = arith.addf %183, %184 : vector<1x256xf32>
    %cst_90 = arith.constant 5.000000e-01 : f32
    %186 = vector.broadcast %cst_90 : f32 to vector<1x256xf32>
    %187 = arith.mulf %186, %185 : vector<1x256xf32>
    %c0_91 = arith.constant 0 : index
    %c0_92 = arith.constant 0 : index
    %188 = vector.load %arg9[%c0_91, %c0_92] : memref<256x256xf32, #tpu.memory_space<vmem>>, vector<256x256xf32>
    %189 = vector.broadcast %187 : vector<1x256xf32> to vector<256x256xf32>
    %190 = arith.subf %188, %189 : vector<256x256xf32>
    %cst_93 = arith.constant 0.000000e+00 : f32
    %191 = vector.broadcast %cst_93 : f32 to vector<256x256xf32>
    %192 = arith.maximumf %190, %191 : vector<256x256xf32>
    %cst_94 = arith.constant dense<0.000000e+00> : vector<256xf32>
    %193 = vector.multi_reduction <add>, %192, %cst_94 [0] : vector<256x256xf32> to vector<256xf32>
    %194 = vector.shape_cast %193 : vector<256xf32> to vector<1x256xf32>
    %cst_95 = arith.constant 1.000000e+00 : f32
    %195 = vector.broadcast %cst_95 : f32 to vector<1x256xf32>
    %196 = arith.cmpf oge, %194, %195 : vector<1x256xf32>
    %197 = arith.select %196, %187, %183 : vector<1x256xi1>, vector<1x256xf32>
    %198 = arith.select %196, %184, %187 : vector<1x256xi1>, vector<1x256xf32>
    %c12_i32 = arith.constant 12 : i32
    %199 = arith.addf %197, %198 : vector<1x256xf32>
    %cst_96 = arith.constant 5.000000e-01 : f32
    %200 = vector.broadcast %cst_96 : f32 to vector<1x256xf32>
    %201 = arith.mulf %200, %199 : vector<1x256xf32>
    %c0_97 = arith.constant 0 : index
    %c0_98 = arith.constant 0 : index
    %202 = vector.load %arg9[%c0_97, %c0_98] : memref<256x256xf32, #tpu.memory_space<vmem>>, vector<256x256xf32>
    %203 = vector.broadcast %201 : vector<1x256xf32> to vector<256x256xf32>
    %204 = arith.subf %202, %203 : vector<256x256xf32>
    %cst_99 = arith.constant 0.000000e+00 : f32
    %205 = vector.broadcast %cst_99 : f32 to vector<256x256xf32>
    %206 = arith.maximumf %204, %205 : vector<256x256xf32>
    %cst_100 = arith.constant dense<0.000000e+00> : vector<256xf32>
    %207 = vector.multi_reduction <add>, %206, %cst_100 [0] : vector<256x256xf32> to vector<256xf32>
    %208 = vector.shape_cast %207 : vector<256xf32> to vector<1x256xf32>
    %cst_101 = arith.constant 1.000000e+00 : f32
    %209 = vector.broadcast %cst_101 : f32 to vector<1x256xf32>
    %210 = arith.cmpf oge, %208, %209 : vector<1x256xf32>
    %211 = arith.select %210, %201, %197 : vector<1x256xi1>, vector<1x256xf32>
    %212 = arith.select %210, %198, %201 : vector<1x256xi1>, vector<1x256xf32>
    %c13_i32 = arith.constant 13 : i32
    %213 = arith.addf %211, %212 : vector<1x256xf32>
    %cst_102 = arith.constant 5.000000e-01 : f32
    %214 = vector.broadcast %cst_102 : f32 to vector<1x256xf32>
    %215 = arith.mulf %214, %213 : vector<1x256xf32>
    %c0_103 = arith.constant 0 : index
    %c0_104 = arith.constant 0 : index
    %216 = vector.load %arg9[%c0_103, %c0_104] : memref<256x256xf32, #tpu.memory_space<vmem>>, vector<256x256xf32>
    %217 = vector.broadcast %215 : vector<1x256xf32> to vector<256x256xf32>
    %218 = arith.subf %216, %217 : vector<256x256xf32>
    %cst_105 = arith.constant 0.000000e+00 : f32
    %219 = vector.broadcast %cst_105 : f32 to vector<256x256xf32>
    %220 = arith.maximumf %218, %219 : vector<256x256xf32>
    %cst_106 = arith.constant dense<0.000000e+00> : vector<256xf32>
    %221 = vector.multi_reduction <add>, %220, %cst_106 [0] : vector<256x256xf32> to vector<256xf32>
    %222 = vector.shape_cast %221 : vector<256xf32> to vector<1x256xf32>
    %cst_107 = arith.constant 1.000000e+00 : f32
    %223 = vector.broadcast %cst_107 : f32 to vector<1x256xf32>
    %224 = arith.cmpf oge, %222, %223 : vector<1x256xf32>
    %225 = arith.select %224, %215, %211 : vector<1x256xi1>, vector<1x256xf32>
    %226 = arith.select %224, %212, %215 : vector<1x256xi1>, vector<1x256xf32>
    %c14_i32 = arith.constant 14 : i32
    %227 = arith.addf %225, %226 : vector<1x256xf32>
    %cst_108 = arith.constant 5.000000e-01 : f32
    %228 = vector.broadcast %cst_108 : f32 to vector<1x256xf32>
    %229 = arith.mulf %228, %227 : vector<1x256xf32>
    %c0_109 = arith.constant 0 : index
    %c0_110 = arith.constant 0 : index
    %230 = vector.load %arg9[%c0_109, %c0_110] : memref<256x256xf32, #tpu.memory_space<vmem>>, vector<256x256xf32>
    %231 = vector.broadcast %229 : vector<1x256xf32> to vector<256x256xf32>
    %232 = arith.subf %230, %231 : vector<256x256xf32>
    %cst_111 = arith.constant 0.000000e+00 : f32
    %233 = vector.broadcast %cst_111 : f32 to vector<256x256xf32>
    %234 = arith.maximumf %232, %233 : vector<256x256xf32>
    %cst_112 = arith.constant dense<0.000000e+00> : vector<256xf32>
    %235 = vector.multi_reduction <add>, %234, %cst_112 [0] : vector<256x256xf32> to vector<256xf32>
    %236 = vector.shape_cast %235 : vector<256xf32> to vector<1x256xf32>
    %cst_113 = arith.constant 1.000000e+00 : f32
    %237 = vector.broadcast %cst_113 : f32 to vector<1x256xf32>
    %238 = arith.cmpf oge, %236, %237 : vector<1x256xf32>
    %239 = arith.select %238, %229, %225 : vector<1x256xi1>, vector<1x256xf32>
    %240 = arith.select %238, %226, %229 : vector<1x256xi1>, vector<1x256xf32>
    %c15_i32 = arith.constant 15 : i32
    %241 = arith.addf %239, %240 : vector<1x256xf32>
    %cst_114 = arith.constant 5.000000e-01 : f32
    %242 = vector.broadcast %cst_114 : f32 to vector<1x256xf32>
    %243 = arith.mulf %242, %241 : vector<1x256xf32>
    %c0_115 = arith.constant 0 : index
    %c0_116 = arith.constant 0 : index
    %244 = vector.load %arg9[%c0_115, %c0_116] : memref<256x256xf32, #tpu.memory_space<vmem>>, vector<256x256xf32>
    %245 = vector.broadcast %243 : vector<1x256xf32> to vector<256x256xf32>
    %246 = arith.subf %244, %245 : vector<256x256xf32>
    %cst_117 = arith.constant 0.000000e+00 : f32
    %247 = vector.broadcast %cst_117 : f32 to vector<256x256xf32>
    %248 = arith.maximumf %246, %247 : vector<256x256xf32>
    %cst_118 = arith.constant dense<0.000000e+00> : vector<256xf32>
    %249 = vector.multi_reduction <add>, %248, %cst_118 [0] : vector<256x256xf32> to vector<256xf32>
    %250 = vector.shape_cast %249 : vector<256xf32> to vector<1x256xf32>
    %cst_119 = arith.constant 1.000000e+00 : f32
    %251 = vector.broadcast %cst_119 : f32 to vector<1x256xf32>
    %252 = arith.cmpf oge, %250, %251 : vector<1x256xf32>
    %253 = arith.select %252, %243, %239 : vector<1x256xi1>, vector<1x256xf32>
    %254 = arith.select %252, %240, %243 : vector<1x256xi1>, vector<1x256xf32>
    %c0_120 = arith.constant 0 : index
    %c0_121 = arith.constant 0 : index
    %255 = vector.load %arg9[%c0_120, %c0_121] : memref<256x256xf32, #tpu.memory_space<vmem>>, vector<256x256xf32>
    %256 = vector.broadcast %253 : vector<1x256xf32> to vector<256x256xf32>
    %257 = arith.cmpf ogt, %255, %256 : vector<256x256xf32>
    %258 = arith.extui %257 : vector<256x256xi1> to vector<256x256xi32>
    %259 = arith.sitofp %258 : vector<256x256xi32> to vector<256x256xf32>
    %cst_122 = arith.constant dense<0.000000e+00> : vector<256xf32>
    %260 = vector.multi_reduction <add>, %259, %cst_122 [0] : vector<256x256xf32> to vector<256xf32>
    %261 = vector.shape_cast %260 : vector<256xf32> to vector<1x256xf32>
    %262 = arith.mulf %259, %255 : vector<256x256xf32>
    %cst_123 = arith.constant dense<0.000000e+00> : vector<256xf32>
    %263 = vector.multi_reduction <add>, %262, %cst_123 [0] : vector<256x256xf32> to vector<256xf32>
    %264 = vector.shape_cast %263 : vector<256xf32> to vector<1x256xf32>
    %cst_124 = arith.constant 1.000000e+00 : f32
    %265 = vector.broadcast %cst_124 : f32 to vector<1x256xf32>
    %266 = arith.subf %264, %265 : vector<1x256xf32>
    %267 = arith.divf %266, %261 : vector<1x256xf32>
    %268 = vector.broadcast %267 : vector<1x256xf32> to vector<256x256xf32>
    %269 = arith.subf %255, %268 : vector<256x256xf32>
    %cst_125 = arith.constant 0.000000e+00 : f32
    %270 = vector.broadcast %cst_125 : f32 to vector<256x256xf32>
    %271 = arith.maximumf %269, %270 : vector<256x256xf32>
    %272 = arith.truncf %271 : vector<256x256xf32> to vector<256x256xbf16>
    %c0_126 = arith.constant 0 : index
    %c0_127 = arith.constant 0 : index
    %273 = vector.load %arg10[%c0_126, %c0_127] : memref<256x256xbf16, #tpu.memory_space<vmem>>, vector<256x256xbf16>
    tpu.vector_store %arg10[%c0_126, %c0_127], %272 {strides = array<i32>} : memref<256x256xbf16, #tpu.memory_space<vmem>>, vector<256x256xbf16>,
    %c0_128 = arith.constant 0 : index
    %c0_129 = arith.constant 0 : index
    %274 = vector.load %arg8[%c0_128, %c0_129] : memref<16x256xbf16, #tpu.memory_space<vmem>>, vector<16x256xbf16>
    %c0_130 = arith.constant 0 : index
    %c0_131 = arith.constant 0 : index
    %275 = vector.load %arg10[%c0_130, %c0_131] : memref<256x256xbf16, #tpu.memory_space<vmem>>, vector<256x256xbf16>
    %cst_132 = arith.constant dense<0.000000e+00> : vector<16x256xf32>
    %276 = tpu.matmul %274, %275, %cst_132 {dimension_numbers = #tpu.dot_dimension_numbers<[1], [0], [0], [1], [0, 0, 1, 1], [], []>} : vector<16x256xbf16>, vector<256x256xbf16>, vector<16x256xf32> -> vector<16x256xf32>
    %cst_133 = arith.constant 1.000000e+00 : f32
    %277 = vector.broadcast %cst_133 : f32 to vector<16x256xf32>
    %278 = arith.mulf %277, %276 : vector<16x256xf32>
    %c0_134 = arith.constant 0 : index
    %c0_135 = arith.constant 0 : index
    %279 = vector.load %arg1[%c0_134, %c0_135] : memref<16x256xf32, #tpu.memory_space<vmem>>, vector<16x256xf32>
    %280 = arith.addf %278, %279 : vector<16x256xf32>
    %c0_136 = arith.constant 0 : index
    %c0_137 = arith.constant 0 : index
    %281 = vector.load %arg5[%c0_136, %c0_137] : memref<16x256xf32, #tpu.memory_space<vmem>>, vector<16x256xf32>
    tpu.vector_store %arg5[%c0_136, %c0_137], %280 {strides = array<i32>} : memref<16x256xf32, #tpu.memory_space<vmem>>, vector<16x256xf32>,
    return
  }
  func.func @transform_0(%arg0: i32) -> (i32, i32) {
    %c0_i32 = arith.constant 0 : i32
    %c0_i32_0 = arith.constant 0 : i32
    return %c0_i32, %arg0 : i32, i32
  }
  func.func @transform_1(%arg0: i32) -> (i32, i32) {
    %c0_i32 = arith.constant 0 : i32
    %c0_i32_0 = arith.constant 0 : i32
    %c0_i32_1 = arith.constant 0 : i32
    return %c0_i32, %c0_i32_0 : i32, i32
  }
  func.func @transform_2(%arg0: i32) -> (i32, i32) {
    %c0_i32 = arith.constant 0 : i32
    %c0_i32_0 = arith.constant 0 : i32
    %c0_i32_1 = arith.constant 0 : i32
    return %c0_i32, %c0_i32_0 : i32, i32
  }
  func.func @transform_3(%arg0: i32) -> (i32, i32) {
    %c0_i32 = arith.constant 0 : i32
    %c0_i32_0 = arith.constant 0 : i32
    %c0_i32_1 = arith.constant 0 : i32
    return %c0_i32, %c0_i32_0 : i32, i32
  }
  func.func @transform_4(%arg0: i32) -> (i32, i32) {
    %c0_i32 = arith.constant 0 : i32
    %c0_i32_0 = arith.constant 0 : i32
    return %c0_i32, %arg0 : i32, i32
  }
}

</mosaic_0001>

<bundles_post_ra>
// kernel: tpu_custom_call.1
= control target key start
LH: loop header
LB: loop body
LE: loop exit
PB: predicated region body
PF: predicated region fallthrough
CT: control target
= control target key end

     0   :  { %9 = vsyncpa [#allocation9], 0  ;;  %s8794_s0 = inlined_call_operand.vmem [shape: f32[16,512], index: 0, kind: input, shape index: {}]   ;;  %s8795_s1 = inlined_call_operand.vmem [shape: f32[32,16], index: 1, kind: input, shape index: {}]   ;;  %s8796_s2 = inlined_call_operand.vmem [shape: f32[32,1], index: 2, kind: input, shape index: {}]   ;;  %s8797_s3 = inlined_call_operand.vmem [shape: f32[32,1], index: 3, kind: input, shape index: {}]   ;;  %s8798_s4 = inlined_call_operand.hbm [shape: f32[16,512], index: 4, kind: output, shape index: {}]  }
   0x1   :  { %11 = vsyncpa [#allocation9 + $0x1], 0  ;;  %s5477_s15 = smov 0   ;;  %s5479_s16 = smov 0  }
   0x2   :  { %s5481_s17 = smov 0   ;;  %s5483_s18 = smov 0  }
   0x3 LB: > { %s5144_s19 = sadd.s32 4294967295, %s5442_s18   ;;  %s5145_s20 = sadd.s32 4294967294, %s5442_s18   ;;  %s5442_s18 = sphi %s5483_s18, %s9628_s18   ;;  %s5438_s17 = sphi %s5481_s17, %s9627_s17   ;;  %s5434_s16 = sphi %s5479_s16, %s9626_s16   ;;  %s5430_s15 = sphi %s5477_s15, %s9625_s15  }
   0x4   : > { %s5500_s21 = sadd.s32 1, %s5442_s18   ;;  %s24_s22 = sadd.s32 1, %s5438_s17 }
   0x5   : > { %s21_s23 = ssub.s32 %s5442_s18, %s5500_s21  ;;  %p31_p0 = scmp.ne.s32.totalorder %s5438_s17, %s5434_s16 }
   0x6   : > { %p22_p1 = scmp.eq.s32.totalorder %s21_s23, 0  ;;  %p32_p2 = scmp.eq.s32.totalorder %s5442_s18, 0 }
   0x7   : > { %p124_p3 = scmp.eq.s32.totalorder %s5144_s19, 1  ;;  %p129_p4 = scmp.ne.s32.totalorder %s5434_s16, %s5430_s15 }
   0x8   : > { %s5513_s24 = scalar_select %p22_p1, %s5438_s17, %s24_s22  }
   0x9   : > { %p33_p5 = por %p32_p2, %p31_p0  ;;  %p5515_p6 = por %p124_p3, %p31_p0 }
   0xa   : > { %p130_p7 = scmp.eq.s32.totalorder %s5145_s20, 1  ;;  %p5147_p9 = scmp.ge.s32.totalorder %s5442_s18, 2 }
   0xc   : > { %p5519_p8 = por %p130_p7, %p129_p4  ;;  %155 = sbr.rel (%p5147_p9) target bundleno = 26 (0x1a), region = 28 }
  0x13   : > { %158 = sbr.rel (!%p33_p5) target bundleno = 26 (0x1a), region = 32  ;;  %s160_s27 = sand.u32 (%p33_p5), 1, %s5438_s17  }
  0x14   : > { %s5316_s28 = sshll.u32 (%p33_p5), %s5442_s18, 4  ;;  %s5148_s29 = sshll.u32 (%p33_p5), %s160_s27, 5 }
  0x15   : > { %s165_s6 = scalar_lea.vmem (%p33_p5), %s8794_s0, %s5316_s28  ;;  %s162_s7 = scalar_lea.vmem (%p33_p5), [#allocation7], %s5148_s29 }
  0x16   : > { %v178_v0 = vld [vmem:[%s165_s6] sm:$0xff] (%p33_p5)  ;;  %v180_v1 = vld [vmem:[%s165_s6 + $0x8] sm:$0xff] (%p33_p5) }
  0x17   : > { %v182_v2 = vld [vmem:[%s165_s6 + $0x20] sm:$0xff] (%p33_p5)  ;;  %179 = vst [vmem:[%s162_s7] sm:$0xff] (%p33_p5), %v178_v0  ;;  %181 = vst [vmem:[%s162_s7 + $0x8] sm:$0xff] (%p33_p5), %v180_v1  ;;  %v184_v3 = vld [vmem:[%s165_s6 + $0x28] sm:$0xff] (%p33_p5) }
  0x18   : > { %183 = vst [vmem:[%s162_s7 + $0x10] sm:$0xff] (%p33_p5), %v182_v2  ;;  %185 = vst [vmem:[%s162_s7 + $0x18] sm:$0xff] (%p33_p5), %v184_v3 }
  0x1a PF: > { %p5151_p10 = scmp.ge.s32.totalorder %s5442_s18, 1  ;;  %p190_p11 = scmp.lt.s32.totalorder %s5442_s18, 3 }
  0x1c   : > { %p191_p12 = pnand %p5151_p10, %p190_p11 }
  0x1e   : > { %194 = sbr.rel (%p191_p12) target bundleno = 2715 (0xa9b), region = 55 }
  0x25   : > { %s197_s8 = sand.u32 1, %s5434_s16   ;;  %v8799_v4 = vmov 0.0   ;;  %v5445_v5 = vmov 0   ;;  %v234_v6 = vld [vmem:[%s8796_s2 + $0x8] sm:$0xff]  ;;  %v233_v7 = vld [vmem:[%s8796_s2] sm:$0xff]  ;;  %vm257_vm0 = vcmask 130048  }
  0x26   : > { %s5536_s9 = sshll.u32 %s197_s8, 5  ;;  %334 = vmatprep.mubr.f32.mxu0 %v8799_v4  ;;  %5375 = vset.pattern.permute.xlu1 %v5445_v5  ;;  %v367_v8 = vld [vmem:[%s8797_s3] sm:$0xff]  ;;  %v368_v14 = vld [vmem:[%s8797_s3 + $0x8] sm:$0xff]  ;;  %v227_v18 = vld [vmem:[%s8795_s1 + $0x10] sm:$0xff]  ;;  %vm524_vm3 = vcmask 1043456   ;;  %vm475_vm6 = vcmask 64512  }
  0x27   : > { %5374 = vset.pattern.permute.xlu0 %v5445_v5  ;;  %239 = vperm.xlu1 %5375, %v233_v7   ;;  %s5551_s22 = scalar_lea.vmem [#allocation7], %s5536_s9  ;;  %v225_v16 = vld [vmem:[%s8795_s1] sm:$0xff]  ;;  %v226_v17 = vld [vmem:[%s8795_s1 + $0x8] sm:$0xff]  ;;  %v228_v19 = vld [vmem:[%s8795_s1 + $0x18] sm:$0xff]  ;;  %s221_s30 = scalar_lea.vmem [#allocation8], %s5536_s9 }
  0x28   : > { %v230_v9 = vld [vmem:[%s5551_s22 + $0x8] sm:$0xff]  ;;  %v232_v10 = vld [vmem:[%s5551_s22 + $0x18] sm:$0xff]  ;;  %v229_v11 = vld [vmem:[%s5551_s22] sm:$0xff]  ;;  %244 = vperm.xlu0 %5374, %v234_v6   ;;  %563 = vmatprep.mubr.bf16.mxu1 %v5445_v5  ;;  %s5077_s5 = sshll.u32 %s221_s30, 4  ;;  %s5319_s6 = sshll.u32 %s5144_s19, 8  ;;  %s8743_s5 = int_to_ptr.vmem [resolvable:$true] %s5077_s5 }
  0x29   : > { %v5324_v12 = vpack.c.bf16 %v232_v10, %v230_v9  ;;  %v231_v13 = vld [vmem:[%s5551_s22 + $0x10] sm:$0xff]  ;;  %v236_v48 = vld [vmem:[%s8796_s2 + $0x18] sm:$0xff]  ;;  %s8748_s10 = scalar_lea.hbm %s8798_s4, %s5319_s6  ;;  %s8752_s19 = scalar_lea.sflag [#allocation9], %s197_s8 }
  0x2a   : > { %v5326_v15 = vpack.c.bf16 %v231_v13, %v229_v11  ;;  %v370_v50 = vld [vmem:[%s8797_s3 + $0x18] sm:$0xff]  ;;  %v235_v51 = vld [vmem:[%s8796_s2 + $0x10] sm:$0xff]  ;;  %s5448_s11 = smov [#allocation8]  }
  0x2b   : > { %5325 = vmatprep.subr.bf16.mxu0 %v5324_v12  ;;  %373 = vperm.xlu1 %5375, %v367_v8   ;;  %v369_v52 = vld [vmem:[%s8797_s3 + $0x10] sm:$0xff]  ;;  %s5384_s12 = sshll.u32 %s5448_s11, 4  ;;  %s5385_s12 = int_to_ptr.vmem [resolvable:$false] %s5384_s12 }
  0x2c   : > { %5327 = vmatpush1.bf16.msra.mxu0 %v5326_v15  ;;  %378 = vperm.xlu0 %5374, %v368_v14   ;;  %s5386_s13 = scalar_lea.vmem %s5385_s12, 1024  ;;  %p5387_p2 = scmp.lt.s32.totalorder %s8743_s5, %s5385_s12 }
  0x2f   : > { %5154 = vmatmul.mubr.msk.f32.vlgmr.msra.gmra.mrb[0].mxu0 %vm257_vm0, %v225_v16 }
  0x30   : > { %340 = vmatprep.mubr.f32.mxu0 %v8799_v4 }
  0x33   : > { %5155 = vmatmul.mubr.msk.f32.gmra.mrb[2].mxu0 %vm257_vm0, %v226_v17 }
  0x34   : > { %346 = vmatprep.mubr.f32.mxu0 %v8799_v4 }
  0x37   : > { %5156 = vmatmul.mubr.msk.f32.gmra.mrb[4].mxu0 %vm257_vm0, %v227_v18 }
  0x38   : > { %352 = vmatprep.mubr.f32.mxu0 %v8799_v4 }
  0x3b   : > { %5157 = vmatmul.mubr.msk.f32.gmra.mrb[6].mxu0 %vm257_vm0, %v228_v19 }
  0xa6   : > { %v240_v20 = vpop.permute.xlu1 %239 }
  0xa7   : > { %v245_v21 = vpop.permute.xlu0 %244 }
  0xaa   : > { %v374_v23 = vpop.permute.xlu1 %373 }
  0xab   : > { %v379_v33 = vpop.permute.xlu0 %378 }
 0x102   : > { %v336_v22 = vpop.f32.mrb[0].mxu0 }
 0x103   : > { %v337_v24 = vadd.f32 %v336_v22, %v240_v20  ;;  %v338_v25 = vpop.f32.mrb[1].mxu0 }
 0x104   : > { %v339_v26 = vadd.f32 %v338_v25, %v240_v20 }
 0x105   : > { %v391_v27 = vmul.f32 %v374_v23, %v337_v24  ;;  %vm359_vm1 = vcmp.ge.f32.partialorder %v337_v24, 0.0 }
 0x106   : > { %v392_v28 = vmul.f32 %v374_v23, %v339_v26  ;;  %v342_v29 = vpop.f32.mrb[2].mxu0  ;;  %vm360_vm2 = vcmp.ge.f32.partialorder %v339_v26, 0.0 }
 0x107   : > { %v343_v30 = vadd.f32 %v342_v29, %v245_v21  ;;  %v344_v31 = vpop.f32.mrb[3].mxu0  ;;  %v399_v32 = vsel %vm359_vm1, %v337_v24, %v391_v27 }
 0x108   : > { %v345_v34 = vadd.f32 %v344_v31, %v245_v21  ;;  %v400_v35 = vsel %vm360_vm2, %v339_v26, %v392_v28  ;;  %v5322_v36 = vpack.c.bf16 %v399_v32, %v399_v32 }
 0x109   : > { %vm361_vm4 = vcmp.ge.f32.partialorder %v343_v30, 0.0  ;;  %v393_v37 = vmul.f32 %v379_v33, %v343_v30  ;;  %v5323_v38 = vpack.c.bf16 %v400_v35, %v400_v35 }
 0x10a   : > { %vm362_vm5 = vcmp.ge.f32.partialorder %v345_v34, 0.0  ;;  %v394_v39 = vmul.f32 %v379_v33, %v345_v34  ;;  %v526_v40 = vsel %vm524_vm3, %v5322_v36, 0  ;;  %v348_v45 = vpop.f32.mrb[4].mxu0 }
 0x10b   : > { %5164 = vmatprep.subr.msk.bf16.mxu1 %vm524_vm3, %v5323_v38  ;;  %v401_v41 = vsel %vm361_vm4, %v343_v30, %v393_v37  ;;  %v350_v46 = vpop.f32.mrb[5].mxu0 }
 0x10c   : > { %532 = vmatpush1.bf16.msra.mxu1 %v526_v40  ;;  %v5320_v42 = vpack.c.bf16 %v401_v41, %v401_v41  ;;  %v402_v43 = vsel %vm362_vm5, %v345_v34, %v394_v39 }
 0x10d   : > { %v5321_v44 = vpack.c.bf16 %v402_v43, %v402_v43 }
 0x10e   : > { %438 = vxpose.xlu0.c.b16.start.end [1/1] (short) %v5320_v42, 128  ;;  %v354_v47 = vpop.f32.mrb[6].mxu0 }
 0x10f   : > { %454 = vxpose.xlu1.c.b16.start.end [1/1] (short) %v5321_v44, 128  ;;  %v356_v49 = vpop.f32.mrb[7].mxu0 }
 0x12f   : > { %254 = vperm.xlu1 %5375, %v236_v48  }
 0x133   : > { %388 = vperm.xlu1 %5375, %v370_v50   ;;  %249 = vperm.xlu0 %5374, %v235_v51  }
 0x137   : > { %383 = vperm.xlu0 %5374, %v369_v52  }
 0x174   : > { %v446_v53 = vpop.trf.xlu0 }
 0x175   : > { %5165 = vmatmul.mubr.msk.bf16.vlgmr.msra.gmra.mrb[0].mxu1 %vm475_vm6, %v446_v53  ;;  %v462_v55 = vpop.trf.xlu1 }
 0x176   : > { %573 = vmatprep.mubr.bf16.mxu1 %v5445_v5 }
 0x178   : > { %v447_v54 = vpop.trf.xlu0 }
 0x179   : > { %v463_v57 = vpop.trf.xlu1 }
 0x17c   : > { %v448_v56 = vpop.trf.xlu0 }
 0x17d   : > { %5166 = vmatmul.mubr.msk.bf16.gmra.mrb[4].mxu1 %vm475_vm6, %v447_v54  ;;  %v464_v59 = vpop.trf.xlu1 }
 0x17e   : > { %583 = vmatprep.mubr.bf16.mxu1 %v5445_v5 }
 0x180   : > { %v449_v58 = vpop.trf.xlu0 }
 0x181   : > { %v465_v60 = vpop.trf.xlu1 }
 0x184   : > { %v450_v61 = vpop.trf.xlu0 }
 0x185   : > { %5167 = vmatmul.mubr.msk.bf16.gmra.mrb[8].mxu1 %vm475_vm6, %v448_v56  ;;  %v466_v62 = vpop.trf.xlu1 }
 0x186   : > { %593 = vmatprep.mubr.bf16.mxu1 %v5445_v5 }
 0x188   : > { %v451_v63 = vpop.trf.xlu0 }
 0x189   : > { %v467_v0 = vpop.trf.xlu1 }
 0x18c   : > { %v452_v1 = vpop.trf.xlu0 }
 0x18d   : > { %5168 = vmatmul.mubr.msk.bf16.gmra.mrb[12].mxu1 %vm475_vm6, %v449_v58  ;;  %v468_v2 = vpop.trf.xlu1 }
 0x18e   : > { %603 = vmatprep.mubr.bf16.mxu1 %v5445_v5 }
 0x190   : > { %v453_v6 = vpop.trf.xlu0 }
 0x191   : > { %v469_v3 = vpop.trf.xlu1 }
 0x195   : > { %5169 = vmatmul.mubr.msk.bf16.gmra.mrb[16].mxu1 %vm475_vm6, %v450_v61 }
 0x196   : > { %613 = vmatprep.mubr.bf16.mxu1 %v5445_v5 }
 0x19d   : > { %5170 = vmatmul.mubr.msk.bf16.gmra.mrb[20].mxu1 %vm475_vm6, %v451_v63 }
 0x19e   : > { %623 = vmatprep.mubr.bf16.mxu1 %v5445_v5 }
 0x1a5   : > { %5171 = vmatmul.mubr.msk.bf16.gmra.mrb[24].mxu1 %vm475_vm6, %v452_v1 }
 0x1a6   : > { %633 = vmatprep.mubr.bf16.mxu1 %v5445_v5 }
 0x1ad   : > { %5172 = vmatmul.mubr.msk.bf16.gmra.mrb[28].mxu1 %vm475_vm6, %v453_v6 }
 0x1ae   : > { %v255_v7 = vpop.permute.xlu1 %254  ;;  %643 = vmatprep.mubr.bf16.mxu1 %v5445_v5 }
 0x1af   : > { %v355_v8 = vadd.f32 %v354_v47, %v255_v7  ;;  %v357_v11 = vadd.f32 %v356_v49, %v255_v7 }
 0x1b1   : > { %vm365_vm7 = vcmp.ge.f32.partialorder %v355_v8, 0.0  ;;  %vm366_vm8 = vcmp.ge.f32.partialorder %v357_v11, 0.0 }
 0x1b2   : > { %v389_v9 = vpop.permute.xlu1 %388  ;;  %v250_v10 = vpop.permute.xlu0 %249 }
 0x1b3   : > { %v397_v12 = vmul.f32 %v389_v9, %v355_v8  ;;  %v349_v13 = vadd.f32 %v348_v45, %v250_v10  ;;  %v351_v14 = vadd.f32 %v350_v46, %v250_v10  ;;  %v398_v15 = vmul.f32 %v389_v9, %v357_v11 }
 0x1b5   : > { %v5604_v16 = vsel %vm365_vm7, %v355_v8, %v397_v12  ;;  %5173 = vmatmul.mubr.msk.bf16.gmra.mrb[32].mxu1 %vm475_vm6, %v462_v55  ;;  %vm363_vm9 = vcmp.ge.f32.partialorder %v349_v13, 0.0  ;;  %vm364_vm10 = vcmp.ge.f32.partialorder %v351_v14, 0.0  ;;  %v406_v22 = vsel %vm366_vm8, %v357_v11, %v398_v15 }
 0x1b6   : > { %9063 = vst [vmem:[#allocation11_spill] sm:$0xff] %v5604_v16  ;;  %v384_v17 = vpop.permute.xlu0 %383  ;;  %653 = vmatprep.mubr.bf16.mxu1 %v5445_v5 }
 0x1b7   : > { %v395_v18 = vmul.f32 %v384_v17, %v349_v13  ;;  %v396_v19 = vmul.f32 %v384_v17, %v351_v14 }
 0x1b9   : > { %v5608_v20 = vsel %vm363_vm9, %v349_v13, %v395_v18  ;;  %v404_v21 = vsel %vm364_vm10, %v351_v14, %v396_v19 }
 0x1ba   : > { %9064 = vst [vmem:[#allocation12_spill] sm:$0xff] %v5608_v20  ;;  %v426_v24 = vpack.c.bf16 %v406_v22, %v404_v21 }
 0x1bc   : > { %5048 = vmatprep.mubr.bf16.mxu0 %v426_v24 }
 0x1bd   : > { %5174 = vmatmul.mubr.msk.bf16.gmra.mrb[36].mxu1 %vm475_vm6, %v463_v57 }
 0x1be   : > { %663 = vmatprep.mubr.bf16.mxu1 %v5445_v5 }
 0x1c5   : > { %5175 = vmatmul.mubr.msk.bf16.gmra.mrb[40].mxu1 %vm475_vm6, %v464_v59 }
 0x1c6   : > { %673 = vmatprep.mubr.bf16.mxu1 %v5445_v5 }
 0x1cd   : > { %5176 = vmatmul.mubr.msk.bf16.gmra.mrb[44].mxu1 %vm475_vm6, %v465_v60 }
 0x1ce   : > { %683 = vmatprep.mubr.bf16.mxu1 %v5445_v5 }
 0x1d5   : > { %5177 = vmatmul.mubr.msk.bf16.gmra.mrb[48].mxu1 %vm475_vm6, %v466_v62 }
 0x1d6   : > { %693 = vmatprep.mubr.bf16.mxu1 %v5445_v5 }
 0x1dd   : > { %5178 = vmatmul.mubr.msk.bf16.gmra.mrb[52].mxu1 %vm475_vm6, %v467_v0 }
 0x1de   : > { %703 = vmatprep.mubr.bf16.mxu1 %v5445_v5 }
 0x1e5   : > { %5179 = vmatmul.mubr.msk.bf16.gmra.mrb[56].mxu1 %vm475_vm6, %v468_v2 }
 0x1e6   : > { %713 = vmatprep.mubr.bf16.mxu1 %v5445_v5 }
 0x1ed   : > { %5180 = vmatmul.mubr.msk.bf16.gmra.mrb[60].mxu1 %vm475_vm6, %v469_v3 }
 0x248   : > { %v5625_v25 = vpop.f32.mrb[0].mxu1 }
 0x249   : > { %v5627_v26 = vpop.f32.mrb[1].mxu1 }
 0x24a   : > { %v5629_v27 = vpop.f32.mrb[2].mxu1 }
 0x24b   : > { %v5631_v28 = vpop.f32.mrb[3].mxu1 }
 0x250   : > { %v5633_v29 = vpop.f32.mrb[4].mxu1 }
 0x251   : > { %v724_v30 = vmax.f32 %v5625_v25, %v5633_v29  ;;  %v5637_v31 = vpop.f32.mrb[5].mxu1 }
 0x252   : > { %v761_v5 = vmax.f32 %v5627_v26, %v5637_v31  ;;  %v5641_v32 = vpop.f32.mrb[6].mxu1 }
 0x253   : > { %v725_v33 = vmax.f32 %v5629_v27, %v5641_v32  ;;  %v5645_v34 = vpop.f32.mrb[7].mxu1 }
 0x254   : > { %v762_v35 = vmax.f32 %v5631_v28, %v5645_v34 }
 0x258   : > { %v5649_v36 = vpop.f32.mrb[8].mxu1 }
 0x259   : > { %v726_v37 = vmax.f32 %v724_v30, %v5649_v36  ;;  %v5652_v38 = vpop.f32.mrb[9].mxu1 }
 0x25a   : > { %v763_v39 = vmax.f32 %v761_v5, %v5652_v38  ;;  %v5655_v40 = vpop.f32.mrb[10].mxu1 }
 0x25b   : > { %v727_v41 = vmax.f32 %v725_v33, %v5655_v40  ;;  %v5658_v42 = vpop.f32.mrb[11].mxu1 }
 0x25c   : > { %v764_v43 = vmax.f32 %v762_v35, %v5658_v42 }
 0x260   : > { %v5661_v44 = vpop.f32.mrb[12].mxu1 }
 0x261   : > { %v728_v45 = vmax.f32 %v726_v37, %v5661_v44  ;;  %v5664_v46 = vpop.f32.mrb[13].mxu1 }
 0x262   : > { %v765_v47 = vmax.f32 %v763_v39, %v5664_v46  ;;  %v5667_v48 = vpop.f32.mrb[14].mxu1 }
 0x263   : > { %v729_v49 = vmax.f32 %v727_v41, %v5667_v48  ;;  %v5670_v50 = vpop.f32.mrb[15].mxu1 }
 0x264   : > { %v766_v51 = vmax.f32 %v764_v43, %v5670_v50 }
 0x268   : > { %v5673_v52 = vpop.f32.mrb[16].mxu1 }
 0x269   : > { %v730_v53 = vmax.f32 %v728_v45, %v5673_v52  ;;  %v5676_v54 = vpop.f32.mrb[17].mxu1 }
 0x26a   : > { %v767_v55 = vmax.f32 %v765_v47, %v5676_v54  ;;  %v5679_v56 = vpop.f32.mrb[18].mxu1 }
 0x26b   : > { %v731_v57 = vmax.f32 %v729_v49, %v5679_v56  ;;  %v5682_v58 = vpop.f32.mrb[19].mxu1 }
 0x26c   : > { %v768_v59 = vmax.f32 %v766_v51, %v5682_v58 }
 0x270   : > { %v5685_v60 = vpop.f32.mrb[20].mxu1 }
 0x271   : > { %v732_v61 = vmax.f32 %v730_v53, %v5685_v60  ;;  %v5688_v62 = vpop.f32.mrb[21].mxu1 }
 0x272   : > { %v769_v63 = vmax.f32 %v767_v55, %v5688_v62  ;;  %v5691_v0 = vpop.f32.mrb[22].mxu1 }
 0x273   : > { %v733_v1 = vmax.f32 %v731_v57, %v5691_v0  ;;  %v5694_v2 = vpop.f32.mrb[23].mxu1 }
 0x274   : > { %v770_v3 = vmax.f32 %v768_v59, %v5694_v2 }
 0x278   : > { %v5697_v6 = vpop.f32.mrb[24].mxu1 }
 0x279   : > { %v734_v7 = vmax.f32 %v732_v61, %v5697_v6  ;;  %v5700_v8 = vpop.f32.mrb[25].mxu1 }
 0x27a   : > { %v771_v9 = vmax.f32 %v769_v63, %v5700_v8  ;;  %v5703_v10 = vpop.f32.mrb[26].mxu1 }
 0x27b   : > { %v735_v11 = vmax.f32 %v733_v1, %v5703_v10  ;;  %v5706_v12 = vpop.f32.mrb[27].mxu1 }
 0x27c   : > { %v772_v13 = vmax.f32 %v770_v3, %v5706_v12 }
 0x280   : > { %v5709_v14 = vpop.f32.mrb[28].mxu1 }
 0x281   : > { %v736_v15 = vmax.f32 %v734_v7, %v5709_v14  ;;  %v5712_v17 = vpop.f32.mrb[29].mxu1 }
 0x282   : > { %9065 = vst [vmem:[#allocation13_spill] sm:$0xff] %v5712_v17  ;;  %v773_v18 = vmax.f32 %v771_v9, %v5712_v17  ;;  %v5715_v19 = vpop.f32.mrb[30].mxu1 }
 0x283   : > { %v737_v21 = vmax.f32 %v735_v11, %v5715_v19  ;;  %v5718_v22 = vpop.f32.mrb[31].mxu1 }
 0x284   : > { %9066 = vst [vmem:[#allocation14_spill] sm:$0xff] %v5718_v22  ;;  %v774_v24 = vmax.f32 %v772_v13, %v5718_v22 }
 0x288   : > { %v5721_v30 = vpop.f32.mrb[32].mxu1 }
 0x289   : > { %v738_v5 = vmax.f32 %v736_v15, %v5721_v30  ;;  %v5724_v33 = vpop.f32.mrb[33].mxu1 }
 0x28a   : > { %9067 = vst [vmem:[#allocation15_spill] sm:$0xff] %v5724_v33  ;;  %v775_v35 = vmax.f32 %v773_v18, %v5724_v33  ;;  %v5727_v37 = vpop.f32.mrb[34].mxu1 }
 0x28b   : > { %v739_v39 = vmax.f32 %v737_v21, %v5727_v37  ;;  %v5730_v41 = vpop.f32.mrb[35].mxu1 }
 0x28c   : > { %9068 = vst [vmem:[#allocation16_spill] sm:$0xff] %v5730_v41  ;;  %v776_v43 = vmax.f32 %v774_v24, %v5730_v41 }
 0x290   : > { %v5733_v45 = vpop.f32.mrb[36].mxu1 }
 0x291   : > { %v740_v47 = vmax.f32 %v738_v5, %v5733_v45  ;;  %v5736_v49 = vpop.f32.mrb[37].mxu1 }
 0x292   : > { %9069 = vst [vmem:[#allocation17_spill] sm:$0xff] %v5736_v49  ;;  %v777_v51 = vmax.f32 %v775_v35, %v5736_v49  ;;  %v5739_v53 = vpop.f32.mrb[38].mxu1 }
 0x293   : > { %v741_v55 = vmax.f32 %v739_v39, %v5739_v53  ;;  %v5742_v57 = vpop.f32.mrb[39].mxu1 }
 0x294   : > { %9070 = vst [vmem:[#allocation18_spill] sm:$0xff] %v5742_v57  ;;  %v778_v59 = vmax.f32 %v776_v43, %v5742_v57 }
 0x298   : > { %v5745_v61 = vpop.f32.mrb[40].mxu1 }
 0x299   : > { %v742_v63 = vmax.f32 %v740_v47, %v5745_v61  ;;  %v5748_v1 = vpop.f32.mrb[41].mxu1 }
 0x29a   : > { %9071 = vst [vmem:[#allocation19_spill] sm:$0xff] %v5748_v1  ;;  %v779_v3 = vmax.f32 %v777_v51, %v5748_v1  ;;  %v5751_v7 = vpop.f32.mrb[42].mxu1 }
 0x29b   : > { %v743_v9 = vmax.f32 %v741_v55, %v5751_v7  ;;  %v5754_v11 = vpop.f32.mrb[43].mxu1 }
 0x29c   : > { %9072 = vst [vmem:[#allocation20_spill] sm:$0xff] %v5754_v11  ;;  %v780_v13 = vmax.f32 %v778_v59, %v5754_v11 }
 0x2a0   : > { %v5757_v15 = vpop.f32.mrb[44].mxu1 }
 0x2a1   : > { %v744_v18 = vmax.f32 %v742_v63, %v5757_v15  ;;  %v5760_v21 = vpop.f32.mrb[45].mxu1 }
 0x2a2   : > { %9073 = vst [vmem:[#allocation21_spill] sm:$0xff] %v5760_v21  ;;  %v781_v24 = vmax.f32 %v779_v3, %v5760_v21  ;;  %v5763_v5 = vpop.f32.mrb[46].mxu1 }
 0x2a3   : > { %v745_v35 = vmax.f32 %v743_v9, %v5763_v5  ;;  %v5766_v39 = vpop.f32.mrb[47].mxu1 }
 0x2a4   : > { %9074 = vst [vmem:[#allocation22_spill] sm:$0xff] %v5766_v39  ;;  %v782_v43 = vmax.f32 %v780_v13, %v5766_v39 }
 0x2a8   : > { %v685_v47 = vpop.f32.mrb[48].mxu1 }
 0x2a9   : > { %v746_v51 = vmax.f32 %v744_v18, %v685_v47  ;;  %v5769_v55 = vpop.f32.mrb[49].mxu1 }
 0x2aa   : > { %9075 = vst [vmem:[#allocation23_spill] sm:$0xff] %v5769_v55  ;;  %v783_v59 = vmax.f32 %v781_v24, %v5769_v55  ;;  %v689_v23 = vpop.f32.mrb[50].mxu1 }
 0x2ab   : > { %v747_v63 = vmax.f32 %v745_v35, %v689_v23  ;;  %v5772_v4 = vpop.f32.mrb[51].mxu1 }
 0x2ac   : > { %9076 = vst [vmem:[#allocation24_spill] sm:$0xff] %v5772_v4  ;;  %v784_v3 = vmax.f32 %v782_v43, %v5772_v4 }
 0x2b0   : > { %v695_v20 = vpop.f32.mrb[52].mxu1 }
 0x2b1   : > { %v748_v16 = vmax.f32 %v746_v51, %v695_v20  ;;  %v5775_v21 = vpop.f32.mrb[53].mxu1 }
 0x2b2   : > { %9077 = vst [vmem:[#allocation25_spill] sm:$0xff] %v5775_v21  ;;  %v785_v9 = vmax.f32 %v783_v59, %v5775_v21  ;;  %v699_v11 = vpop.f32.mrb[54].mxu1 }
 0x2b3   : > { %v749_v13 = vmax.f32 %v747_v63, %v699_v11  ;;  %v5778_v39 = vpop.f32.mrb[55].mxu1 }
 0x2b4   : > { %9078 = vst [vmem:[#allocation26_spill] sm:$0xff] %v5778_v39  ;;  %v786_v18 = vmax.f32 %v784_v3, %v5778_v39 }
 0x2b8   : > { %v705_v1 = vpop.f32.mrb[56].mxu1 }
 0x2b9   : > { %v750_v24 = vmax.f32 %v748_v16, %v705_v1  ;;  %v5781_v55 = vpop.f32.mrb[57].mxu1 }
 0x2ba   : > { %9079 = vst [vmem:[#allocation27_spill] sm:$0xff] %v5781_v55  ;;  %v5784_v35 = vmax.f32 %v785_v9, %v5781_v55  ;;  %v709_v43 = vpop.f32.mrb[58].mxu1 }
 0x2bb   : > { %v751_v4 = vmax.f32 %v749_v13, %v709_v43  ;;  %v5786_v51 = vpop.f32.mrb[59].mxu1 }
 0x2bc   : > { %9080 = vst [vmem:[#allocation28_spill] sm:$0xff] %v5786_v51  ;;  %v5789_v57 = vmax.f32 %v786_v18, %v5786_v51 }
 0x2c0   : > { %v715_v59 = vpop.f32.mrb[60].mxu1 }
 0x2c1   : > { %v752_v63 = vmax.f32 %v750_v24, %v715_v59  ;;  %v5791_v21 = vpop.f32.mrb[61].mxu1 }
 0x2c2   : > { %v719_v16 = vpop.f32.mrb[62].mxu1 }
 0x2c3   : > { %v753_v39 = vmax.f32 %v751_v4, %v719_v16 }
 0x2c5   : > { %v754_v49 = vmax.f32 %v752_v63, %v753_v39 }
 0x2c7   : > { %v755_v41 = vrot.slane %v754_v49, 4 }
 0x2c9   : > { %v756_v9 = vmax.f32 %v754_v49, %v755_v41 }
 0x2cb   : > { %v757_v55 = vrot.slane %v756_v9, 2 }
 0x2cd   : > { %v758_v33 = vmax.f32 %v756_v9, %v757_v55 }
 0x2cf   : > { %v759_v13 = vrot.slane %v758_v33, 1 }
 0x2d1   : > { %v760_v22 = vmax.f32 %v758_v33, %v759_v13 }
 0x2d3   : > { %v5796_v17 = vsub.f32 %v5625_v25, %v760_v22  ;;  %v5799_v18 = vsub.f32 %v5629_v27, %v760_v22  ;;  %v5802_v24 = vsub.f32 %v5633_v29, %v760_v22  ;;  %v5805_v3 = vsub.f32 %v5641_v32, %v760_v22 }
 0x2d4   : > { %v5808_v4 = vsub.f32 %v5649_v36, %v760_v22  ;;  %v5811_v41 = vsub.f32 %v5655_v40, %v760_v22  ;;  %v5814_v33 = vsub.f32 %v5661_v44, %v760_v22  ;;  %v5817_v25 = vsub.f32 %v5667_v48, %v760_v22 }
 0x2d5   : > { %9081 = vst [vmem:[#allocation29_spill] sm:$0xff] %v5796_v17  ;;  %9082 = vst [vmem:[#allocation30_spill] sm:$0xff] %v5799_v18  ;;  %v5820_v27 = vsub.f32 %v5673_v52, %v760_v22  ;;  %v5823_v29 = vsub.f32 %v5679_v56, %v760_v22  ;;  %v5826_v32 = vsub.f32 %v5685_v60, %v760_v22 }
 0x2d6   : > { %9083 = vst [vmem:[#allocation31_spill] sm:$0xff] %v5802_v24  ;;  %9084 = vst [vmem:[#allocation32_spill] sm:$0xff] %v5805_v3  ;;  %v5829_v36 = vsub.f32 %v5691_v0, %v760_v22  ;;  %v5832_v40 = vsub.f32 %v5697_v6, %v760_v22  ;;  %v5835_v44 = vsub.f32 %v5703_v10, %v760_v22 }
 0x2d7   : > { %9085 = vst [vmem:[#allocation33_spill] sm:$0xff] %v5808_v4  ;;  %9086 = vst [vmem:[#allocation34_spill] sm:$0xff] %v5811_v41  ;;  %v5838_v48 = vsub.f32 %v5709_v14, %v760_v22  ;;  %v5841_v52 = vsub.f32 %v5715_v19, %v760_v22  ;;  %v5844_v56 = vsub.f32 %v5721_v30, %v760_v22 }
 0x2d8   : > { %9087 = vst [vmem:[#allocation35_spill] sm:$0xff] %v5814_v33  ;;  %9088 = vst [vmem:[#allocation36_spill] sm:$0xff] %v5817_v25  ;;  %v5847_v60 = vsub.f32 %v5727_v37, %v760_v22  ;;  %v5850_v0 = vsub.f32 %v5733_v45, %v760_v22  ;;  %v5853_v6 = vsub.f32 %v5739_v53, %v760_v22 }
 0x2d9   : > { %9089 = vst [vmem:[#allocation37_spill] sm:$0xff] %v5820_v27  ;;  %9090 = vst [vmem:[#allocation38_spill] sm:$0xff] %v5823_v29  ;;  %v5856_v10 = vsub.f32 %v5745_v61, %v760_v22  ;;  %v5859_v14 = vsub.f32 %v5751_v7, %v760_v22  ;;  %v5862_v19 = vsub.f32 %v5757_v15, %v760_v22  ;;  %v5181_v15 = vadd.f32 0.5, %v5796_v17 }
 0x2da   : > { %9091 = vst [vmem:[#allocation39_spill] sm:$0xff] %v5826_v32  ;;  %9092 = vst [vmem:[#allocation40_spill] sm:$0xff] %v5829_v36  ;;  %v5865_v30 = vsub.f32 %v5763_v5, %v760_v22  ;;  %v5867_v37 = vsub.f32 %v685_v47, %v760_v22  ;;  %v5869_v49 = vsub.f32 %v689_v23, %v760_v22  ;;  %v5183_v5 = vadd.f32 0.5, %v5799_v18 }
 0x2db   : > { %9093 = vst [vmem:[#allocation41_spill] sm:$0xff] %v5832_v40  ;;  %9094 = vst [vmem:[#allocation42_spill] sm:$0xff] %v5835_v44  ;;  %v5871_v45 = vsub.f32 %v695_v20, %v760_v22  ;;  %v5873_v53 = vsub.f32 %v699_v11, %v760_v22  ;;  %v5875_v39 = vsub.f32 %v705_v1, %v760_v22  ;;  %v5185_v47 = vadd.f32 0.5, %v5802_v24 }
 0x2dc   : > { %9095 = vst [vmem:[#allocation43_spill] sm:$0xff] %v5838_v48  ;;  %9096 = vst [vmem:[#allocation44_spill] sm:$0xff] %v5841_v52  ;;  %v5877_v61 = vsub.f32 %v709_v43, %v760_v22  ;;  %v5879_v7 = vsub.f32 %v715_v59, %v760_v22  ;;  %v5881_v55 = vsub.f32 %v719_v16, %v760_v22  ;;  %v1054_v23 = vmax.f32 %v5181_v15, 0.0 }
 0x2dd   : > { %9097 = vst [vmem:[#allocation45_spill] sm:$0xff] %v5844_v56  ;;  %9098 = vst [vmem:[#allocation46_spill] sm:$0xff] %v5847_v60  ;;  %v1056_v63 = vmax.f32 %v5183_v5, 0.0  ;;  %v5187_v20 = vadd.f32 0.5, %v5805_v3  ;;  %v5189_v11 = vadd.f32 0.5, %v5808_v4  ;;  %v1058_v1 = vmax.f32 %v5185_v47, 0.0 }
 0x2de   : > { %9099 = vst [vmem:[#allocation47_spill] sm:$0xff] %v5850_v0  ;;  %9100 = vst [vmem:[#allocation48_spill] sm:$0xff] %v5853_v6  ;;  %v5191_v43 = vadd.f32 0.5, %v5811_v41  ;;  %v5193_v22 = vadd.f32 0.5, %v5814_v33  ;;  %v5195_v18 = vadd.f32 0.5, %v5817_v25  ;;  %v5197_v15 = vadd.f32 0.5, %v5820_v27 }
 0x2df   : > { %9101 = vst [vmem:[#allocation49_spill] sm:$0xff] %v5856_v10  ;;  %9102 = vst [vmem:[#allocation50_spill] sm:$0xff] %v5859_v14  ;;  %v1118_v9 = vadd.f32 %v1056_v63, %v1054_v23  ;;  %v1060_v59 = vmax.f32 %v5187_v20, 0.0  ;;  %v1062_v16 = vmax.f32 %v5189_v11, 0.0  ;;  %v5199_v4 = vadd.f32 0.5, %v5823_v29 }
 0x2e0   : > { %9103 = vst [vmem:[#allocation51_spill] sm:$0xff] %v5862_v19  ;;  %9104 = vst [vmem:[#allocation52_spill] sm:$0xff] %v5865_v30  ;;  %v1064_v51 = vmax.f32 %v5191_v43, 0.0  ;;  %v1066_v5 = vmax.f32 %v5193_v22, 0.0  ;;  %v1068_v47 = vmax.f32 %v5195_v18, 0.0  ;;  %v5201_v63 = vadd.f32 0.5, %v5826_v32 }
 0x2e1   : > { %9105 = vst [vmem:[#allocation53_spill] sm:$0xff] %v5867_v37  ;;  %9106 = vst [vmem:[#allocation54_spill] sm:$0xff] %v5869_v49  ;;  %v1119_v13 = vadd.f32 %v1118_v9, %v1058_v1  ;;  %v1070_v20 = vmax.f32 %v5197_v15, 0.0  ;;  %v5203_v9 = vadd.f32 0.5, %v5829_v36  ;;  %v1072_v11 = vmax.f32 %v5199_v4, 0.0 }
 0x2e2   : > { %9107 = vst [vmem:[#allocation55_spill] sm:$0xff] %v5871_v45  ;;  %9108 = vst [vmem:[#allocation56_spill] sm:$0xff] %v5873_v53  ;;  %v1074_v43 = vmax.f32 %v5201_v63, 0.0 }
 0x2e3   : > { %9109 = vst [vmem:[#allocation57_spill] sm:$0xff] %v5875_v39  ;;  %9110 = vst [vmem:[#allocation58_spill] sm:$0xff] %v5877_v61  ;;  %v1120_v17 = vadd.f32 %v1119_v13, %v1060_v59  ;;  %v5205_v13 = vadd.f32 0.5, %v5832_v40  ;;  %v1076_v22 = vmax.f32 %v5203_v9, 0.0 }
 0x2e4   : > { %9111 = vst [vmem:[#allocation59_spill] sm:$0xff] %v5879_v7  ;;  %9112 = vst [vmem:[#allocation60_spill] sm:$0xff] %v5881_v55 }
 0x2e5   : > { %v1121_v24 = vadd.f32 %v1120_v17, %v1062_v16  ;;  %v5207_v16 = vadd.f32 0.5, %v5835_v44  ;;  %v1078_v18 = vmax.f32 %v5205_v13, 0.0 }
 0x2e7   : > { %v1122_v3 = vadd.f32 %v1121_v24, %v1064_v51  ;;  %v5209_v24 = vadd.f32 0.5, %v5838_v48  ;;  %v1080_v15 = vmax.f32 %v5207_v16, 0.0 }
 0x2e9   : > { %v1123_v23 = vadd.f32 %v1122_v3, %v1066_v5  ;;  %v5211_v5 = vadd.f32 0.5, %v5841_v52  ;;  %v1082_v4 = vmax.f32 %v5209_v24, 0.0 }
 0x2eb   : > { %v1124_v1 = vadd.f32 %v1123_v23, %v1068_v47  ;;  %v5213_v23 = vadd.f32 0.5, %v5844_v56  ;;  %v1084_v63 = vmax.f32 %v5211_v5, 0.0 }
 0x2ed   : > { %v1125_v59 = vadd.f32 %v1124_v1, %v1070_v20  ;;  %v5215_v1 = vadd.f32 0.5, %v5847_v60  ;;  %v1086_v9 = vmax.f32 %v5213_v23, 0.0 }
 0x2ef   : > { %v1126_v17 = vadd.f32 %v1125_v59, %v1072_v11  ;;  %v5217_v59 = vadd.f32 0.5, %v5850_v0  ;;  %v1088_v13 = vmax.f32 %v5215_v1, 0.0 }
 0x2f1   : > { %v1127_v51 = vadd.f32 %v1126_v17, %v1074_v43  ;;  %v5219_v17 = vadd.f32 0.5, %v5853_v6  ;;  %v1090_v16 = vmax.f32 %v5217_v59, 0.0 }
 0x2f3   : > { %v1128_v3 = vadd.f32 %v1127_v51, %v1076_v22  ;;  %v5221_v51 = vadd.f32 0.5, %v5856_v10  ;;  %v1092_v24 = vmax.f32 %v5219_v17, 0.0 }
 0x2f5   : > { %v1129_v47 = vadd.f32 %v1128_v3, %v1078_v18  ;;  %v5223_v3 = vadd.f32 0.5, %v5859_v14  ;;  %v1094_v5 = vmax.f32 %v5221_v51, 0.0 }
 0x2f7   : > { %v1130_v20 = vadd.f32 %v1129_v47, %v1080_v15  ;;  %v5225_v47 = vadd.f32 0.5, %v5862_v19  ;;  %v1096_v23 = vmax.f32 %v5223_v3, 0.0 }
 0x2f9   : > { %v1131_v11 = vadd.f32 %v1130_v20, %v1082_v4  ;;  %v5227_v20 = vadd.f32 0.5, %v5865_v30  ;;  %v1098_v1 = vmax.f32 %v5225_v47, 0.0 }
 0x2fb   : > { %v1132_v43 = vadd.f32 %v1131_v11, %v1084_v63  ;;  %v5229_v11 = vadd.f32 0.5, %v5867_v37  ;;  %v1100_v59 = vmax.f32 %v5227_v20, 0.0 }
 0x2fd   : > { %v1133_v22 = vadd.f32 %v1132_v43, %v1086_v9  ;;  %v5231_v43 = vadd.f32 0.5, %v5869_v49  ;;  %v1102_v17 = vmax.f32 %v5229_v11, 0.0  ;;  %v5243_v11 = vadd.f32 0.5, %v5881_v55 }
 0x2ff   : > { %v1134_v18 = vadd.f32 %v1133_v22, %v1088_v13  ;;  %v5233_v22 = vadd.f32 0.5, %v5871_v45  ;;  %v1104_v51 = vmax.f32 %v5231_v43, 0.0 }
 0x301   : > { %v1135_v15 = vadd.f32 %v1134_v18, %v1090_v16  ;;  %v5235_v18 = vadd.f32 0.5, %v5873_v53  ;;  %v1106_v3 = vmax.f32 %v5233_v22, 0.0  ;;  %v9113_v22 = vmax.f32 %v5784_v35, %v5791_v21 }
 0x303   : > { %v1136_v4 = vadd.f32 %v1135_v15, %v1092_v24  ;;  %v5237_v15 = vadd.f32 0.5, %v5875_v39  ;;  %v1108_v47 = vmax.f32 %v5235_v18, 0.0 }
 0x305   : > { %v1137_v63 = vadd.f32 %v1136_v4, %v1094_v5  ;;  %v5239_v4 = vadd.f32 0.5, %v5877_v61  ;;  %v1110_v20 = vmax.f32 %v5237_v15, 0.0 }
 0x307   : > { %v1138_v9 = vadd.f32 %v1137_v63, %v1096_v23  ;;  %v5241_v63 = vadd.f32 0.5, %v5879_v7 }
 0x309   : > { %v1139_v13 = vadd.f32 %v1138_v9, %v1098_v1  ;;  %v721_v9 = vpop.f32.mrb[63].mxu1 }
 0x30a   : > { %v790_v43 = vmax.f32 %v5789_v57, %v721_v9 }
 0x30b   : > { %v1140_v16 = vadd.f32 %v1139_v13, %v1100_v59  ;;  %v1112_v59 = vmax.f32 %v5239_v4, 0.0 }
 0x30d   : > { %v1141_v24 = vadd.f32 %v1140_v16, %v1102_v17  ;;  %v1114_v17 = vmax.f32 %v5241_v63, 0.0 }
 0x30f   : > { %v1142_v5 = vadd.f32 %v1141_v24, %v1104_v51  ;;  %v791_v51 = vmax.f32 %v9113_v22, %v790_v43  ;;  %v1116_v24 = vmax.f32 %v5243_v11, 0.0  ;;  %v9135_v22 = vld [vmem:[#allocation16_spill] sm:$0xff] }
 0x311   : > { %v1143_v23 = vadd.f32 %v1142_v5, %v1106_v3  ;;  %v792_v3 = vrot.slane %v791_v51, 4 }
 0x313   : > { %v1144_v1 = vadd.f32 %v1143_v23, %v1108_v47  ;;  %v793_v7 = vmax.f32 %v791_v51, %v792_v3  ;;  %v9137_v51 = vld [vmem:[#allocation17_spill] sm:$0xff]  ;;  %v9140_v3 = vld [vmem:[#allocation18_spill] sm:$0xff] }
 0x315   : > { %v1145_v13 = vadd.f32 %v1144_v1, %v1110_v20  ;;  %v794_v47 = vrot.slane %v793_v7, 2 }
 0x317   : > { %v1146_v16 = vadd.f32 %v1145_v13, %v1112_v59  ;;  %v795_v61 = vmax.f32 %v793_v7, %v794_v47 }
 0x319   : > { %v1147_v18 = vadd.f32 %v1146_v16, %v1114_v17  ;;  %v796_v4 = vrot.slane %v795_v61, 1 }
 0x31b   : > { %v1148_v5 = vadd.f32 %v1147_v18, %v1116_v24  ;;  %v797_v1 = vmax.f32 %v795_v61, %v796_v4  ;;  %v8835_v24 = vmov -0.5  }
 0x31d   : > { %v1149_v15 = vrot.slane %v1148_v5, 4  ;;  %v5920_v63 = vsub.f32 %v5627_v26, %v797_v1  ;;  %v5923_v35 = vsub.f32 %v5631_v28, %v797_v1  ;;  %v5926_v11 = vsub.f32 %v5637_v31, %v797_v1 }
 0x31e   : > { %v5929_v59 = vsub.f32 %v5645_v34, %v797_v1  ;;  %v5932_v13 = vsub.f32 %v5652_v38, %v797_v1  ;;  %v5935_v7 = vsub.f32 %v5658_v42, %v797_v1  ;;  %v5938_v61 = vsub.f32 %v5664_v46, %v797_v1 }
 0x31f   : > { %v1150_v23 = vadd.f32 %v1149_v15, %v1148_v5  ;;  %9114 = vst [vmem:[#allocation61_spill] sm:$0xff] %v5920_v63  ;;  %9115 = vst [vmem:[#allocation62_spill] sm:$0xff] %v5923_v35  ;;  %v5944_v28 = vsub.f32 %v5676_v54, %v797_v1  ;;  %v5947_v31 = vsub.f32 %v5682_v58, %v797_v1  ;;  %v9130_v54 = vld [vmem:[#allocation14_spill] sm:$0xff]  ;;  %v9132_v58 = vld [vmem:[#allocation15_spill] sm:$0xff] }
 0x320   : > { %9116 = vst [vmem:[#allocation63_spill] sm:$0xff] %v5926_v11  ;;  %9117 = vst [vmem:[#allocation64_spill] sm:$0xff] %v5929_v59  ;;  %v5950_v34 = vsub.f32 %v5688_v62, %v797_v1  ;;  %v5953_v38 = vsub.f32 %v5694_v2, %v797_v1  ;;  %v5956_v42 = vsub.f32 %v5700_v8, %v797_v1  ;;  %v8836_v62 = vmov -1.0   ;;  %v9142_v15 = vld [vmem:[#allocation19_spill] sm:$0xff] }
 0x321   : > { %v1151_v55 = vrot.slane %v1150_v23, 2  ;;  %9118 = vst [vmem:[#allocation65_spill] sm:$0xff] %v5932_v13  ;;  %9119 = vst [vmem:[#allocation66_spill] sm:$0xff] %v5935_v7  ;;  %v5959_v46 = vsub.f32 %v5706_v12, %v797_v1  ;;  %v5965_v17 = vsub.f32 %v9130_v54, %v797_v1  ;;  %v5968_v16 = vsub.f32 %v9132_v58, %v797_v1  ;;  %v9150_v54 = vld [vmem:[#allocation23_spill] sm:$0xff] }
 0x322   : > { %9120 = vst [vmem:[#allocation67_spill] sm:$0xff] %v5938_v61  ;;  %9122 = vst [vmem:[#allocation69_spill] sm:$0xff] %v5944_v28  ;;  %v5974_v8 = vsub.f32 %v9135_v22, %v797_v1  ;;  %v5977_v12 = vsub.f32 %v9137_v51, %v797_v1  ;;  %v5983_v5 = vsub.f32 %v9140_v3, %v797_v1  ;;  %v9152_v22 = vld [vmem:[#allocation24_spill] sm:$0xff]  ;;  %v9154_v3 = vld [vmem:[#allocation25_spill] sm:$0xff] }
 0x323   : > { %v1152_v20 = vadd.f32 %v1151_v55, %v1150_v23  ;;  %v5941_v55 = vsub.f32 %v5670_v50, %v797_v1  ;;  %9123 = vst [vmem:[#allocation70_spill] sm:$0xff] %v5947_v31  ;;  %9124 = vst [vmem:[#allocation71_spill] sm:$0xff] %v5950_v34  ;;  %v9128_v50 = vld [vmem:[#allocation13_spill] sm:$0xff]  ;;  %v5986_v47 = vsub.f32 %v9142_v15, %v797_v1  ;;  %v9144_v23 = vld [vmem:[#allocation20_spill] sm:$0xff] }
 0x324   : > { %9125 = vst [vmem:[#allocation72_spill] sm:$0xff] %v5953_v38  ;;  %9126 = vst [vmem:[#allocation73_spill] sm:$0xff] %v5956_v42  ;;  %v5962_v43 = vsub.f32 %v9128_v50, %v797_v1  ;;  %v5989_v4 = vsub.f32 %v9144_v23, %v797_v1  ;;  %v5998_v58 = vsub.f32 %v9150_v54, %v797_v1  ;;  %v9156_v15 = vld [vmem:[#allocation26_spill] sm:$0xff]  ;;  %v9158_v23 = vld [vmem:[#allocation27_spill] sm:$0xff] }
 0x325   : > { %v1153_v57 = vrot.slane %v1152_v20, 1  ;;  %9121 = vst [vmem:[#allocation68_spill] sm:$0xff] %v5941_v55  ;;  %9127 = vst [vmem:[#allocation74_spill] sm:$0xff] %v5959_v46  ;;  %v6001_v51 = vsub.f32 %v9152_v22, %v797_v1  ;;  %v6018_v54 = vsub.f32 %v721_v9, %v797_v1 }
 0x326   : > { %9129 = vst [vmem:[#allocation13_spill] sm:$0xff] %v5962_v43  ;;  %9131 = vst [vmem:[#allocation14_spill] sm:$0xff] %v5965_v17 }
 0x327   : > { %v1154_v26 = vadd.f32 %v1153_v57, %v1152_v20  ;;  %9133 = vst [vmem:[#allocation15_spill] sm:$0xff] %v5968_v16  ;;  %9136 = vst [vmem:[#allocation16_spill] sm:$0xff] %v5974_v8  ;;  %v9146_v20 = vld [vmem:[#allocation21_spill] sm:$0xff] }
 0x328   : > { %9138 = vst [vmem:[#allocation17_spill] sm:$0xff] %v5977_v12  ;;  %9141 = vst [vmem:[#allocation18_spill] sm:$0xff] %v5983_v5  ;;  %v5992_v57 = vsub.f32 %v9146_v20, %v797_v1  ;;  %v9160_v20 = vld [vmem:[#allocation28_spill] sm:$0xff] }
 0x329   : > { %vm1192_vm11 = vcmp.ge.f32.partialorder %v1154_v26, 1.0  ;;  %9143 = vst [vmem:[#allocation19_spill] sm:$0xff] %v5986_v47  ;;  %9145 = vst [vmem:[#allocation20_spill] sm:$0xff] %v5989_v4  ;;  %v9148_v26 = vld [vmem:[#allocation22_spill] sm:$0xff]  ;;  %v6010_v4 = vsub.f32 %v9158_v23, %v797_v1 }
 0x32a   : > { %v5971_v2 = vsel %vm1192_vm11, -0.5, %v8836_v62  ;;  %v5980_v18 = vsel %vm1192_vm11, 0.0, %v8835_v24  ;;  %9147 = vst [vmem:[#allocation21_spill] sm:$0xff] %v5992_v57  ;;  %v5995_v50 = vsub.f32 %v9148_v26, %v797_v1  ;;  %9151 = vst [vmem:[#allocation23_spill] sm:$0xff] %v5998_v58  ;;  %v6004_v24 = vsub.f32 %v9154_v3, %v797_v1  ;;  %v9164_v3 = vld [vmem:[#allocation29_spill] sm:$0xff] }
 0x32b   : > { %9134 = vst [vmem:[#allocation75_spill] sm:$0xff] %v5971_v2  ;;  %9139 = vst [vmem:[#allocation76_spill] sm:$0xff] %v5980_v18  ;;  %v6007_v62 = vsub.f32 %v9156_v15, %v797_v1  ;;  %v6013_v57 = vsub.f32 %v9160_v20, %v797_v1  ;;  %v6016_v26 = vsub.f32 %v5791_v21, %v797_v1  ;;  %v9167_v21 = vld [vmem:[#allocation32_spill] sm:$0xff]  ;;  %v9168_v1 = vld [vmem:[#allocation33_spill] sm:$0xff] }
 0x32c   : > { %9149 = vst [vmem:[#allocation22_spill] sm:$0xff] %v5995_v50  ;;  %9153 = vst [vmem:[#allocation24_spill] sm:$0xff] %v6001_v51  ;;  %v1198_v22 = vadd.f32 %v5980_v18, %v5971_v2 }
 0x32d   : > { %9155 = vst [vmem:[#allocation25_spill] sm:$0xff] %v6004_v24  ;;  %9157 = vst [vmem:[#allocation26_spill] sm:$0xff] %v6007_v62  ;;  %v9165_v62 = vld [vmem:[#allocation30_spill] sm:$0xff] }
 0x32e   : > { %9159 = vst [vmem:[#allocation27_spill] sm:$0xff] %v6010_v4  ;;  %9161 = vst [vmem:[#allocation28_spill] sm:$0xff] %v6013_v57  ;;  %v6022_v51 = vmul.f32 0.5, %v1198_v22  ;;  %v9166_v4 = vld [vmem:[#allocation31_spill] sm:$0xff] }
 0x32f   : > { %9162 = vst [vmem:[#allocation77_spill] sm:$0xff] %v6016_v26  ;;  %9163 = vst [vmem:[#allocation78_spill] sm:$0xff] %v6018_v54 }
 0x330   : > { %v1202_v15 = vsub.f32 %v9164_v3, %v6022_v51  ;;  %v1204_v23 = vsub.f32 %v9165_v62, %v6022_v51  ;;  %v1206_v20 = vsub.f32 %v9166_v4, %v6022_v51  ;;  %v1208_v9 = vsub.f32 %v9167_v21, %v6022_v51 }
 0x331   : > { %v1210_v54 = vsub.f32 %v9168_v1, %v6022_v51  ;;  %v1212_v18 = vsub.f32 %v5811_v41, %v6022_v51  ;;  %v1214_v62 = vsub.f32 %v5814_v33, %v6022_v51  ;;  %v1218_v1 = vsub.f32 %v5820_v27, %v6022_v51 }
 0x332   : > { %v1266_v57 = vmax.f32 %v1202_v15, 0.0  ;;  %v1268_v24 = vmax.f32 %v1204_v23, 0.0  ;;  %v1270_v26 = vmax.f32 %v1206_v20, 0.0  ;;  %v1272_v3 = vmax.f32 %v1208_v9, 0.0 }
 0x333   : > { %v1274_v58 = vmax.f32 %v1210_v54, 0.0  ;;  %v1216_v15 = vsub.f32 %v5817_v25, %v6022_v51  ;;  %v1276_v23 = vmax.f32 %v1212_v18, 0.0  ;;  %v1278_v20 = vmax.f32 %v1214_v62, 0.0 }
 0x334   : > { %v1330_v22 = vadd.f32 %v1268_v24, %v1266_v57  ;;  %v1220_v57 = vsub.f32 %v5823_v29, %v6022_v51  ;;  %v5184_v54 = vadd.f32 0.5, %v5923_v35  ;;  %v5188_v35 = vadd.f32 0.5, %v5929_v59 }
 0x335   : > { %v1280_v9 = vmax.f32 %v1216_v15, 0.0  ;;  %v1226_v15 = vsub.f32 %v5832_v40, %v6022_v51 }
 0x336   : > { %v1331_v2 = vadd.f32 %v1330_v22, %v1270_v26  ;;  %v5182_v22 = vadd.f32 0.5, %v5920_v63  ;;  %v1057_v29 = vmax.f32 %v5184_v54, 0.0  ;;  %v5190_v63 = vadd.f32 0.5, %v5932_v13 }
 0x337   : > { %v1290_v54 = vmax.f32 %v1226_v15, 0.0  ;;  %v5196_v15 = vadd.f32 0.5, %v5941_v55 }
 0x338   : > { %v1332_v4 = vadd.f32 %v1331_v2, %v1272_v3  ;;  %v1222_v2 = vsub.f32 %v5826_v32, %v6022_v51  ;;  %v1282_v3 = vmax.f32 %v1218_v1, 0.0  ;;  %v1228_v1 = vsub.f32 %v5835_v44, %v6022_v51 }
 0x33a   : > { %v1333_v21 = vadd.f32 %v1332_v4, %v1274_v58  ;;  %v1224_v4 = vsub.f32 %v5829_v36, %v6022_v51  ;;  %v1284_v58 = vmax.f32 %v1220_v57, 0.0  ;;  %v1292_v59 = vmax.f32 %v1228_v1, 0.0 }
 0x33b   : > { %v5198_v1 = vadd.f32 0.5, %v5944_v28 }
 0x33c   : > { %v1334_v24 = vadd.f32 %v1333_v21, %v1276_v23  ;;  %v5186_v21 = vadd.f32 0.5, %v5926_v11  ;;  %v1055_v23 = vmax.f32 %v5182_v22, 0.0  ;;  %v1230_v22 = vsub.f32 %v5838_v48, %v6022_v51 }
 0x33d   : > { %v5192_v11 = vadd.f32 0.5, %v5935_v7 }
 0x33e   : > { %v1335_v26 = vadd.f32 %v1334_v24, %v1278_v20  ;;  %v1286_v20 = vmax.f32 %v1222_v2, 0.0  ;;  %v1059_v57 = vmax.f32 %v5186_v21, 0.0  ;;  %v1061_v2 = vmax.f32 %v5188_v35, 0.0 }
 0x33f   : > { %v1294_v21 = vmax.f32 %v1230_v22, 0.0  ;;  %v1236_v35 = vsub.f32 %v5847_v60, %v6022_v51 }
 0x340   : > { %v1336_v18 = vadd.f32 %v1335_v26, %v1280_v9  ;;  %v1288_v9 = vmax.f32 %v1224_v4, 0.0  ;;  %v5194_v4 = vadd.f32 0.5, %v5938_v61 }
 0x342   : > { %v1337_v62 = vadd.f32 %v1336_v18, %v1282_v3  ;;  %v1155_v3 = vadd.f32 %v1057_v29, %v1055_v23  ;;  %v1234_v29 = vsub.f32 %v5844_v56, %v6022_v51 }
 0x344   : > { %v1338_v24 = vadd.f32 %v1337_v62, %v1284_v58  ;;  %v1156_v58 = vadd.f32 %v1155_v3, %v1059_v57  ;;  %v1232_v62 = vsub.f32 %v5841_v52, %v6022_v51 }
 0x346   : > { %v1339_v26 = vadd.f32 %v1338_v24, %v1286_v20  ;;  %v1063_v20 = vmax.f32 %v5190_v63, 0.0  ;;  %v1157_v24 = vadd.f32 %v1156_v58, %v1061_v2  ;;  %v1296_v57 = vmax.f32 %v1232_v62, 0.0 }
 0x347   : > { %v1238_v63 = vsub.f32 %v5850_v0, %v6022_v51  ;;  %v1298_v2 = vmax.f32 %v1234_v29, 0.0  ;;  %v5202_v62 = vadd.f32 0.5, %v5950_v34  ;;  %v5204_v29 = vadd.f32 0.5, %v5953_v38 }
 0x348   : > { %v1340_v18 = vadd.f32 %v1339_v26, %v1288_v9  ;;  %v1065_v9 = vmax.f32 %v5192_v11, 0.0  ;;  %v1158_v26 = vadd.f32 %v1157_v24, %v1063_v20  ;;  %v1240_v11 = vsub.f32 %v5853_v6, %v6022_v51 }
 0x349   : > { %v1300_v20 = vmax.f32 %v1236_v35, 0.0  ;;  %v5206_v35 = vadd.f32 0.5, %v5956_v42 }
 0x34a   : > { %v1341_v44 = vadd.f32 %v1340_v18, %v1290_v54  ;;  %v1067_v54 = vmax.f32 %v5194_v4, 0.0  ;;  %v1159_v18 = vadd.f32 %v1158_v26, %v1065_v9  ;;  %v1242_v4 = vsub.f32 %v5856_v10, %v6022_v51 }
 0x34b   : > { %v1302_v9 = vmax.f32 %v1238_v63, 0.0  ;;  %v5208_v63 = vadd.f32 0.5, %v5959_v46 }
 0x34c   : > { %v1342_v23 = vadd.f32 %v1341_v44, %v1292_v59  ;;  %v5200_v44 = vadd.f32 0.5, %v5947_v31  ;;  %v1069_v59 = vmax.f32 %v5196_v15, 0.0  ;;  %v1160_v22 = vadd.f32 %v1159_v18, %v1067_v54 }
 0x34d   : > { %v1244_v15 = vsub.f32 %v5859_v14, %v6022_v51  ;;  %v1304_v54 = vmax.f32 %v1240_v11, 0.0  ;;  %v5210_v11 = vadd.f32 0.5, %v5962_v43 }
 0x34e   : > { %v1343_v3 = vadd.f32 %v1342_v23, %v1294_v21  ;;  %v1071_v21 = vmax.f32 %v5198_v1, 0.0  ;;  %v1161_v23 = vadd.f32 %v1160_v22, %v1069_v59  ;;  %v1246_v1 = vsub.f32 %v5862_v19, %v6022_v51 }
 0x34f   : > { %v1306_v59 = vmax.f32 %v1242_v4, 0.0  ;;  %v5212_v4 = vadd.f32 0.5, %v5965_v17 }
 0x350   : > { %v1344_v58 = vadd.f32 %v1343_v3, %v1296_v57  ;;  %v1073_v57 = vmax.f32 %v5200_v44, 0.0  ;;  %v1162_v3 = vadd.f32 %v1161_v23, %v1071_v21  ;;  %v1248_v44 = vsub.f32 %v5865_v30, %v6022_v51 }
 0x351   : > { %v1308_v21 = vmax.f32 %v1244_v15, 0.0  ;;  %v5214_v15 = vadd.f32 0.5, %v5968_v16 }
 0x352   : > { %v1345_v24 = vadd.f32 %v1344_v58, %v1298_v2  ;;  %v1075_v2 = vmax.f32 %v5202_v62, 0.0  ;;  %v1163_v58 = vadd.f32 %v1162_v3, %v1073_v57  ;;  %v1250_v62 = vsub.f32 %v5867_v37, %v6022_v51 }
 0x353   : > { %v1310_v57 = vmax.f32 %v1246_v1, 0.0  ;;  %v5216_v1 = vadd.f32 0.5, %v5974_v8 }
 0x354   : > { %v1346_v26 = vadd.f32 %v1345_v24, %v1300_v20  ;;  %v1077_v20 = vmax.f32 %v5204_v29, 0.0  ;;  %v1164_v24 = vadd.f32 %v1163_v58, %v1075_v2  ;;  %v1252_v29 = vsub.f32 %v5869_v49, %v6022_v51 }
 0x355   : > { %v1312_v2 = vmax.f32 %v1248_v44, 0.0  ;;  %v5218_v44 = vadd.f32 0.5, %v5977_v12 }
 0x356   : > { %v1347_v18 = vadd.f32 %v1346_v26, %v1302_v9  ;;  %v1079_v9 = vmax.f32 %v5206_v35, 0.0  ;;  %v1165_v26 = vadd.f32 %v1164_v24, %v1077_v20  ;;  %v1254_v35 = vsub.f32 %v5871_v45, %v6022_v51 }
 0x357   : > { %v1314_v20 = vmax.f32 %v1250_v62, 0.0  ;;  %v5220_v62 = vadd.f32 0.5, %v5983_v5 }
 0x358   : > { %v1348_v22 = vadd.f32 %v1347_v18, %v1304_v54  ;;  %v1081_v54 = vmax.f32 %v5208_v63, 0.0  ;;  %v1166_v18 = vadd.f32 %v1165_v26, %v1079_v9  ;;  %v1256_v63 = vsub.f32 %v5873_v53, %v6022_v51 }
 0x359   : > { %v1316_v9 = vmax.f32 %v1252_v29, 0.0  ;;  %v5222_v29 = vadd.f32 0.5, %v5986_v47 }
 0x35a   : > { %v1349_v23 = vadd.f32 %v1348_v22, %v1306_v59  ;;  %v1083_v59 = vmax.f32 %v5210_v11, 0.0  ;;  %v1167_v22 = vadd.f32 %v1166_v18, %v1081_v54  ;;  %v1258_v11 = vsub.f32 %v5875_v39, %v6022_v51 }
 0x35b   : > { %v1318_v54 = vmax.f32 %v1254_v35, 0.0  ;;  %v9171_v35 = vld [vmem:[#allocation20_spill] sm:$0xff] }
 0x35c   : > { %v1350_v3 = vadd.f32 %v1349_v23, %v1308_v21  ;;  %v1085_v21 = vmax.f32 %v5212_v4, 0.0  ;;  %v1168_v23 = vadd.f32 %v1167_v22, %v1083_v59  ;;  %v9169_v4 = vld [vmem:[#allocation58_spill] sm:$0xff]  ;;  %v1320_v22 = vmax.f32 %v1256_v63, 0.0  ;;  %v9173_v63 = vld [vmem:[#allocation21_spill] sm:$0xff] }
 0x35d   : > { %v1260_v59 = vsub.f32 %v9169_v4, %v6022_v51 }
 0x35e   : > { %v1351_v58 = vadd.f32 %v1350_v3, %v1310_v57  ;;  %v1087_v57 = vmax.f32 %v5214_v15, 0.0  ;;  %v1169_v3 = vadd.f32 %v1168_v23, %v1085_v21  ;;  %v9170_v15 = vld [vmem:[#allocation59_spill] sm:$0xff]  ;;  %v1322_v23 = vmax.f32 %v1258_v11, 0.0 }
 0x35f   : > { %v1262_v21 = vsub.f32 %v9170_v15, %v6022_v51 }
 0x360   : > { %v1352_v24 = vadd.f32 %v1351_v58, %v1312_v2  ;;  %v1089_v2 = vmax.f32 %v5216_v1, 0.0  ;;  %v1170_v58 = vadd.f32 %v1169_v3, %v1087_v57  ;;  %v9172_v1 = vld [vmem:[#allocation60_spill] sm:$0xff]  ;;  %v1324_v3 = vmax.f32 %v1260_v59, 0.0 }
 0x361   : > { %v1264_v57 = vsub.f32 %v9172_v1, %v6022_v51 }
 0x362   : > { %v1353_v26 = vadd.f32 %v1352_v24, %v1314_v20  ;;  %v1091_v20 = vmax.f32 %v5218_v44, 0.0  ;;  %v1171_v24 = vadd.f32 %v1170_v58, %v1089_v2  ;;  %v1326_v44 = vmax.f32 %v1262_v21, 0.0 }
 0x363   : > { %v5228_v58 = vadd.f32 0.5, %v5995_v50 }
 0x364   : > { %v1354_v18 = vadd.f32 %v1353_v26, %v1316_v9  ;;  %v5224_v9 = vadd.f32 0.5, %v9171_v35  ;;  %v1093_v26 = vmax.f32 %v5220_v62, 0.0  ;;  %v1172_v5 = vadd.f32 %v1171_v24, %v1091_v20  ;;  %v9174_v35 = vld [vmem:[#allocation23_spill] sm:$0xff] }
 0x365   : > { %v5230_v62 = vadd.f32 0.5, %v9174_v35  ;;  %v1101_v46 = vmax.f32 %v5228_v58, 0.0 }
 0x366   : > { %v1355_v8 = vadd.f32 %v1354_v18, %v1318_v54  ;;  %v5226_v54 = vadd.f32 0.5, %v9173_v63  ;;  %v1095_v18 = vmax.f32 %v5222_v29, 0.0  ;;  %v1173_v47 = vadd.f32 %v1172_v5, %v1093_v26 }
 0x367   : > { %v1097_v17 = vmax.f32 %v5224_v9, 0.0  ;;  %v1103_v29 = vmax.f32 %v5230_v62, 0.0 }
 0x368   : > { %v1356_v12 = vadd.f32 %v1355_v8, %v1320_v22  ;;  %v1174_v11 = vadd.f32 %v1173_v47, %v1095_v18  ;;  %v1328_v8 = vmax.f32 %v1264_v57, 0.0  ;;  %v1099_v20 = vmax.f32 %v5226_v54, 0.0 }
 0x36a   : > { %v1357_v16 = vadd.f32 %v1356_v12, %v1322_v23  ;;  %v1175_v24 = vadd.f32 %v1174_v11, %v1097_v17  ;;  %v9175_v23 = vld [vmem:[#allocation24_spill] sm:$0xff] }
 0x36b   : > { %v5232_v63 = vadd.f32 0.5, %v9175_v23 }
 0x36c   : > { %v1358_v2 = vadd.f32 %v1357_v16, %v1324_v3  ;;  %v1176_v59 = vadd.f32 %v1175_v24, %v1099_v20  ;;  %v9176_v3 = vld [vmem:[#allocation25_spill] sm:$0xff]  ;;  %v9180_v24 = vld [vmem:[#allocation76_spill] sm:$0xff] }
 0x36d   : > { %v5234_v9 = vadd.f32 0.5, %v9176_v3  ;;  %v1105_v47 = vmax.f32 %v5232_v63, 0.0 }
 0x36e   : > { %v1359_v22 = vadd.f32 %v1358_v2, %v1326_v44  ;;  %v1177_v5 = vadd.f32 %v1176_v59, %v1101_v46  ;;  %v9177_v2 = vld [vmem:[#allocation26_spill] sm:$0xff]  ;;  %v9179_v46 = vld [vmem:[#allocation75_spill] sm:$0xff]  ;;  %v9181_v59 = vld [vmem:[#allocation28_spill] sm:$0xff] }
 0x36f   : > { %v5236_v54 = vadd.f32 0.5, %v9177_v2  ;;  %v1107_v17 = vmax.f32 %v5234_v9, 0.0 }
 0x370   : > { %v1360_v43 = vadd.f32 %v1359_v22, %v1328_v8  ;;  %v1178_v16 = vadd.f32 %v1177_v5, %v1103_v29  ;;  %v9178_v8 = vld [vmem:[#allocation27_spill] sm:$0xff] }
 0x371   : > { %v5238_v22 = vadd.f32 0.5, %v9178_v8  ;;  %v1109_v20 = vmax.f32 %v5236_v54, 0.0 }
 0x372   : > { %v1361_v12 = vrot.slane %v1360_v43, 4  ;;  %v1179_v18 = vadd.f32 %v1178_v16, %v1105_v47  ;;  %v9182_v16 = vld [vmem:[#allocation77_spill] sm:$0xff] }
 0x373   : > { %v1111_v29 = vmax.f32 %v5238_v22, 0.0 }
 0x374   : > { %v1362_v21 = vadd.f32 %v1361_v12, %v1360_v43  ;;  %v1180_v58 = vadd.f32 %v1179_v18, %v1107_v17  ;;  %v5240_v12 = vadd.f32 0.5, %v9181_v59  ;;  %v9183_v18 = vld [vmem:[#allocation78_spill] sm:$0xff]  ;;  %v9184_v17 = vld [vmem:[#allocation29_spill] sm:$0xff] }
 0x376   : > { %v1363_v26 = vrot.slane %v1362_v21, 2  ;;  %v1181_v62 = vadd.f32 %v1180_v58, %v1109_v20  ;;  %v1113_v9 = vmax.f32 %v5240_v12, 0.0 }
 0x378   : > { %v1364_v57 = vadd.f32 %v1363_v26, %v1362_v21  ;;  %v1182_v21 = vadd.f32 %v1181_v62, %v1111_v29  ;;  %v5242_v26 = vadd.f32 0.5, %v9182_v16 }
 0x37a   : > { %v1365_v44 = vrot.slane %v1364_v57, 1  ;;  %v1115_v54 = vmax.f32 %v5242_v26, 0.0 }
 0x37c   : > { %v1366_v11 = vadd.f32 %v1365_v44, %v1364_v57  ;;  %v1183_v57 = vadd.f32 %v1182_v21, %v1113_v9  ;;  %v5244_v44 = vadd.f32 0.5, %v9183_v18  ;;  %v9188_v9 = vld [vmem:[#allocation33_spill] sm:$0xff] }
 0x37e   : > { %vm1404_vm12 = vcmp.ge.f32.partialorder %v1366_v11, 1.0  ;;  %v9185_v11 = vld [vmem:[#allocation30_spill] sm:$0xff]  ;;  %v1184_v22 = vadd.f32 %v1183_v57, %v1115_v54  ;;  %v1117_v20 = vmax.f32 %v5244_v44, 0.0 }
 0x37f   : > { %v6119_v43 = vsel %vm1404_vm12, %v6022_v51, %v9179_v46  ;;  %v6123_v63 = vsel %vm1404_vm12, %v9180_v24, %v6022_v51  ;;  %v9186_v46 = vld [vmem:[#allocation31_spill] sm:$0xff] }
 0x380   : > { %v1410_v5 = vadd.f32 %v6123_v63, %v6119_v43  ;;  %v1185_v12 = vadd.f32 %v1184_v22, %v1117_v20 }
 0x382   : > { %v6129_v47 = vmul.f32 0.5, %v1410_v5  ;;  %v9187_v5 = vld [vmem:[#allocation32_spill] sm:$0xff]  ;;  %v1186_v59 = vrot.slane %v1185_v12, 4 }
 0x384   : > { %v1414_v51 = vsub.f32 %v9184_v17, %v6129_v47  ;;  %v1416_v58 = vsub.f32 %v9185_v11, %v6129_v47  ;;  %v1418_v62 = vsub.f32 %v9186_v46, %v6129_v47  ;;  %v1420_v21 = vsub.f32 %v9187_v5, %v6129_v47 }
 0x385   : > { %v1422_v26 = vsub.f32 %v9188_v9, %v6129_v47  ;;  %v1424_v8 = vsub.f32 %v5811_v41, %v6129_v47  ;;  %v1187_v54 = vadd.f32 %v1186_v59, %v1185_v12  ;;  %v1428_v2 = vsub.f32 %v5817_v25, %v6129_v47  ;;  %v9189_v59 = vld [vmem:[#allocation38_spill] sm:$0xff] }
 0x386   : > { %v1478_v24 = vmax.f32 %v1414_v51, 0.0  ;;  %v1480_v29 = vmax.f32 %v1416_v58, 0.0  ;;  %v1482_v18 = vmax.f32 %v1418_v62, 0.0  ;;  %v1484_v57 = vmax.f32 %v1420_v21, 0.0 }
 0x387   : > { %v1426_v51 = vsub.f32 %v5814_v33, %v6129_v47  ;;  %v1486_v58 = vmax.f32 %v1422_v26, 0.0  ;;  %v1188_v20 = vrot.slane %v1187_v54, 2  ;;  %v1488_v3 = vmax.f32 %v1424_v8, 0.0 }
 0x388   : > { %v1542_v16 = vadd.f32 %v1480_v29, %v1478_v24  ;;  %v1430_v24 = vsub.f32 %v5820_v27, %v6129_v47  ;;  %v1436_v8 = vsub.f32 %v5829_v36, %v6129_v47 }
 0x389   : > { %v1189_v62 = vadd.f32 %v1188_v20, %v1187_v54  ;;  %v1490_v29 = vmax.f32 %v1426_v51, 0.0 }
 0x38a   : > { %v1543_v44 = vadd.f32 %v1542_v16, %v1482_v18  ;;  %v1432_v16 = vsub.f32 %v9189_v59, %v6129_v47  ;;  %v1492_v18 = vmax.f32 %v1428_v2, 0.0 }
 0x38b   : > { %v1190_v21 = vrot.slane %v1189_v62, 1 }
 0x38c   : > { %v1544_v22 = vadd.f32 %v1543_v44, %v1484_v57  ;;  %v1434_v57 = vsub.f32 %v5826_v32, %v6129_v47  ;;  %v1494_v44 = vmax.f32 %v1430_v24, 0.0  ;;  %v1496_v54 = vmax.f32 %v1432_v16, 0.0 }
 0x38d   : > { %v1191_v26 = vadd.f32 %v1190_v21, %v1189_v62  ;;  %v9194_v62 = vld [vmem:[#allocation42_spill] sm:$0xff] }
 0x38e   : > { %v1545_v9 = vadd.f32 %v1544_v22, %v1486_v58  ;;  %v9190_v22 = vmov -1.0   ;;  %v1440_v24 = vsub.f32 %v9194_v62, %v6129_v47 }
 0x38f   : > { %vm1193_vm13 = vcmp.ge.f32.partialorder %v1191_v26, 1.0  ;;  %v1444_v26 = vsub.f32 %v5841_v52, %v6129_v47 }
 0x390   : > { %v1546_v41 = vadd.f32 %v1545_v9, %v1488_v3  ;;  %v1438_v3 = vsub.f32 %v5832_v40, %v6129_v47  ;;  %v1498_v9 = vmax.f32 %v1434_v57, 0.0  ;;  %v6159_v2 = vsel %vm1193_vm13, -0.5, %v9190_v22 }
 0x391   : > { %9191 = vst [vmem:[#allocation75_spill] sm:$0xff] %v6159_v2  ;;  %v1504_v57 = vmax.f32 %v1440_v24, 0.0  ;;  %v9195_v24 = vld [vmem:[#allocation61_spill] sm:$0xff] }
 0x392   : > { %v1547_v12 = vadd.f32 %v1546_v41, %v1490_v29  ;;  %v9192_v41 = vmov -0.5   ;;  %v1500_v29 = vmax.f32 %v1436_v8, 0.0  ;;  %v1502_v16 = vmax.f32 %v1438_v3, 0.0 }
 0x393   : > { %v6162_v20 = vsel %vm1193_vm13, 0.0, %v9192_v41  ;;  %v1508_v3 = vmax.f32 %v1444_v26, 0.0  ;;  %v1450_v41 = vsub.f32 %v5850_v0, %v6129_v47  ;;  %v1454_v26 = vsub.f32 %v5856_v10, %v6129_v47  ;;  %v9198_v0 = vld [vmem:[#allocation64_spill] sm:$0xff] }
 0x394   : > { %v1548_v25 = vadd.f32 %v1547_v12, %v1492_v18  ;;  %9193 = vst [vmem:[#allocation76_spill] sm:$0xff] %v6162_v20  ;;  %v1199_v12 = vadd.f32 %v6162_v20, %v6159_v2 }
 0x396   : > { %v1549_v58 = vadd.f32 %v1548_v25, %v1494_v44  ;;  %v1442_v25 = vsub.f32 %v5838_v48, %v6129_v47  ;;  %v6174_v8 = vmul.f32 0.5, %v1199_v12 }
 0x398   : > { %v1550_v51 = vadd.f32 %v1549_v58, %v1496_v54  ;;  %v1446_v54 = vsub.f32 %v5844_v56, %v6129_v47  ;;  %v1506_v58 = vmax.f32 %v1442_v25, 0.0  ;;  %v1452_v25 = vsub.f32 %v5853_v6, %v6129_v47 }
 0x399   : > { %v1209_v6 = vsub.f32 %v9198_v0, %v6174_v8  ;;  %v1462_v0 = vsub.f32 %v5867_v37, %v6129_v47 }
 0x39a   : > { %v1551_v21 = vadd.f32 %v1550_v51, %v1498_v9  ;;  %v1448_v9 = vsub.f32 %v5847_v60, %v6129_v47  ;;  %v1516_v2 = vmax.f32 %v1452_v25, 0.0  ;;  %v1213_v25 = vsub.f32 %v5935_v7, %v6174_v8 }
 0x39c   : > { %v1552_v18 = vadd.f32 %v1551_v21, %v1500_v29  ;;  %v1510_v29 = vmax.f32 %v1446_v54, 0.0  ;;  %v1512_v12 = vmax.f32 %v1448_v9, 0.0  ;;  %v1458_v9 = vsub.f32 %v5862_v19, %v6129_v47 }
 0x39e   : > { %v1553_v44 = vadd.f32 %v1552_v18, %v1502_v16  ;;  %v1203_v16 = vsub.f32 %v9195_v24, %v6174_v8  ;;  %v9196_v18 = vld [vmem:[#allocation62_spill] sm:$0xff]  ;;  %v1456_v24 = vsub.f32 %v5859_v14, %v6129_v47 }
 0x39f   : > { %v1205_v20 = vsub.f32 %v9196_v18, %v6174_v8 }
 0x3a0   : > { %v1554_v22 = vadd.f32 %v1553_v44, %v1504_v57  ;;  %v1514_v44 = vmax.f32 %v1450_v41, 0.0  ;;  %v1211_v41 = vsub.f32 %v5932_v13, %v6174_v8 }
 0x3a2   : > { %v1555_v51 = vadd.f32 %v1554_v22, %v1506_v58  ;;  %v9197_v22 = vld [vmem:[#allocation63_spill] sm:$0xff] }
 0x3a3   : > { %v1207_v54 = vsub.f32 %v9197_v22, %v6174_v8 }
 0x3a4   : > { %v1556_v21 = vadd.f32 %v1555_v51, %v1508_v3  ;;  %v1267_v3 = vmax.f32 %v1203_v16, 0.0  ;;  %v1269_v51 = vmax.f32 %v1205_v20, 0.0  ;;  %v1460_v20 = vsub.f32 %v5865_v30, %v6129_v47 }
 0x3a5   : > { %v1520_v16 = vmax.f32 %v1456_v24, 0.0 }
 0x3a6   : > { %v1557_v57 = vadd.f32 %v1556_v21, %v1510_v29  ;;  %v1518_v29 = vmax.f32 %v1454_v26, 0.0  ;;  %v1522_v26 = vmax.f32 %v1458_v9, 0.0  ;;  %v1524_v24 = vmax.f32 %v1460_v20, 0.0 }
 0x3a7   : > { %v1526_v9 = vmax.f32 %v1462_v0, 0.0 }
 0x3a8   : > { %v1558_v58 = vadd.f32 %v1557_v57, %v1512_v12  ;;  %v1271_v12 = vmax.f32 %v1207_v54, 0.0  ;;  %v1367_v57 = vadd.f32 %v1269_v51, %v1267_v3  ;;  %v1275_v54 = vmax.f32 %v1211_v41, 0.0 }
 0x3a9   : > { %v1464_v51 = vsub.f32 %v5869_v49, %v6129_v47 }
 0x3aa   : > { %v1559_v18 = vadd.f32 %v1558_v58, %v1514_v44  ;;  %v1273_v44 = vmax.f32 %v1209_v6, 0.0  ;;  %v1368_v58 = vadd.f32 %v1367_v57, %v1271_v12  ;;  %v1277_v6 = vmax.f32 %v1213_v25, 0.0 }
 0x3ab   : > { %v1466_v57 = vsub.f32 %v5871_v45, %v6129_v47  ;;  %v1528_v20 = vmax.f32 %v1464_v51, 0.0 }
 0x3ac   : > { %v1560_v21 = vadd.f32 %v1559_v18, %v1516_v2  ;;  %v1215_v18 = vsub.f32 %v5938_v61, %v6174_v8  ;;  %v1369_v3 = vadd.f32 %v1368_v58, %v1273_v44  ;;  %v1468_v58 = vsub.f32 %v5873_v53, %v6129_v47 }
 0x3ad   : > { %v1530_v0 = vmax.f32 %v1466_v57, 0.0 }
 0x3ae   : > { %v1561_v22 = vadd.f32 %v1560_v21, %v1518_v29  ;;  %v1217_v21 = vsub.f32 %v5941_v55, %v6174_v8  ;;  %v1370_v12 = vadd.f32 %v1369_v3, %v1275_v54  ;;  %v1279_v41 = vmax.f32 %v1215_v18, 0.0 }
 0x3af   : > { %v1470_v3 = vsub.f32 %v5875_v39, %v6129_v47  ;;  %v1532_v51 = vmax.f32 %v1468_v58, 0.0 }
 0x3b0   : > { %v1562_v2 = vadd.f32 %v1561_v22, %v1520_v16  ;;  %v1219_v16 = vsub.f32 %v5944_v28, %v6174_v8  ;;  %v1371_v44 = vadd.f32 %v1370_v12, %v1277_v6  ;;  %v1281_v25 = vmax.f32 %v1217_v21, 0.0 }
 0x3b1   : > { %v1472_v12 = vsub.f32 %v9169_v4, %v6129_v47  ;;  %v1534_v57 = vmax.f32 %v1470_v3, 0.0  ;;  %v9200_v3 = vld [vmem:[#allocation13_spill] sm:$0xff] }
 0x3b2   : > { %v1563_v29 = vadd.f32 %v1562_v2, %v1522_v26  ;;  %v1221_v2 = vsub.f32 %v5947_v31, %v6174_v8  ;;  %v1372_v54 = vadd.f32 %v1371_v44, %v1279_v41  ;;  %v1283_v18 = vmax.f32 %v1219_v16, 0.0 }
 0x3b3   : > { %v1474_v44 = vsub.f32 %v9170_v15, %v6129_v47  ;;  %v1536_v58 = vmax.f32 %v1472_v12, 0.0 }
 0x3b4   : > { %v1564_v22 = vadd.f32 %v1563_v29, %v1524_v24  ;;  %v1223_v29 = vsub.f32 %v5950_v34, %v6174_v8  ;;  %v1373_v6 = vadd.f32 %v1372_v54, %v1281_v25  ;;  %v1285_v21 = vmax.f32 %v1221_v2, 0.0 }
 0x3b5   : > { %v1476_v54 = vsub.f32 %v9172_v1, %v6129_v47 }
 0x3b6   : > { %v1565_v26 = vadd.f32 %v1564_v22, %v1526_v9  ;;  %v1225_v22 = vsub.f32 %v5953_v38, %v6174_v8  ;;  %v1374_v41 = vadd.f32 %v1373_v6, %v1283_v18  ;;  %v1287_v16 = vmax.f32 %v1223_v29, 0.0 }
 0x3b7   : > { %v1538_v6 = vmax.f32 %v1474_v44, 0.0 }
 0x3b8   : > { %v1566_v24 = vadd.f32 %v1565_v26, %v1528_v20  ;;  %v1227_v26 = vsub.f32 %v5956_v42, %v6174_v8  ;;  %v1375_v25 = vadd.f32 %v1374_v41, %v1285_v21  ;;  %v1289_v2 = vmax.f32 %v1225_v22, 0.0  ;;  %v9201_v21 = vld [vmem:[#allocation14_spill] sm:$0xff]  ;;  %v9202_v22 = vld [vmem:[#allocation15_spill] sm:$0xff] }
 0x3b9   : > { %v1540_v42 = vmax.f32 %v1476_v54, 0.0  ;;  %v1233_v41 = vsub.f32 %v9201_v21, %v6174_v8  ;;  %v1235_v44 = vsub.f32 %v9202_v22, %v6174_v8  ;;  %v9203_v54 = vld [vmem:[#allocation16_spill] sm:$0xff] }
 0x3ba   : > { %v1567_v9 = vadd.f32 %v1566_v24, %v1530_v0  ;;  %v9199_v24 = vld [vmem:[#allocation74_spill] sm:$0xff]  ;;  %v1376_v18 = vadd.f32 %v1375_v25, %v1287_v16 }
 0x3bb   : > { %v1229_v38 = vsub.f32 %v9199_v24, %v6174_v8  ;;  %v1297_v16 = vmax.f32 %v1233_v41, 0.0 }
 0x3bc   : > { %v1568_v20 = vadd.f32 %v1567_v9, %v1532_v51  ;;  %v1231_v51 = vsub.f32 %v9200_v3, %v6174_v8  ;;  %v1291_v9 = vmax.f32 %v1227_v26, 0.0  ;;  %v1377_v31 = vadd.f32 %v1376_v18, %v1289_v2 }
 0x3bd   : > { %v1293_v28 = vmax.f32 %v1229_v38, 0.0  ;;  %v1299_v2 = vmax.f32 %v1235_v44, 0.0 }
 0x3be   : > { %v1569_v0 = vadd.f32 %v1568_v20, %v1534_v57  ;;  %v1378_v12 = vadd.f32 %v1377_v31, %v1291_v9  ;;  %v1295_v20 = vmax.f32 %v1231_v51, 0.0  ;;  %v9204_v31 = vld [vmem:[#allocation17_spill] sm:$0xff] }
 0x3c0   : > { %v1570_v34 = vadd.f32 %v1569_v0, %v1536_v58  ;;  %v1379_v55 = vadd.f32 %v1378_v12, %v1293_v28 }
 0x3c2   : > { %v1571_v29 = vadd.f32 %v1570_v34, %v1538_v6  ;;  %v1380_v25 = vadd.f32 %v1379_v55, %v1295_v20  ;;  %v1237_v34 = vsub.f32 %v9203_v54, %v6174_v8  ;;  %v9206_v20 = vld [vmem:[#allocation19_spill] sm:$0xff] }
 0x3c3   : > { %v1243_v44 = vsub.f32 %v9206_v20, %v6174_v8 }
 0x3c4   : > { %v1572_v57 = vadd.f32 %v1571_v29, %v1540_v42  ;;  %v1381_v0 = vadd.f32 %v1380_v25, %v1297_v16  ;;  %v1239_v42 = vsub.f32 %v9204_v31, %v6174_v8  ;;  %v1301_v28 = vmax.f32 %v1237_v34, 0.0  ;;  %v9205_v29 = vld [vmem:[#allocation18_spill] sm:$0xff] }
 0x3c5   : > { %v1241_v55 = vsub.f32 %v9205_v29, %v6174_v8  ;;  %v1307_v34 = vmax.f32 %v1243_v44, 0.0  ;;  %v9213_v29 = vld [vmem:[#allocation27_spill] sm:$0xff] }
 0x3c6   : > { %v1573_v24 = vrot.slane %v1572_v57, 4  ;;  %v1382_v6 = vadd.f32 %v1381_v0, %v1299_v2  ;;  %v9207_v0 = vld [vmem:[#allocation20_spill] sm:$0xff] }
 0x3c7   : > { %v1305_v16 = vmax.f32 %v1241_v55, 0.0 }
 0x3c8   : > { %v1574_v58 = vadd.f32 %v1573_v24, %v1572_v57  ;;  %v1383_v9 = vadd.f32 %v1382_v6, %v1301_v28  ;;  %v1303_v24 = vmax.f32 %v1239_v42, 0.0  ;;  %v1249_v28 = vsub.f32 %v5995_v50, %v6174_v8 }
 0x3ca   : > { %v1575_v26 = vrot.slane %v1574_v58, 2  ;;  %v1384_v41 = vadd.f32 %v1383_v9, %v1303_v24  ;;  %v1251_v9 = vsub.f32 %v9174_v35, %v6174_v8 }
 0x3cc   : > { %v1576_v18 = vadd.f32 %v1575_v26, %v1574_v58  ;;  %v1385_v58 = vadd.f32 %v1384_v41, %v1305_v16  ;;  %v1245_v26 = vsub.f32 %v9207_v0, %v6174_v8  ;;  %v1253_v16 = vsub.f32 %v9175_v23, %v6174_v8 }
 0x3ce   : > { %v1577_v38 = vrot.slane %v1576_v18, 1 }
 0x3d0   : > { %v1578_v51 = vadd.f32 %v1577_v38, %v1576_v18  ;;  %v9208_v18 = vld [vmem:[#allocation21_spill] sm:$0xff] }
 0x3d1   : > { %v1247_v6 = vsub.f32 %v9208_v18, %v6174_v8 }
 0x3d2   : > { %vm1616_vm14 = vcmp.ge.f32.partialorder %v1578_v51, 1.0 }
 0x3d3   : > { %v6248_v12 = vsel %vm1616_vm14, %v6129_v47, %v6119_v43  ;;  %v6252_v57 = vsel %vm1616_vm14, %v6123_v63, %v6129_v47  ;;  %v1386_v43 = vadd.f32 %v1385_v58, %v1307_v34  ;;  %v1309_v63 = vmax.f32 %v1245_v26, 0.0  ;;  %v9209_v26 = vld [vmem:[#allocation25_spill] sm:$0xff] }
 0x3d4   : > { %v1622_v25 = vadd.f32 %v6252_v57, %v6248_v12  ;;  %v1311_v51 = vmax.f32 %v1247_v6, 0.0  ;;  %v1313_v58 = vmax.f32 %v1249_v28, 0.0  ;;  %v1255_v34 = vsub.f32 %v9209_v26, %v6174_v8  ;;  %v9210_v6 = vld [vmem:[#allocation33_spill] sm:$0xff] }
 0x3d5   : > { %v1387_v42 = vadd.f32 %v1386_v43, %v1309_v63  ;;  %v1315_v43 = vmax.f32 %v1251_v9, 0.0  ;;  %v1259_v26 = vsub.f32 %v9213_v29, %v6174_v8 }
 0x3d6   : > { %v6260_v2 = vmul.f32 0.5, %v1622_v25  ;;  %v1319_v9 = vmax.f32 %v1255_v34, 0.0 }
 0x3d7   : > { %v1388_v44 = vadd.f32 %v1387_v42, %v1311_v51  ;;  %v1317_v42 = vmax.f32 %v1253_v16, 0.0  ;;  %v9212_v51 = vld [vmem:[#allocation34_spill] sm:$0xff]  ;;  %v1323_v34 = vmax.f32 %v1259_v26, 0.0 }
 0x3d8   : > { %v1626_v47 = vsub.f32 %v9184_v17, %v6260_v2  ;;  %v1628_v38 = vsub.f32 %v9185_v11, %v6260_v2  ;;  %v1630_v55 = vsub.f32 %v9186_v46, %v6260_v2  ;;  %v1632_v25 = vsub.f32 %v9187_v5, %v6260_v2 }
 0x3d9   : > { %v1634_v63 = vsub.f32 %v9210_v6, %v6260_v2  ;;  %v1389_v18 = vadd.f32 %v1388_v44, %v1313_v58  ;;  %v1636_v23 = vsub.f32 %v9212_v51, %v6260_v2  ;;  %v1638_v31 = vsub.f32 %v5814_v33, %v6260_v2  ;;  %v9214_v44 = vld [vmem:[#allocation28_spill] sm:$0xff] }
 0x3da   : > { %v1690_v24 = vmax.f32 %v1626_v47, 0.0  ;;  %v1692_v41 = vmax.f32 %v1628_v38, 0.0  ;;  %v1694_v35 = vmax.f32 %v1630_v55, 0.0  ;;  %v9211_v47 = vld [vmem:[#allocation26_spill] sm:$0xff]  ;;  %v1696_v0 = vmax.f32 %v1632_v25, 0.0 }
 0x3db   : > { %v1257_v38 = vsub.f32 %v9211_v47, %v6174_v8  ;;  %v1390_v28 = vadd.f32 %v1389_v18, %v1315_v43  ;;  %v1698_v55 = vmax.f32 %v1634_v63, 0.0  ;;  %v1261_v58 = vsub.f32 %v9214_v44, %v6174_v8  ;;  %v9215_v47 = vld [vmem:[#allocation36_spill] sm:$0xff]  ;;  %v9216_v18 = vld [vmem:[#allocation77_spill] sm:$0xff] }
 0x3dc   : > { %v1754_v50 = vadd.f32 %v1692_v41, %v1690_v24  ;;  %v1640_v51 = vsub.f32 %v9215_v47, %v6260_v2  ;;  %v1700_v25 = vmax.f32 %v1636_v23, 0.0  ;;  %v1263_v43 = vsub.f32 %v9216_v18, %v6174_v8 }
 0x3dd   : > { %v1391_v41 = vadd.f32 %v1390_v28, %v1317_v42  ;;  %v1321_v16 = vmax.f32 %v1257_v38, 0.0  ;;  %v1642_v29 = vsub.f32 %v5820_v27, %v6260_v2  ;;  %v1702_v63 = vmax.f32 %v1638_v31, 0.0  ;;  %v9217_v42 = vld [vmem:[#allocation78_spill] sm:$0xff] }
 0x3de   : > { %v1755_v20 = vadd.f32 %v1754_v50, %v1694_v35  ;;  %v1265_v28 = vsub.f32 %v9217_v42, %v6174_v8  ;;  %v1325_v38 = vmax.f32 %v1261_v58, 0.0  ;;  %v1644_v44 = vsub.f32 %v9189_v59, %v6260_v2 }
 0x3df   : > { %v1392_v35 = vadd.f32 %v1391_v41, %v1319_v9  ;;  %v1704_v23 = vmax.f32 %v1640_v51, 0.0  ;;  %v1646_v26 = vsub.f32 %v5826_v32, %v6260_v2  ;;  %v1706_v41 = vmax.f32 %v1642_v29, 0.0 }
 0x3e0   : > { %v1756_v24 = vadd.f32 %v1755_v20, %v1696_v0  ;;  %v1329_v31 = vmax.f32 %v1265_v28, 0.0  ;;  %v1654_v28 = vsub.f32 %v5838_v48, %v6260_v2 }
 0x3e1   : > { %v1393_v0 = vadd.f32 %v1392_v35, %v1321_v16  ;;  %v1648_v16 = vsub.f32 %v5829_v36, %v6260_v2  ;;  %v1650_v35 = vsub.f32 %v5832_v40, %v6260_v2  ;;  %v1710_v51 = vmax.f32 %v1646_v26, 0.0 }
 0x3e2   : > { %v1757_v50 = vadd.f32 %v1756_v24, %v1698_v55  ;;  %v1327_v24 = vmax.f32 %v1263_v43, 0.0  ;;  %v1652_v43 = vsub.f32 %v9194_v62, %v6260_v2  ;;  %v1718_v26 = vmax.f32 %v1654_v28, 0.0 }
 0x3e3   : > { %v1394_v9 = vadd.f32 %v1393_v0, %v1323_v34  ;;  %v1666_v28 = vsub.f32 %v5856_v10, %v6260_v2 }
 0x3e4   : > { %v1758_v20 = vadd.f32 %v1757_v50, %v1700_v25  ;;  %v1708_v25 = vmax.f32 %v1644_v44, 0.0 }
 0x3e5   : > { %v1395_v27 = vadd.f32 %v1394_v9, %v1325_v38  ;;  %v1714_v38 = vmax.f32 %v1650_v35, 0.0  ;;  %v9218_v35 = vld [vmem:[#allocation47_spill] sm:$0xff] }
 0x3e6   : > { %v1759_v55 = vadd.f32 %v1758_v20, %v1702_v63  ;;  %v1712_v20 = vmax.f32 %v1648_v16, 0.0  ;;  %v1660_v16 = vsub.f32 %v5847_v60, %v6260_v2 }
 0x3e7   : > { %v1396_v58 = vadd.f32 %v1395_v27, %v1327_v24  ;;  %v1656_v27 = vsub.f32 %v5841_v52, %v6260_v2  ;;  %v1658_v24 = vsub.f32 %v5844_v56, %v6260_v2 }
 0x3e8   : > { %v1760_v18 = vadd.f32 %v1759_v55, %v1704_v23 }
 0x3e9   : > { %v1397_v34 = vadd.f32 %v1396_v58, %v1329_v31 }
 0x3ea   : > { %v1761_v50 = vadd.f32 %v1760_v18, %v1706_v41  ;;  %v1716_v18 = vmax.f32 %v1652_v43, 0.0 }
 0x3eb   : > { %v1398_v0 = vrot.slane %v1397_v34, 4 }
 0x3ec   : > { %v1762_v63 = vadd.f32 %v1761_v50, %v1708_v25  ;;  %v1720_v25 = vmax.f32 %v1656_v27, 0.0  ;;  %v1668_v27 = vsub.f32 %v5859_v14, %v6260_v2 }
 0x3ed   : > { %v1399_v44 = vadd.f32 %v1398_v0, %v1397_v34  ;;  %v1724_v0 = vmax.f32 %v1660_v16, 0.0  ;;  %v1730_v16 = vmax.f32 %v1666_v28, 0.0 }
 0x3ee   : > { %v1763_v29 = vadd.f32 %v1762_v63, %v1710_v51  ;;  %v1662_v51 = vsub.f32 %v9218_v35, %v6260_v2  ;;  %v1722_v63 = vmax.f32 %v1658_v24, 0.0 }
 0x3ef   : > { %v1400_v9 = vrot.slane %v1399_v44, 2 }
 0x3f0   : > { %v1764_v23 = vadd.f32 %v1763_v29, %v1712_v20  ;;  %v9219_v20 = vld [vmem:[#allocation48_spill] sm:$0xff] }
 0x3f1   : > { %v1401_v31 = vadd.f32 %v1400_v9, %v1399_v44  ;;  %v1664_v29 = vsub.f32 %v9219_v20, %v6260_v2  ;;  %v9220_v9 = vld [vmem:[#allocation75_spill] sm:$0xff] }
 0x3f2   : > { %v1765_v55 = vadd.f32 %v1764_v23, %v1714_v38  ;;  %v1726_v23 = vmax.f32 %v1662_v51, 0.0 }
 0x3f3   : > { %v1402_v58 = vrot.slane %v1401_v31, 1 }
 0x3f4   : > { %v1766_v41 = vadd.f32 %v1765_v55, %v1716_v18  ;;  %v1728_v18 = vmax.f32 %v1664_v29, 0.0 }
 0x3f5   : > { %v1403_v43 = vadd.f32 %v1402_v58, %v1401_v31  ;;  %v1670_v31 = vsub.f32 %v5862_v19, %v6260_v2  ;;  %v1732_v58 = vmax.f32 %v1668_v27, 0.0 }
 0x3f6   : > { %v1767_v50 = vadd.f32 %v1766_v41, %v1718_v26  ;;  %v9222_v26 = vld [vmem:[#allocation76_spill] sm:$0xff] }
 0x3f7   : > { %vm1405_vm15 = vcmp.ge.f32.partialorder %v1403_v43, 1.0  ;;  %v1734_v43 = vmax.f32 %v1670_v31, 0.0 }
 0x3f8   : > { %v1768_v34 = vadd.f32 %v1767_v50, %v1720_v25  ;;  %v6328_v24 = vsel %vm1405_vm15, %v6174_v8, %v9220_v9  ;;  %v6332_v41 = vsel %vm1405_vm15, %v9222_v26, %v6174_v8  ;;  %v1672_v50 = vsub.f32 %v5865_v30, %v6260_v2  ;;  %v9224_v26 = vld [vmem:[#allocation61_spill] sm:$0xff] }
 0x3f9   : > { %9221 = vst [vmem:[#allocation75_spill] sm:$0xff] %v6328_v24  ;;  %9223 = vst [vmem:[#allocation76_spill] sm:$0xff] %v6332_v41  ;;  %v1676_v8 = vsub.f32 %v5869_v49, %v6260_v2 }
 0x3fa   : > { %v1769_v38 = vadd.f32 %v1768_v34, %v1722_v63  ;;  %v1411_v63 = vadd.f32 %v6332_v41, %v6328_v24  ;;  %v1674_v34 = vsub.f32 %v5867_v37, %v6260_v2 }
 0x3fc   : > { %v1770_v44 = vadd.f32 %v1769_v38, %v1724_v0  ;;  %v1736_v0 = vmax.f32 %v1672_v50, 0.0  ;;  %v6344_v28 = vmul.f32 0.5, %v1411_v63  ;;  %v1682_v50 = vsub.f32 %v5875_v39, %v6260_v2 }
 0x3fd   : > { %v1684_v63 = vsub.f32 %v9169_v4, %v6260_v2 }
 0x3fe   : > { %v1771_v55 = vadd.f32 %v1770_v44, %v1726_v23  ;;  %v1678_v23 = vsub.f32 %v5871_v45, %v6260_v2  ;;  %v1738_v44 = vmax.f32 %v1674_v34, 0.0  ;;  %v1415_v31 = vsub.f32 %v9224_v26, %v6344_v28  ;;  %v9227_v26 = vld [vmem:[#allocation64_spill] sm:$0xff] }
 0x3ff   : > { %v1421_v41 = vsub.f32 %v9227_v26, %v6344_v28  ;;  %v1427_v26 = vsub.f32 %v5938_v61, %v6344_v28 }
 0x400   : > { %v1772_v25 = vadd.f32 %v1771_v55, %v1728_v18  ;;  %v1680_v18 = vsub.f32 %v5873_v53, %v6260_v2  ;;  %v1740_v55 = vmax.f32 %v1676_v8, 0.0 }
 0x402   : > { %v1773_v51 = vadd.f32 %v1772_v25, %v1730_v16  ;;  %v9225_v16 = vld [vmem:[#allocation62_spill] sm:$0xff]  ;;  %v1744_v34 = vmax.f32 %v1680_v18, 0.0  ;;  %v1423_v18 = vsub.f32 %v5932_v13, %v6344_v28 }
 0x403   : > { %v1417_v25 = vsub.f32 %v9225_v16, %v6344_v28 }
 0x404   : > { %v1774_v29 = vadd.f32 %v1773_v51, %v1732_v58  ;;  %v1742_v58 = vmax.f32 %v1678_v23, 0.0  ;;  %v1688_v23 = vsub.f32 %v9172_v1, %v6260_v2  ;;  %v1487_v1 = vmax.f32 %v1423_v18, 0.0 }
 0x406   : > { %v1775_v38 = vadd.f32 %v1774_v29, %v1734_v43  ;;  %v9226_v29 = vld [vmem:[#allocation63_spill] sm:$0xff] }
 0x407   : > { %v1419_v8 = vsub.f32 %v9226_v29, %v6344_v28  ;;  %v1425_v29 = vsub.f32 %v5935_v7, %v6344_v28 }
 0x408   : > { %v1776_v27 = vadd.f32 %v1775_v38, %v1736_v0  ;;  %v1479_v0 = vmax.f32 %v1415_v31, 0.0  ;;  %v1481_v38 = vmax.f32 %v1417_v25, 0.0 }
 0x40a   : > { %v1777_v9 = vadd.f32 %v1776_v27, %v1738_v44  ;;  %v1686_v44 = vsub.f32 %v9170_v15, %v6260_v2  ;;  %v1746_v27 = vmax.f32 %v1682_v50, 0.0  ;;  %v1485_v50 = vmax.f32 %v1421_v41, 0.0 }
 0x40c   : > { %v1778_v51 = vadd.f32 %v1777_v9, %v1740_v55  ;;  %v1748_v55 = vmax.f32 %v1684_v63, 0.0  ;;  %v1750_v31 = vmax.f32 %v1686_v44, 0.0 }
 0x40e   : > { %v1779_v43 = vadd.f32 %v1778_v51, %v1742_v58  ;;  %v1483_v58 = vmax.f32 %v1419_v8, 0.0  ;;  %v1579_v51 = vadd.f32 %v1481_v38, %v1479_v0  ;;  %v9228_v8 = vld [vmem:[#allocation68_spill] sm:$0xff]  ;;  %v1491_v38 = vmax.f32 %v1427_v26, 0.0  ;;  %v9231_v26 = vld [vmem:[#allocation71_spill] sm:$0xff] }
 0x40f   : > { %v1429_v0 = vsub.f32 %v9228_v8, %v6344_v28 }
 0x410   : > { %v1780_v16 = vadd.f32 %v1779_v43, %v1744_v34  ;;  %v1580_v34 = vadd.f32 %v1579_v51, %v1483_v58  ;;  %v1752_v43 = vmax.f32 %v1688_v23, 0.0  ;;  %v9229_v23 = vld [vmem:[#allocation69_spill] sm:$0xff] }
 0x411   : > { %v1431_v58 = vsub.f32 %v9229_v23, %v6344_v28  ;;  %v1493_v51 = vmax.f32 %v1429_v0, 0.0 }
 0x412   : > { %v1781_v9 = vadd.f32 %v1780_v16, %v1746_v27  ;;  %v1581_v63 = vadd.f32 %v1580_v34, %v1485_v50  ;;  %v1489_v27 = vmax.f32 %v1425_v29, 0.0 }
 0x414   : > { %v1782_v25 = vadd.f32 %v1781_v9, %v1748_v55  ;;  %v1582_v15 = vadd.f32 %v1581_v63, %v1487_v1  ;;  %v1495_v1 = vmax.f32 %v1431_v58, 0.0 }
 0x416   : > { %v1783_v24 = vadd.f32 %v1782_v25, %v1750_v31  ;;  %v1583_v44 = vadd.f32 %v1582_v15, %v1489_v27  ;;  %v1435_v15 = vsub.f32 %v9231_v26, %v6344_v28  ;;  %v9232_v27 = vld [vmem:[#allocation72_spill] sm:$0xff] }
 0x417   : > { %v1437_v0 = vsub.f32 %v9232_v27, %v6344_v28 }
 0x418   : > { %v1784_v16 = vadd.f32 %v1783_v24, %v1752_v43  ;;  %v1584_v9 = vadd.f32 %v1583_v44, %v1491_v38  ;;  %v9230_v24 = vld [vmem:[#allocation70_spill] sm:$0xff]  ;;  %v1499_v38 = vmax.f32 %v1435_v15, 0.0 }
 0x419   : > { %v1433_v29 = vsub.f32 %v9230_v24, %v6344_v28  ;;  %v1501_v58 = vmax.f32 %v1437_v0, 0.0 }
 0x41a   : > { %v1785_v13 = vrot.slane %v1784_v16, 4  ;;  %v1585_v25 = vadd.f32 %v1584_v9, %v1493_v51  ;;  %v9233_v9 = vld [vmem:[#allocation73_spill] sm:$0xff] }
 0x41c   : > { %v1786_v55 = vadd.f32 %v1785_v13, %v1784_v16  ;;  %v1586_v34 = vadd.f32 %v1585_v25, %v1495_v1  ;;  %v1497_v13 = vmax.f32 %v1433_v29, 0.0  ;;  %v1443_v1 = vsub.f32 %v9200_v3, %v6344_v28 }
 0x41e   : > { %v1787_v41 = vrot.slane %v1786_v55, 2  ;;  %v1587_v43 = vadd.f32 %v1586_v34, %v1497_v13  ;;  %v1445_v34 = vsub.f32 %v9201_v21, %v6344_v28 }
 0x420   : > { %v1788_v31 = vadd.f32 %v1787_v41, %v1786_v55  ;;  %v1588_v55 = vadd.f32 %v1587_v43, %v1499_v38  ;;  %v1439_v41 = vsub.f32 %v9233_v9, %v6344_v28  ;;  %v1447_v38 = vsub.f32 %v9202_v22, %v6344_v28  ;;  %v9237_v9 = vld [vmem:[#allocation18_spill] sm:$0xff] }
 0x422   : > { %v1789_v18 = vrot.slane %v1788_v31, 1 }
 0x424   : > { %v1790_v50 = vadd.f32 %v1789_v18, %v1788_v31  ;;  %v9234_v31 = vld [vmem:[#allocation74_spill] sm:$0xff] }
 0x425   : > { %v1441_v25 = vsub.f32 %v9234_v31, %v6344_v28 }
 0x426   : > { %vm1828_vm0 = vcmp.ge.f32.partialorder %v1790_v50, 1.0 }
 0x427   : > { %v6382_v63 = vsel %vm1828_vm0, %v6260_v2, %v6248_v12  ;;  %v6386_v16 = vsel %vm1828_vm0, %v6252_v57, %v6260_v2  ;;  %v1589_v12 = vadd.f32 %v1588_v55, %v1501_v58  ;;  %v1503_v57 = vmax.f32 %v1439_v41, 0.0 }
 0x428   : > { %v1834_v44 = vadd.f32 %v6386_v16, %v6382_v63  ;;  %v1505_v50 = vmax.f32 %v1441_v25, 0.0  ;;  %v1507_v55 = vmax.f32 %v1443_v1, 0.0  ;;  %v1449_v41 = vsub.f32 %v9203_v54, %v6344_v28 }
 0x429   : > { %v1590_v29 = vadd.f32 %v1589_v12, %v1503_v57  ;;  %v1509_v58 = vmax.f32 %v1445_v34, 0.0  ;;  %v1453_v54 = vsub.f32 %v9237_v9, %v6344_v28  ;;  %v9240_v9 = vld [vmem:[#allocation37_spill] sm:$0xff] }
 0x42a   : > { %v6394_v51 = vmul.f32 0.5, %v1834_v44  ;;  %v1513_v34 = vmax.f32 %v1449_v41, 0.0 }
 0x42b   : > { %v1591_v0 = vadd.f32 %v1590_v29, %v1505_v50  ;;  %v1511_v29 = vmax.f32 %v1447_v38, 0.0  ;;  %v9236_v50 = vld [vmem:[#allocation34_spill] sm:$0xff]  ;;  %v1517_v41 = vmax.f32 %v1453_v54, 0.0 }
 0x42c   : > { %v1838_v2 = vsub.f32 %v9184_v17, %v6394_v51  ;;  %v1840_v18 = vsub.f32 %v9185_v11, %v6394_v51  ;;  %v1842_v15 = vsub.f32 %v9186_v46, %v6394_v51  ;;  %v1844_v44 = vsub.f32 %v9187_v5, %v6394_v51 }
 0x42d   : > { %v1846_v12 = vsub.f32 %v9210_v6, %v6394_v51  ;;  %v1592_v21 = vadd.f32 %v1591_v0, %v1507_v55  ;;  %v1848_v22 = vsub.f32 %v9236_v50, %v6394_v51  ;;  %v1850_v27 = vsub.f32 %v5814_v33, %v6394_v51  ;;  %v9238_v0 = vld [vmem:[#allocation19_spill] sm:$0xff] }
 0x42e   : > { %v1902_v13 = vmax.f32 %v1838_v2, 0.0  ;;  %v1904_v43 = vmax.f32 %v1840_v18, 0.0  ;;  %v1906_v25 = vmax.f32 %v1842_v15, 0.0  ;;  %v9235_v2 = vld [vmem:[#allocation17_spill] sm:$0xff]  ;;  %v1908_v3 = vmax.f32 %v1844_v44, 0.0 }
 0x42f   : > { %v1451_v18 = vsub.f32 %v9235_v2, %v6344_v28  ;;  %v1593_v1 = vadd.f32 %v1592_v21, %v1509_v58  ;;  %v1910_v15 = vmax.f32 %v1846_v12, 0.0  ;;  %v1455_v55 = vsub.f32 %v9238_v0, %v6344_v28  ;;  %v9239_v58 = vld [vmem:[#allocation20_spill] sm:$0xff] }
 0x430   : > { %v1966_v57 = vadd.f32 %v1904_v43, %v1902_v13  ;;  %v1852_v2 = vsub.f32 %v9215_v47, %v6394_v51  ;;  %v1912_v44 = vmax.f32 %v1848_v22, 0.0  ;;  %v1854_v33 = vsub.f32 %v9240_v9, %v6394_v51 }
 0x431   : > { %v1594_v43 = vadd.f32 %v1593_v1, %v1511_v29  ;;  %v1515_v38 = vmax.f32 %v1451_v18, 0.0  ;;  %v1914_v12 = vmax.f32 %v1850_v27, 0.0  ;;  %v9241_v29 = vld [vmem:[#allocation21_spill] sm:$0xff]  ;;  %v1519_v18 = vmax.f32 %v1455_v55, 0.0 }
 0x432   : > { %v1967_v31 = vadd.f32 %v1966_v57, %v1906_v25  ;;  %v1457_v57 = vsub.f32 %v9239_v58, %v6344_v28  ;;  %v1459_v1 = vsub.f32 %v9241_v29, %v6344_v28  ;;  %v1856_v0 = vsub.f32 %v9189_v59, %v6394_v51 }
 0x433   : > { %v1595_v21 = vadd.f32 %v1594_v43, %v1513_v34  ;;  %v1916_v22 = vmax.f32 %v1852_v2, 0.0  ;;  %v1858_v58 = vsub.f32 %v5826_v32, %v6394_v51  ;;  %v1918_v27 = vmax.f32 %v1854_v33, 0.0 }
 0x434   : > { %v1968_v13 = vadd.f32 %v1967_v31, %v1908_v3  ;;  %v1521_v54 = vmax.f32 %v1457_v57, 0.0  ;;  %v1523_v55 = vmax.f32 %v1459_v1, 0.0  ;;  %v1860_v29 = vsub.f32 %v5829_v36, %v6394_v51 }
 0x435   : > { %v1596_v31 = vadd.f32 %v1595_v21, %v1515_v38  ;;  %v1920_v2 = vmax.f32 %v1856_v0, 0.0  ;;  %v1922_v33 = vmax.f32 %v1858_v58, 0.0 }
 0x436   : > { %v1969_v25 = vadd.f32 %v1968_v13, %v1910_v15  ;;  %v9242_v13 = vld [vmem:[#allocation22_spill] sm:$0xff]  ;;  %v1924_v0 = vmax.f32 %v1860_v29, 0.0 }
 0x437   : > { %v1597_v34 = vadd.f32 %v1596_v31, %v1517_v41  ;;  %v1461_v43 = vsub.f32 %v9242_v13, %v6344_v28  ;;  %v1862_v13 = vsub.f32 %v5832_v40, %v6394_v51 }
 0x438   : > { %v1970_v3 = vadd.f32 %v1969_v25, %v1912_v44  ;;  %v9243_v25 = vld [vmem:[#allocation23_spill] sm:$0xff] }
 0x439   : > { %v1598_v38 = vadd.f32 %v1597_v34, %v1519_v18  ;;  %v1463_v21 = vsub.f32 %v9243_v25, %v6344_v28  ;;  %v1525_v57 = vmax.f32 %v1461_v43, 0.0  ;;  %v1864_v25 = vsub.f32 %v9194_v62, %v6394_v51 }
 0x43a   : > { %v1971_v15 = vadd.f32 %v1970_v3, %v1914_v12  ;;  %v9244_v3 = vld [vmem:[#allocation24_spill] sm:$0xff]  ;;  %v1926_v58 = vmax.f32 %v1862_v13, 0.0 }
 0x43b   : > { %v1599_v41 = vadd.f32 %v1598_v38, %v1521_v54  ;;  %v1465_v31 = vsub.f32 %v9244_v3, %v6344_v28  ;;  %v1527_v1 = vmax.f32 %v1463_v21, 0.0  ;;  %v1866_v3 = vsub.f32 %v5838_v48, %v6394_v51 }
 0x43c   : > { %v1972_v44 = vadd.f32 %v1971_v15, %v1916_v22  ;;  %v9245_v15 = vld [vmem:[#allocation25_spill] sm:$0xff]  ;;  %v1928_v29 = vmax.f32 %v1864_v25, 0.0 }
 0x43d   : > { %v1600_v18 = vadd.f32 %v1599_v41, %v1523_v55  ;;  %v1467_v34 = vsub.f32 %v9245_v15, %v6344_v28  ;;  %v1529_v43 = vmax.f32 %v1465_v31, 0.0  ;;  %v1868_v15 = vsub.f32 %v5841_v52, %v6394_v51 }
 0x43e   : > { %v1973_v12 = vadd.f32 %v1972_v44, %v1918_v27  ;;  %v9246_v44 = vld [vmem:[#allocation26_spill] sm:$0xff]  ;;  %v1930_v13 = vmax.f32 %v1866_v3, 0.0 }
 0x43f   : > { %v1601_v54 = vadd.f32 %v1600_v18, %v1525_v57  ;;  %v1469_v38 = vsub.f32 %v9246_v44, %v6344_v28  ;;  %v1531_v21 = vmax.f32 %v1467_v34, 0.0  ;;  %v1870_v44 = vsub.f32 %v5844_v56, %v6394_v51 }
 0x440   : > { %v1974_v22 = vadd.f32 %v1973_v12, %v1920_v2  ;;  %v9247_v12 = vld [vmem:[#allocation27_spill] sm:$0xff]  ;;  %v1932_v25 = vmax.f32 %v1868_v15, 0.0 }
 0x441   : > { %v1602_v55 = vadd.f32 %v1601_v54, %v1527_v1  ;;  %v1471_v41 = vsub.f32 %v9247_v12, %v6344_v28  ;;  %v1533_v31 = vmax.f32 %v1469_v38, 0.0  ;;  %v1872_v12 = vsub.f32 %v5847_v60, %v6394_v51 }
 0x442   : > { %v1975_v27 = vadd.f32 %v1974_v22, %v1922_v33  ;;  %v9248_v22 = vld [vmem:[#allocation28_spill] sm:$0xff]  ;;  %v1934_v3 = vmax.f32 %v1870_v44, 0.0 }
 0x443   : > { %v1603_v57 = vadd.f32 %v1602_v55, %v1529_v43  ;;  %v1473_v18 = vsub.f32 %v9248_v22, %v6344_v28  ;;  %v1535_v34 = vmax.f32 %v1471_v41, 0.0  ;;  %v1874_v55 = vsub.f32 %v9218_v35, %v6394_v51 }
 0x444   : > { %v1976_v2 = vadd.f32 %v1975_v27, %v1924_v0  ;;  %v9249_v27 = vld [vmem:[#allocation77_spill] sm:$0xff]  ;;  %v1876_v41 = vsub.f32 %v9219_v20, %v6394_v51 }
 0x445   : > { %v1604_v1 = vadd.f32 %v1603_v57, %v1531_v21  ;;  %v1475_v54 = vsub.f32 %v9249_v27, %v6344_v28  ;;  %v1537_v38 = vmax.f32 %v1473_v18, 0.0  ;;  %v1936_v57 = vmax.f32 %v1872_v12, 0.0 }
 0x446   : > { %v1977_v33 = vadd.f32 %v1976_v2, %v1926_v58  ;;  %v1477_v2 = vsub.f32 %v9217_v42, %v6344_v28  ;;  %v1940_v44 = vmax.f32 %v1876_v41, 0.0 }
 0x447   : > { %v1605_v43 = vadd.f32 %v1604_v1, %v1533_v31  ;;  %v1878_v31 = vsub.f32 %v5856_v10, %v6394_v51  ;;  %v1880_v1 = vsub.f32 %v5859_v14, %v6394_v51 }
 0x448   : > { %v1978_v0 = vadd.f32 %v1977_v33, %v1928_v29  ;;  %v1539_v33 = vmax.f32 %v1475_v54, 0.0  ;;  %v1541_v15 = vmax.f32 %v1477_v2, 0.0  ;;  %v1882_v54 = vsub.f32 %v5862_v19, %v6394_v51 }
 0x449   : > { %v1606_v21 = vadd.f32 %v1605_v43, %v1535_v34  ;;  %v1884_v2 = vsub.f32 %v5865_v30, %v6394_v51 }
 0x44a   : > { %v1979_v58 = vadd.f32 %v1978_v0, %v1930_v13  ;;  %v1938_v13 = vmax.f32 %v1874_v55, 0.0 }
 0x44b   : > { %v1607_v22 = vadd.f32 %v1606_v21, %v1537_v38  ;;  %v1944_v38 = vmax.f32 %v1880_v1, 0.0  ;;  %v1888_v21 = vsub.f32 %v5869_v49, %v6394_v51 }
 0x44c   : > { %v1980_v29 = vadd.f32 %v1979_v58, %v1932_v25  ;;  %v1942_v58 = vmax.f32 %v1878_v31, 0.0 }
 0x44d   : > { %v1608_v18 = vadd.f32 %v1607_v22, %v1539_v33  ;;  %v1886_v22 = vsub.f32 %v5867_v37, %v6394_v51  ;;  %v1948_v33 = vmax.f32 %v1884_v2, 0.0 }
 0x44e   : > { %v1981_v27 = vadd.f32 %v1980_v29, %v1934_v3 }
 0x44f   : > { %v1609_v34 = vadd.f32 %v1608_v18, %v1541_v15  ;;  %v1890_v15 = vsub.f32 %v5871_v45, %v6394_v51  ;;  %v1950_v31 = vmax.f32 %v1886_v22, 0.0  ;;  %v1952_v18 = vmax.f32 %v1888_v21, 0.0 }
 0x450   : > { %v1982_v0 = vadd.f32 %v1981_v27, %v1936_v57  ;;  %v1946_v27 = vmax.f32 %v1882_v54, 0.0 }
 0x451   : > { %v1610_v43 = vrot.slane %v1609_v34, 4 }
 0x452   : > { %v1983_v25 = vadd.f32 %v1982_v0, %v1938_v13  ;;  %v1892_v0 = vsub.f32 %v5873_v53, %v6394_v51 }
 0x453   : > { %v1611_v55 = vadd.f32 %v1610_v43, %v1609_v34  ;;  %v1954_v34 = vmax.f32 %v1890_v15, 0.0 }
 0x454   : > { %v1984_v12 = vadd.f32 %v1983_v25, %v1940_v44  ;;  %v1894_v25 = vsub.f32 %v5875_v39, %v6394_v51 }
 0x455   : > { %v1612_v57 = vrot.slane %v1611_v55, 2 }
 0x456   : > { %v1985_v3 = vadd.f32 %v1984_v12, %v1942_v58  ;;  %v1896_v58 = vsub.f32 %v9169_v4, %v6394_v51  ;;  %v1956_v12 = vmax.f32 %v1892_v0, 0.0  ;;  %v1958_v22 = vmax.f32 %v1894_v25, 0.0  ;;  %v9252_v0 = vld [vmem:[#allocation75_spill] sm:$0xff] }
 0x457   : > { %v1613_v44 = vadd.f32 %v1612_v57, %v1611_v55 }
 0x458   : > { %v1986_v29 = vadd.f32 %v1985_v3, %v1944_v38  ;;  %v9250_v38 = vld [vmem:[#allocation59_spill] sm:$0xff]  ;;  %v1960_v55 = vmax.f32 %v1896_v58, 0.0 }
 0x459   : > { %v1614_v2 = vrot.slane %v1613_v44, 1  ;;  %v1898_v3 = vsub.f32 %v9250_v38, %v6394_v51 }
 0x45a   : > { %v1987_v41 = vadd.f32 %v1986_v29, %v1946_v27  ;;  %v9251_v29 = vld [vmem:[#allocation60_spill] sm:$0xff] }
 0x45b   : > { %v1900_v21 = vsub.f32 %v9251_v29, %v6394_v51  ;;  %v1962_v57 = vmax.f32 %v1898_v3, 0.0 }
 0x45c   : > { %v1988_v13 = vadd.f32 %v1987_v41, %v1948_v33  ;;  %v1615_v41 = vadd.f32 %v1614_v2, %v1613_v44 }
 0x45e   : > { %v1989_v1 = vadd.f32 %v1988_v13, %v1950_v31  ;;  %v1964_v31 = vmax.f32 %v1900_v21, 0.0  ;;  %vm1617_vm1 = vcmp.ge.f32.partialorder %v1615_v41, 1.0 }
 0x460   : > { %v1990_v54 = vadd.f32 %v1989_v1, %v1952_v18  ;;  %v6500_v1 = vsel %vm1617_vm1, %v6344_v28, %v9252_v0 }
 0x462   : > { %v1991_v43 = vadd.f32 %v1990_v54, %v1954_v34  ;;  %v9253_v34 = vld [vmem:[#allocation76_spill] sm:$0xff] }
 0x463   : > { %v6504_v25 = vsel %vm1617_vm1, %v9253_v34, %v6344_v28  ;;  %v9257_v34 = vld [vmem:[#allocation64_spill] sm:$0xff] }
 0x464   : > { %v1992_v27 = vadd.f32 %v1991_v43, %v1956_v12  ;;  %v1623_v58 = vadd.f32 %v6504_v25, %v6500_v1 }
 0x466   : > { %v1993_v33 = vadd.f32 %v1992_v27, %v1958_v22  ;;  %v6508_v2 = vmul.f32 0.5, %v1623_v58  ;;  %v9254_v27 = vld [vmem:[#allocation61_spill] sm:$0xff] }
 0x468   : > { %v1994_v15 = vadd.f32 %v1993_v33, %v1960_v55  ;;  %v1627_v21 = vsub.f32 %v9254_v27, %v6508_v2  ;;  %v9255_v55 = vld [vmem:[#allocation62_spill] sm:$0xff] }
 0x469   : > { %v1629_v33 = vsub.f32 %v9255_v55, %v6508_v2 }
 0x46a   : > { %v1995_v13 = vadd.f32 %v1994_v15, %v1962_v57  ;;  %v1691_v28 = vmax.f32 %v1627_v21, 0.0  ;;  %v1637_v21 = vsub.f32 %v5935_v7, %v6508_v2 }
 0x46b   : > { %v1693_v41 = vmax.f32 %v1629_v33, 0.0 }
 0x46c   : > { %v1996_v18 = vadd.f32 %v1995_v13, %v1964_v31  ;;  %v9256_v31 = vld [vmem:[#allocation63_spill] sm:$0xff] }
 0x46d   : > { %v1631_v13 = vsub.f32 %v9256_v31, %v6508_v2  ;;  %v1791_v0 = vadd.f32 %v1693_v41, %v1691_v28  ;;  %v1639_v28 = vsub.f32 %v5938_v61, %v6508_v2  ;;  %v9259_v31 = vld [vmem:[#allocation35_spill] sm:$0xff] }
 0x46e   : > { %v1997_v54 = vrot.slane %v1996_v18, 4 }
 0x470   : > { %v1998_v12 = vadd.f32 %v1997_v54, %v1996_v18  ;;  %v1633_v54 = vsub.f32 %v9257_v34, %v6508_v2 }
 0x472   : > { %v1999_v44 = vrot.slane %v1998_v12, 2 }
 0x474   : > { %v2000_v43 = vadd.f32 %v1999_v44, %v1998_v12  ;;  %v1695_v12 = vmax.f32 %v1631_v13, 0.0 }
 0x476   : > { %v2001_v3 = vrot.slane %v2000_v43, 1  ;;  %v1792_v44 = vadd.f32 %v1791_v0, %v1695_v12 }
 0x478   : > { %v2002_v22 = vadd.f32 %v2001_v3, %v2000_v43  ;;  %v1697_v3 = vmax.f32 %v1633_v54, 0.0  ;;  %v1641_v54 = vsub.f32 %v9228_v8, %v6508_v2 }
 0x47a   : > { %vm2040_vm2 = vcmp.ge.f32.partialorder %v2002_v22, 1.0  ;;  %v1793_v22 = vadd.f32 %v1792_v44, %v1697_v3  ;;  %v1701_v44 = vmax.f32 %v1637_v21, 0.0  ;;  %v1643_v3 = vsub.f32 %v9229_v23, %v6508_v2 }
 0x47b   : > { %v6516_v57 = vsel %vm2040_vm2, %v6394_v51, %v6382_v63  ;;  %v6520_v15 = vsel %vm2040_vm2, %v6386_v16, %v6394_v51  ;;  %v9258_v63 = vld [vmem:[#allocation65_spill] sm:$0xff]  ;;  %v1647_v23 = vsub.f32 %v9231_v26, %v6508_v2 }
 0x47c   : > { %v2046_v18 = vadd.f32 %v6520_v15, %v6516_v57  ;;  %v1635_v43 = vsub.f32 %v9258_v63, %v6508_v2 }
 0x47e   : > { %v6528_v58 = vmul.f32 0.5, %v2046_v18  ;;  %v1699_v33 = vmax.f32 %v1635_v43, 0.0  ;;  %v1703_v43 = vmax.f32 %v1639_v28, 0.0  ;;  %v1707_v28 = vmax.f32 %v1643_v3, 0.0 }
 0x47f   : > { %v1711_v3 = vmax.f32 %v1647_v23, 0.0 }
 0x480   : > { %v2050_v16 = vsub.f32 %v9184_v17, %v6528_v58  ;;  %v2052_v51 = vsub.f32 %v9185_v11, %v6528_v58  ;;  %v2054_v41 = vsub.f32 %v9186_v46, %v6528_v58  ;;  %v1794_v0 = vadd.f32 %v1793_v22, %v1699_v33 }
 0x481   : > { %v2056_v12 = vsub.f32 %v9187_v5, %v6528_v58  ;;  %v2058_v61 = vsub.f32 %v9210_v6, %v6528_v58  ;;  %v2060_v22 = vsub.f32 %v9236_v50, %v6528_v58  ;;  %v2062_v55 = vsub.f32 %v9259_v31, %v6528_v58 }
 0x482   : > { %v2114_v13 = vmax.f32 %v2050_v16, 0.0  ;;  %v2116_v18 = vmax.f32 %v2052_v51, 0.0  ;;  %v2118_v7 = vmax.f32 %v2054_v41, 0.0  ;;  %v1795_v34 = vadd.f32 %v1794_v0, %v1701_v44  ;;  %v9260_v0 = vld [vmem:[#allocation72_spill] sm:$0xff] }
 0x483   : > { %v1645_v16 = vsub.f32 %v9230_v24, %v6508_v2  ;;  %v1705_v51 = vmax.f32 %v1641_v54, 0.0  ;;  %v2120_v33 = vmax.f32 %v2056_v12, 0.0  ;;  %v2122_v41 = vmax.f32 %v2058_v61, 0.0 }
 0x484   : > { %v2178_v63 = vadd.f32 %v2116_v18, %v2114_v13  ;;  %v1796_v21 = vadd.f32 %v1795_v34, %v1703_v43  ;;  %v1649_v44 = vsub.f32 %v9260_v0, %v6508_v2  ;;  %v2064_v24 = vsub.f32 %v9215_v47, %v6528_v58 }
 0x485   : > { %v1709_v54 = vmax.f32 %v1645_v16, 0.0  ;;  %v2124_v12 = vmax.f32 %v2060_v22, 0.0  ;;  %v2066_v26 = vsub.f32 %v9240_v9, %v6528_v58  ;;  %v2126_v61 = vmax.f32 %v2062_v55, 0.0 }
 0x486   : > { %v2179_v8 = vadd.f32 %v2178_v63, %v2118_v7  ;;  %v1797_v18 = vadd.f32 %v1796_v21, %v1705_v51  ;;  %v9261_v63 = vld [vmem:[#allocation73_spill] sm:$0xff]  ;;  %v1713_v16 = vmax.f32 %v1649_v44, 0.0  ;;  %v2068_v0 = vsub.f32 %v9189_v59, %v6528_v58 }
 0x487   : > { %v1651_v43 = vsub.f32 %v9261_v63, %v6508_v2  ;;  %v2128_v22 = vmax.f32 %v2064_v24, 0.0  ;;  %v2070_v63 = vsub.f32 %v5826_v32, %v6528_v58  ;;  %v2130_v55 = vmax.f32 %v2066_v26, 0.0 }
 0x488   : > { %v2180_v13 = vadd.f32 %v2179_v8, %v2120_v33  ;;  %v1798_v34 = vadd.f32 %v1797_v18, %v1707_v28  ;;  %v9262_v33 = vld [vmem:[#allocation74_spill] sm:$0xff]  ;;  %v2132_v24 = vmax.f32 %v2068_v0, 0.0 }
 0x489   : > { %v1653_v21 = vsub.f32 %v9262_v33, %v6508_v2  ;;  %v1715_v23 = vmax.f32 %v1651_v43, 0.0  ;;  %v2072_v33 = vsub.f32 %v5829_v36, %v6528_v58  ;;  %v2134_v26 = vmax.f32 %v2070_v63, 0.0 }
 0x48a   : > { %v2181_v7 = vadd.f32 %v2180_v13, %v2122_v41  ;;  %v1799_v51 = vadd.f32 %v1798_v34, %v1709_v54  ;;  %v9263_v13 = vld [vmem:[#allocation13_spill] sm:$0xff] }
 0x48b   : > { %v1655_v18 = vsub.f32 %v9263_v13, %v6508_v2  ;;  %v1717_v44 = vmax.f32 %v1653_v21, 0.0  ;;  %v2074_v13 = vsub.f32 %v5832_v40, %v6528_v58  ;;  %v2136_v0 = vmax.f32 %v2072_v33, 0.0 }
 0x48c   : > { %v2182_v8 = vadd.f32 %v2181_v7, %v2124_v12  ;;  %v1800_v28 = vadd.f32 %v1799_v51, %v1711_v3  ;;  %v9264_v7 = vld [vmem:[#allocation14_spill] sm:$0xff] }
 0x48d   : > { %v1657_v34 = vsub.f32 %v9264_v7, %v6508_v2  ;;  %v1719_v43 = vmax.f32 %v1655_v18, 0.0  ;;  %v2076_v7 = vsub.f32 %v9194_v62, %v6528_v58  ;;  %v2138_v63 = vmax.f32 %v2074_v13, 0.0 }
 0x48e   : > { %v2183_v41 = vadd.f32 %v2182_v8, %v2126_v61  ;;  %v1801_v54 = vadd.f32 %v1800_v28, %v1713_v16  ;;  %v9265_v8 = vld [vmem:[#allocation15_spill] sm:$0xff] }
 0x48f   : > { %v1659_v51 = vsub.f32 %v9265_v8, %v6508_v2  ;;  %v1721_v21 = vmax.f32 %v1657_v34, 0.0  ;;  %v2078_v8 = vsub.f32 %v5838_v48, %v6528_v58  ;;  %v2140_v33 = vmax.f32 %v2076_v7, 0.0 }
 0x490   : > { %v2184_v12 = vadd.f32 %v2183_v41, %v2128_v22  ;;  %v1802_v3 = vadd.f32 %v1801_v54, %v1715_v23  ;;  %v9266_v41 = vld [vmem:[#allocation16_spill] sm:$0xff] }
 0x491   : > { %v1661_v28 = vsub.f32 %v9266_v41, %v6508_v2  ;;  %v1723_v18 = vmax.f32 %v1659_v51, 0.0  ;;  %v2080_v41 = vsub.f32 %v5841_v52, %v6528_v58  ;;  %v2142_v13 = vmax.f32 %v2078_v8, 0.0 }
 0x492   : > { %v2185_v61 = vadd.f32 %v2184_v12, %v2130_v55  ;;  %v1803_v16 = vadd.f32 %v1802_v3, %v1717_v44  ;;  %v9267_v12 = vld [vmem:[#allocation17_spill] sm:$0xff] }
 0x493   : > { %v1663_v54 = vsub.f32 %v9267_v12, %v6508_v2  ;;  %v1725_v34 = vmax.f32 %v1661_v28, 0.0  ;;  %v2082_v12 = vsub.f32 %v5844_v56, %v6528_v58  ;;  %v2144_v7 = vmax.f32 %v2080_v41, 0.0 }
 0x494   : > { %v2186_v22 = vadd.f32 %v2185_v61, %v2132_v24  ;;  %v1804_v23 = vadd.f32 %v1803_v16, %v1719_v43  ;;  %v9268_v61 = vld [vmem:[#allocation18_spill] sm:$0xff] }
 0x495   : > { %v1665_v3 = vsub.f32 %v9268_v61, %v6508_v2  ;;  %v1727_v51 = vmax.f32 %v1663_v54, 0.0  ;;  %v2084_v61 = vsub.f32 %v5847_v60, %v6528_v58  ;;  %v2146_v8 = vmax.f32 %v2082_v12, 0.0 }
 0x496   : > { %v2187_v55 = vadd.f32 %v2186_v22, %v2134_v26  ;;  %v1805_v44 = vadd.f32 %v1804_v23, %v1721_v21  ;;  %v9269_v22 = vld [vmem:[#allocation19_spill] sm:$0xff] }
 0x497   : > { %v1667_v16 = vsub.f32 %v9269_v22, %v6508_v2  ;;  %v1729_v28 = vmax.f32 %v1665_v3, 0.0  ;;  %v2086_v22 = vsub.f32 %v9218_v35, %v6528_v58  ;;  %v2148_v41 = vmax.f32 %v2084_v61, 0.0 }
 0x498   : > { %v2188_v24 = vadd.f32 %v2187_v55, %v2136_v0  ;;  %v1806_v43 = vadd.f32 %v1805_v44, %v1723_v18  ;;  %v9270_v55 = vld [vmem:[#allocation20_spill] sm:$0xff] }
 0x499   : > { %v1669_v23 = vsub.f32 %v9270_v55, %v6508_v2  ;;  %v1731_v54 = vmax.f32 %v1667_v16, 0.0  ;;  %v2088_v55 = vsub.f32 %v9219_v20, %v6528_v58  ;;  %v2150_v12 = vmax.f32 %v2086_v22, 0.0 }
 0x49a   : > { %v2189_v26 = vadd.f32 %v2188_v24, %v2138_v63  ;;  %v1807_v21 = vadd.f32 %v1806_v43, %v1725_v34  ;;  %v9271_v24 = vld [vmem:[#allocation21_spill] sm:$0xff] }
 0x49b   : > { %v1671_v44 = vsub.f32 %v9271_v24, %v6508_v2  ;;  %v1733_v3 = vmax.f32 %v1669_v23, 0.0  ;;  %v2090_v24 = vsub.f32 %v5856_v10, %v6528_v58  ;;  %v2152_v61 = vmax.f32 %v2088_v55, 0.0 }
 0x49c   : > { %v2190_v0 = vadd.f32 %v2189_v26, %v2140_v33  ;;  %v1808_v18 = vadd.f32 %v1807_v21, %v1727_v51  ;;  %v9272_v26 = vld [vmem:[#allocation22_spill] sm:$0xff] }
 0x49d   : > { %v1673_v43 = vsub.f32 %v9272_v26, %v6508_v2  ;;  %v1735_v16 = vmax.f32 %v1671_v44, 0.0  ;;  %v2092_v26 = vsub.f32 %v5859_v14, %v6528_v58  ;;  %v2154_v22 = vmax.f32 %v2090_v24, 0.0 }
 0x49e   : > { %v2191_v63 = vadd.f32 %v2190_v0, %v2142_v13  ;;  %v1809_v34 = vadd.f32 %v1808_v18, %v1729_v28  ;;  %v9273_v0 = vld [vmem:[#allocation23_spill] sm:$0xff] }
 0x49f   : > { %v1675_v21 = vsub.f32 %v9273_v0, %v6508_v2  ;;  %v1737_v23 = vmax.f32 %v1673_v43, 0.0  ;;  %v2094_v0 = vsub.f32 %v5862_v19, %v6528_v58  ;;  %v2156_v55 = vmax.f32 %v2092_v26, 0.0  ;;  %v9278_v26 = vld [vmem:[#allocation28_spill] sm:$0xff] }
 0x4a0   : > { %v2192_v33 = vadd.f32 %v2191_v63, %v2144_v7  ;;  %v1810_v51 = vadd.f32 %v1809_v34, %v1731_v54  ;;  %v9274_v63 = vld [vmem:[#allocation24_spill] sm:$0xff] }
 0x4a1   : > { %v1677_v18 = vsub.f32 %v9274_v63, %v6508_v2  ;;  %v1739_v44 = vmax.f32 %v1675_v21, 0.0  ;;  %v2096_v63 = vsub.f32 %v5865_v30, %v6528_v58  ;;  %v2158_v24 = vmax.f32 %v2094_v0, 0.0 }
 0x4a2   : > { %v2193_v13 = vadd.f32 %v2192_v33, %v2146_v8  ;;  %v1811_v28 = vadd.f32 %v1810_v51, %v1733_v3  ;;  %v9275_v33 = vld [vmem:[#allocation25_spill] sm:$0xff]  ;;  %v2104_v0 = vsub.f32 %v5873_v53, %v6528_v58 }
 0x4a3   : > { %v1679_v34 = vsub.f32 %v9275_v33, %v6508_v2  ;;  %v1741_v43 = vmax.f32 %v1677_v18, 0.0  ;;  %v2098_v33 = vsub.f32 %v5867_v37, %v6528_v58  ;;  %v2100_v18 = vsub.f32 %v5869_v49, %v6528_v58 }
 0x4a4   : > { %v2194_v7 = vadd.f32 %v2193_v13, %v2148_v41  ;;  %v1812_v54 = vadd.f32 %v1811_v28, %v1735_v16  ;;  %v9276_v13 = vld [vmem:[#allocation26_spill] sm:$0xff] }
 0x4a5   : > { %v1681_v51 = vsub.f32 %v9276_v13, %v6508_v2  ;;  %v1743_v21 = vmax.f32 %v1679_v34, 0.0  ;;  %v2102_v34 = vsub.f32 %v5871_v45, %v6528_v58 }
 0x4a6   : > { %v2195_v8 = vadd.f32 %v2194_v7, %v2150_v12  ;;  %v1813_v3 = vadd.f32 %v1812_v54, %v1737_v23  ;;  %v9277_v7 = vld [vmem:[#allocation27_spill] sm:$0xff]  ;;  %v2160_v54 = vmax.f32 %v2096_v63, 0.0  ;;  %v9279_v63 = vld [vmem:[#allocation77_spill] sm:$0xff] }
 0x4a7   : > { %v1683_v28 = vsub.f32 %v9277_v7, %v6508_v2 }
 0x4a8   : > { %v2196_v41 = vadd.f32 %v2195_v8, %v2152_v61  ;;  %v1814_v16 = vadd.f32 %v1813_v3, %v1739_v44  ;;  %v1745_v8 = vmax.f32 %v1681_v51, 0.0  ;;  %v1685_v44 = vsub.f32 %v9278_v26, %v6508_v2 }
 0x4a9   : > { %v2164_v51 = vmax.f32 %v2100_v18, 0.0 }
 0x4aa   : > { %v2197_v12 = vadd.f32 %v2196_v41, %v2154_v22  ;;  %v1815_v23 = vadd.f32 %v1814_v16, %v1741_v43  ;;  %v1747_v22 = vmax.f32 %v1683_v28, 0.0  ;;  %v2162_v41 = vmax.f32 %v2098_v33, 0.0 }
 0x4ab   : > { %v1749_v16 = vmax.f32 %v1685_v44, 0.0  ;;  %v2166_v28 = vmax.f32 %v2102_v34, 0.0  ;;  %v2108_v33 = vsub.f32 %v9169_v4, %v6528_v58 }
 0x4ac   : > { %v2198_v61 = vadd.f32 %v2197_v12, %v2156_v55  ;;  %v1816_v30 = vadd.f32 %v1815_v23, %v1743_v21  ;;  %v1687_v12 = vsub.f32 %v9279_v63, %v6508_v2  ;;  %v2106_v21 = vsub.f32 %v5875_v39, %v6528_v58 }
 0x4ad   : > { %v1689_v23 = vsub.f32 %v9217_v42, %v6508_v2  ;;  %v2172_v34 = vmax.f32 %v2108_v33, 0.0 }
 0x4ae   : > { %v2199_v13 = vadd.f32 %v2198_v61, %v2158_v24  ;;  %v1817_v7 = vadd.f32 %v1816_v30, %v1745_v8  ;;  %v2168_v30 = vmax.f32 %v2104_v0, 0.0  ;;  %v1751_v8 = vmax.f32 %v1687_v12, 0.0 }
 0x4af   : > { %v2170_v18 = vmax.f32 %v2106_v21, 0.0 }
 0x4b0   : > { %v2200_v3 = vadd.f32 %v2199_v13, %v2160_v54  ;;  %v1818_v55 = vadd.f32 %v1817_v7, %v1747_v22  ;;  %v2110_v7 = vsub.f32 %v9250_v38, %v6528_v58  ;;  %v2112_v22 = vsub.f32 %v9251_v29, %v6528_v58 }
 0x4b2   : > { %v2201_v43 = vadd.f32 %v2200_v3, %v2162_v41  ;;  %v1819_v61 = vadd.f32 %v1818_v55, %v1749_v16  ;;  %v1753_v3 = vmax.f32 %v1689_v23, 0.0  ;;  %v2176_v55 = vmax.f32 %v2112_v22, 0.0 }
 0x4b4   : > { %v2202_v24 = vadd.f32 %v2201_v43, %v2164_v51  ;;  %v1820_v44 = vadd.f32 %v1819_v61, %v1751_v8  ;;  %v2174_v51 = vmax.f32 %v2110_v7, 0.0 }
 0x4b6   : > { %v2203_v13 = vadd.f32 %v2202_v24, %v2166_v28  ;;  %v1821_v0 = vadd.f32 %v1820_v44, %v1753_v3 }
 0x4b8   : > { %v2204_v54 = vadd.f32 %v2203_v13, %v2168_v30  ;;  %v1822_v24 = vrot.slane %v1821_v0, 4 }
 0x4ba   : > { %v2205_v41 = vadd.f32 %v2204_v54, %v2170_v18  ;;  %v1823_v63 = vadd.f32 %v1822_v24, %v1821_v0 }
 0x4bc   : > { %v2206_v43 = vadd.f32 %v2205_v41, %v2172_v34  ;;  %v1824_v30 = vrot.slane %v1823_v63, 2 }
 0x4be   : > { %v2207_v16 = vadd.f32 %v2206_v43, %v2174_v51  ;;  %v1825_v8 = vadd.f32 %v1824_v30, %v1823_v63 }
 0x4c0   : > { %v2208_v28 = vadd.f32 %v2207_v16, %v2176_v55  ;;  %v1826_v7 = vrot.slane %v1825_v8, 1  ;;  %v9280_v16 = vld [vmem:[#allocation62_spill] sm:$0xff] }
 0x4c2   : > { %v2209_v12 = vrot.slane %v2208_v28, 4  ;;  %v1827_v54 = vadd.f32 %v1826_v7, %v1825_v8  ;;  %v9281_v8 = vld [vmem:[#allocation63_spill] sm:$0xff] }
 0x4c4   : > { %v2210_v42 = vadd.f32 %v2209_v12, %v2208_v28  ;;  %vm1829_vm4 = vcmp.ge.f32.partialorder %v1827_v54, 1.0 }
 0x4c6   : > { %v2211_v26 = vrot.slane %v2210_v42, 2 }
 0x4c8   : > { %v2212_v21 = vadd.f32 %v2211_v26, %v2210_v42 }
 0x4ca   : > { %v2213_v61 = vrot.slane %v2212_v21, 1 }
 0x4cc   : > { %v2214_v13 = vadd.f32 %v2213_v61, %v2212_v21 }
 0x4ce   : > { %vm2252_vm3 = vcmp.ge.f32.partialorder %v2214_v13, 1.0 }
 0x4cf   : > { %v6652_v33 = vsel %vm2252_vm3, %v6528_v58, %v6516_v57  ;;  %v6656_v23 = vsel %vm2252_vm3, %v6520_v15, %v6528_v58  ;;  %v6668_v57 = vsel %vm1829_vm4, %v6508_v2, %v6500_v1  ;;  %v6672_v15 = vsel %vm1829_vm4, %v6504_v25, %v6508_v2 }
 0x4d0   : > { %v2258_v18 = vadd.f32 %v6656_v23, %v6652_v33  ;;  %v1835_v58 = vadd.f32 %v6672_v15, %v6668_v57 }
 0x4d2   : > { %v6660_v44 = vmul.f32 0.5, %v2258_v18  ;;  %v6680_v3 = vmul.f32 0.5, %v1835_v58 }
 0x4d4   : > { %v2262_v42 = vsub.f32 %v9184_v17, %v6660_v44  ;;  %v2264_v26 = vsub.f32 %v9185_v11, %v6660_v44  ;;  %v2266_v63 = vsub.f32 %v9186_v46, %v6660_v44  ;;  %v2268_v41 = vsub.f32 %v9187_v5, %v6660_v44 }
 0x4d5   : > { %v2270_v1 = vsub.f32 %v9210_v6, %v6660_v44  ;;  %v2272_v25 = vsub.f32 %v9236_v50, %v6660_v44  ;;  %v1839_v55 = vsub.f32 %v9254_v27, %v6680_v3  ;;  %v1841_v28 = vsub.f32 %v9280_v16, %v6680_v3 }
 0x4d6   : > { %v2326_v22 = vmax.f32 %v2262_v42, 0.0  ;;  %v2328_v34 = vmax.f32 %v2264_v26, 0.0  ;;  %v2330_v51 = vmax.f32 %v2266_v63, 0.0  ;;  %v2332_v2 = vmax.f32 %v2268_v41, 0.0  ;;  %v9282_v63 = vld [vmem:[#allocation64_spill] sm:$0xff] }
 0x4d7   : > { %v2274_v24 = vsub.f32 %v9259_v31, %v6660_v44  ;;  %v2334_v12 = vmax.f32 %v2270_v1, 0.0  ;;  %v2276_v30 = vsub.f32 %v9215_v47, %v6660_v44  ;;  %v2336_v61 = vmax.f32 %v2272_v25, 0.0 }
 0x4d8   : > { %v2390_v43 = vadd.f32 %v2328_v34, %v2326_v22  ;;  %v1843_v7 = vsub.f32 %v9281_v8, %v6680_v3  ;;  %v1903_v18 = vmax.f32 %v1839_v55, 0.0  ;;  %v1905_v54 = vmax.f32 %v1841_v28, 0.0 }
 0x4d9   : > { %v2278_v42 = vsub.f32 %v9240_v9, %v6660_v44  ;;  %v2338_v26 = vmax.f32 %v2274_v24, 0.0  ;;  %v1845_v22 = vsub.f32 %v9282_v63, %v6680_v3  ;;  %v2280_v34 = vsub.f32 %v9189_v59, %v6660_v44  ;;  %v9284_v24 = vld [vmem:[#allocation66_spill] sm:$0xff] }
 0x4da   : > { %v2391_v0 = vadd.f32 %v2390_v43, %v2330_v51  ;;  %v2340_v41 = vmax.f32 %v2276_v30, 0.0  ;;  %v9283_v51 = vld [vmem:[#allocation65_spill] sm:$0xff]  ;;  %v1907_v25 = vmax.f32 %v1843_v7, 0.0 }
 0x4db   : > { %v1847_v43 = vsub.f32 %v9283_v51, %v6680_v3  ;;  %v2342_v55 = vmax.f32 %v2278_v42, 0.0  ;;  %v2344_v30 = vmax.f32 %v2280_v34, 0.0 }
 0x4dc   : > { %v2392_v21 = vadd.f32 %v2391_v0, %v2332_v2  ;;  %v2003_v2 = vadd.f32 %v1905_v54, %v1903_v18  ;;  %v2282_v0 = vsub.f32 %v5826_v32, %v6660_v44  ;;  %v2286_v54 = vsub.f32 %v5832_v40, %v6660_v44 }
 0x4dd   : > { %v1911_v7 = vmax.f32 %v1847_v43, 0.0 }
 0x4de   : > { %v2393_v13 = vadd.f32 %v2392_v21, %v2334_v12  ;;  %v1849_v12 = vsub.f32 %v9284_v24, %v6680_v3  ;;  %v1909_v21 = vmax.f32 %v1845_v22, 0.0  ;;  %v2346_v42 = vmax.f32 %v2282_v0, 0.0 }
 0x4df   : > { %v2350_v0 = vmax.f32 %v2286_v54, 0.0 }
 0x4e0   : > { %v2394_v58 = vadd.f32 %v2393_v13, %v2336_v61  ;;  %v2004_v61 = vadd.f32 %v2003_v2, %v1907_v25  ;;  %v2284_v13 = vsub.f32 %v5829_v36, %v6660_v44  ;;  %v1913_v22 = vmax.f32 %v1849_v12, 0.0 }
 0x4e1   : > { %v2288_v2 = vsub.f32 %v9194_v62, %v6660_v44 }
 0x4e2   : > { %v2395_v1 = vadd.f32 %v2394_v58, %v2338_v26  ;;  %v9285_v58 = vld [vmem:[#allocation67_spill] sm:$0xff]  ;;  %v2005_v18 = vadd.f32 %v2004_v61, %v1909_v21  ;;  %v2348_v34 = vmax.f32 %v2284_v13, 0.0  ;;  %v2290_v61 = vsub.f32 %v5838_v48, %v6660_v44 }
 0x4e3   : > { %v1851_v51 = vsub.f32 %v9285_v58, %v6680_v3  ;;  %v2352_v13 = vmax.f32 %v2288_v2, 0.0 }
 0x4e4   : > { %v2396_v28 = vadd.f32 %v2395_v1, %v2340_v41  ;;  %v9286_v1 = vld [vmem:[#allocation68_spill] sm:$0xff]  ;;  %v2006_v25 = vadd.f32 %v2005_v18, %v1911_v7  ;;  %v2292_v18 = vsub.f32 %v5841_v52, %v6660_v44  ;;  %v2354_v54 = vmax.f32 %v2290_v61, 0.0 }
 0x4e5   : > { %v1853_v24 = vsub.f32 %v9286_v1, %v6680_v3  ;;  %v1915_v43 = vmax.f32 %v1851_v51, 0.0 }
 0x4e6   : > { %v2397_v26 = vadd.f32 %v2396_v28, %v2342_v55  ;;  %v9287_v28 = vld [vmem:[#allocation69_spill] sm:$0xff]  ;;  %v2007_v21 = vadd.f32 %v2006_v25, %v1913_v22  ;;  %v2294_v25 = vsub.f32 %v5844_v56, %v6660_v44  ;;  %v2356_v2 = vmax.f32 %v2292_v18, 0.0 }
 0x4e7   : > { %v1855_v58 = vsub.f32 %v9287_v28, %v6680_v3  ;;  %v1917_v12 = vmax.f32 %v1853_v24, 0.0 }
 0x4e8   : > { %v2398_v41 = vadd.f32 %v2397_v26, %v2344_v30  ;;  %v9288_v26 = vld [vmem:[#allocation70_spill] sm:$0xff]  ;;  %v2008_v7 = vadd.f32 %v2007_v21, %v1915_v43  ;;  %v2296_v21 = vsub.f32 %v5847_v60, %v6660_v44  ;;  %v2358_v61 = vmax.f32 %v2294_v25, 0.0 }
 0x4e9   : > { %v1857_v1 = vsub.f32 %v9288_v26, %v6680_v3  ;;  %v1919_v51 = vmax.f32 %v1855_v58, 0.0 }
 0x4ea   : > { %v2399_v55 = vadd.f32 %v2398_v41, %v2346_v42  ;;  %v9289_v41 = vld [vmem:[#allocation71_spill] sm:$0xff]  ;;  %v2009_v22 = vadd.f32 %v2008_v7, %v1917_v12  ;;  %v2298_v7 = vsub.f32 %v9218_v35, %v6660_v44  ;;  %v2360_v18 = vmax.f32 %v2296_v21, 0.0 }
 0x4eb   : > { %v1859_v28 = vsub.f32 %v9289_v41, %v6680_v3  ;;  %v1921_v24 = vmax.f32 %v1857_v1, 0.0 }
 0x4ec   : > { %v2400_v30 = vadd.f32 %v2399_v55, %v2348_v34  ;;  %v9290_v55 = vld [vmem:[#allocation72_spill] sm:$0xff]  ;;  %v2010_v43 = vadd.f32 %v2009_v22, %v1919_v51  ;;  %v2300_v22 = vsub.f32 %v9219_v20, %v6660_v44  ;;  %v2362_v25 = vmax.f32 %v2298_v7, 0.0 }
 0x4ed   : > { %v1861_v26 = vsub.f32 %v9290_v55, %v6680_v3  ;;  %v1923_v58 = vmax.f32 %v1859_v28, 0.0 }
 0x4ee   : > { %v2401_v42 = vadd.f32 %v2400_v30, %v2350_v0  ;;  %v9291_v30 = vld [vmem:[#allocation73_spill] sm:$0xff]  ;;  %v2011_v12 = vadd.f32 %v2010_v43, %v1921_v24  ;;  %v2302_v43 = vsub.f32 %v5856_v10, %v6660_v44  ;;  %v2364_v21 = vmax.f32 %v2300_v22, 0.0 }
 0x4ef   : > { %v1863_v41 = vsub.f32 %v9291_v30, %v6680_v3  ;;  %v1925_v1 = vmax.f32 %v1861_v26, 0.0 }
 0x4f0   : > { %v2402_v34 = vadd.f32 %v2401_v42, %v2352_v13  ;;  %v9292_v42 = vld [vmem:[#allocation74_spill] sm:$0xff]  ;;  %v2012_v51 = vadd.f32 %v2011_v12, %v1923_v58  ;;  %v2304_v12 = vsub.f32 %v5859_v14, %v6660_v44  ;;  %v2366_v7 = vmax.f32 %v2302_v43, 0.0 }
 0x4f1   : > { %v1865_v55 = vsub.f32 %v9292_v42, %v6680_v3  ;;  %v1927_v28 = vmax.f32 %v1863_v41, 0.0 }
 0x4f2   : > { %v2403_v0 = vadd.f32 %v2402_v34, %v2354_v54  ;;  %v9293_v34 = vld [vmem:[#allocation13_spill] sm:$0xff]  ;;  %v2013_v24 = vadd.f32 %v2012_v51, %v1925_v1  ;;  %v2306_v51 = vsub.f32 %v5862_v19, %v6660_v44  ;;  %v2368_v22 = vmax.f32 %v2304_v12, 0.0 }
 0x4f3   : > { %v1867_v30 = vsub.f32 %v9293_v34, %v6680_v3  ;;  %v1929_v26 = vmax.f32 %v1865_v55, 0.0 }
 0x4f4   : > { %v2404_v13 = vadd.f32 %v2403_v0, %v2356_v2  ;;  %v9294_v0 = vld [vmem:[#allocation14_spill] sm:$0xff]  ;;  %v2014_v58 = vadd.f32 %v2013_v24, %v1927_v28  ;;  %v9297_v24 = vld [vmem:[#allocation52_spill] sm:$0xff]  ;;  %v2370_v43 = vmax.f32 %v2306_v51, 0.0 }
 0x4f5   : > { %v1869_v42 = vsub.f32 %v9294_v0, %v6680_v3  ;;  %v1931_v41 = vmax.f32 %v1867_v30, 0.0  ;;  %v2308_v14 = vsub.f32 %v9297_v24, %v6660_v44 }
 0x4f6   : > { %v2405_v54 = vadd.f32 %v2404_v13, %v2358_v61  ;;  %v9295_v13 = vld [vmem:[#allocation15_spill] sm:$0xff]  ;;  %v2015_v1 = vadd.f32 %v2014_v58, %v1929_v26  ;;  %v2310_v58 = vsub.f32 %v5867_v37, %v6660_v44 }
 0x4f7   : > { %v1871_v34 = vsub.f32 %v9295_v13, %v6680_v3  ;;  %v1933_v55 = vmax.f32 %v1869_v42, 0.0  ;;  %v2372_v12 = vmax.f32 %v2308_v14, 0.0 }
 0x4f8   : > { %v2406_v2 = vadd.f32 %v2405_v54, %v2360_v18  ;;  %v9296_v54 = vld [vmem:[#allocation16_spill] sm:$0xff]  ;;  %v2016_v28 = vadd.f32 %v2015_v1, %v1931_v41  ;;  %v2312_v1 = vsub.f32 %v5869_v49, %v6660_v44  ;;  %v2374_v51 = vmax.f32 %v2310_v58, 0.0 }
 0x4f9   : > { %v1873_v0 = vsub.f32 %v9296_v54, %v6680_v3  ;;  %v1935_v30 = vmax.f32 %v1871_v34, 0.0 }
 0x4fa   : > { %v2407_v61 = vadd.f32 %v2406_v2, %v2362_v25  ;;  %v9298_v2 = vld [vmem:[#allocation17_spill] sm:$0xff]  ;;  %v2017_v26 = vadd.f32 %v2016_v28, %v1933_v55  ;;  %v2314_v28 = vsub.f32 %v5871_v45, %v6660_v44  ;;  %v2376_v14 = vmax.f32 %v2312_v1, 0.0 }
 0x4fb   : > { %v1875_v13 = vsub.f32 %v9298_v2, %v6680_v3  ;;  %v1937_v42 = vmax.f32 %v1873_v0, 0.0 }
 0x4fc   : > { %v2408_v18 = vadd.f32 %v2407_v61, %v2364_v21  ;;  %v9299_v61 = vld [vmem:[#allocation18_spill] sm:$0xff]  ;;  %v2018_v41 = vadd.f32 %v2017_v26, %v1935_v30  ;;  %v2316_v26 = vsub.f32 %v5873_v53, %v6660_v44  ;;  %v2378_v58 = vmax.f32 %v2314_v28, 0.0 }
 0x4fd   : > { %v1877_v54 = vsub.f32 %v9299_v61, %v6680_v3  ;;  %v1939_v34 = vmax.f32 %v1875_v13, 0.0 }
 0x4fe   : > { %v2409_v25 = vadd.f32 %v2408_v18, %v2366_v7  ;;  %v9300_v18 = vld [vmem:[#allocation19_spill] sm:$0xff]  ;;  %v2019_v55 = vadd.f32 %v2018_v41, %v1937_v42  ;;  %v2318_v41 = vsub.f32 %v5875_v39, %v6660_v44  ;;  %v2380_v1 = vmax.f32 %v2316_v26, 0.0 }
 0x4ff   : > { %v1879_v2 = vsub.f32 %v9300_v18, %v6680_v3  ;;  %v1941_v0 = vmax.f32 %v1877_v54, 0.0 }
 0x500   : > { %v2410_v21 = vadd.f32 %v2409_v25, %v2368_v22  ;;  %v9301_v25 = vld [vmem:[#allocation20_spill] sm:$0xff]  ;;  %v2020_v30 = vadd.f32 %v2019_v55, %v1939_v34  ;;  %v2320_v55 = vsub.f32 %v9169_v4, %v6660_v44  ;;  %v2382_v28 = vmax.f32 %v2318_v41, 0.0  ;;  %v9307_v41 = vld [vmem:[#allocation26_spill] sm:$0xff] }
 0x501   : > { %v1881_v61 = vsub.f32 %v9301_v25, %v6680_v3  ;;  %v1943_v13 = vmax.f32 %v1879_v2, 0.0 }
 0x502   : > { %v2411_v7 = vadd.f32 %v2410_v21, %v2370_v43  ;;  %v9302_v21 = vld [vmem:[#allocation21_spill] sm:$0xff]  ;;  %v2021_v42 = vadd.f32 %v2020_v30, %v1941_v0  ;;  %v2322_v30 = vsub.f32 %v9250_v38, %v6660_v44  ;;  %v2384_v26 = vmax.f32 %v2320_v55, 0.0 }
 0x503   : > { %v1883_v18 = vsub.f32 %v9302_v21, %v6680_v3  ;;  %v1945_v54 = vmax.f32 %v1881_v61, 0.0 }
 0x504   : > { %v2412_v22 = vadd.f32 %v2411_v7, %v2372_v12  ;;  %v9303_v7 = vld [vmem:[#allocation22_spill] sm:$0xff]  ;;  %v2022_v34 = vadd.f32 %v2021_v42, %v1943_v13  ;;  %v2324_v42 = vsub.f32 %v9251_v29, %v6660_v44 }
 0x505   : > { %v1885_v25 = vsub.f32 %v9303_v7, %v6680_v3  ;;  %v1947_v2 = vmax.f32 %v1883_v18, 0.0 }
 0x506   : > { %v2413_v43 = vadd.f32 %v2412_v22, %v2374_v51  ;;  %v9304_v22 = vld [vmem:[#allocation23_spill] sm:$0xff]  ;;  %v2023_v0 = vadd.f32 %v2022_v34, %v1945_v54  ;;  %v2386_v34 = vmax.f32 %v2322_v30, 0.0 }
 0x507   : > { %v1887_v21 = vsub.f32 %v9304_v22, %v6680_v3  ;;  %v1949_v61 = vmax.f32 %v1885_v25, 0.0 }
 0x508   : > { %v2414_v12 = vadd.f32 %v2413_v43, %v2376_v14  ;;  %v9305_v43 = vld [vmem:[#allocation24_spill] sm:$0xff]  ;;  %v2024_v13 = vadd.f32 %v2023_v0, %v1947_v2  ;;  %v9308_v2 = vld [vmem:[#allocation27_spill] sm:$0xff] }
 0x509   : > { %v1889_v7 = vsub.f32 %v9305_v43, %v6680_v3  ;;  %v1951_v18 = vmax.f32 %v1887_v21, 0.0  ;;  %v2388_v43 = vmax.f32 %v2324_v42, 0.0  ;;  %v1895_v0 = vsub.f32 %v9308_v2, %v6680_v3  ;;  %v9309_v21 = vld [vmem:[#allocation28_spill] sm:$0xff]  ;;  %v9310_v42 = vld [vmem:[#allocation77_spill] sm:$0xff] }
 0x50a   : > { %v2415_v51 = vadd.f32 %v2414_v12, %v2378_v58  ;;  %v9306_v12 = vld [vmem:[#allocation25_spill] sm:$0xff]  ;;  %v2025_v54 = vadd.f32 %v2024_v13, %v1949_v61  ;;  %v1897_v30 = vsub.f32 %v9309_v21, %v6680_v3 }
 0x50b   : > { %v1891_v22 = vsub.f32 %v9306_v12, %v6680_v3  ;;  %v1959_v61 = vmax.f32 %v1895_v0, 0.0 }
 0x50c   : > { %v2416_v14 = vadd.f32 %v2415_v51, %v2380_v1  ;;  %v1893_v1 = vsub.f32 %v9307_v41, %v6680_v3  ;;  %v1953_v51 = vmax.f32 %v1889_v7, 0.0  ;;  %v2026_v38 = vadd.f32 %v2025_v54, %v1951_v18 }
 0x50d   : > { %v1955_v29 = vmax.f32 %v1891_v22, 0.0  ;;  %v1961_v18 = vmax.f32 %v1897_v30, 0.0 }
 0x50e   : > { %v2417_v58 = vadd.f32 %v2416_v14, %v2382_v28  ;;  %v2027_v55 = vadd.f32 %v2026_v38, %v1953_v51  ;;  %v1957_v14 = vmax.f32 %v1893_v1, 0.0  ;;  %v9311_v38 = vld [vmem:[#allocation78_spill] sm:$0xff] }
 0x510   : > { %v2418_v4 = vadd.f32 %v2417_v58, %v2384_v26  ;;  %v2028_v39 = vadd.f32 %v2027_v55, %v1955_v29 }
 0x512   : > { %v2419_v25 = vadd.f32 %v2418_v4, %v2386_v34  ;;  %v2029_v13 = vadd.f32 %v2028_v39, %v1957_v14  ;;  %v1899_v4 = vsub.f32 %v9310_v42, %v6680_v3 }
 0x514   : > { %v2420_v28 = vadd.f32 %v2419_v25, %v2388_v43  ;;  %v2030_v58 = vadd.f32 %v2029_v13, %v1959_v61  ;;  %v1901_v43 = vsub.f32 %v9311_v38, %v6680_v3  ;;  %v1963_v29 = vmax.f32 %v1899_v4, 0.0 }
 0x516   : > { %v2421_v12 = vrot.slane %v2420_v28, 4  ;;  %v2031_v34 = vadd.f32 %v2030_v58, %v1961_v18  ;;  %v1965_v25 = vmax.f32 %v1901_v43, 0.0 }
 0x518   : > { %v2422_v26 = vadd.f32 %v2421_v12, %v2420_v28  ;;  %v2032_v51 = vadd.f32 %v2031_v34, %v1963_v29 }
 0x51a   : > { %v2423_v7 = vrot.slane %v2422_v26, 2  ;;  %v2033_v0 = vadd.f32 %v2032_v51, %v1965_v25 }
 0x51c   : > { %v2424_v54 = vadd.f32 %v2423_v7, %v2422_v26  ;;  %v2034_v28 = vrot.slane %v2033_v0, 4 }
 0x51e   : > { %v2425_v22 = vrot.slane %v2424_v54, 1  ;;  %v2035_v30 = vadd.f32 %v2034_v28, %v2033_v0 }
 0x520   : > { %v2426_v1 = vadd.f32 %v2425_v22, %v2424_v54  ;;  %v2036_v26 = vrot.slane %v2035_v30, 2 }
 0x522   : > { %vm2464_vm5 = vcmp.ge.f32.partialorder %v2426_v1, 1.0 }
 0x523   : > { %v6804_v39 = vsel %vm2464_vm5, %v6660_v44, %v6652_v33  ;;  %v6808_v12 = vsel %vm2464_vm5, %v6656_v23, %v6660_v44  ;;  %v2037_v44 = vadd.f32 %v2036_v26, %v2035_v30 }
 0x524   : > { %v2470_v55 = vadd.f32 %v6808_v12, %v6804_v39 }
 0x525   : > { %v2038_v34 = vrot.slane %v2037_v44, 1 }
 0x526   : > { %v6812_v14 = vmul.f32 0.5, %v2470_v55 }
 0x527   : > { %v2039_v1 = vadd.f32 %v2038_v34, %v2037_v44 }
 0x528   : > { %v2474_v61 = vsub.f32 %v9184_v17, %v6812_v14  ;;  %v2476_v13 = vsub.f32 %v9185_v11, %v6812_v14  ;;  %v2478_v33 = vsub.f32 %v9186_v46, %v6812_v14  ;;  %v2480_v7 = vsub.f32 %v9187_v5, %v6812_v14 }
 0x529   : > { %v2482_v4 = vsub.f32 %v9210_v6, %v6812_v14  ;;  %v2484_v22 = vsub.f32 %v9236_v50, %v6812_v14  ;;  %v2486_v51 = vsub.f32 %v9259_v31, %v6812_v14  ;;  %v2488_v55 = vsub.f32 %v9215_v47, %v6812_v14 }
 0x52a   : > { %v2538_v58 = vmax.f32 %v2474_v61, 0.0  ;;  %v2540_v23 = vmax.f32 %v2476_v13, 0.0  ;;  %v2542_v18 = vmax.f32 %v2478_v33, 0.0  ;;  %v2544_v43 = vmax.f32 %v2480_v7, 0.0 }
 0x52b   : > { %v2546_v25 = vmax.f32 %v2482_v4, 0.0  ;;  %v2548_v28 = vmax.f32 %v2484_v22, 0.0  ;;  %vm2041_vm6 = vcmp.ge.f32.partialorder %v2039_v1, 1.0  ;;  %v2490_v61 = vsub.f32 %v9240_v9, %v6812_v14 }
 0x52c   : > { %v2602_v54 = vadd.f32 %v2540_v23, %v2538_v58  ;;  %v2550_v13 = vmax.f32 %v2486_v51, 0.0  ;;  %v6834_v33 = vsel %vm2041_vm6, %v6680_v3, %v6668_v57  ;;  %v6838_v58 = vsel %vm2041_vm6, %v6672_v15, %v6680_v3 }
 0x52d   : > { %v2492_v23 = vsub.f32 %v9189_v59, %v6812_v14  ;;  %v2552_v44 = vmax.f32 %v2488_v55, 0.0  ;;  %v2494_v4 = vsub.f32 %v5826_v32, %v6812_v14  ;;  %v2047_v34 = vadd.f32 %v6838_v58, %v6834_v33 }
 0x52e   : > { %v2603_v29 = vadd.f32 %v2602_v54, %v2542_v18  ;;  %v2554_v18 = vmax.f32 %v2490_v61, 0.0  ;;  %v2496_v57 = vsub.f32 %v5829_v36, %v6812_v14  ;;  %v2498_v15 = vsub.f32 %v5832_v40, %v6812_v14 }
 0x52f   : > { %v2556_v22 = vmax.f32 %v2492_v23, 0.0  ;;  %v2558_v3 = vmax.f32 %v2494_v4, 0.0  ;;  %v6850_v1 = vmul.f32 0.5, %v2047_v34  ;;  %v2500_v51 = vsub.f32 %v9194_v62, %v6812_v14 }
 0x530   : > { %v2604_v0 = vadd.f32 %v2603_v29, %v2544_v43  ;;  %v2502_v55 = vsub.f32 %v5838_v48, %v6812_v14 }
 0x531   : > { %v2051_v61 = vsub.f32 %v9254_v27, %v6850_v1  ;;  %v2564_v23 = vmax.f32 %v2500_v51, 0.0 }
 0x532   : > { %v2605_v30 = vadd.f32 %v2604_v0, %v2546_v25  ;;  %v2560_v25 = vmax.f32 %v2496_v57, 0.0  ;;  %v2566_v4 = vmax.f32 %v2502_v55, 0.0 }
 0x533   : > { %v2115_v34 = vmax.f32 %v2051_v61, 0.0  ;;  %v2512_v61 = vsub.f32 %v9219_v20, %v6812_v14 }
 0x534   : > { %v2606_v26 = vadd.f32 %v2605_v30, %v2548_v28  ;;  %v2562_v28 = vmax.f32 %v2498_v15, 0.0 }
 0x536   : > { %v2607_v7 = vadd.f32 %v2606_v26, %v2550_v13  ;;  %v2053_v13 = vsub.f32 %v9280_v16, %v6850_v1  ;;  %v2504_v26 = vsub.f32 %v5841_v52, %v6812_v14 }
 0x538   : > { %v2608_v54 = vadd.f32 %v2607_v7, %v2552_v44  ;;  %v2506_v7 = vsub.f32 %v5844_v56, %v6812_v14  ;;  %v2117_v57 = vmax.f32 %v2053_v13, 0.0 }
 0x53a   : > { %v2609_v43 = vadd.f32 %v2608_v54, %v2554_v18  ;;  %v2055_v54 = vsub.f32 %v9281_v8, %v6850_v1  ;;  %v2570_v51 = vmax.f32 %v2506_v7, 0.0 }
 0x53c   : > { %v2610_v29 = vadd.f32 %v2609_v43, %v2556_v22  ;;  %v2508_v22 = vsub.f32 %v5847_v60, %v6812_v14  ;;  %v2568_v43 = vmax.f32 %v2504_v26, 0.0  ;;  %v9313_v26 = vld [vmem:[#allocation66_spill] sm:$0xff] }
 0x53e   : > { %v2611_v0 = vadd.f32 %v2610_v29, %v2558_v3  ;;  %v2057_v3 = vsub.f32 %v9282_v63, %v6850_v1  ;;  %v2510_v29 = vsub.f32 %v9218_v35, %v6812_v14  ;;  %v2572_v13 = vmax.f32 %v2508_v22, 0.0 }
 0x53f   : > { %v2514_v63 = vsub.f32 %v5856_v10, %v6812_v14  ;;  %v2576_v22 = vmax.f32 %v2512_v61, 0.0 }
 0x540   : > { %v2612_v30 = vadd.f32 %v2611_v0, %v2560_v25  ;;  %v9312_v0 = vld [vmem:[#allocation65_spill] sm:$0xff]  ;;  %v2574_v7 = vmax.f32 %v2510_v29, 0.0 }
 0x541   : > { %v2059_v55 = vsub.f32 %v9312_v0, %v6850_v1  ;;  %v2578_v29 = vmax.f32 %v2514_v63, 0.0 }
 0x542   : > { %v2613_v44 = vadd.f32 %v2612_v30, %v2562_v28  ;;  %v2119_v28 = vmax.f32 %v2055_v54, 0.0  ;;  %v2215_v30 = vadd.f32 %v2117_v57, %v2115_v34  ;;  %v9315_v57 = vld [vmem:[#allocation50_spill] sm:$0xff] }
 0x543   : > { %v2123_v54 = vmax.f32 %v2059_v55, 0.0  ;;  %v2516_v8 = vsub.f32 %v9315_v57, %v6812_v14 }
 0x544   : > { %v2614_v18 = vadd.f32 %v2613_v44, %v2564_v23  ;;  %v2061_v44 = vsub.f32 %v9313_v26, %v6850_v1 }
 0x545   : > { %v2580_v61 = vmax.f32 %v2516_v8, 0.0 }
 0x546   : > { %v2615_v15 = vadd.f32 %v2614_v18, %v2566_v4  ;;  %v2121_v4 = vmax.f32 %v2057_v3, 0.0  ;;  %v2216_v18 = vadd.f32 %v2215_v30, %v2119_v28  ;;  %v2125_v3 = vmax.f32 %v2061_v44, 0.0 }
 0x547   : > { %v2518_v30 = vsub.f32 %v5862_v19, %v6812_v14 }
 0x548   : > { %v2616_v25 = vadd.f32 %v2615_v15, %v2568_v43  ;;  %v9314_v15 = vld [vmem:[#allocation67_spill] sm:$0xff]  ;;  %v2217_v34 = vadd.f32 %v2216_v18, %v2121_v4  ;;  %v2520_v18 = vsub.f32 %v9297_v24, %v6812_v14 }
 0x549   : > { %v2063_v0 = vsub.f32 %v9314_v15, %v6850_v1  ;;  %v2582_v63 = vmax.f32 %v2518_v30, 0.0 }
 0x54a   : > { %v2617_v23 = vadd.f32 %v2616_v25, %v2570_v51  ;;  %v9316_v25 = vld [vmem:[#allocation68_spill] sm:$0xff]  ;;  %v2218_v28 = vadd.f32 %v2217_v34, %v2123_v54  ;;  %v2522_v34 = vsub.f32 %v5867_v37, %v6812_v14  ;;  %v2584_v8 = vmax.f32 %v2520_v18, 0.0 }
 0x54b   : > { %v2065_v26 = vsub.f32 %v9316_v25, %v6850_v1  ;;  %v2127_v55 = vmax.f32 %v2063_v0, 0.0 }
 0x54c   : > { %v2618_v43 = vadd.f32 %v2617_v23, %v2572_v13  ;;  %v9317_v23 = vld [vmem:[#allocation69_spill] sm:$0xff]  ;;  %v2219_v4 = vadd.f32 %v2218_v28, %v2125_v3  ;;  %v2524_v28 = vsub.f32 %v5869_v49, %v6812_v14  ;;  %v2586_v30 = vmax.f32 %v2522_v34, 0.0 }
 0x54d   : > { %v2067_v15 = vsub.f32 %v9317_v23, %v6850_v1  ;;  %v2129_v44 = vmax.f32 %v2065_v26, 0.0 }
 0x54e   : > { %v2619_v51 = vadd.f32 %v2618_v43, %v2574_v7  ;;  %v9318_v43 = vld [vmem:[#allocation70_spill] sm:$0xff]  ;;  %v2220_v54 = vadd.f32 %v2219_v4, %v2127_v55  ;;  %v2526_v4 = vsub.f32 %v5871_v45, %v6812_v14  ;;  %v2588_v18 = vmax.f32 %v2524_v28, 0.0 }
 0x54f   : > { %v2069_v25 = vsub.f32 %v9318_v43, %v6850_v1  ;;  %v2131_v0 = vmax.f32 %v2067_v15, 0.0 }
 0x550   : > { %v2620_v13 = vadd.f32 %v2619_v51, %v2576_v22  ;;  %v9319_v51 = vld [vmem:[#allocation71_spill] sm:$0xff]  ;;  %v2221_v3 = vadd.f32 %v2220_v54, %v2129_v44  ;;  %v2528_v54 = vsub.f32 %v5873_v53, %v6812_v14  ;;  %v2590_v34 = vmax.f32 %v2526_v4, 0.0 }
 0x551   : > { %v2071_v23 = vsub.f32 %v9319_v51, %v6850_v1  ;;  %v2133_v26 = vmax.f32 %v2069_v25, 0.0 }
 0x552   : > { %v2621_v7 = vadd.f32 %v2620_v13, %v2578_v29  ;;  %v9320_v13 = vld [vmem:[#allocation72_spill] sm:$0xff]  ;;  %v2222_v55 = vadd.f32 %v2221_v3, %v2131_v0  ;;  %v9323_v3 = vld [vmem:[#allocation57_spill] sm:$0xff]  ;;  %v2592_v28 = vmax.f32 %v2528_v54, 0.0 }
 0x553   : > { %v2073_v43 = vsub.f32 %v9320_v13, %v6850_v1  ;;  %v2135_v15 = vmax.f32 %v2071_v23, 0.0  ;;  %v2530_v45 = vsub.f32 %v9323_v3, %v6812_v14 }
 0x554   : > { %v2622_v22 = vadd.f32 %v2621_v7, %v2580_v61  ;;  %v9321_v7 = vld [vmem:[#allocation73_spill] sm:$0xff]  ;;  %v2223_v44 = vadd.f32 %v2222_v55, %v2133_v26  ;;  %v9325_v55 = vld [vmem:[#allocation58_spill] sm:$0xff] }
 0x555   : > { %v2075_v51 = vsub.f32 %v9321_v7, %v6850_v1  ;;  %v2137_v25 = vmax.f32 %v2073_v43, 0.0  ;;  %v2532_v53 = vsub.f32 %v9325_v55, %v6812_v14  ;;  %v2594_v4 = vmax.f32 %v2530_v45, 0.0  ;;  %v9331_v45 = vld [vmem:[#allocation17_spill] sm:$0xff] }
 0x556   : > { %v2623_v29 = vadd.f32 %v2622_v22, %v2582_v63  ;;  %v9322_v22 = vld [vmem:[#allocation74_spill] sm:$0xff]  ;;  %v2224_v0 = vadd.f32 %v2223_v44, %v2135_v15  ;;  %v9327_v44 = vld [vmem:[#allocation59_spill] sm:$0xff] }
 0x557   : > { %v2077_v13 = vsub.f32 %v9322_v22, %v6850_v1  ;;  %v2139_v23 = vmax.f32 %v2075_v51, 0.0  ;;  %v2534_v3 = vsub.f32 %v9327_v44, %v6812_v14  ;;  %v2596_v54 = vmax.f32 %v2532_v53, 0.0 }
 0x558   : > { %v2624_v61 = vadd.f32 %v2623_v29, %v2584_v8  ;;  %v9324_v29 = vld [vmem:[#allocation13_spill] sm:$0xff]  ;;  %v2225_v26 = vadd.f32 %v2224_v0, %v2137_v25  ;;  %v9329_v0 = vld [vmem:[#allocation60_spill] sm:$0xff] }
 0x559   : > { %v2079_v7 = vsub.f32 %v9324_v29, %v6850_v1  ;;  %v2141_v43 = vmax.f32 %v2077_v13, 0.0  ;;  %v2536_v55 = vsub.f32 %v9329_v0, %v6812_v14 }
 0x55a   : > { %v2625_v63 = vadd.f32 %v2624_v61, %v2586_v30  ;;  %v9326_v61 = vld [vmem:[#allocation14_spill] sm:$0xff]  ;;  %v2226_v15 = vadd.f32 %v2225_v26, %v2139_v23  ;;  %v2598_v26 = vmax.f32 %v2534_v3, 0.0 }
 0x55b   : > { %v2081_v22 = vsub.f32 %v9326_v61, %v6850_v1  ;;  %v2143_v51 = vmax.f32 %v2079_v7, 0.0 }
 0x55c   : > { %v2626_v8 = vadd.f32 %v2625_v63, %v2588_v18  ;;  %v9328_v63 = vld [vmem:[#allocation15_spill] sm:$0xff]  ;;  %v2227_v25 = vadd.f32 %v2226_v15, %v2141_v43  ;;  %v9332_v43 = vld [vmem:[#allocation18_spill] sm:$0xff] }
 0x55d   : > { %v2083_v29 = vsub.f32 %v9328_v63, %v6850_v1  ;;  %v2145_v13 = vmax.f32 %v2081_v22, 0.0  ;;  %v2600_v63 = vmax.f32 %v2536_v55, 0.0  ;;  %v2089_v15 = vsub.f32 %v9332_v43, %v6850_v1  ;;  %v9333_v22 = vld [vmem:[#allocation19_spill] sm:$0xff]  ;;  %v9334_v55 = vld [vmem:[#allocation20_spill] sm:$0xff] }
 0x55e   : > { %v2627_v30 = vadd.f32 %v2626_v8, %v2590_v34  ;;  %v9330_v8 = vld [vmem:[#allocation16_spill] sm:$0xff]  ;;  %v2228_v23 = vadd.f32 %v2227_v25, %v2143_v51  ;;  %v2091_v3 = vsub.f32 %v9333_v22, %v6850_v1 }
 0x55f   : > { %v2085_v61 = vsub.f32 %v9330_v8, %v6850_v1  ;;  %v2153_v51 = vmax.f32 %v2089_v15, 0.0 }
 0x560   : > { %v2628_v18 = vadd.f32 %v2627_v30, %v2592_v28  ;;  %v2087_v28 = vsub.f32 %v9331_v45, %v6850_v1  ;;  %v2147_v30 = vmax.f32 %v2083_v29, 0.0  ;;  %v2229_v44 = vadd.f32 %v2228_v23, %v2145_v13 }
 0x561   : > { %v2149_v0 = vmax.f32 %v2085_v61, 0.0  ;;  %v2155_v13 = vmax.f32 %v2091_v3, 0.0 }
 0x562   : > { %v2629_v34 = vadd.f32 %v2628_v18, %v2594_v4  ;;  %v2230_v53 = vadd.f32 %v2229_v44, %v2147_v30  ;;  %v2151_v18 = vmax.f32 %v2087_v28, 0.0  ;;  %v9335_v44 = vld [vmem:[#allocation21_spill] sm:$0xff] }
 0x564   : > { %v2630_v49 = vadd.f32 %v2629_v34, %v2596_v54  ;;  %v2231_v37 = vadd.f32 %v2230_v53, %v2149_v0 }
 0x566   : > { %v2631_v7 = vadd.f32 %v2630_v49, %v2598_v26  ;;  %v2232_v25 = vadd.f32 %v2231_v37, %v2151_v18  ;;  %v2093_v49 = vsub.f32 %v9334_v55, %v6850_v1  ;;  %v9337_v18 = vld [vmem:[#allocation23_spill] sm:$0xff] }
 0x567   : > { %v2099_v3 = vsub.f32 %v9337_v18, %v6850_v1 }
 0x568   : > { %v2632_v4 = vadd.f32 %v2631_v7, %v2600_v63  ;;  %v2233_v34 = vadd.f32 %v2232_v25, %v2153_v51  ;;  %v2095_v63 = vsub.f32 %v9335_v44, %v6850_v1  ;;  %v2157_v0 = vmax.f32 %v2093_v49, 0.0  ;;  %v9336_v7 = vld [vmem:[#allocation22_spill] sm:$0xff] }
 0x569   : > { %v2097_v37 = vsub.f32 %v9336_v7, %v6850_v1  ;;  %v2163_v49 = vmax.f32 %v2099_v3, 0.0 }
 0x56a   : > { %v2633_v8 = vrot.slane %v2632_v4, 4  ;;  %v2234_v26 = vadd.f32 %v2233_v34, %v2155_v13  ;;  %v9338_v34 = vld [vmem:[#allocation24_spill] sm:$0xff] }
 0x56b   : > { %v2161_v51 = vmax.f32 %v2097_v37, 0.0 }
 0x56c   : > { %v2634_v54 = vadd.f32 %v2633_v8, %v2632_v4  ;;  %v2235_v30 = vadd.f32 %v2234_v26, %v2157_v0  ;;  %v2159_v8 = vmax.f32 %v2095_v63, 0.0  ;;  %v2105_v0 = vsub.f32 %v9307_v41, %v6850_v1 }
 0x56e   : > { %v2635_v29 = vrot.slane %v2634_v54, 2  ;;  %v2236_v15 = vadd.f32 %v2235_v30, %v2159_v8  ;;  %v2107_v30 = vsub.f32 %v9308_v2, %v6850_v1 }
 0x570   : > { %v2636_v23 = vadd.f32 %v2635_v29, %v2634_v54  ;;  %v2237_v54 = vadd.f32 %v2236_v15, %v2161_v51  ;;  %v2101_v29 = vsub.f32 %v9338_v34, %v6850_v1  ;;  %v2109_v51 = vsub.f32 %v9309_v21, %v6850_v1 }
 0x572   : > { %v2637_v61 = vrot.slane %v2636_v23, 1 }
 0x574   : > { %v2638_v28 = vadd.f32 %v2637_v61, %v2636_v23  ;;  %v9339_v23 = vld [vmem:[#allocation25_spill] sm:$0xff] }
 0x575   : > { %v2103_v26 = vsub.f32 %v9339_v23, %v6850_v1 }
 0x576   : > { %vm2676_vm7 = vcmp.ge.f32.partialorder %v2638_v28, 1.0 }
 0x577   : > { %v6940_v53 = vsel %vm2676_vm7, %v6812_v14, %v6804_v39  ;;  %v6944_v4 = vsel %vm2676_vm7, %v6808_v12, %v6812_v14  ;;  %v2238_v39 = vadd.f32 %v2237_v54, %v2163_v49  ;;  %v2165_v12 = vmax.f32 %v2101_v29, 0.0 }
 0x578   : > { %v2682_v25 = vadd.f32 %v6944_v4, %v6940_v53  ;;  %v2167_v28 = vmax.f32 %v2103_v26, 0.0  ;;  %v2169_v54 = vmax.f32 %v2105_v0, 0.0  ;;  %v2111_v29 = vsub.f32 %v9310_v42, %v6850_v1 }
 0x579   : > { %v2239_v63 = vadd.f32 %v2238_v39, %v2165_v12  ;;  %v2171_v49 = vmax.f32 %v2107_v30, 0.0 }
 0x57a   : > { %v6952_v13 = vmul.f32 0.5, %v2682_v25  ;;  %v2175_v41 = vmax.f32 %v2111_v29, 0.0 }
 0x57b   : > { %v2240_v3 = vadd.f32 %v2239_v63, %v2167_v28 }
 0x57c   : > { %v2686_v14 = vsub.f32 %v9184_v17, %v6952_v13  ;;  %v2688_v61 = vsub.f32 %v9185_v11, %v6952_v13  ;;  %v2690_v37 = vsub.f32 %v9186_v46, %v6952_v13  ;;  %v2692_v25 = vsub.f32 %v9187_v5, %v6952_v13 }
 0x57d   : > { %v2694_v39 = vsub.f32 %v9210_v6, %v6952_v13  ;;  %v2241_v2 = vadd.f32 %v2240_v3, %v2169_v54  ;;  %v2696_v63 = vsub.f32 %v9236_v50, %v6952_v13  ;;  %v2698_v30 = vsub.f32 %v9259_v31, %v6952_v13 }
 0x57e   : > { %v2750_v8 = vmax.f32 %v2686_v14, 0.0  ;;  %v2752_v15 = vmax.f32 %v2688_v61, 0.0  ;;  %v2754_v26 = vmax.f32 %v2690_v37, 0.0  ;;  %v2113_v14 = vsub.f32 %v9311_v38, %v6850_v1 }
 0x57f   : > { %v2173_v61 = vmax.f32 %v2109_v51, 0.0  ;;  %v2756_v28 = vmax.f32 %v2692_v25, 0.0  ;;  %v2242_v0 = vadd.f32 %v2241_v2, %v2171_v49  ;;  %v2758_v42 = vmax.f32 %v2694_v39, 0.0 }
 0x580   : > { %v2814_v12 = vadd.f32 %v2752_v15, %v2750_v8  ;;  %v2177_v37 = vmax.f32 %v2113_v14, 0.0  ;;  %v2700_v8 = vsub.f32 %v9215_v47, %v6952_v13  ;;  %v2760_v15 = vmax.f32 %v2696_v63, 0.0 }
 0x581   : > { %v2243_v34 = vadd.f32 %v2242_v0, %v2173_v61  ;;  %v2702_v54 = vsub.f32 %v9240_v9, %v6952_v13  ;;  %v2762_v25 = vmax.f32 %v2698_v30, 0.0  ;;  %v2704_v29 = vsub.f32 %v9189_v59, %v6952_v13 }
 0x582   : > { %v2815_v21 = vadd.f32 %v2814_v12, %v2754_v26  ;;  %v2764_v49 = vmax.f32 %v2700_v8, 0.0  ;;  %v2706_v12 = vsub.f32 %v5826_v32, %v6952_v13  ;;  %v2712_v8 = vsub.f32 %v9194_v62, %v6952_v13 }
 0x583   : > { %v2244_v51 = vadd.f32 %v2243_v34, %v2175_v41  ;;  %v2766_v14 = vmax.f32 %v2702_v54, 0.0  ;;  %v2708_v41 = vsub.f32 %v5829_v36, %v6952_v13  ;;  %v2714_v54 = vsub.f32 %v5838_v48, %v6952_v13 }
 0x584   : > { %v2816_v23 = vadd.f32 %v2815_v21, %v2756_v28  ;;  %v2710_v28 = vsub.f32 %v5832_v40, %v6952_v13  ;;  %v2770_v0 = vmax.f32 %v2706_v12, 0.0 }
 0x585   : > { %v2245_v2 = vadd.f32 %v2244_v51, %v2177_v37  ;;  %v2778_v12 = vmax.f32 %v2714_v54, 0.0 }
 0x586   : > { %v2817_v3 = vadd.f32 %v2816_v23, %v2758_v42  ;;  %v2768_v42 = vmax.f32 %v2704_v29, 0.0  ;;  %v2716_v29 = vsub.f32 %v5841_v52, %v6952_v13 }
 0x587   : > { %v2246_v21 = vrot.slane %v2245_v2, 4 }
 0x588   : > { %v2818_v26 = vadd.f32 %v2817_v3, %v2760_v15  ;;  %v2772_v15 = vmax.f32 %v2708_v41, 0.0 }
 0x589   : > { %v2247_v63 = vadd.f32 %v2246_v21, %v2245_v2  ;;  %v2718_v21 = vsub.f32 %v5844_v56, %v6952_v13 }
 0x58a   : > { %v2819_v39 = vadd.f32 %v2818_v26, %v2762_v25  ;;  %v2774_v25 = vmax.f32 %v2710_v28, 0.0 }
 0x58b   : > { %v2248_v23 = vrot.slane %v2247_v63, 2  ;;  %v2782_v28 = vmax.f32 %v2718_v21, 0.0 }
 0x58c   : > { %v2820_v61 = vadd.f32 %v2819_v39, %v2764_v49  ;;  %v2776_v49 = vmax.f32 %v2712_v8, 0.0 }
 0x58d   : > { %v2249_v37 = vadd.f32 %v2248_v23, %v2247_v63  ;;  %v2780_v63 = vmax.f32 %v2716_v29, 0.0  ;;  %v2722_v23 = vsub.f32 %v9218_v35, %v6952_v13 }
 0x58e   : > { %v2821_v34 = vadd.f32 %v2820_v61, %v2766_v14  ;;  %v2720_v61 = vsub.f32 %v5847_v60, %v6952_v13 }
 0x58f   : > { %v2250_v51 = vrot.slane %v2249_v37, 1 }
 0x590   : > { %v2822_v30 = vadd.f32 %v2821_v34, %v2768_v42 }
 0x591   : > { %v2251_v2 = vadd.f32 %v2250_v51, %v2249_v37  ;;  %v2784_v37 = vmax.f32 %v2720_v61, 0.0  ;;  %v9342_v61 = vld [vmem:[#allocation53_spill] sm:$0xff] }
 0x592   : > { %v2823_v3 = vadd.f32 %v2822_v30, %v2770_v0  ;;  %v2724_v30 = vsub.f32 %v9219_v20, %v6952_v13 }
 0x593   : > { %vm2253_vm8 = vcmp.ge.f32.partialorder %v2251_v2, 1.0 }
 0x594   : > { %v2824_v26 = vadd.f32 %v2823_v3, %v2772_v15  ;;  %v7004_v42 = vsel %vm2253_vm8, %v6850_v1, %v6834_v33  ;;  %v7008_v34 = vsel %vm2253_vm8, %v6838_v58, %v6850_v1  ;;  %v2726_v33 = vsub.f32 %v5856_v10, %v6952_v13 }
 0x595   : > { %9340 = vst [vmem:[#allocation75_spill] sm:$0xff] %v7004_v42  ;;  %9341 = vst [vmem:[#allocation76_spill] sm:$0xff] %v7008_v34  ;;  %v2259_v15 = vadd.f32 %v7008_v34, %v7004_v42  ;;  %v2786_v3 = vmax.f32 %v2722_v23, 0.0  ;;  %v2728_v58 = vsub.f32 %v9315_v57, %v6952_v13  ;;  %v2788_v1 = vmax.f32 %v2724_v30, 0.0  ;;  %v9351_v42 = vld [vmem:[#allocation58_spill] sm:$0xff] }
 0x596   : > { %v2825_v39 = vadd.f32 %v2824_v26, %v2774_v25  ;;  %v2730_v26 = vsub.f32 %v5862_v19, %v6952_v13  ;;  %v2790_v2 = vmax.f32 %v2726_v33, 0.0 }
 0x597   : > { %v7020_v25 = vmul.f32 0.5, %v2259_v15 }
 0x598   : > { %v2826_v14 = vadd.f32 %v2825_v39, %v2776_v49  ;;  %v2732_v49 = vsub.f32 %v9297_v24, %v6952_v13  ;;  %v2792_v39 = vmax.f32 %v2728_v58, 0.0 }
 0x59a   : > { %v2827_v41 = vadd.f32 %v2826_v14, %v2778_v12  ;;  %v2263_v12 = vsub.f32 %v9254_v27, %v7020_v25  ;;  %v2265_v14 = vsub.f32 %v9280_v16, %v7020_v25  ;;  %v2796_v30 = vmax.f32 %v2732_v49, 0.0  ;;  %v9348_v49 = vld [vmem:[#allocation65_spill] sm:$0xff] }
 0x59c   : > { %v2828_v0 = vadd.f32 %v2827_v41, %v2780_v63  ;;  %v2734_v63 = vsub.f32 %v9342_v61, %v6952_v13  ;;  %v2794_v41 = vmax.f32 %v2730_v26, 0.0  ;;  %v2327_v33 = vmax.f32 %v2263_v12, 0.0  ;;  %v9347_v26 = vld [vmem:[#allocation56_spill] sm:$0xff]  ;;  %v9349_v12 = vld [vmem:[#allocation57_spill] sm:$0xff] }
 0x59e   : > { %v2829_v8 = vadd.f32 %v2828_v0, %v2782_v28  ;;  %v9343_v28 = vld [vmem:[#allocation54_spill] sm:$0xff] }
 0x59f   : > { %v2736_v0 = vsub.f32 %v9343_v28, %v6952_v13 }
 0x5a0   : > { %v2830_v51 = vadd.f32 %v2829_v8, %v2784_v37  ;;  %v9344_v8 = vld [vmem:[#allocation63_spill] sm:$0xff] }
 0x5a1   : > { %v2267_v15 = vsub.f32 %v9344_v8, %v7020_v25 }
 0x5a2   : > { %v2831_v54 = vadd.f32 %v2830_v51, %v2786_v3  ;;  %v2329_v3 = vmax.f32 %v2265_v14, 0.0  ;;  %v9345_v51 = vld [vmem:[#allocation55_spill] sm:$0xff]  ;;  %v2742_v14 = vsub.f32 %v9349_v12, %v6952_v13 }
 0x5a3   : > { %v2738_v58 = vsub.f32 %v9345_v51, %v6952_v13 }
 0x5a4   : > { %v2832_v29 = vadd.f32 %v2831_v54, %v2788_v1  ;;  %v2798_v1 = vmax.f32 %v2734_v63, 0.0  ;;  %v2427_v8 = vadd.f32 %v2329_v3, %v2327_v33  ;;  %v9350_v63 = vld [vmem:[#allocation66_spill] sm:$0xff]  ;;  %v9353_v3 = vld [vmem:[#allocation59_spill] sm:$0xff] }
 0x5a5   : > { %v2802_v27 = vmax.f32 %v2738_v58, 0.0  ;;  %v2746_v12 = vsub.f32 %v9353_v3, %v6952_v13  ;;  %v2806_v58 = vmax.f32 %v2742_v14, 0.0  ;;  %v9357_v14 = vld [vmem:[#allocation70_spill] sm:$0xff] }
 0x5a6   : > { %v2833_v21 = vadd.f32 %v2832_v29, %v2790_v2  ;;  %v9346_v2 = vld [vmem:[#allocation64_spill] sm:$0xff] }
 0x5a7   : > { %v2269_v29 = vsub.f32 %v9346_v2, %v7020_v25 }
 0x5a8   : > { %v2834_v23 = vadd.f32 %v2833_v21, %v2792_v39  ;;  %v2740_v39 = vsub.f32 %v9347_v26, %v6952_v13  ;;  %v2800_v21 = vmax.f32 %v2736_v0, 0.0  ;;  %v2744_v26 = vsub.f32 %v9351_v42, %v6952_v13 }
 0x5aa   : > { %v2835_v37 = vadd.f32 %v2834_v23, %v2794_v41  ;;  %v2271_v41 = vsub.f32 %v9348_v49, %v7020_v25  ;;  %v2331_v23 = vmax.f32 %v2267_v15, 0.0  ;;  %v2804_v0 = vmax.f32 %v2740_v39, 0.0 }
 0x5ab   : > { %v2808_v39 = vmax.f32 %v2744_v26, 0.0 }
 0x5ac   : > { %v2836_v54 = vadd.f32 %v2835_v37, %v2796_v30  ;;  %v2273_v30 = vsub.f32 %v9350_v63, %v7020_v25  ;;  %v2333_v37 = vmax.f32 %v2269_v29, 0.0  ;;  %v2428_v2 = vadd.f32 %v2427_v8, %v2331_v23  ;;  %v9355_v23 = vld [vmem:[#allocation60_spill] sm:$0xff] }
 0x5ad   : > { %v2335_v15 = vmax.f32 %v2271_v41, 0.0  ;;  %v2748_v42 = vsub.f32 %v9355_v23, %v6952_v13 }
 0x5ae   : > { %v2837_v16 = vadd.f32 %v2836_v54, %v2798_v1  ;;  %v9352_v54 = vld [vmem:[#allocation67_spill] sm:$0xff]  ;;  %v2429_v33 = vadd.f32 %v2428_v2, %v2333_v37  ;;  %v2337_v29 = vmax.f32 %v2273_v30, 0.0  ;;  %v2810_v37 = vmax.f32 %v2746_v12, 0.0 }
 0x5af   : > { %v2275_v49 = vsub.f32 %v9352_v54, %v7020_v25 }
 0x5b0   : > { %v2838_v34 = vadd.f32 %v2837_v16, %v2800_v21  ;;  %v9354_v21 = vld [vmem:[#allocation68_spill] sm:$0xff]  ;;  %v2430_v8 = vadd.f32 %v2429_v33, %v2335_v15  ;;  %v9358_v15 = vld [vmem:[#allocation71_spill] sm:$0xff] }
 0x5b1   : > { %v2277_v63 = vsub.f32 %v9354_v21, %v7020_v25  ;;  %v2339_v41 = vmax.f32 %v2275_v49, 0.0  ;;  %v2812_v21 = vmax.f32 %v2748_v42, 0.0  ;;  %v2283_v33 = vsub.f32 %v9358_v15, %v7020_v25  ;;  %v9359_v49 = vld [vmem:[#allocation72_spill] sm:$0xff]  ;;  %v9360_v42 = vld [vmem:[#allocation73_spill] sm:$0xff] }
 0x5b2   : > { %v2839_v1 = vadd.f32 %v2838_v34, %v2802_v27  ;;  %v9356_v34 = vld [vmem:[#allocation69_spill] sm:$0xff]  ;;  %v2431_v2 = vadd.f32 %v2430_v8, %v2337_v29  ;;  %v2285_v12 = vsub.f32 %v9359_v49, %v7020_v25 }
 0x5b3   : > { %v2279_v54 = vsub.f32 %v9356_v34, %v7020_v25  ;;  %v2347_v29 = vmax.f32 %v2283_v33, 0.0 }
 0x5b4   : > { %v2840_v16 = vadd.f32 %v2839_v1, %v2804_v0  ;;  %v2281_v0 = vsub.f32 %v9357_v14, %v7020_v25  ;;  %v2341_v1 = vmax.f32 %v2277_v63, 0.0  ;;  %v2432_v3 = vadd.f32 %v2431_v2, %v2339_v41 }
 0x5b5   : > { %v2343_v23 = vmax.f32 %v2279_v54, 0.0  ;;  %v2349_v41 = vmax.f32 %v2285_v12, 0.0 }
 0x5b6   : > { %v2841_v27 = vadd.f32 %v2840_v16, %v2806_v58  ;;  %v2433_v26 = vadd.f32 %v2432_v3, %v2341_v1  ;;  %v2345_v16 = vmax.f32 %v2281_v0, 0.0  ;;  %v9361_v3 = vld [vmem:[#allocation74_spill] sm:$0xff] }
 0x5b8   : > { %v2842_v51 = vadd.f32 %v2841_v27, %v2808_v39  ;;  %v2434_v28 = vadd.f32 %v2433_v26, %v2343_v23 }
 0x5ba   : > { %v2843_v30 = vadd.f32 %v2842_v51, %v2810_v37  ;;  %v2435_v8 = vadd.f32 %v2434_v28, %v2345_v16  ;;  %v2287_v51 = vsub.f32 %v9360_v42, %v7020_v25  ;;  %v9363_v16 = vld [vmem:[#allocation14_spill] sm:$0xff] }
 0x5bb   : > { %v2293_v12 = vsub.f32 %v9363_v16, %v7020_v25 }
 0x5bc   : > { %v2844_v58 = vadd.f32 %v2843_v30, %v2812_v21  ;;  %v2436_v27 = vadd.f32 %v2435_v8, %v2347_v29  ;;  %v2289_v21 = vsub.f32 %v9361_v3, %v7020_v25  ;;  %v2351_v23 = vmax.f32 %v2287_v51, 0.0  ;;  %v9362_v30 = vld [vmem:[#allocation13_spill] sm:$0xff] }
 0x5bd   : > { %v2291_v28 = vsub.f32 %v9362_v30, %v7020_v25  ;;  %v2357_v51 = vmax.f32 %v2293_v12, 0.0 }
 0x5be   : > { %v2845_v34 = vrot.slane %v2844_v58, 4  ;;  %v2437_v37 = vadd.f32 %v2436_v27, %v2349_v41  ;;  %v9364_v27 = vld [vmem:[#allocation15_spill] sm:$0xff] }
 0x5bf   : > { %v2355_v29 = vmax.f32 %v2291_v28, 0.0 }
 0x5c0   : > { %v2846_v39 = vadd.f32 %v2845_v34, %v2844_v58  ;;  %v2438_v1 = vadd.f32 %v2437_v37, %v2351_v23  ;;  %v2353_v34 = vmax.f32 %v2289_v21, 0.0  ;;  %v2299_v23 = vsub.f32 %v9331_v45, %v7020_v25 }
 0x5c2   : > { %v2847_v63 = vrot.slane %v2846_v39, 2  ;;  %v2439_v33 = vadd.f32 %v2438_v1, %v2353_v34  ;;  %v2301_v1 = vsub.f32 %v9332_v43, %v7020_v25 }
 0x5c4   : > { %v2848_v2 = vadd.f32 %v2847_v63, %v2846_v39  ;;  %v2440_v39 = vadd.f32 %v2439_v33, %v2355_v29  ;;  %v2295_v63 = vsub.f32 %v9364_v27, %v7020_v25  ;;  %v2303_v29 = vsub.f32 %v9333_v22, %v7020_v25 }
 0x5c6   : > { %v2849_v54 = vrot.slane %v2848_v2, 1 }
 0x5c8   : > { %v2850_v0 = vadd.f32 %v2849_v54, %v2848_v2  ;;  %v9365_v2 = vld [vmem:[#allocation16_spill] sm:$0xff] }
 0x5c9   : > { %v2297_v37 = vsub.f32 %v9365_v2, %v7020_v25 }
 0x5ca   : > { %vm2888_vm9 = vcmp.ge.f32.partialorder %v2850_v0, 1.0 }
 0x5cb   : > { %v7074_v26 = vsel %vm2888_vm9, %v6952_v13, %v6940_v53  ;;  %v7078_v58 = vsel %vm2888_vm9, %v6944_v4, %v6952_v13  ;;  %v2441_v53 = vadd.f32 %v2440_v39, %v2357_v51  ;;  %v2359_v4 = vmax.f32 %v2295_v63, 0.0 }
 0x5cc   : > { %v2894_v8 = vadd.f32 %v7078_v58, %v7074_v26  ;;  %v2361_v0 = vmax.f32 %v2297_v37, 0.0  ;;  %v2363_v39 = vmax.f32 %v2299_v23, 0.0  ;;  %v2305_v63 = vsub.f32 %v9334_v55, %v7020_v25 }
 0x5cd   : > { %v2442_v21 = vadd.f32 %v2441_v53, %v2359_v4  ;;  %v2365_v51 = vmax.f32 %v2301_v1, 0.0  ;;  %v2309_v55 = vsub.f32 %v9336_v7, %v7020_v25 }
 0x5ce   : > { %v7086_v41 = vmul.f32 0.5, %v2894_v8  ;;  %v2369_v1 = vmax.f32 %v2305_v63, 0.0 }
 0x5cf   : > { %v2443_v12 = vadd.f32 %v2442_v21, %v2361_v0  ;;  %v2373_v63 = vmax.f32 %v2309_v55, 0.0 }
 0x5d0   : > { %v2898_v13 = vsub.f32 %v9184_v17, %v7086_v41  ;;  %v2900_v54 = vsub.f32 %v9185_v11, %v7086_v41  ;;  %v2902_v28 = vsub.f32 %v9186_v46, %v7086_v41  ;;  %v2904_v8 = vsub.f32 %v9187_v5, %v7086_v41 }
 0x5d1   : > { %v2906_v53 = vsub.f32 %v9210_v6, %v7086_v41  ;;  %v2444_v43 = vadd.f32 %v2443_v12, %v2363_v39  ;;  %v2908_v21 = vsub.f32 %v9236_v50, %v7086_v41  ;;  %v2910_v45 = vsub.f32 %v9259_v31, %v7086_v41 }
 0x5d2   : > { %v2962_v34 = vmax.f32 %v2898_v13, 0.0  ;;  %v2964_v33 = vmax.f32 %v2900_v54, 0.0  ;;  %v2966_v37 = vmax.f32 %v2902_v28, 0.0  ;;  %v2307_v13 = vsub.f32 %v9335_v44, %v7020_v25 }
 0x5d3   : > { %v2367_v54 = vmax.f32 %v2303_v29, 0.0  ;;  %v2968_v0 = vmax.f32 %v2904_v8, 0.0  ;;  %v2445_v23 = vadd.f32 %v2444_v43, %v2365_v51  ;;  %v2970_v28 = vmax.f32 %v2906_v53, 0.0  ;;  %v9366_v51 = vld [vmem:[#allocation24_spill] sm:$0xff] }
 0x5d4   : > { %v3026_v4 = vadd.f32 %v2964_v33, %v2962_v34  ;;  %v2311_v12 = vsub.f32 %v9337_v18, %v7020_v25  ;;  %v2371_v29 = vmax.f32 %v2307_v13, 0.0  ;;  %v2912_v39 = vsub.f32 %v9215_v47, %v7086_v41 }
 0x5d5   : > { %v2446_v33 = vadd.f32 %v2445_v23, %v2367_v54  ;;  %v2972_v8 = vmax.f32 %v2908_v21, 0.0  ;;  %v2914_v7 = vsub.f32 %v9240_v9, %v7086_v41  ;;  %v2974_v53 = vmax.f32 %v2910_v45, 0.0 }
 0x5d6   : > { %v3027_v22 = vadd.f32 %v3026_v4, %v2966_v37  ;;  %v2313_v4 = vsub.f32 %v9366_v51, %v7020_v25  ;;  %v2375_v13 = vmax.f32 %v2311_v12, 0.0  ;;  %v2916_v18 = vsub.f32 %v9189_v59, %v7086_v41 }
 0x5d7   : > { %v2447_v43 = vadd.f32 %v2446_v33, %v2369_v1  ;;  %v2976_v21 = vmax.f32 %v2912_v39, 0.0  ;;  %v2918_v51 = vsub.f32 %v5826_v32, %v7086_v41  ;;  %v2978_v45 = vmax.f32 %v2914_v7, 0.0 }
 0x5d8   : > { %v3028_v34 = vadd.f32 %v3027_v22, %v2968_v0  ;;  %v9367_v0 = vld [vmem:[#allocation25_spill] sm:$0xff]  ;;  %v2377_v55 = vmax.f32 %v2313_v4, 0.0  ;;  %v2980_v39 = vmax.f32 %v2916_v18, 0.0 }
 0x5d9   : > { %v2448_v54 = vadd.f32 %v2447_v43, %v2371_v29  ;;  %v2315_v23 = vsub.f32 %v9367_v0, %v7020_v25  ;;  %v2920_v0 = vsub.f32 %v5829_v36, %v7086_v41  ;;  %v2982_v7 = vmax.f32 %v2918_v51, 0.0 }
 0x5da   : > { %v3029_v37 = vadd.f32 %v3028_v34, %v2970_v28  ;;  %v9368_v34 = vld [vmem:[#allocation26_spill] sm:$0xff] }
 0x5db   : > { %v2449_v1 = vadd.f32 %v2448_v54, %v2373_v63  ;;  %v2317_v33 = vsub.f32 %v9368_v34, %v7020_v25  ;;  %v2379_v12 = vmax.f32 %v2315_v23, 0.0  ;;  %v2922_v34 = vsub.f32 %v5832_v40, %v7086_v41 }
 0x5dc   : > { %v3030_v22 = vadd.f32 %v3029_v37, %v2972_v8  ;;  %v9369_v37 = vld [vmem:[#allocation27_spill] sm:$0xff]  ;;  %v2984_v18 = vmax.f32 %v2920_v0, 0.0 }
 0x5dd   : > { %v2450_v29 = vadd.f32 %v2449_v1, %v2375_v13  ;;  %v2319_v43 = vsub.f32 %v9369_v37, %v7020_v25  ;;  %v2381_v4 = vmax.f32 %v2317_v33, 0.0  ;;  %v2924_v37 = vsub.f32 %v9194_v62, %v7086_v41 }
 0x5de   : > { %v3031_v28 = vadd.f32 %v3030_v22, %v2974_v53  ;;  %v9370_v22 = vld [vmem:[#allocation28_spill] sm:$0xff]  ;;  %v2986_v51 = vmax.f32 %v2922_v34, 0.0 }
 0x5df   : > { %v2451_v63 = vadd.f32 %v2450_v29, %v2377_v55  ;;  %v2321_v54 = vsub.f32 %v9370_v22, %v7020_v25  ;;  %v2383_v23 = vmax.f32 %v2319_v43, 0.0  ;;  %v2926_v29 = vsub.f32 %v5838_v48, %v7086_v41 }
 0x5e0   : > { %v3032_v8 = vadd.f32 %v3031_v28, %v2976_v21  ;;  %v9371_v28 = vld [vmem:[#allocation77_spill] sm:$0xff]  ;;  %v2928_v43 = vsub.f32 %v5841_v52, %v7086_v41 }
 0x5e1   : > { %v2452_v13 = vadd.f32 %v2451_v63, %v2379_v12  ;;  %v2323_v1 = vsub.f32 %v9371_v28, %v7020_v25  ;;  %v2385_v33 = vmax.f32 %v2321_v54, 0.0  ;;  %v2988_v63 = vmax.f32 %v2924_v37, 0.0 }
 0x5e2   : > { %v3033_v53 = vadd.f32 %v3032_v8, %v2978_v45  ;;  %v2325_v8 = vsub.f32 %v9311_v38, %v7020_v25  ;;  %v2992_v34 = vmax.f32 %v2928_v43, 0.0 }
 0x5e3   : > { %v2453_v55 = vadd.f32 %v2452_v13, %v2381_v4  ;;  %v2930_v4 = vsub.f32 %v5844_v56, %v7086_v41  ;;  %v2932_v13 = vsub.f32 %v5847_v60, %v7086_v41 }
 0x5e4   : > { %v3034_v21 = vadd.f32 %v3033_v53, %v2980_v39  ;;  %v2387_v53 = vmax.f32 %v2323_v1, 0.0  ;;  %v2389_v0 = vmax.f32 %v2325_v8, 0.0  ;;  %v2934_v1 = vsub.f32 %v9218_v35, %v7086_v41 }
 0x5e5   : > { %v2454_v12 = vadd.f32 %v2453_v55, %v2383_v23  ;;  %v2936_v8 = vsub.f32 %v9219_v20, %v7086_v41 }
 0x5e6   : > { %v3035_v45 = vadd.f32 %v3034_v21, %v2982_v7  ;;  %v2990_v7 = vmax.f32 %v2926_v29, 0.0 }
 0x5e7   : > { %v2455_v22 = vadd.f32 %v2454_v12, %v2385_v33  ;;  %v2996_v33 = vmax.f32 %v2932_v13, 0.0  ;;  %v3000_v43 = vmax.f32 %v2936_v8, 0.0  ;;  %v2944_v13 = vsub.f32 %v9297_v24, %v7086_v41 }
 0x5e8   : > { %v3036_v39 = vadd.f32 %v3035_v45, %v2984_v18  ;;  %v2994_v45 = vmax.f32 %v2930_v4, 0.0  ;;  %v2942_v4 = vsub.f32 %v5862_v19, %v7086_v41 }
 0x5e9   : > { %v2456_v54 = vadd.f32 %v2455_v22, %v2387_v53  ;;  %v2938_v22 = vsub.f32 %v5856_v10, %v7086_v41  ;;  %v2940_v53 = vsub.f32 %v9315_v57, %v7086_v41 }
 0x5ea   : > { %v3037_v28 = vadd.f32 %v3036_v39, %v2986_v51 }
 0x5eb   : > { %v2457_v23 = vadd.f32 %v2456_v54, %v2389_v0 }
 0x5ec   : > { %v3038_v21 = vadd.f32 %v3037_v28, %v2988_v63  ;;  %v2998_v28 = vmax.f32 %v2934_v1, 0.0  ;;  %v2946_v1 = vsub.f32 %v9342_v61, %v7086_v41 }
 0x5ed   : > { %v2458_v55 = vrot.slane %v2457_v23, 4 }
 0x5ee   : > { %v3039_v18 = vadd.f32 %v3038_v21, %v2990_v7  ;;  %v3002_v7 = vmax.f32 %v2938_v22, 0.0 }
 0x5ef   : > { %v2459_v29 = vadd.f32 %v2458_v55, %v2457_v23  ;;  %v9372_v55 = vld [vmem:[#allocation54_spill] sm:$0xff] }
 0x5f0   : > { %v3040_v37 = vadd.f32 %v3039_v18, %v2992_v34  ;;  %v3004_v34 = vmax.f32 %v2940_v53, 0.0  ;;  %v2948_v8 = vsub.f32 %v9372_v55, %v7086_v41 }
 0x5f1   : > { %v2460_v12 = vrot.slane %v2459_v29, 2 }
 0x5f2   : > { %v3041_v51 = vadd.f32 %v3040_v37, %v2994_v45  ;;  %v3006_v45 = vmax.f32 %v2942_v4, 0.0 }
 0x5f3   : > { %v2461_v0 = vadd.f32 %v2460_v12, %v2459_v29  ;;  %v9373_v29 = vld [vmem:[#allocation55_spill] sm:$0xff] }
 0x5f4   : > { %v3042_v39 = vadd.f32 %v3041_v51, %v2996_v33  ;;  %v3008_v33 = vmax.f32 %v2944_v13, 0.0  ;;  %v2950_v22 = vsub.f32 %v9373_v29, %v7086_v41  ;;  %v9374_v12 = vld [vmem:[#allocation75_spill] sm:$0xff] }
 0x5f5   : > { %v2462_v54 = vrot.slane %v2461_v0, 1 }
 0x5f6   : > { %v3043_v63 = vadd.f32 %v3042_v39, %v2998_v28  ;;  %v3010_v28 = vmax.f32 %v2946_v1, 0.0  ;;  %v9380_v1 = vld [vmem:[#allocation58_spill] sm:$0xff] }
 0x5f7   : > { %v2463_v23 = vadd.f32 %v2462_v54, %v2461_v0  ;;  %v9378_v0 = vld [vmem:[#allocation56_spill] sm:$0xff]  ;;  %v9379_v54 = vld [vmem:[#allocation57_spill] sm:$0xff] }
 0x5f8   : > { %v3044_v21 = vadd.f32 %v3043_v63, %v3000_v43  ;;  %v9376_v43 = vld [vmem:[#allocation76_spill] sm:$0xff]  ;;  %v2952_v4 = vsub.f32 %v9378_v0, %v7086_v41  ;;  %v2954_v13 = vsub.f32 %v9379_v54, %v7086_v41 }
 0x5f9   : > { %vm2465_vm10 = vcmp.ge.f32.partialorder %v2463_v23, 1.0 }
 0x5fa   : > { %v3045_v18 = vadd.f32 %v3044_v21, %v3002_v7  ;;  %v7174_v53 = vsel %vm2465_vm10, %v7020_v25, %v9374_v12  ;;  %v7178_v63 = vsel %vm2465_vm10, %v9376_v43, %v7020_v25  ;;  %v3012_v7 = vmax.f32 %v2948_v8, 0.0  ;;  %v9381_v25 = vld [vmem:[#allocation59_spill] sm:$0xff] }
 0x5fb   : > { %9375 = vst [vmem:[#allocation74_spill] sm:$0xff] %v7174_v53  ;;  %9377 = vst [vmem:[#allocation13_spill] sm:$0xff] %v7178_v63  ;;  %v2471_v23 = vadd.f32 %v7178_v63, %v7174_v53  ;;  %v3018_v12 = vmax.f32 %v2954_v13, 0.0  ;;  %v9383_v63 = vld [vmem:[#allocation61_spill] sm:$0xff] }
 0x5fc   : > { %v3046_v37 = vadd.f32 %v3045_v18, %v3004_v34  ;;  %v3014_v34 = vmax.f32 %v2950_v22, 0.0 }
 0x5fd   : > { %v7190_v8 = vmul.f32 0.5, %v2471_v23 }
 0x5fe   : > { %v3047_v51 = vadd.f32 %v3046_v37, %v3006_v45  ;;  %v2956_v45 = vsub.f32 %v9380_v1, %v7086_v41  ;;  %v3016_v37 = vmax.f32 %v2952_v4, 0.0  ;;  %v9384_v4 = vld [vmem:[#allocation62_spill] sm:$0xff] }
 0x5ff   : > { %v2475_v53 = vsub.f32 %v9383_v63, %v7190_v8 }
 0x600   : > { %v3048_v39 = vadd.f32 %v3047_v51, %v3008_v33  ;;  %v2958_v51 = vsub.f32 %v9381_v25, %v7086_v41  ;;  %v3020_v22 = vmax.f32 %v2956_v45, 0.0 }
 0x601   : > { %v2539_v13 = vmax.f32 %v2475_v53, 0.0 }
 0x602   : > { %v3049_v21 = vadd.f32 %v3048_v39, %v3010_v28  ;;  %v9382_v28 = vld [vmem:[#allocation60_spill] sm:$0xff] }
 0x603   : > { %v2960_v39 = vsub.f32 %v9382_v28, %v7086_v41 }
 0x604   : > { %v3050_v18 = vadd.f32 %v3049_v21, %v3012_v7  ;;  %v3022_v21 = vmax.f32 %v2958_v51, 0.0  ;;  %v9386_v51 = vld [vmem:[#allocation64_spill] sm:$0xff] }
 0x606   : > { %v3051_v33 = vadd.f32 %v3050_v18, %v3014_v34  ;;  %v2477_v34 = vsub.f32 %v9384_v4, %v7190_v8  ;;  %v3024_v18 = vmax.f32 %v2960_v39, 0.0  ;;  %v9387_v39 = vld [vmem:[#allocation65_spill] sm:$0xff] }
 0x608   : > { %v3052_v43 = vadd.f32 %v3051_v33, %v3016_v37  ;;  %v2541_v37 = vmax.f32 %v2477_v34, 0.0  ;;  %v9385_v33 = vld [vmem:[#allocation63_spill] sm:$0xff]  ;;  %v9388_v34 = vld [vmem:[#allocation66_spill] sm:$0xff] }
 0x609   : > { %v2479_v0 = vsub.f32 %v9385_v33, %v7190_v8 }
 0x60a   : > { %v3053_v7 = vadd.f32 %v3052_v43, %v3018_v12  ;;  %v2639_v45 = vadd.f32 %v2541_v37, %v2539_v13  ;;  %v2481_v43 = vsub.f32 %v9386_v51, %v7190_v8 }
 0x60c   : > { %v3054_v54 = vadd.f32 %v3053_v7, %v3020_v22  ;;  %v2543_v22 = vmax.f32 %v2479_v0, 0.0 }
 0x60e   : > { %v3055_v1 = vadd.f32 %v3054_v54, %v3022_v21  ;;  %v2640_v63 = vadd.f32 %v2639_v45, %v2543_v22  ;;  %v2483_v54 = vsub.f32 %v9387_v39, %v7190_v8 }
 0x610   : > { %v3056_v25 = vadd.f32 %v3055_v1, %v3024_v18  ;;  %v2545_v1 = vmax.f32 %v2481_v43, 0.0  ;;  %v2485_v18 = vsub.f32 %v9388_v34, %v7190_v8 }
 0x612   : > { %v3057_v23 = vrot.slane %v3056_v25, 4  ;;  %v2641_v21 = vadd.f32 %v2640_v63, %v2545_v1  ;;  %v2549_v45 = vmax.f32 %v2485_v18, 0.0  ;;  %v2493_v18 = vsub.f32 %v9357_v14, %v7190_v8 }
 0x614   : > { %v3058_v28 = vadd.f32 %v3057_v23, %v3056_v25  ;;  %v2547_v25 = vmax.f32 %v2483_v54, 0.0  ;;  %v9391_v54 = vld [vmem:[#allocation69_spill] sm:$0xff] }
 0x615   : > { %v2491_v1 = vsub.f32 %v9391_v54, %v7190_v8 }
 0x616   : > { %v3059_v12 = vrot.slane %v3058_v28, 2  ;;  %v2642_v13 = vadd.f32 %v2641_v21, %v2547_v25 }
 0x617   : > { %v2555_v25 = vmax.f32 %v2491_v1, 0.0 }
 0x618   : > { %v3060_v7 = vadd.f32 %v3059_v12, %v3058_v28  ;;  %v9389_v28 = vld [vmem:[#allocation67_spill] sm:$0xff]  ;;  %v2643_v63 = vadd.f32 %v2642_v13, %v2549_v45  ;;  %v9390_v12 = vld [vmem:[#allocation68_spill] sm:$0xff]  ;;  %v2495_v13 = vsub.f32 %v9358_v15, %v7190_v8 }
 0x619   : > { %v2487_v23 = vsub.f32 %v9389_v28, %v7190_v8  ;;  %v2489_v43 = vsub.f32 %v9390_v12, %v7190_v8 }
 0x61a   : > { %v3061_v29 = vrot.slane %v3060_v7, 1  ;;  %v2559_v1 = vmax.f32 %v2495_v13, 0.0 }
 0x61b   : > { %v2551_v22 = vmax.f32 %v2487_v23, 0.0 }
 0x61c   : > { %v3062_v53 = vadd.f32 %v3061_v29, %v3060_v7 }
 0x61e   : > { %vm3100_vm11 = vcmp.ge.f32.partialorder %v3062_v53, 1.0 }
 0x61f   : > { %v7208_v37 = vsel %vm3100_vm11, %v7086_v41, %v7074_v26  ;;  %v7212_v0 = vsel %vm3100_vm11, %v7078_v58, %v7086_v41  ;;  %v2644_v26 = vadd.f32 %v2643_v63, %v2551_v22  ;;  %v2553_v58 = vmax.f32 %v2489_v43, 0.0 }
 0x620   : > { %v3106_v29 = vadd.f32 %v7212_v0, %v7208_v37  ;;  %v2497_v43 = vsub.f32 %v9359_v49, %v7190_v8 }
 0x621   : > { %v2645_v21 = vadd.f32 %v2644_v26, %v2553_v58  ;;  %v2557_v26 = vmax.f32 %v2493_v18, 0.0  ;;  %v2499_v58 = vsub.f32 %v9360_v42, %v7190_v8  ;;  %v2503_v42 = vsub.f32 %v9362_v30, %v7190_v8 }
 0x622   : > { %v7220_v7 = vmul.f32 0.5, %v3106_v29 }
 0x623   : > { %v2646_v63 = vadd.f32 %v2645_v21, %v2555_v25  ;;  %v2563_v13 = vmax.f32 %v2499_v58, 0.0  ;;  %v2567_v58 = vmax.f32 %v2503_v42, 0.0 }
 0x624   : > { %v3110_v41 = vsub.f32 %v9184_v17, %v7220_v7  ;;  %v3112_v53 = vsub.f32 %v9185_v11, %v7220_v7  ;;  %v3114_v23 = vsub.f32 %v9186_v46, %v7220_v7  ;;  %v3116_v22 = vsub.f32 %v9187_v5, %v7220_v7 }
 0x625   : > { %v3118_v15 = vsub.f32 %v9210_v6, %v7220_v7  ;;  %v2647_v12 = vadd.f32 %v2646_v63, %v2557_v26  ;;  %v3120_v21 = vsub.f32 %v9236_v50, %v7220_v7  ;;  %v3122_v28 = vsub.f32 %v9259_v31, %v7220_v7 }
 0x626   : > { %v3174_v45 = vmax.f32 %v3110_v41, 0.0  ;;  %v3176_v29 = vmax.f32 %v3112_v53, 0.0  ;;  %v3178_v14 = vmax.f32 %v3114_v23, 0.0  ;;  %v2501_v41 = vsub.f32 %v9361_v3, %v7190_v8 }
 0x627   : > { %v2561_v53 = vmax.f32 %v2497_v43, 0.0  ;;  %v3180_v25 = vmax.f32 %v3116_v22, 0.0  ;;  %v2648_v18 = vadd.f32 %v2647_v12, %v2559_v1  ;;  %v3182_v23 = vmax.f32 %v3118_v15, 0.0 }
 0x628   : > { %v3238_v54 = vadd.f32 %v3176_v29, %v3174_v45  ;;  %v2505_v63 = vsub.f32 %v9363_v16, %v7190_v8  ;;  %v2565_v43 = vmax.f32 %v2501_v41, 0.0  ;;  %v3124_v26 = vsub.f32 %v9215_v47, %v7220_v7 }
 0x629   : > { %v2649_v29 = vadd.f32 %v2648_v18, %v2561_v53  ;;  %v3184_v22 = vmax.f32 %v3120_v21, 0.0  ;;  %v3126_v1 = vsub.f32 %v9240_v9, %v7220_v7  ;;  %v3186_v15 = vmax.f32 %v3122_v28, 0.0 }
 0x62a   : > { %v3239_v49 = vadd.f32 %v3238_v54, %v3178_v14  ;;  %v2507_v54 = vsub.f32 %v9364_v27, %v7190_v8  ;;  %v2569_v41 = vmax.f32 %v2505_v63, 0.0  ;;  %v3128_v18 = vsub.f32 %v9189_v59, %v7220_v7 }
 0x62b   : > { %v2650_v12 = vadd.f32 %v2649_v29, %v2563_v13  ;;  %v3188_v21 = vmax.f32 %v3124_v26, 0.0  ;;  %v3130_v27 = vsub.f32 %v5826_v32, %v7220_v7  ;;  %v3190_v28 = vmax.f32 %v3126_v1, 0.0 }
 0x62c   : > { %v3240_v45 = vadd.f32 %v3239_v49, %v3180_v25  ;;  %v2509_v25 = vsub.f32 %v9365_v2, %v7190_v8  ;;  %v2571_v42 = vmax.f32 %v2507_v54, 0.0  ;;  %v3132_v2 = vsub.f32 %v5829_v36, %v7220_v7 }
 0x62d   : > { %v2651_v53 = vadd.f32 %v2650_v12, %v2565_v43  ;;  %v3192_v26 = vmax.f32 %v3128_v18, 0.0  ;;  %v3194_v1 = vmax.f32 %v3130_v27, 0.0 }
 0x62e   : > { %v3241_v14 = vadd.f32 %v3240_v45, %v3182_v23  ;;  %v9392_v45 = vld [vmem:[#allocation17_spill] sm:$0xff]  ;;  %v2573_v63 = vmax.f32 %v2509_v25, 0.0  ;;  %v3196_v18 = vmax.f32 %v3132_v2, 0.0 }
 0x62f   : > { %v2652_v13 = vadd.f32 %v2651_v53, %v2567_v58  ;;  %v2511_v29 = vsub.f32 %v9392_v45, %v7190_v8  ;;  %v3134_v45 = vsub.f32 %v5832_v40, %v7220_v7 }
 0x630   : > { %v3242_v49 = vadd.f32 %v3241_v14, %v3184_v22  ;;  %v9393_v14 = vld [vmem:[#allocation18_spill] sm:$0xff] }
 0x631   : > { %v2653_v43 = vadd.f32 %v2652_v13, %v2569_v41  ;;  %v2513_v12 = vsub.f32 %v9393_v14, %v7190_v8  ;;  %v2575_v54 = vmax.f32 %v2511_v29, 0.0  ;;  %v3136_v14 = vsub.f32 %v9194_v62, %v7220_v7 }
 0x632   : > { %v3243_v23 = vadd.f32 %v3242_v49, %v3186_v15  ;;  %v9394_v49 = vld [vmem:[#allocation19_spill] sm:$0xff]  ;;  %v3198_v27 = vmax.f32 %v3134_v45, 0.0 }
 0x633   : > { %v2654_v58 = vadd.f32 %v2653_v43, %v2571_v42  ;;  %v2515_v53 = vsub.f32 %v9394_v49, %v7190_v8  ;;  %v2577_v25 = vmax.f32 %v2513_v12, 0.0  ;;  %v3138_v43 = vsub.f32 %v5838_v48, %v7220_v7 }
 0x634   : > { %v3244_v22 = vadd.f32 %v3243_v23, %v3188_v21  ;;  %v9395_v23 = vld [vmem:[#allocation20_spill] sm:$0xff]  ;;  %v3200_v2 = vmax.f32 %v3136_v14, 0.0 }
 0x635   : > { %v2655_v41 = vadd.f32 %v2654_v58, %v2573_v63  ;;  %v2517_v13 = vsub.f32 %v9395_v23, %v7190_v8  ;;  %v2579_v29 = vmax.f32 %v2515_v53, 0.0  ;;  %v3140_v23 = vsub.f32 %v5841_v52, %v7220_v7 }
 0x636   : > { %v3245_v15 = vadd.f32 %v3244_v22, %v3190_v28  ;;  %v2519_v22 = vsub.f32 %v9335_v44, %v7190_v8  ;;  %v3142_v44 = vsub.f32 %v5844_v56, %v7220_v7  ;;  %v3202_v45 = vmax.f32 %v3138_v43, 0.0 }
 0x637   : > { %v2656_v42 = vadd.f32 %v2655_v41, %v2575_v54  ;;  %v2581_v12 = vmax.f32 %v2517_v13, 0.0  ;;  %v3204_v14 = vmax.f32 %v3140_v23, 0.0 }
 0x638   : > { %v3246_v21 = vadd.f32 %v3245_v15, %v3192_v26  ;;  %v9396_v15 = vld [vmem:[#allocation22_spill] sm:$0xff]  ;;  %v2583_v53 = vmax.f32 %v2519_v22, 0.0  ;;  %v3206_v43 = vmax.f32 %v3142_v44, 0.0 }
 0x639   : > { %v2657_v63 = vadd.f32 %v2656_v42, %v2577_v25  ;;  %v2521_v58 = vsub.f32 %v9396_v15, %v7190_v8  ;;  %v3144_v15 = vsub.f32 %v5847_v60, %v7220_v7 }
 0x63a   : > { %v3247_v28 = vadd.f32 %v3246_v21, %v3194_v1  ;;  %v9397_v21 = vld [vmem:[#allocation23_spill] sm:$0xff] }
 0x63b   : > { %v2658_v54 = vadd.f32 %v2657_v63, %v2579_v29  ;;  %v2523_v41 = vsub.f32 %v9397_v21, %v7190_v8  ;;  %v2585_v13 = vmax.f32 %v2521_v58, 0.0  ;;  %v3146_v21 = vsub.f32 %v9218_v35, %v7220_v7 }
 0x63c   : > { %v3248_v26 = vadd.f32 %v3247_v28, %v3196_v18  ;;  %v9398_v28 = vld [vmem:[#allocation24_spill] sm:$0xff]  ;;  %v3208_v23 = vmax.f32 %v3144_v15, 0.0 }
 0x63d   : > { %v2659_v25 = vadd.f32 %v2658_v54, %v2581_v12  ;;  %v2525_v42 = vsub.f32 %v9398_v28, %v7190_v8  ;;  %v2587_v22 = vmax.f32 %v2523_v41, 0.0  ;;  %v3148_v28 = vsub.f32 %v9219_v20, %v7220_v7  ;;  %v9402_v15 = vld [vmem:[#allocation28_spill] sm:$0xff] }
 0x63e   : > { %v3249_v1 = vadd.f32 %v3248_v26, %v3198_v27  ;;  %v9399_v26 = vld [vmem:[#allocation25_spill] sm:$0xff]  ;;  %v3210_v44 = vmax.f32 %v3146_v21, 0.0  ;;  %v3156_v21 = vsub.f32 %v9297_v24, %v7220_v7 }
 0x63f   : > { %v2660_v29 = vadd.f32 %v2659_v25, %v2583_v53  ;;  %v2527_v63 = vsub.f32 %v9399_v26, %v7190_v8  ;;  %v2589_v58 = vmax.f32 %v2525_v42, 0.0  ;;  %v3150_v26 = vsub.f32 %v5856_v10, %v7220_v7 }
 0x640   : > { %v3250_v18 = vadd.f32 %v3249_v1, %v3200_v2  ;;  %v9400_v1 = vld [vmem:[#allocation26_spill] sm:$0xff]  ;;  %v3152_v42 = vsub.f32 %v9315_v57, %v7220_v7 }
 0x641   : > { %v2661_v12 = vadd.f32 %v2660_v29, %v2585_v13  ;;  %v2529_v54 = vsub.f32 %v9400_v1, %v7190_v8  ;;  %v2591_v41 = vmax.f32 %v2527_v63, 0.0  ;;  %v3212_v29 = vmax.f32 %v3148_v28, 0.0  ;;  %v9403_v28 = vld [vmem:[#allocation77_spill] sm:$0xff] }
 0x642   : > { %v3251_v27 = vadd.f32 %v3250_v18, %v3202_v45  ;;  %v9401_v18 = vld [vmem:[#allocation27_spill] sm:$0xff]  ;;  %v3154_v63 = vsub.f32 %v5862_v19, %v7220_v7 }
 0x643   : > { %v2662_v53 = vadd.f32 %v2661_v12, %v2587_v22  ;;  %v2531_v25 = vsub.f32 %v9401_v18, %v7190_v8  ;;  %v2533_v22 = vsub.f32 %v9402_v15, %v7190_v8 }
 0x644   : > { %v3252_v2 = vadd.f32 %v3251_v27, %v3204_v14  ;;  %v2593_v27 = vmax.f32 %v2529_v54, 0.0  ;;  %v3216_v54 = vmax.f32 %v3152_v42, 0.0 }
 0x645   : > { %v2663_v13 = vadd.f32 %v2662_v53, %v2589_v58  ;;  %v2597_v53 = vmax.f32 %v2533_v22, 0.0 }
 0x646   : > { %v3253_v45 = vadd.f32 %v3252_v2, %v3206_v43  ;;  %v2595_v43 = vmax.f32 %v2531_v25, 0.0  ;;  %v3214_v2 = vmax.f32 %v3150_v26, 0.0  ;;  %v3218_v25 = vmax.f32 %v3154_v63, 0.0 }
 0x647   : > { %v2664_v49 = vadd.f32 %v2663_v13, %v2591_v41  ;;  %v3158_v41 = vsub.f32 %v9342_v61, %v7220_v7  ;;  %v3160_v26 = vsub.f32 %v9372_v55, %v7220_v7  ;;  %v2537_v13 = vsub.f32 %v9311_v38, %v7190_v8 }
 0x648   : > { %v3254_v14 = vadd.f32 %v3253_v45, %v3208_v23  ;;  %v2535_v45 = vsub.f32 %v9403_v28, %v7190_v8 }
 0x649   : > { %v2665_v18 = vadd.f32 %v2664_v49, %v2593_v27  ;;  %v3220_v49 = vmax.f32 %v3156_v21, 0.0 }
 0x64a   : > { %v3255_v1 = vadd.f32 %v3254_v14, %v3210_v44  ;;  %v2599_v27 = vmax.f32 %v2535_v45, 0.0  ;;  %v9407_v45 = vld [vmem:[#allocation58_spill] sm:$0xff] }
 0x64b   : > { %v2666_v23 = vadd.f32 %v2665_v18, %v2595_v43  ;;  %v9404_v18 = vld [vmem:[#allocation55_spill] sm:$0xff]  ;;  %v3168_v38 = vsub.f32 %v9407_v45, %v7220_v7 }
 0x64c   : > { %v3256_v12 = vadd.f32 %v3255_v1, %v3212_v29  ;;  %v3162_v42 = vsub.f32 %v9404_v18, %v7220_v7  ;;  %v3222_v29 = vmax.f32 %v3158_v41, 0.0  ;;  %v9408_v41 = vld [vmem:[#allocation59_spill] sm:$0xff] }
 0x64d   : > { %v2667_v14 = vadd.f32 %v2666_v23, %v2597_v53  ;;  %v9406_v23 = vld [vmem:[#allocation57_spill] sm:$0xff] }
 0x64e   : > { %v3257_v58 = vadd.f32 %v3256_v12, %v3214_v2  ;;  %v9405_v2 = vld [vmem:[#allocation56_spill] sm:$0xff]  ;;  %v3224_v12 = vmax.f32 %v3160_v26, 0.0  ;;  %v3166_v21 = vsub.f32 %v9406_v23, %v7220_v7  ;;  %v3226_v53 = vmax.f32 %v3162_v42, 0.0 }
 0x64f   : > { %v2668_v43 = vadd.f32 %v2667_v14, %v2599_v27  ;;  %v3164_v63 = vsub.f32 %v9405_v2, %v7220_v7  ;;  %v3170_v14 = vsub.f32 %v9408_v41, %v7220_v7  ;;  %v9409_v26 = vld [vmem:[#allocation60_spill] sm:$0xff] }
 0x650   : > { %v3258_v44 = vadd.f32 %v3257_v58, %v3216_v54  ;;  %v2601_v58 = vmax.f32 %v2537_v13, 0.0  ;;  %v3172_v13 = vsub.f32 %v9409_v26, %v7220_v7 }
 0x651   : > { %v3228_v28 = vmax.f32 %v3164_v63, 0.0  ;;  %v3234_v23 = vmax.f32 %v3170_v14, 0.0 }
 0x652   : > { %v3259_v1 = vadd.f32 %v3258_v44, %v3218_v25  ;;  %v2669_v44 = vadd.f32 %v2668_v43, %v2601_v58  ;;  %v3236_v43 = vmax.f32 %v3172_v13, 0.0 }
 0x654   : > { %v3260_v22 = vadd.f32 %v3259_v1, %v3220_v49  ;;  %v3230_v49 = vmax.f32 %v3166_v21, 0.0  ;;  %v2670_v27 = vrot.slane %v2669_v44, 4 }
 0x656   : > { %v3261_v54 = vadd.f32 %v3260_v22, %v3222_v29  ;;  %v3232_v29 = vmax.f32 %v3168_v38, 0.0 }
 0x658   : > { %v3262_v25 = vadd.f32 %v3261_v54, %v3224_v12  ;;  %v2671_v12 = vadd.f32 %v2670_v27, %v2669_v44 }
 0x65a   : > { %v3263_v15 = vadd.f32 %v3262_v25, %v3226_v53  ;;  %v2672_v45 = vrot.slane %v2671_v12, 2 }
 0x65c   : > { %v3264_v1 = vadd.f32 %v3263_v15, %v3228_v28  ;;  %v2673_v25 = vadd.f32 %v2672_v45, %v2671_v12  ;;  %v9410_v45 = vld [vmem:[#allocation74_spill] sm:$0xff] }
 0x65e   : > { %v3265_v22 = vadd.f32 %v3264_v1, %v3230_v49  ;;  %v2674_v21 = vrot.slane %v2673_v25, 1 }
 0x660   : > { %v3266_v42 = vadd.f32 %v3265_v22, %v3232_v29  ;;  %v2675_v18 = vadd.f32 %v2674_v21, %v2673_v25 }
 0x662   : > { %v3267_v54 = vadd.f32 %v3266_v42, %v3234_v23  ;;  %vm2677_vm13 = vcmp.ge.f32.partialorder %v2675_v18, 1.0  ;;  %v9412_v18 = vld [vmem:[#allocation61_spill] sm:$0xff] }
 0x664   : > { %v3268_v58 = vadd.f32 %v3267_v54, %v3236_v43 }
 0x666   : > { %v3269_v63 = vrot.slane %v3268_v58, 4 }
 0x668   : > { %v3270_v53 = vadd.f32 %v3269_v63, %v3268_v58 }
 0x66a   : > { %v3271_v2 = vrot.slane %v3270_v53, 2 }
 0x66c   : > { %v3272_v41 = vadd.f32 %v3271_v2, %v3270_v53  ;;  %v7346_v2 = vsel %vm2677_vm13, %v7190_v8, %v9410_v45 }
 0x66e   : > { %v3273_v15 = vrot.slane %v3272_v41, 1 }
 0x670   : > { %v3274_v28 = vadd.f32 %v3273_v15, %v3272_v41  ;;  %v9411_v41 = vld [vmem:[#allocation13_spill] sm:$0xff] }
 0x671   : > { %v7350_v14 = vsel %vm2677_vm13, %v9411_v41, %v7190_v8 }
 0x672   : > { %vm3312_vm12 = vcmp.ge.f32.partialorder %v3274_v28, 1.0 }
 0x673   : > { %v7336_v38 = vsel %vm3312_vm12, %v7220_v7, %v7208_v37  ;;  %v7340_v44 = vsel %vm3312_vm12, %v7212_v0, %v7220_v7  ;;  %v2683_v37 = vadd.f32 %v7350_v14, %v7346_v2 }
 0x674   : > { %v3318_v23 = vadd.f32 %v7340_v44, %v7336_v38 }
 0x675   : > { %v7356_v1 = vmul.f32 0.5, %v2683_v37 }
 0x676   : > { %v7354_v49 = vmul.f32 0.5, %v3318_v23 }
 0x677   : > { %v2687_v27 = vsub.f32 %v9412_v18, %v7356_v1  ;;  %v2689_v8 = vsub.f32 %v9384_v4, %v7356_v1  ;;  %v2691_v12 = vsub.f32 %v9385_v33, %v7356_v1  ;;  %v2693_v25 = vsub.f32 %v9386_v51, %v7356_v1 }
 0x678   : > { %v3322_v0 = vsub.f32 %v9184_v17, %v7354_v49  ;;  %v3324_v7 = vsub.f32 %v9185_v11, %v7354_v49  ;;  %v3326_v13 = vsub.f32 %v9186_v46, %v7354_v49  ;;  %v3328_v42 = vsub.f32 %v9187_v5, %v7354_v49 }
 0x679   : > { %v2751_v43 = vmax.f32 %v2687_v27, 0.0  ;;  %v2753_v54 = vmax.f32 %v2689_v8, 0.0  ;;  %v3330_v58 = vsub.f32 %v9210_v6, %v7354_v49  ;;  %v3332_v21 = vsub.f32 %v9236_v50, %v7354_v49 }
 0x67a   : > { %v3386_v29 = vmax.f32 %v3322_v0, 0.0  ;;  %v3388_v22 = vmax.f32 %v3324_v7, 0.0  ;;  %v3390_v63 = vmax.f32 %v3326_v13, 0.0  ;;  %v3392_v15 = vmax.f32 %v3328_v42, 0.0 }
 0x67b   : > { %v2695_v23 = vsub.f32 %v9387_v39, %v7356_v1  ;;  %v2755_v45 = vmax.f32 %v2691_v12, 0.0  ;;  %v2851_v41 = vadd.f32 %v2753_v54, %v2751_v43  ;;  %v3334_v37 = vsub.f32 %v9259_v31, %v7354_v49 }
 0x67c   : > { %v3450_v53 = vadd.f32 %v3388_v22, %v3386_v29  ;;  %v3394_v0 = vmax.f32 %v3330_v58, 0.0  ;;  %v2697_v27 = vsub.f32 %v9388_v34, %v7356_v1  ;;  %v2757_v8 = vmax.f32 %v2693_v25, 0.0 }
 0x67d   : > { %v2852_v13 = vadd.f32 %v2851_v41, %v2755_v45  ;;  %v3336_v29 = vsub.f32 %v9215_v47, %v7354_v49  ;;  %v3396_v22 = vmax.f32 %v3332_v21, 0.0  ;;  %v2759_v12 = vmax.f32 %v2695_v23, 0.0 }
 0x67e   : > { %v3451_v28 = vadd.f32 %v3450_v53, %v3390_v63  ;;  %v9413_v63 = vld [vmem:[#allocation67_spill] sm:$0xff]  ;;  %v3338_v54 = vsub.f32 %v9240_v9, %v7354_v49  ;;  %v3398_v58 = vmax.f32 %v3334_v37, 0.0  ;;  %v2761_v25 = vmax.f32 %v2697_v27, 0.0 }
 0x67f   : > { %v2699_v53 = vsub.f32 %v9413_v63, %v7356_v1  ;;  %v2853_v43 = vadd.f32 %v2852_v13, %v2757_v8  ;;  %v3340_v41 = vsub.f32 %v9189_v59, %v7354_v49  ;;  %v3400_v21 = vmax.f32 %v3336_v29, 0.0 }
 0x680   : > { %v3452_v7 = vadd.f32 %v3451_v28, %v3392_v15  ;;  %v9414_v28 = vld [vmem:[#allocation68_spill] sm:$0xff]  ;;  %v3342_v13 = vsub.f32 %v5826_v32, %v7354_v49  ;;  %v3402_v37 = vmax.f32 %v3338_v54, 0.0 }
 0x681   : > { %v2701_v31 = vsub.f32 %v9414_v28, %v7356_v1  ;;  %v2854_v45 = vadd.f32 %v2853_v43, %v2759_v12  ;;  %v2763_v23 = vmax.f32 %v2699_v53, 0.0  ;;  %v3344_v43 = vsub.f32 %v5829_v36, %v7354_v49 }
 0x682   : > { %v3453_v42 = vadd.f32 %v3452_v7, %v3394_v0  ;;  %v9415_v7 = vld [vmem:[#allocation69_spill] sm:$0xff]  ;;  %v3404_v29 = vmax.f32 %v3340_v41, 0.0  ;;  %v3406_v54 = vmax.f32 %v3342_v13, 0.0 }
 0x683   : > { %v2703_v47 = vsub.f32 %v9415_v7, %v7356_v1  ;;  %v2855_v8 = vadd.f32 %v2854_v45, %v2761_v25  ;;  %v2765_v27 = vmax.f32 %v2701_v31, 0.0  ;;  %v3346_v45 = vsub.f32 %v5832_v40, %v7354_v49 }
 0x684   : > { %v3454_v15 = vadd.f32 %v3453_v42, %v3396_v22  ;;  %v9416_v42 = vld [vmem:[#allocation70_spill] sm:$0xff]  ;;  %v3408_v41 = vmax.f32 %v3344_v43, 0.0 }
 0x685   : > { %v2705_v9 = vsub.f32 %v9416_v42, %v7356_v1  ;;  %v2856_v12 = vadd.f32 %v2855_v8, %v2763_v23  ;;  %v2767_v53 = vmax.f32 %v2703_v47, 0.0  ;;  %v3348_v8 = vsub.f32 %v9194_v62, %v7354_v49 }
 0x686   : > { %v3455_v0 = vadd.f32 %v3454_v15, %v3398_v58  ;;  %v9417_v15 = vld [vmem:[#allocation71_spill] sm:$0xff]  ;;  %v3410_v13 = vmax.f32 %v3346_v45, 0.0 }
 0x687   : > { %v2707_v59 = vsub.f32 %v9417_v15, %v7356_v1  ;;  %v2857_v25 = vadd.f32 %v2856_v12, %v2765_v27  ;;  %v2769_v31 = vmax.f32 %v2705_v9, 0.0  ;;  %v3350_v12 = vsub.f32 %v5838_v48, %v7354_v49 }
 0x688   : > { %v3456_v22 = vadd.f32 %v3455_v0, %v3400_v21  ;;  %v9418_v0 = vld [vmem:[#allocation72_spill] sm:$0xff]  ;;  %v3412_v43 = vmax.f32 %v3348_v8, 0.0 }
 0x689   : > { %v2709_v32 = vsub.f32 %v9418_v0, %v7356_v1  ;;  %v2858_v23 = vadd.f32 %v2857_v25, %v2767_v53  ;;  %v2771_v47 = vmax.f32 %v2707_v59, 0.0  ;;  %v3352_v25 = vsub.f32 %v5841_v52, %v7354_v49 }
 0x68a   : > { %v3457_v58 = vadd.f32 %v3456_v22, %v3402_v37  ;;  %v9419_v22 = vld [vmem:[#allocation73_spill] sm:$0xff]  ;;  %v3414_v45 = vmax.f32 %v3350_v12, 0.0 }
 0x68b   : > { %v2711_v36 = vsub.f32 %v9419_v22, %v7356_v1  ;;  %v2859_v27 = vadd.f32 %v2858_v23, %v2769_v31  ;;  %v2773_v9 = vmax.f32 %v2709_v32, 0.0  ;;  %v3354_v23 = vsub.f32 %v5844_v56, %v7354_v49 }
 0x68c   : > { %v3458_v21 = vadd.f32 %v3457_v58, %v3404_v29  ;;  %v2713_v58 = vsub.f32 %v9361_v3, %v7356_v1  ;;  %v3416_v8 = vmax.f32 %v3352_v25, 0.0 }
 0x68d   : > { %v2860_v53 = vadd.f32 %v2859_v27, %v2771_v47  ;;  %v2775_v59 = vmax.f32 %v2711_v36, 0.0  ;;  %v3356_v27 = vsub.f32 %v5847_v60, %v7354_v49  ;;  %v3418_v12 = vmax.f32 %v3354_v23, 0.0 }
 0x68e   : > { %v3459_v37 = vadd.f32 %v3458_v21, %v3406_v54  ;;  %v2715_v21 = vsub.f32 %v9362_v30, %v7356_v1  ;;  %v2777_v32 = vmax.f32 %v2713_v58, 0.0 }
 0x68f   : > { %v2861_v31 = vadd.f32 %v2860_v53, %v2773_v9  ;;  %v3358_v53 = vsub.f32 %v9218_v35, %v7354_v49  ;;  %v3420_v25 = vmax.f32 %v3356_v27, 0.0 }
 0x690   : > { %v3460_v29 = vadd.f32 %v3459_v37, %v3408_v41  ;;  %v2717_v37 = vsub.f32 %v9363_v16, %v7356_v1  ;;  %v2779_v36 = vmax.f32 %v2715_v21, 0.0 }
 0x691   : > { %v2862_v47 = vadd.f32 %v2861_v31, %v2775_v59  ;;  %v3360_v31 = vsub.f32 %v9219_v20, %v7354_v49  ;;  %v3422_v23 = vmax.f32 %v3358_v53, 0.0 }
 0x692   : > { %v3461_v54 = vadd.f32 %v3460_v29, %v3410_v13  ;;  %v9420_v29 = vld [vmem:[#allocation15_spill] sm:$0xff]  ;;  %v2781_v58 = vmax.f32 %v2717_v37, 0.0 }
 0x693   : > { %v2719_v52 = vsub.f32 %v9420_v29, %v7356_v1  ;;  %v2863_v9 = vadd.f32 %v2862_v47, %v2777_v32  ;;  %v3362_v47 = vsub.f32 %v5856_v10, %v7354_v49  ;;  %v3424_v27 = vmax.f32 %v3360_v31, 0.0 }
 0x694   : > { %v3462_v41 = vadd.f32 %v3461_v54, %v3412_v43  ;;  %v9421_v54 = vld [vmem:[#allocation16_spill] sm:$0xff] }
 0x695   : > { %v2721_v56 = vsub.f32 %v9421_v54, %v7356_v1  ;;  %v2864_v59 = vadd.f32 %v2863_v9, %v2779_v36  ;;  %v2783_v21 = vmax.f32 %v2719_v52, 0.0  ;;  %v3364_v9 = vsub.f32 %v9315_v57, %v7354_v49 }
 0x696   : > { %v3463_v13 = vadd.f32 %v3462_v41, %v3414_v45  ;;  %v9422_v41 = vld [vmem:[#allocation17_spill] sm:$0xff]  ;;  %v3426_v53 = vmax.f32 %v3362_v47, 0.0 }
 0x697   : > { %v2723_v60 = vsub.f32 %v9422_v41, %v7356_v1  ;;  %v2865_v32 = vadd.f32 %v2864_v59, %v2781_v58  ;;  %v2785_v37 = vmax.f32 %v2721_v56, 0.0  ;;  %v3366_v59 = vsub.f32 %v5862_v19, %v7354_v49 }
 0x698   : > { %v3464_v43 = vadd.f32 %v3463_v13, %v3416_v8  ;;  %v9423_v13 = vld [vmem:[#allocation18_spill] sm:$0xff]  ;;  %v3428_v31 = vmax.f32 %v3364_v9, 0.0 }
 0x699   : > { %v2725_v35 = vsub.f32 %v9423_v13, %v7356_v1  ;;  %v2866_v36 = vadd.f32 %v2865_v32, %v2783_v21  ;;  %v2787_v52 = vmax.f32 %v2723_v60, 0.0  ;;  %v3368_v32 = vsub.f32 %v9297_v24, %v7354_v49 }
 0x69a   : > { %v3465_v45 = vadd.f32 %v3464_v43, %v3418_v12  ;;  %v9424_v43 = vld [vmem:[#allocation19_spill] sm:$0xff]  ;;  %v3430_v47 = vmax.f32 %v3366_v59, 0.0 }
 0x69b   : > { %v2727_v20 = vsub.f32 %v9424_v43, %v7356_v1  ;;  %v2867_v58 = vadd.f32 %v2866_v36, %v2785_v37  ;;  %v2789_v56 = vmax.f32 %v2725_v35, 0.0  ;;  %v3370_v36 = vsub.f32 %v9342_v61, %v7354_v49 }
 0x69c   : > { %v3466_v8 = vadd.f32 %v3465_v45, %v3420_v25  ;;  %v9425_v45 = vld [vmem:[#allocation20_spill] sm:$0xff]  ;;  %v3432_v9 = vmax.f32 %v3368_v32, 0.0 }
 0x69d   : > { %v2729_v10 = vsub.f32 %v9425_v45, %v7356_v1  ;;  %v2868_v21 = vadd.f32 %v2867_v58, %v2787_v52  ;;  %v2791_v60 = vmax.f32 %v2727_v20, 0.0  ;;  %v3372_v58 = vsub.f32 %v9372_v55, %v7354_v49 }
 0x69e   : > { %v3467_v12 = vadd.f32 %v3466_v8, %v3422_v23  ;;  %v9426_v8 = vld [vmem:[#allocation21_spill] sm:$0xff]  ;;  %v3434_v59 = vmax.f32 %v3370_v36, 0.0 }
 0x69f   : > { %v2731_v57 = vsub.f32 %v9426_v8, %v7356_v1  ;;  %v2869_v37 = vadd.f32 %v2868_v21, %v2789_v56  ;;  %v2793_v35 = vmax.f32 %v2729_v10, 0.0  ;;  %v9429_v21 = vld [vmem:[#allocation55_spill] sm:$0xff]  ;;  %v3436_v32 = vmax.f32 %v3372_v58, 0.0 }
 0x6a0   : > { %v3468_v25 = vadd.f32 %v3467_v12, %v3424_v27  ;;  %v9427_v12 = vld [vmem:[#allocation22_spill] sm:$0xff]  ;;  %v3374_v61 = vsub.f32 %v9429_v21, %v7354_v49 }
 0x6a1   : > { %v2733_v19 = vsub.f32 %v9427_v12, %v7356_v1  ;;  %v2870_v52 = vadd.f32 %v2869_v37, %v2791_v60  ;;  %v2795_v20 = vmax.f32 %v2731_v57, 0.0  ;;  %v9431_v37 = vld [vmem:[#allocation56_spill] sm:$0xff] }
 0x6a2   : > { %v3469_v23 = vadd.f32 %v3468_v25, %v3426_v53  ;;  %v9428_v25 = vld [vmem:[#allocation23_spill] sm:$0xff]  ;;  %v3376_v55 = vsub.f32 %v9431_v37, %v7354_v49  ;;  %v3438_v36 = vmax.f32 %v3374_v61, 0.0 }
 0x6a3   : > { %v2735_v24 = vsub.f32 %v9428_v25, %v7356_v1  ;;  %v2871_v56 = vadd.f32 %v2870_v52, %v2793_v35  ;;  %v2797_v10 = vmax.f32 %v2733_v19, 0.0  ;;  %v9433_v52 = vld [vmem:[#allocation57_spill] sm:$0xff] }
 0x6a4   : > { %v3470_v27 = vadd.f32 %v3469_v23, %v3428_v31  ;;  %v9430_v23 = vld [vmem:[#allocation24_spill] sm:$0xff]  ;;  %v3378_v21 = vsub.f32 %v9433_v52, %v7354_v49  ;;  %v3440_v58 = vmax.f32 %v3376_v55, 0.0 }
 0x6a5   : > { %v2737_v12 = vsub.f32 %v9430_v23, %v7356_v1  ;;  %v2872_v60 = vadd.f32 %v2871_v56, %v2795_v20  ;;  %v2799_v57 = vmax.f32 %v2735_v24, 0.0  ;;  %v9435_v56 = vld [vmem:[#allocation58_spill] sm:$0xff] }
 0x6a6   : > { %v3471_v53 = vadd.f32 %v3470_v27, %v3430_v47  ;;  %v9432_v27 = vld [vmem:[#allocation25_spill] sm:$0xff]  ;;  %v3380_v37 = vsub.f32 %v9435_v56, %v7354_v49  ;;  %v3442_v61 = vmax.f32 %v3378_v21, 0.0 }
 0x6a7   : > { %v2739_v25 = vsub.f32 %v9432_v27, %v7356_v1  ;;  %v2873_v35 = vadd.f32 %v2872_v60, %v2797_v10  ;;  %v2801_v19 = vmax.f32 %v2737_v12, 0.0  ;;  %v9437_v60 = vld [vmem:[#allocation59_spill] sm:$0xff] }
 0x6a8   : > { %v3472_v31 = vadd.f32 %v3471_v53, %v3432_v9  ;;  %v9434_v53 = vld [vmem:[#allocation26_spill] sm:$0xff]  ;;  %v3382_v52 = vsub.f32 %v9437_v60, %v7354_v49  ;;  %v3444_v55 = vmax.f32 %v3380_v37, 0.0 }
 0x6a9   : > { %v2741_v23 = vsub.f32 %v9434_v53, %v7356_v1  ;;  %v2874_v20 = vadd.f32 %v2873_v35, %v2799_v57  ;;  %v2803_v24 = vmax.f32 %v2739_v25, 0.0  ;;  %v3384_v35 = vsub.f32 %v9409_v26, %v7354_v49 }
 0x6aa   : > { %v3473_v47 = vadd.f32 %v3472_v31, %v3434_v59  ;;  %v9436_v31 = vld [vmem:[#allocation27_spill] sm:$0xff] }
 0x6ab   : > { %v2743_v27 = vsub.f32 %v9436_v31, %v7356_v1  ;;  %v2875_v10 = vadd.f32 %v2874_v20, %v2801_v19  ;;  %v2805_v12 = vmax.f32 %v2741_v23, 0.0  ;;  %v3446_v31 = vmax.f32 %v3382_v52, 0.0  ;;  %v9439_v19 = vld [vmem:[#allocation77_spill] sm:$0xff]  ;;  %v9440_v23 = vld [vmem:[#allocation78_spill] sm:$0xff] }
 0x6ac   : > { %v3474_v9 = vadd.f32 %v3473_v47, %v3436_v32  ;;  %v9438_v47 = vld [vmem:[#allocation28_spill] sm:$0xff]  ;;  %v2747_v20 = vsub.f32 %v9439_v19, %v7356_v1 }
 0x6ad   : > { %v2745_v53 = vsub.f32 %v9438_v47, %v7356_v1  ;;  %v2876_v57 = vadd.f32 %v2875_v10, %v2803_v24  ;;  %v2749_v24 = vsub.f32 %v9440_v23, %v7356_v1 }
 0x6ae   : > { %v3475_v59 = vadd.f32 %v3474_v9, %v3438_v36  ;;  %v2807_v9 = vmax.f32 %v2743_v27, 0.0  ;;  %v2811_v10 = vmax.f32 %v2747_v20, 0.0 }
 0x6af   : > { %v2877_v56 = vadd.f32 %v2876_v57, %v2805_v12  ;;  %v2809_v60 = vmax.f32 %v2745_v53, 0.0 }
 0x6b0   : > { %v3476_v32 = vadd.f32 %v3475_v59, %v3440_v58  ;;  %v3448_v58 = vmax.f32 %v3384_v35, 0.0 }
 0x6b1   : > { %v2878_v21 = vadd.f32 %v2877_v56, %v2807_v9 }
 0x6b2   : > { %v3477_v36 = vadd.f32 %v3476_v32, %v3442_v61  ;;  %v2813_v61 = vmax.f32 %v2749_v24, 0.0 }
 0x6b3   : > { %v2879_v48 = vadd.f32 %v2878_v21, %v2809_v60 }
 0x6b4   : > { %v3478_v25 = vadd.f32 %v3477_v36, %v3444_v55 }
 0x6b5   : > { %v2880_v37 = vadd.f32 %v2879_v48, %v2811_v10 }
 0x6b6   : > { %v3479_v59 = vadd.f32 %v3478_v25, %v3446_v31 }
 0x6b7   : > { %v2881_v32 = vadd.f32 %v2880_v37, %v2813_v61 }
 0x6b8   : > { %v3480_v47 = vadd.f32 %v3479_v59, %v3448_v58 }
 0x6b9   : > { %v2882_v12 = vrot.slane %v2881_v32, 4 }
 0x6ba   : > { %v3481_v26 = vrot.slane %v3480_v47, 4 }
 0x6bb   : > { %v2883_v55 = vadd.f32 %v2882_v12, %v2881_v32 }
 0x6bc   : > { %v3482_v27 = vadd.f32 %v3481_v26, %v3480_v47 }
 0x6bd   : > { %v2884_v53 = vrot.slane %v2883_v55, 2 }
 0x6be   : > { %v3483_v52 = vrot.slane %v3482_v27, 2 }
 0x6bf   : > { %v2885_v35 = vadd.f32 %v2884_v53, %v2883_v55 }
 0x6c0   : > { %v3484_v57 = vadd.f32 %v3483_v52, %v3482_v27 }
 0x6c1   : > { %v2886_v31 = vrot.slane %v2885_v35, 1 }
 0x6c2   : > { %v3485_v36 = vrot.slane %v3484_v57, 1 }
 0x6c3   : > { %v2887_v26 = vadd.f32 %v2886_v31, %v2885_v35 }
 0x6c4   : > { %v3486_v56 = vadd.f32 %v3485_v36, %v3484_v57 }
 0x6c5   : > { %vm2889_vm15 = vcmp.ge.f32.partialorder %v2887_v26, 1.0 }
 0x6c6   : > { %vm3524_vm14 = vcmp.ge.f32.partialorder %v3486_v56, 1.0  ;;  %v7500_v25 = vsel %vm2889_vm15, %v7356_v1, %v7346_v2  ;;  %v7504_v20 = vsel %vm2889_vm15, %v7350_v14, %v7356_v1 }
 0x6c7   : > { %v7488_v60 = vsel %vm3524_vm14, %v7354_v49, %v7336_v38  ;;  %v7492_v48 = vsel %vm3524_vm14, %v7340_v44, %v7354_v49  ;;  %v2895_v49 = vadd.f32 %v7504_v20, %v7500_v25 }
 0x6c8   : > { %v3530_v47 = vadd.f32 %v7492_v48, %v7488_v60 }
 0x6c9   : > { %v7512_v59 = vmul.f32 0.5, %v2895_v49 }
 0x6ca   : > { %v7496_v9 = vmul.f32 0.5, %v3530_v47 }
 0x6cb   : > { %v2899_v14 = vsub.f32 %v9412_v18, %v7512_v59  ;;  %v2901_v1 = vsub.f32 %v9384_v4, %v7512_v59  ;;  %v2903_v27 = vsub.f32 %v9385_v33, %v7512_v59  ;;  %v2905_v55 = vsub.f32 %v9386_v51, %v7512_v59 }
 0x6cc   : > { %v3534_v38 = vsub.f32 %v9184_v17, %v7496_v9  ;;  %v3536_v44 = vsub.f32 %v9185_v11, %v7496_v9  ;;  %v3538_v2 = vsub.f32 %v9186_v46, %v7496_v9  ;;  %v3540_v10 = vsub.f32 %v9187_v5, %v7496_v9 }
 0x6cd   : > { %v2963_v32 = vmax.f32 %v2899_v14, 0.0  ;;  %v2965_v52 = vmax.f32 %v2901_v1, 0.0  ;;  %v3542_v12 = vsub.f32 %v9210_v6, %v7496_v9  ;;  %v2907_v53 = vsub.f32 %v9387_v39, %v7512_v59 }
 0x6ce   : > { %v3598_v21 = vmax.f32 %v3534_v38, 0.0  ;;  %v3600_v58 = vmax.f32 %v3536_v44, 0.0  ;;  %v3602_v37 = vmax.f32 %v3538_v2, 0.0  ;;  %v3604_v57 = vmax.f32 %v3540_v10, 0.0 }
 0x6cf   : > { %v2967_v56 = vmax.f32 %v2903_v27, 0.0  ;;  %v3063_v35 = vadd.f32 %v2965_v52, %v2963_v32  ;;  %v3544_v31 = vsub.f32 %v9236_v50, %v7496_v9  ;;  %v3606_v26 = vmax.f32 %v3542_v12, 0.0 }
 0x6d0   : > { %v3662_v24 = vadd.f32 %v3600_v58, %v3598_v21  ;;  %v2909_v47 = vsub.f32 %v9388_v34, %v7512_v59  ;;  %v2969_v38 = vmax.f32 %v2905_v55, 0.0  ;;  %v2911_v21 = vsub.f32 %v9413_v63, %v7512_v59 }
 0x6d1   : > { %v3064_v44 = vadd.f32 %v3063_v35, %v2967_v56  ;;  %v2971_v58 = vmax.f32 %v2907_v53, 0.0  ;;  %v3608_v1 = vmax.f32 %v3544_v31, 0.0  ;;  %v2913_v10 = vsub.f32 %v9414_v28, %v7512_v59 }
 0x6d2   : > { %v3663_v61 = vadd.f32 %v3662_v24, %v3602_v37  ;;  %v9441_v24 = vld [vmem:[#allocation35_spill] sm:$0xff]  ;;  %v2973_v37 = vmax.f32 %v2909_v47, 0.0  ;;  %v2915_v32 = vsub.f32 %v9415_v7, %v7512_v59  ;;  %v2975_v52 = vmax.f32 %v2911_v21, 0.0 }
 0x6d3   : > { %v3065_v2 = vadd.f32 %v3064_v44, %v2969_v38  ;;  %v3546_v14 = vsub.f32 %v9441_v24, %v7496_v9  ;;  %v2917_v53 = vsub.f32 %v9416_v42, %v7512_v59  ;;  %v2977_v56 = vmax.f32 %v2913_v10, 0.0  ;;  %v9443_v44 = vld [vmem:[#allocation37_spill] sm:$0xff] }
 0x6d4   : > { %v3664_v36 = vadd.f32 %v3663_v61, %v3604_v57  ;;  %v9442_v57 = vld [vmem:[#allocation36_spill] sm:$0xff]  ;;  %v2979_v47 = vmax.f32 %v2915_v32, 0.0  ;;  %v2923_v10 = vsub.f32 %v9419_v22, %v7512_v59 }
 0x6d5   : > { %v3066_v61 = vadd.f32 %v3065_v2, %v2971_v58  ;;  %v3548_v55 = vsub.f32 %v9442_v57, %v7496_v9  ;;  %v2921_v58 = vsub.f32 %v9418_v0, %v7512_v59  ;;  %v2981_v2 = vmax.f32 %v2917_v53, 0.0 }
 0x6d6   : > { %v3665_v49 = vadd.f32 %v3664_v36, %v3606_v26  ;;  %v3610_v36 = vmax.f32 %v3546_v14, 0.0  ;;  %v2919_v26 = vsub.f32 %v9417_v15, %v7512_v59  ;;  %v2927_v53 = vsub.f32 %v9362_v30, %v7512_v59 }
 0x6d7   : > { %v3067_v12 = vadd.f32 %v3066_v61, %v2973_v37  ;;  %v3612_v21 = vmax.f32 %v3548_v55, 0.0 }
 0x6d8   : > { %v3666_v27 = vadd.f32 %v3665_v49, %v3608_v1  ;;  %v3550_v49 = vsub.f32 %v9443_v44, %v7496_v9  ;;  %v2983_v37 = vmax.f32 %v2919_v26, 0.0 }
 0x6d9   : > { %v3068_v35 = vadd.f32 %v3067_v12, %v2975_v52  ;;  %v2925_v12 = vsub.f32 %v9361_v3, %v7512_v59 }
 0x6da   : > { %v3667_v31 = vadd.f32 %v3666_v27, %v3610_v36  ;;  %v9444_v27 = vld [vmem:[#allocation38_spill] sm:$0xff]  ;;  %v3614_v32 = vmax.f32 %v3550_v49, 0.0  ;;  %v2985_v36 = vmax.f32 %v2921_v58, 0.0  ;;  %v2931_v58 = vsub.f32 %v9420_v29, %v7512_v59 }
 0x6db   : > { %v3069_v38 = vadd.f32 %v3068_v35, %v2977_v56  ;;  %v3552_v52 = vsub.f32 %v9444_v27, %v7496_v9  ;;  %v2987_v35 = vmax.f32 %v2923_v10, 0.0 }
 0x6dc   : > { %v3668_v1 = vadd.f32 %v3667_v31, %v3612_v21  ;;  %v2929_v21 = vsub.f32 %v9363_v16, %v7512_v59 }
 0x6dd   : > { %v3070_v14 = vadd.f32 %v3069_v38, %v2979_v47  ;;  %v9445_v47 = vld [vmem:[#allocation39_spill] sm:$0xff]  ;;  %v3616_v26 = vmax.f32 %v3552_v52, 0.0 }
 0x6de   : > { %v3669_v56 = vadd.f32 %v3668_v1, %v3614_v32  ;;  %v3554_v38 = vsub.f32 %v9445_v47, %v7496_v9 }
 0x6df   : > { %v3071_v61 = vadd.f32 %v3070_v14, %v2981_v2  ;;  %v2989_v2 = vmax.f32 %v2925_v12, 0.0  ;;  %v2935_v12 = vsub.f32 %v9422_v41, %v7512_v59 }
 0x6e0   : > { %v3670_v14 = vadd.f32 %v3669_v56, %v3616_v26  ;;  %v3618_v10 = vmax.f32 %v3554_v38, 0.0  ;;  %v2937_v26 = vsub.f32 %v9423_v13, %v7512_v59 }
 0x6e1   : > { %v3072_v55 = vadd.f32 %v3071_v61, %v2983_v37  ;;  %v2991_v37 = vmax.f32 %v2927_v53, 0.0  ;;  %v9446_v61 = vld [vmem:[#allocation40_spill] sm:$0xff] }
 0x6e2   : > { %v3556_v32 = vsub.f32 %v9446_v61, %v7496_v9  ;;  %v3671_v47 = vadd.f32 %v3670_v14, %v3618_v10  ;;  %v2941_v10 = vsub.f32 %v9425_v45, %v7512_v59 }
 0x6e3   : > { %v3073_v31 = vadd.f32 %v3072_v55, %v2985_v36  ;;  %v2933_v36 = vsub.f32 %v9421_v54, %v7512_v59  ;;  %v2993_v55 = vmax.f32 %v2929_v21, 0.0  ;;  %v2939_v21 = vsub.f32 %v9424_v43, %v7512_v59 }
 0x6e4   : > { %v3620_v53 = vmax.f32 %v3556_v32, 0.0 }
 0x6e5   : > { %v3074_v49 = vadd.f32 %v3073_v31, %v2987_v35  ;;  %v2995_v35 = vmax.f32 %v2931_v58, 0.0  ;;  %v3558_v31 = vsub.f32 %v5832_v40, %v7496_v9 }
 0x6e7   : > { %v3075_v1 = vadd.f32 %v3074_v49, %v2989_v2  ;;  %v2997_v2 = vmax.f32 %v2933_v36, 0.0  ;;  %v3672_v49 = vadd.f32 %v3671_v47, %v3620_v53  ;;  %v3622_v58 = vmax.f32 %v3558_v31, 0.0 }
 0x6e8   : > { %v2943_v36 = vsub.f32 %v9426_v8, %v7512_v59 }
 0x6e9   : > { %v3076_v52 = vadd.f32 %v3075_v1, %v2991_v37  ;;  %v2999_v37 = vmax.f32 %v2935_v12, 0.0  ;;  %v3560_v1 = vsub.f32 %v9194_v62, %v7496_v9  ;;  %v3005_v62 = vmax.f32 %v2941_v10, 0.0  ;;  %v9452_v10 = vld [vmem:[#allocation24_spill] sm:$0xff] }
 0x6ea   : > { %v3007_v61 = vmax.f32 %v2943_v36, 0.0 }
 0x6eb   : > { %v3077_v56 = vadd.f32 %v3076_v52, %v2993_v55  ;;  %v3001_v55 = vmax.f32 %v2937_v26, 0.0  ;;  %v3673_v52 = vadd.f32 %v3672_v49, %v3622_v58  ;;  %v3624_v12 = vmax.f32 %v3560_v1, 0.0  ;;  %v9449_v26 = vld [vmem:[#allocation44_spill] sm:$0xff]  ;;  %v9451_v1 = vld [vmem:[#allocation45_spill] sm:$0xff] }
 0x6ec   : > { %v3564_v49 = vsub.f32 %v9449_v26, %v7496_v9  ;;  %v3566_v44 = vsub.f32 %v9451_v1, %v7496_v9 }
 0x6ed   : > { %v3078_v38 = vadd.f32 %v3077_v56, %v2995_v35  ;;  %v3003_v35 = vmax.f32 %v2939_v21, 0.0  ;;  %v9447_v56 = vld [vmem:[#allocation43_spill] sm:$0xff]  ;;  %v3674_v40 = vadd.f32 %v3673_v52, %v3624_v12  ;;  %v2949_v52 = vsub.f32 %v9452_v10, %v7512_v59 }
 0x6ee   : > { %v3562_v53 = vsub.f32 %v9447_v56, %v7496_v9  ;;  %v3628_v57 = vmax.f32 %v3564_v49, 0.0  ;;  %v3630_v12 = vmax.f32 %v3566_v44, 0.0 }
 0x6ef   : > { %v3079_v14 = vadd.f32 %v3078_v38, %v2997_v2  ;;  %v9448_v2 = vld [vmem:[#allocation22_spill] sm:$0xff] }
 0x6f0   : > { %v2945_v38 = vsub.f32 %v9448_v2, %v7512_v59 }
 0x6f1   : > { %v3080_v32 = vadd.f32 %v3079_v14, %v2999_v37  ;;  %v3626_v37 = vmax.f32 %v3562_v53, 0.0  ;;  %v9450_v14 = vld [vmem:[#allocation23_spill] sm:$0xff] }
 0x6f2   : > { %v2947_v21 = vsub.f32 %v9450_v14, %v7512_v59  ;;  %v3009_v58 = vmax.f32 %v2945_v38, 0.0 }
 0x6f3   : > { %v3081_v47 = vadd.f32 %v3080_v32, %v3001_v55  ;;  %v3675_v32 = vadd.f32 %v3674_v40, %v3626_v37  ;;  %v9455_v37 = vld [vmem:[#allocation47_spill] sm:$0xff] }
 0x6f4   : > { %v3011_v36 = vmax.f32 %v2947_v21, 0.0 }
 0x6f5   : > { %v3082_v31 = vadd.f32 %v3081_v47, %v3003_v35  ;;  %v9453_v47 = vld [vmem:[#allocation46_spill] sm:$0xff] }
 0x6f6   : > { %v3568_v53 = vsub.f32 %v9453_v47, %v7496_v9  ;;  %v9458_v47 = vld [vmem:[#allocation27_spill] sm:$0xff] }
 0x6f7   : > { %v3083_v27 = vadd.f32 %v3082_v31, %v3005_v62  ;;  %v3676_v62 = vadd.f32 %v3675_v32, %v3628_v57  ;;  %v9454_v31 = vld [vmem:[#allocation25_spill] sm:$0xff]  ;;  %v9457_v32 = vld [vmem:[#allocation48_spill] sm:$0xff]  ;;  %v2955_v26 = vsub.f32 %v9458_v47, %v7512_v59 }
 0x6f8   : > { %v2951_v38 = vsub.f32 %v9454_v31, %v7512_v59  ;;  %v3632_v49 = vmax.f32 %v3568_v53, 0.0 }
 0x6f9   : > { %v3084_v55 = vadd.f32 %v3083_v27, %v3007_v61  ;;  %v3013_v27 = vmax.f32 %v2949_v52, 0.0  ;;  %v3677_v40 = vadd.f32 %v3676_v62, %v3630_v12  ;;  %v9459_v12 = vld [vmem:[#allocation49_spill] sm:$0xff] }
 0x6fa   : > { %v3015_v21 = vmax.f32 %v2951_v38, 0.0  ;;  %v3019_v38 = vmax.f32 %v2955_v26, 0.0 }
 0x6fb   : > { %v3085_v56 = vadd.f32 %v3084_v55, %v3009_v58  ;;  %v3570_v58 = vsub.f32 %v9455_v37, %v7496_v9  ;;  %v9456_v55 = vld [vmem:[#allocation26_spill] sm:$0xff]  ;;  %v3678_v57 = vadd.f32 %v3677_v40, %v3632_v49  ;;  %v9460_v37 = vld [vmem:[#allocation28_spill] sm:$0xff] }
 0x6fc   : > { %v2953_v1 = vsub.f32 %v9456_v55, %v7512_v59  ;;  %v2957_v55 = vsub.f32 %v9460_v37, %v7512_v59  ;;  %v9461_v49 = vld [vmem:[#allocation50_spill] sm:$0xff] }
 0x6fd   : > { %v3086_v35 = vadd.f32 %v3085_v56, %v3011_v36  ;;  %v3572_v36 = vsub.f32 %v9457_v32, %v7496_v9  ;;  %v3634_v44 = vmax.f32 %v3570_v58, 0.0  ;;  %v2959_v32 = vsub.f32 %v9439_v19, %v7512_v59 }
 0x6fe   : > { %v3017_v52 = vmax.f32 %v2953_v1, 0.0  ;;  %v3021_v1 = vmax.f32 %v2957_v55, 0.0  ;;  %v9464_v55 = vld [vmem:[#allocation53_spill] sm:$0xff] }
 0x6ff   : > { %v3087_v61 = vadd.f32 %v3086_v35, %v3013_v27  ;;  %v3679_v62 = vadd.f32 %v3678_v57, %v3634_v44  ;;  %v3574_v27 = vsub.f32 %v9459_v12, %v7496_v9  ;;  %v3636_v53 = vmax.f32 %v3572_v36, 0.0  ;;  %v9462_v44 = vld [vmem:[#allocation51_spill] sm:$0xff] }
 0x700   : > { %v2961_v12 = vsub.f32 %v9440_v23, %v7512_v59  ;;  %v3023_v26 = vmax.f32 %v2959_v32, 0.0 }
 0x701   : > { %v3088_v56 = vadd.f32 %v3087_v61, %v3015_v21  ;;  %v3680_v40 = vadd.f32 %v3679_v62, %v3636_v53  ;;  %v3576_v21 = vsub.f32 %v9461_v49, %v7496_v9  ;;  %v3638_v58 = vmax.f32 %v3574_v27, 0.0  ;;  %v9463_v53 = vld [vmem:[#allocation52_spill] sm:$0xff] }
 0x702   : > { %v3025_v49 = vmax.f32 %v2961_v12, 0.0 }
 0x703   : > { %v3089_v35 = vadd.f32 %v3088_v56, %v3017_v52  ;;  %v3681_v57 = vadd.f32 %v3680_v40, %v3638_v58  ;;  %v3578_v52 = vsub.f32 %v9462_v44, %v7496_v9  ;;  %v3640_v36 = vmax.f32 %v3576_v21, 0.0  ;;  %v9465_v44 = vld [vmem:[#allocation54_spill] sm:$0xff] }
 0x704   : > { %v3582_v40 = vsub.f32 %v9464_v55, %v7496_v9  ;;  %v3584_v23 = vsub.f32 %v9465_v44, %v7496_v9 }
 0x705   : > { %v3090_v61 = vadd.f32 %v3089_v35, %v3019_v38  ;;  %v3682_v62 = vadd.f32 %v3681_v57, %v3640_v36  ;;  %v3580_v38 = vsub.f32 %v9463_v53, %v7496_v9  ;;  %v3642_v27 = vmax.f32 %v3578_v52, 0.0 }
 0x706   : > { %v3646_v32 = vmax.f32 %v3582_v40, 0.0  ;;  %v3648_v12 = vmax.f32 %v3584_v23, 0.0 }
 0x707   : > { %v3091_v56 = vadd.f32 %v3090_v61, %v3021_v1  ;;  %v3683_v37 = vadd.f32 %v3682_v62, %v3642_v27  ;;  %v3644_v61 = vmax.f32 %v3580_v38, 0.0  ;;  %v9467_v27 = vld [vmem:[#allocation56_spill] sm:$0xff] }
 0x708   : > { %v3588_v38 = vsub.f32 %v9467_v27, %v7496_v9 }
 0x709   : > { %v3092_v35 = vadd.f32 %v3091_v56, %v3023_v26  ;;  %v3684_v1 = vadd.f32 %v3683_v37, %v3644_v61  ;;  %v9466_v26 = vld [vmem:[#allocation55_spill] sm:$0xff] }
 0x70a   : > { %v3586_v52 = vsub.f32 %v9466_v26, %v7496_v9  ;;  %v3652_v40 = vmax.f32 %v3588_v38, 0.0 }
 0x70b   : > { %v3093_v19 = vadd.f32 %v3092_v35, %v3025_v49  ;;  %v3685_v56 = vadd.f32 %v3684_v1, %v3646_v32 }
 0x70c   : > { %v3650_v55 = vmax.f32 %v3586_v52, 0.0 }
 0x70d   : > { %v3094_v58 = vrot.slane %v3093_v19, 4  ;;  %v3686_v49 = vadd.f32 %v3685_v56, %v3648_v12 }
 0x70f   : > { %v3095_v21 = vadd.f32 %v3094_v58, %v3093_v19  ;;  %v3687_v37 = vadd.f32 %v3686_v49, %v3650_v55  ;;  %v9468_v19 = vld [vmem:[#allocation57_spill] sm:$0xff]  ;;  %v9471_v49 = vld [vmem:[#allocation60_spill] sm:$0xff] }
 0x710   : > { %v3590_v61 = vsub.f32 %v9468_v19, %v7496_v9 }
 0x711   : > { %v3096_v57 = vrot.slane %v3095_v21, 2  ;;  %v3688_v58 = vadd.f32 %v3687_v37, %v3652_v40 }
 0x713   : > { %v3097_v36 = vadd.f32 %v3096_v57, %v3095_v21  ;;  %v9469_v21 = vld [vmem:[#allocation58_spill] sm:$0xff]  ;;  %v3654_v57 = vmax.f32 %v3590_v61, 0.0 }
 0x714   : > { %v3592_v32 = vsub.f32 %v9469_v21, %v7496_v9 }
 0x715   : > { %v3098_v62 = vrot.slane %v3097_v36, 1  ;;  %v3689_v56 = vadd.f32 %v3688_v58, %v3654_v57 }
 0x716   : > { %v3656_v12 = vmax.f32 %v3592_v32, 0.0 }
 0x717   : > { %v3099_v35 = vadd.f32 %v3098_v62, %v3097_v36  ;;  %v9470_v36 = vld [vmem:[#allocation59_spill] sm:$0xff] }
 0x718   : > { %v3594_v52 = vsub.f32 %v9470_v36, %v7496_v9 }
 0x719   : > { %vm3101_vm0 = vcmp.ge.f32.partialorder %v3099_v35, 1.0  ;;  %v3596_v35 = vsub.f32 %v9471_v49, %v7496_v9 }
 0x71a   : > { %v7634_v1 = vsel %vm3101_vm0, %v7512_v59, %v7500_v25  ;;  %v7638_v23 = vsel %vm3101_vm0, %v7504_v20, %v7512_v59  ;;  %v3690_v25 = vadd.f32 %v3689_v56, %v3656_v12  ;;  %v3658_v20 = vmax.f32 %v3594_v52, 0.0 }
 0x71b   : > { %v3107_v55 = vadd.f32 %v7638_v23, %v7634_v1  ;;  %v3660_v61 = vmax.f32 %v3596_v35, 0.0 }
 0x71c   : > { %v3691_v37 = vadd.f32 %v3690_v25, %v3658_v20 }
 0x71d   : > { %v7646_v62 = vmul.f32 0.5, %v3107_v55 }
 0x71e   : > { %v3692_v57 = vadd.f32 %v3691_v37, %v3660_v61 }
 0x71f   : > { %v3111_v59 = vsub.f32 %v9412_v18, %v7646_v62  ;;  %v3113_v38 = vsub.f32 %v9384_v4, %v7646_v62  ;;  %v3115_v40 = vsub.f32 %v9385_v33, %v7646_v62  ;;  %v3117_v55 = vsub.f32 %v9386_v51, %v7646_v62 }
 0x720   : > { %v3119_v56 = vsub.f32 %v9387_v39, %v7646_v62  ;;  %v3693_v49 = vrot.slane %v3692_v57, 4  ;;  %v3121_v36 = vsub.f32 %v9388_v34, %v7646_v62  ;;  %v3123_v20 = vsub.f32 %v9413_v63, %v7646_v62 }
 0x721   : > { %v3175_v58 = vmax.f32 %v3111_v59, 0.0  ;;  %v3177_v32 = vmax.f32 %v3113_v38, 0.0  ;;  %v3179_v52 = vmax.f32 %v3115_v40, 0.0  ;;  %v3181_v25 = vmax.f32 %v3117_v55, 0.0 }
 0x722   : > { %v3183_v59 = vmax.f32 %v3119_v56, 0.0  ;;  %v3694_v37 = vadd.f32 %v3693_v49, %v3692_v57  ;;  %v3125_v61 = vsub.f32 %v9414_v28, %v7646_v62  ;;  %v3185_v21 = vmax.f32 %v3121_v36, 0.0 }
 0x723   : > { %v3275_v12 = vadd.f32 %v3177_v32, %v3175_v58  ;;  %v3127_v40 = vsub.f32 %v9415_v7, %v7646_v62  ;;  %v3187_v58 = vmax.f32 %v3123_v20, 0.0  ;;  %v3129_v55 = vsub.f32 %v9416_v42, %v7646_v62 }
 0x724   : > { %v3695_v27 = vrot.slane %v3694_v37, 2  ;;  %v3131_v56 = vsub.f32 %v9417_v15, %v7646_v62  ;;  %v3133_v36 = vsub.f32 %v9418_v0, %v7646_v62 }
 0x725   : > { %v3276_v35 = vadd.f32 %v3275_v12, %v3179_v52  ;;  %v3189_v52 = vmax.f32 %v3125_v61, 0.0  ;;  %v3191_v49 = vmax.f32 %v3127_v40, 0.0  ;;  %v3137_v61 = vsub.f32 %v9361_v3, %v7646_v62 }
 0x726   : > { %v3139_v40 = vsub.f32 %v9362_v30, %v7646_v62 }
 0x727   : > { %v3277_v38 = vadd.f32 %v3276_v35, %v3181_v25  ;;  %v3696_v25 = vadd.f32 %v3695_v27, %v3694_v37  ;;  %v3193_v35 = vmax.f32 %v3129_v55, 0.0 }
 0x729   : > { %v3278_v19 = vadd.f32 %v3277_v38, %v3183_v59  ;;  %v3697_v38 = vrot.slane %v3696_v25, 1 }
 0x72b   : > { %v3279_v32 = vadd.f32 %v3278_v19, %v3185_v21  ;;  %v3135_v19 = vsub.f32 %v9419_v22, %v7646_v62  ;;  %v3195_v21 = vmax.f32 %v3131_v56, 0.0 }
 0x72d   : > { %v3280_v12 = vadd.f32 %v3279_v32, %v3187_v58  ;;  %v3197_v58 = vmax.f32 %v3133_v36, 0.0  ;;  %v3199_v27 = vmax.f32 %v3135_v19, 0.0 }
 0x72f   : > { %v3281_v57 = vadd.f32 %v3280_v12, %v3189_v52  ;;  %v3698_v52 = vadd.f32 %v3697_v38, %v3696_v25  ;;  %v3201_v12 = vmax.f32 %v3137_v61, 0.0  ;;  %v3143_v25 = vsub.f32 %v9420_v29, %v7646_v62 }
 0x730   : > { %v3145_v38 = vsub.f32 %v9421_v54, %v7646_v62 }
 0x731   : > { %v3282_v59 = vadd.f32 %v3281_v57, %v3191_v49  ;;  %v3141_v49 = vsub.f32 %v9363_v16, %v7646_v62  ;;  %v3203_v57 = vmax.f32 %v3139_v40, 0.0  ;;  %vm3736_vm1 = vcmp.ge.f32.partialorder %v3698_v52, 1.0 }
 0x732   : > { %v7688_v36 = vsel %vm3736_vm1, %v7492_v48, %v7496_v9  ;;  %v3207_v61 = vmax.f32 %v3143_v25, 0.0  ;;  %v3209_v48 = vmax.f32 %v3145_v38, 0.0 }
 0x733   : > { %v3283_v20 = vadd.f32 %v3282_v59, %v3193_v35  ;;  %v7684_v59 = vsel %vm3736_vm1, %v7496_v9, %v7488_v60  ;;  %9473 = vst [vmem:[#allocation75_spill] sm:$0xff] %v7688_v36  ;;  %v3205_v19 = vmax.f32 %v3141_v49, 0.0  ;;  %v3147_v60 = vsub.f32 %v9422_v41, %v7646_v62 }
 0x734   : > { %9472 = vst [vmem:[#allocation14_spill] sm:$0xff] %v7684_v59 }
 0x735   : > { %v3284_v32 = vadd.f32 %v3283_v20, %v3195_v21  ;;  %v3742_v20 = vadd.f32 %v7688_v36, %v7684_v59  ;;  %v3211_v52 = vmax.f32 %v3147_v60, 0.0 }
 0x737   : > { %v3285_v37 = vadd.f32 %v3284_v32, %v3197_v58  ;;  %v7696_v32 = vmul.f32 0.5, %v3742_v20 }
 0x739   : > { %v3286_v55 = vadd.f32 %v3285_v37, %v3199_v27  ;;  %v3746_v40 = vsub.f32 %v9184_v17, %v7696_v32  ;;  %v3748_v27 = vsub.f32 %v9185_v11, %v7696_v32  ;;  %v3149_v37 = vsub.f32 %v9423_v13, %v7646_v62 }
 0x73a   : > { %v3752_v38 = vsub.f32 %v9187_v5, %v7696_v32  ;;  %v9477_v5 = vld [vmem:[#allocation77_spill] sm:$0xff] }
 0x73b   : > { %v3287_v56 = vadd.f32 %v3286_v55, %v3201_v12  ;;  %v3810_v55 = vmax.f32 %v3746_v40, 0.0  ;;  %v3812_v49 = vmax.f32 %v3748_v27, 0.0  ;;  %v3754_v40 = vsub.f32 %v9210_v6, %v7696_v32 }
 0x73c   : > { %v3816_v27 = vmax.f32 %v3752_v38, 0.0 }
 0x73d   : > { %v3288_v35 = vadd.f32 %v3287_v56, %v3203_v57  ;;  %v3151_v57 = vsub.f32 %v9424_v43, %v7646_v62  ;;  %v3213_v56 = vmax.f32 %v3149_v37, 0.0  ;;  %v3157_v37 = vsub.f32 %v9448_v2, %v7646_v62 }
 0x73f   : > { %v3289_v21 = vadd.f32 %v3288_v35, %v3205_v19  ;;  %v3750_v35 = vsub.f32 %v9186_v46, %v7696_v32  ;;  %v3874_v19 = vadd.f32 %v3812_v49, %v3810_v55  ;;  %v3215_v20 = vmax.f32 %v3151_v57, 0.0 }
 0x740   : > { %v3159_v55 = vsub.f32 %v9450_v14, %v7646_v62  ;;  %v3756_v57 = vsub.f32 %v9236_v50, %v7696_v32 }
 0x741   : > { %v3290_v58 = vadd.f32 %v3289_v21, %v3207_v61  ;;  %v3153_v21 = vsub.f32 %v9425_v45, %v7646_v62  ;;  %v3814_v61 = vmax.f32 %v3750_v35, 0.0  ;;  %v3161_v35 = vsub.f32 %v9452_v10, %v7646_v62 }
 0x742   : > { %v3223_v38 = vmax.f32 %v3159_v55, 0.0 }
 0x743   : > { %v3291_v9 = vadd.f32 %v3290_v58, %v3209_v48  ;;  %v3875_v60 = vadd.f32 %v3874_v19, %v3814_v61  ;;  %v3155_v48 = vsub.f32 %v9426_v8, %v7646_v62 }
 0x745   : > { %v3292_v12 = vadd.f32 %v3291_v9, %v3211_v52  ;;  %v3217_v9 = vmax.f32 %v3153_v21, 0.0  ;;  %v3219_v49 = vmax.f32 %v3155_v48, 0.0  ;;  %v9474_v48 = vld [vmem:[#allocation26_spill] sm:$0xff] }
 0x747   : > { %v3293_v25 = vadd.f32 %v3292_v12, %v3213_v56  ;;  %v3876_v12 = vadd.f32 %v3875_v60, %v3816_v27  ;;  %v3818_v56 = vmax.f32 %v3754_v40, 0.0  ;;  %v3820_v60 = vmax.f32 %v3756_v57, 0.0 }
 0x748   : > { %v3225_v27 = vmax.f32 %v3161_v35, 0.0  ;;  %v3171_v35 = vsub.f32 %v9477_v5, %v7646_v62 }
 0x749   : > { %v3294_v58 = vadd.f32 %v3293_v25, %v3215_v20  ;;  %v3221_v25 = vmax.f32 %v3157_v37, 0.0  ;;  %v3877_v21 = vadd.f32 %v3876_v12, %v3818_v56  ;;  %v3163_v20 = vsub.f32 %v9454_v31, %v7646_v62 }
 0x74a   : > { %v3167_v37 = vsub.f32 %v9458_v47, %v7646_v62  ;;  %v3235_v11 = vmax.f32 %v3171_v35, 0.0 }
 0x74b   : > { %v3295_v52 = vadd.f32 %v3294_v58, %v3217_v9  ;;  %v3758_v58 = vsub.f32 %v9441_v24, %v7696_v32  ;;  %v3165_v9 = vsub.f32 %v9474_v48, %v7646_v62  ;;  %v3878_v50 = vadd.f32 %v3877_v21, %v3820_v60 }
 0x74d   : > { %v3296_v19 = vadd.f32 %v3295_v52, %v3219_v49  ;;  %v3227_v52 = vmax.f32 %v3163_v20, 0.0  ;;  %v9475_v49 = vld [vmem:[#allocation36_spill] sm:$0xff]  ;;  %v3822_v55 = vmax.f32 %v3758_v58, 0.0  ;;  %v3229_v24 = vmax.f32 %v3165_v9, 0.0  ;;  %v9480_v9 = vld [vmem:[#allocation38_spill] sm:$0xff] }
 0x74e   : > { %v3760_v56 = vsub.f32 %v9475_v49, %v7696_v32 }
 0x74f   : > { %v3297_v61 = vadd.f32 %v3296_v19, %v3221_v25  ;;  %v9476_v25 = vld [vmem:[#allocation28_spill] sm:$0xff]  ;;  %v3879_v6 = vadd.f32 %v3878_v50, %v3822_v55  ;;  %v3764_v50 = vsub.f32 %v9480_v9, %v7696_v32 }
 0x750   : > { %v3169_v19 = vsub.f32 %v9476_v25, %v7646_v62  ;;  %v3824_v20 = vmax.f32 %v3760_v56, 0.0 }
 0x751   : > { %v3298_v40 = vadd.f32 %v3297_v61, %v3223_v38  ;;  %v3231_v38 = vmax.f32 %v3167_v37, 0.0  ;;  %v9478_v61 = vld [vmem:[#allocation37_spill] sm:$0xff]  ;;  %v3828_v56 = vmax.f32 %v3764_v50, 0.0 }
 0x752   : > { %v3762_v60 = vsub.f32 %v9478_v61, %v7696_v32  ;;  %v3233_v49 = vmax.f32 %v3169_v19, 0.0  ;;  %v3880_v46 = vadd.f32 %v3879_v6, %v3824_v20  ;;  %v9482_v19 = vld [vmem:[#allocation40_spill] sm:$0xff] }
 0x753   : > { %v3299_v12 = vadd.f32 %v3298_v40, %v3225_v27  ;;  %v9479_v27 = vld [vmem:[#allocation78_spill] sm:$0xff]  ;;  %v3768_v6 = vsub.f32 %v9482_v19, %v7696_v32 }
 0x754   : > { %v3173_v40 = vsub.f32 %v9479_v27, %v7646_v62 }
 0x755   : > { %v3300_v57 = vadd.f32 %v3299_v12, %v3227_v52  ;;  %v3826_v52 = vmax.f32 %v3762_v60, 0.0  ;;  %v9483_v60 = vld [vmem:[#allocation41_spill] sm:$0xff] }
 0x756   : > { %v3237_v12 = vmax.f32 %v3173_v40, 0.0  ;;  %v3770_v20 = vsub.f32 %v9483_v60, %v7696_v32 }
 0x757   : > { %v3301_v21 = vadd.f32 %v3300_v57, %v3229_v24  ;;  %v3881_v37 = vadd.f32 %v3880_v46, %v3826_v52  ;;  %v9481_v57 = vld [vmem:[#allocation39_spill] sm:$0xff] }
 0x758   : > { %v3766_v61 = vsub.f32 %v9481_v57, %v7696_v32  ;;  %v3834_v52 = vmax.f32 %v3770_v20, 0.0 }
 0x759   : > { %v3302_v58 = vadd.f32 %v3301_v21, %v3231_v38  ;;  %v3882_v59 = vadd.f32 %v3881_v37, %v3828_v56 }
 0x75a   : > { %v3830_v35 = vmax.f32 %v3766_v61, 0.0 }
 0x75b   : > { %v3303_v17 = vadd.f32 %v3302_v58, %v3233_v49  ;;  %v9484_v58 = vld [vmem:[#allocation42_spill] sm:$0xff] }
 0x75c   : > { %v3883_v38 = vadd.f32 %v3882_v59, %v3830_v35  ;;  %v3772_v50 = vsub.f32 %v9484_v58, %v7696_v32 }
 0x75d   : > { %v3304_v55 = vadd.f32 %v3303_v17, %v3235_v11  ;;  %v3832_v17 = vmax.f32 %v3768_v6, 0.0 }
 0x75e   : > { %v3836_v61 = vmax.f32 %v3772_v50, 0.0 }
 0x75f   : > { %v3305_v24 = vadd.f32 %v3304_v55, %v3237_v12  ;;  %v3884_v46 = vadd.f32 %v3883_v38, %v3832_v17  ;;  %v9487_v38 = vld [vmem:[#allocation45_spill] sm:$0xff] }
 0x761   : > { %v3306_v36 = vrot.slane %v3305_v24, 4  ;;  %v3885_v12 = vadd.f32 %v3884_v46, %v3834_v52  ;;  %v9489_v52 = vld [vmem:[#allocation47_spill] sm:$0xff] }
 0x763   : > { %v3307_v27 = vadd.f32 %v3306_v36, %v3305_v24  ;;  %v9485_v36 = vld [vmem:[#allocation43_spill] sm:$0xff]  ;;  %v3886_v37 = vadd.f32 %v3885_v12, %v3836_v61  ;;  %v9486_v24 = vld [vmem:[#allocation44_spill] sm:$0xff]  ;;  %v3782_v12 = vsub.f32 %v9489_v52, %v7696_v32 }
 0x764   : > { %v3774_v55 = vsub.f32 %v9485_v36, %v7696_v32  ;;  %v3776_v56 = vsub.f32 %v9486_v24, %v7696_v32 }
 0x765   : > { %v3308_v49 = vrot.slane %v3307_v27, 2 }
 0x766   : > { %v3838_v6 = vmax.f32 %v3774_v55, 0.0  ;;  %v3840_v20 = vmax.f32 %v3776_v56, 0.0 }
 0x767   : > { %v3309_v21 = vadd.f32 %v3308_v49, %v3307_v27 }
 0x768   : > { %v3887_v49 = vadd.f32 %v3886_v37, %v3838_v6 }
 0x769   : > { %v3310_v11 = vrot.slane %v3309_v21, 1 }
 0x76b   : > { %v3311_v40 = vadd.f32 %v3310_v11, %v3309_v21  ;;  %v3778_v21 = vsub.f32 %v9487_v38, %v7696_v32  ;;  %v9488_v11 = vld [vmem:[#allocation46_spill] sm:$0xff] }
 0x76c   : > { %v3780_v46 = vsub.f32 %v9488_v11, %v7696_v32 }
 0x76d   : > { %vm3313_vm2 = vcmp.ge.f32.partialorder %v3311_v40, 1.0 }
 0x76e   : > { %v7758_v59 = vsel %vm3313_vm2, %v7646_v62, %v7634_v1  ;;  %v7762_v27 = vsel %vm3313_vm2, %v7638_v23, %v7646_v62  ;;  %v3888_v1 = vadd.f32 %v3887_v49, %v3840_v20  ;;  %v3842_v23 = vmax.f32 %v3778_v21, 0.0  ;;  %v9490_v49 = vld [vmem:[#allocation48_spill] sm:$0xff] }
 0x76f   : > { %v3319_v35 = vadd.f32 %v7762_v27, %v7758_v59  ;;  %v3844_v55 = vmax.f32 %v3780_v46, 0.0  ;;  %v3784_v21 = vsub.f32 %v9490_v49, %v7696_v32  ;;  %v3846_v20 = vmax.f32 %v3782_v12, 0.0 }
 0x770   : > { %v3889_v50 = vadd.f32 %v3888_v1, %v3842_v23 }
 0x771   : > { %v7770_v17 = vmul.f32 0.5, %v3319_v35 }
 0x772   : > { %v3890_v6 = vadd.f32 %v3889_v50, %v3844_v55  ;;  %v3848_v55 = vmax.f32 %v3784_v21, 0.0  ;;  %v9493_v21 = vld [vmem:[#allocation51_spill] sm:$0xff] }
 0x773   : > { %v3323_v62 = vsub.f32 %v9412_v18, %v7770_v17  ;;  %v3325_v40 = vsub.f32 %v9384_v4, %v7770_v17  ;;  %v3327_v61 = vsub.f32 %v9385_v33, %v7770_v17  ;;  %v3329_v35 = vsub.f32 %v9386_v51, %v7770_v17 }
 0x774   : > { %v3331_v1 = vsub.f32 %v9387_v39, %v7770_v17  ;;  %v3891_v52 = vadd.f32 %v3890_v6, %v3846_v20  ;;  %v3333_v46 = vsub.f32 %v9388_v34, %v7770_v17  ;;  %v3335_v12 = vsub.f32 %v9413_v63, %v7770_v17 }
 0x775   : > { %v3387_v37 = vmax.f32 %v3323_v62, 0.0  ;;  %v3389_v56 = vmax.f32 %v3325_v40, 0.0  ;;  %v3391_v23 = vmax.f32 %v3327_v61, 0.0  ;;  %v3393_v38 = vmax.f32 %v3329_v35, 0.0  ;;  %v9491_v40 = vld [vmem:[#allocation49_spill] sm:$0xff]  ;;  %v9492_v61 = vld [vmem:[#allocation50_spill] sm:$0xff] }
 0x776   : > { %v3786_v50 = vsub.f32 %v9491_v40, %v7696_v32  ;;  %v3395_v24 = vmax.f32 %v3331_v1, 0.0  ;;  %v3892_v58 = vadd.f32 %v3891_v52, %v3848_v55  ;;  %v3397_v49 = vmax.f32 %v3333_v46, 0.0  ;;  %v9494_v55 = vld [vmem:[#allocation53_spill] sm:$0xff] }
 0x777   : > { %v3487_v11 = vadd.f32 %v3389_v56, %v3387_v37  ;;  %v3788_v37 = vsub.f32 %v9492_v61, %v7696_v32  ;;  %v3399_v35 = vmax.f32 %v3335_v12, 0.0  ;;  %v3790_v1 = vsub.f32 %v9493_v21, %v7696_v32 }
 0x778   : > { %v3850_v56 = vmax.f32 %v3786_v50, 0.0  ;;  %v3339_v46 = vsub.f32 %v9415_v7, %v7770_v17  ;;  %v3794_v12 = vsub.f32 %v9494_v55, %v7696_v32 }
 0x779   : > { %v3488_v62 = vadd.f32 %v3487_v11, %v3391_v23  ;;  %v3337_v11 = vsub.f32 %v9414_v28, %v7770_v17 }
 0x77a   : > { %v3893_v20 = vadd.f32 %v3892_v58, %v3850_v56  ;;  %v3403_v50 = vmax.f32 %v3339_v46, 0.0 }
 0x77b   : > { %v3489_v36 = vadd.f32 %v3488_v62, %v3393_v38  ;;  %v3852_v38 = vmax.f32 %v3788_v37, 0.0  ;;  %v3854_v62 = vmax.f32 %v3790_v1, 0.0  ;;  %v3858_v1 = vmax.f32 %v3794_v12, 0.0 }
 0x77d   : > { %v3490_v60 = vadd.f32 %v3489_v36, %v3395_v24  ;;  %v3894_v23 = vadd.f32 %v3893_v20, %v3852_v38  ;;  %v3401_v36 = vmax.f32 %v3337_v11, 0.0  ;;  %v3792_v24 = vsub.f32 %v9463_v53, %v7696_v32 }
 0x77e   : > { %v3343_v20 = vsub.f32 %v9417_v15, %v7770_v17 }
 0x77f   : > { %v3491_v6 = vadd.f32 %v3490_v60, %v3397_v49  ;;  %v3895_v58 = vadd.f32 %v3894_v23, %v3854_v62  ;;  %v3341_v49 = vsub.f32 %v9416_v42, %v7770_v17  ;;  %v3856_v37 = vmax.f32 %v3792_v24, 0.0 }
 0x780   : > { %v3345_v23 = vsub.f32 %v9418_v0, %v7770_v17  ;;  %v3407_v46 = vmax.f32 %v3343_v20, 0.0 }
 0x781   : > { %v3492_v52 = vadd.f32 %v3491_v6, %v3399_v35  ;;  %v3896_v6 = vadd.f32 %v3895_v58, %v3856_v37  ;;  %v3405_v11 = vmax.f32 %v3341_v49, 0.0  ;;  %v3796_v35 = vsub.f32 %v9465_v44, %v7696_v32 }
 0x782   : > { %v3347_v58 = vsub.f32 %v9419_v22, %v7770_v17  ;;  %v3409_v49 = vmax.f32 %v3345_v23, 0.0  ;;  %v3353_v23 = vsub.f32 %v9363_v16, %v7770_v17 }
 0x783   : > { %v3493_v60 = vadd.f32 %v3492_v52, %v3401_v36  ;;  %v3897_v52 = vadd.f32 %v3896_v6, %v3858_v1  ;;  %v3798_v36 = vsub.f32 %v9466_v26, %v7696_v32  ;;  %v3860_v24 = vmax.f32 %v3796_v35, 0.0  ;;  %v9496_v1 = vld [vmem:[#allocation57_spill] sm:$0xff] }
 0x784   : > { %v3411_v20 = vmax.f32 %v3347_v58, 0.0  ;;  %v3802_v26 = vsub.f32 %v9496_v1, %v7696_v32  ;;  %v3355_v58 = vsub.f32 %v9420_v29, %v7770_v17 }
 0x785   : > { %v3494_v56 = vadd.f32 %v3493_v60, %v3403_v50  ;;  %v3898_v60 = vadd.f32 %v3897_v52, %v3860_v24  ;;  %v9495_v50 = vld [vmem:[#allocation56_spill] sm:$0xff]  ;;  %v3862_v12 = vmax.f32 %v3798_v36, 0.0  ;;  %v9497_v36 = vld [vmem:[#allocation58_spill] sm:$0xff] }
 0x786   : > { %v3800_v37 = vsub.f32 %v9495_v50, %v7696_v32  ;;  %v3417_v50 = vmax.f32 %v3353_v23, 0.0 }
 0x787   : > { %v3495_v38 = vadd.f32 %v3494_v56, %v3405_v11  ;;  %v3899_v6 = vadd.f32 %v3898_v60, %v3862_v12  ;;  %v3349_v11 = vsub.f32 %v9361_v3, %v7770_v17  ;;  %v3866_v60 = vmax.f32 %v3802_v26, 0.0 }
 0x788   : > { %v3864_v35 = vmax.f32 %v3800_v37, 0.0  ;;  %v3357_v37 = vsub.f32 %v9421_v54, %v7770_v17 }
 0x789   : > { %v3496_v62 = vadd.f32 %v3495_v38, %v3407_v46  ;;  %v3351_v38 = vsub.f32 %v9362_v30, %v7770_v17  ;;  %v3413_v24 = vmax.f32 %v3349_v11, 0.0  ;;  %v3359_v11 = vsub.f32 %v9422_v41, %v7770_v17 }
 0x78a   : > { %v3900_v46 = vadd.f32 %v3899_v6, %v3864_v35  ;;  %v9498_v6 = vld [vmem:[#allocation59_spill] sm:$0xff] }
 0x78b   : > { %v3497_v56 = vadd.f32 %v3496_v62, %v3409_v49  ;;  %v3804_v62 = vsub.f32 %v9497_v36, %v7696_v32  ;;  %v3415_v49 = vmax.f32 %v3351_v38, 0.0  ;;  %v3419_v36 = vmax.f32 %v3355_v58, 0.0 }
 0x78c   : > { %v3901_v1 = vadd.f32 %v3900_v46, %v3866_v60  ;;  %v3361_v38 = vsub.f32 %v9423_v13, %v7770_v17  ;;  %v3365_v58 = vsub.f32 %v9425_v45, %v7770_v17 }
 0x78d   : > { %v3498_v52 = vadd.f32 %v3497_v56, %v3411_v20  ;;  %v3806_v20 = vsub.f32 %v9498_v6, %v7696_v32  ;;  %v3868_v35 = vmax.f32 %v3804_v62, 0.0 }
 0x78f   : > { %v3499_v12 = vadd.f32 %v3498_v52, %v3413_v24  ;;  %v3902_v44 = vadd.f32 %v3901_v1, %v3868_v35  ;;  %v3421_v52 = vmax.f32 %v3357_v37, 0.0  ;;  %v9499_v24 = vld [vmem:[#allocation60_spill] sm:$0xff]  ;;  %v3870_v23 = vmax.f32 %v3806_v20, 0.0 }
 0x790   : > { %v3808_v60 = vsub.f32 %v9499_v24, %v7696_v32  ;;  %v3367_v37 = vsub.f32 %v9426_v8, %v7770_v17  ;;  %v3369_v20 = vsub.f32 %v9448_v2, %v7770_v17  ;;  %v3429_v24 = vmax.f32 %v3365_v58, 0.0 }
 0x791   : > { %v3500_v56 = vadd.f32 %v3499_v12, %v3415_v49  ;;  %v3363_v49 = vsub.f32 %v9424_v43, %v7770_v17  ;;  %v3423_v12 = vmax.f32 %v3359_v11, 0.0  ;;  %v3903_v6 = vadd.f32 %v3902_v44, %v3870_v23 }
 0x792   : > { %v3371_v44 = vsub.f32 %v9450_v14, %v7770_v17  ;;  %v3431_v11 = vmax.f32 %v3367_v37, 0.0  ;;  %v3377_v37 = vsub.f32 %v9474_v48, %v7770_v17 }
 0x793   : > { %v3501_v26 = vadd.f32 %v3500_v56, %v3417_v50  ;;  %v3425_v50 = vmax.f32 %v3361_v38, 0.0  ;;  %v3872_v56 = vmax.f32 %v3808_v60, 0.0  ;;  %v3373_v38 = vsub.f32 %v9452_v10, %v7770_v17 }
 0x794   : > { %v3433_v60 = vmax.f32 %v3369_v20, 0.0  ;;  %v3441_v20 = vmax.f32 %v3377_v37, 0.0 }
 0x795   : > { %v3502_v46 = vadd.f32 %v3501_v26, %v3419_v36  ;;  %v3427_v36 = vmax.f32 %v3363_v49, 0.0  ;;  %v3904_v26 = vadd.f32 %v3903_v6, %v3872_v56  ;;  %v3375_v6 = vsub.f32 %v9454_v31, %v7770_v17 }
 0x797   : > { %v3503_v62 = vadd.f32 %v3502_v46, %v3421_v52  ;;  %v3905_v46 = vrot.slane %v3904_v26, 4 }
 0x799   : > { %v3504_v1 = vadd.f32 %v3503_v62, %v3423_v12  ;;  %v3435_v12 = vmax.f32 %v3371_v44, 0.0  ;;  %v3906_v62 = vadd.f32 %v3905_v46, %v3904_v26  ;;  %v3381_v26 = vsub.f32 %v9476_v25, %v7770_v17 }
 0x79b   : > { %v3505_v35 = vadd.f32 %v3504_v1, %v3425_v50  ;;  %v3437_v50 = vmax.f32 %v3373_v38, 0.0  ;;  %v3907_v56 = vrot.slane %v3906_v62, 2 }
 0x79d   : > { %v3506_v55 = vadd.f32 %v3505_v35, %v3427_v36  ;;  %v3908_v36 = vadd.f32 %v3907_v56, %v3906_v62  ;;  %v3379_v35 = vsub.f32 %v9458_v47, %v7770_v17  ;;  %v9503_v56 = vld [vmem:[#allocation75_spill] sm:$0xff] }
 0x79f   : > { %v3507_v52 = vadd.f32 %v3506_v55, %v3429_v24  ;;  %v3439_v55 = vmax.f32 %v3375_v6, 0.0 }
 0x7a1   : > { %v3508_v23 = vadd.f32 %v3507_v52, %v3431_v11  ;;  %v3909_v11 = vrot.slane %v3908_v36, 1  ;;  %v3443_v52 = vmax.f32 %v3379_v35, 0.0 }
 0x7a3   : > { %v3509_v49 = vadd.f32 %v3508_v23, %v3433_v60  ;;  %v3910_v38 = vadd.f32 %v3909_v11, %v3908_v36  ;;  %v3383_v60 = vsub.f32 %v9477_v5, %v7770_v17  ;;  %v3445_v23 = vmax.f32 %v3381_v26, 0.0  ;;  %v9506_v26 = vld [vmem:[#allocation30_spill] sm:$0xff] }
 0x7a5   : > { %v3510_v58 = vadd.f32 %v3509_v49, %v3435_v12  ;;  %vm3948_vm3 = vcmp.ge.f32.partialorder %v3910_v38, 1.0  ;;  %v9500_v49 = vld [vmem:[#allocation78_spill] sm:$0xff]  ;;  %v3447_v6 = vmax.f32 %v3383_v60, 0.0 }
 0x7a6   : > { %v3385_v62 = vsub.f32 %v9500_v49, %v7770_v17  ;;  %v7872_v37 = vsel %vm3948_vm3, %v9503_v56, %v7696_v32 }
 0x7a7   : > { %v3511_v1 = vadd.f32 %v3510_v58, %v3437_v50  ;;  %v9501_v58 = vld [vmem:[#allocation14_spill] sm:$0xff]  ;;  %9504 = vst [vmem:[#allocation62_spill] sm:$0xff] %v7872_v37 }
 0x7a9   : > { %v3512_v24 = vadd.f32 %v3511_v1, %v3439_v55  ;;  %v7868_v1 = vsel %vm3948_vm3, %v7696_v32, %v9501_v58  ;;  %v3449_v55 = vmax.f32 %v3385_v62, 0.0  ;;  %v9507_v32 = vld [vmem:[#allocation31_spill] sm:$0xff] }
 0x7aa   : > { %9502 = vst [vmem:[#allocation76_spill] sm:$0xff] %v7868_v1 }
 0x7ab   : > { %v3513_v44 = vadd.f32 %v3512_v24, %v3441_v20  ;;  %v3954_v24 = vadd.f32 %v7872_v37, %v7868_v1 }
 0x7ad   : > { %v3514_v46 = vadd.f32 %v3513_v44, %v3443_v52  ;;  %v7876_v35 = vmul.f32 0.5, %v3954_v24  ;;  %v9505_v44 = vld [vmem:[#allocation29_spill] sm:$0xff] }
 0x7af   : > { %v3515_v12 = vadd.f32 %v3514_v46, %v3445_v23  ;;  %v3958_v11 = vsub.f32 %v9505_v44, %v7876_v35  ;;  %v3960_v52 = vsub.f32 %v9506_v26, %v7876_v35  ;;  %v9509_v44 = vld [vmem:[#allocation33_spill] sm:$0xff] }
 0x7b0   : > { %v3966_v37 = vsub.f32 %v9509_v44, %v7876_v35 }
 0x7b1   : > { %v3516_v50 = vadd.f32 %v3515_v12, %v3447_v6  ;;  %v4022_v38 = vmax.f32 %v3958_v11, 0.0  ;;  %v4024_v60 = vmax.f32 %v3960_v52, 0.0  ;;  %v3962_v12 = vsub.f32 %v9507_v32, %v7876_v35 }
 0x7b2   : > { %v4030_v52 = vmax.f32 %v3966_v37, 0.0 }
 0x7b3   : > { %v3517_v36 = vadd.f32 %v3516_v50, %v3449_v55  ;;  %v4086_v62 = vadd.f32 %v4024_v60, %v4022_v38  ;;  %v9508_v50 = vld [vmem:[#allocation32_spill] sm:$0xff]  ;;  %v4026_v56 = vmax.f32 %v3962_v12, 0.0 }
 0x7b4   : > { %v3964_v58 = vsub.f32 %v9508_v50, %v7876_v35 }
 0x7b5   : > { %v3518_v20 = vrot.slane %v3517_v36, 4  ;;  %v4087_v55 = vadd.f32 %v4086_v62, %v4026_v56  ;;  %v9512_v62 = vld [vmem:[#allocation36_spill] sm:$0xff]  ;;  %v9513_v56 = vld [vmem:[#allocation37_spill] sm:$0xff] }
 0x7b6   : > { %v4028_v1 = vmax.f32 %v3964_v58, 0.0 }
 0x7b7   : > { %v3519_v46 = vadd.f32 %v3518_v20, %v3517_v36  ;;  %v9510_v20 = vld [vmem:[#allocation34_spill] sm:$0xff] }
 0x7b8   : > { %v4088_v26 = vadd.f32 %v4087_v55, %v4028_v1  ;;  %v3968_v11 = vsub.f32 %v9510_v20, %v7876_v35  ;;  %v3974_v55 = vsub.f32 %v9513_v56, %v7876_v35 }
 0x7b9   : > { %v3520_v23 = vrot.slane %v3519_v46, 2 }
 0x7ba   : > { %v4089_v49 = vadd.f32 %v4088_v26, %v4030_v52  ;;  %v4032_v60 = vmax.f32 %v3968_v11, 0.0 }
 0x7bb   : > { %v3521_v6 = vadd.f32 %v3520_v23, %v3519_v46  ;;  %v9511_v46 = vld [vmem:[#allocation35_spill] sm:$0xff] }
 0x7bc   : > { %v3970_v38 = vsub.f32 %v9511_v46, %v7876_v35  ;;  %v4090_v1 = vadd.f32 %v4089_v49, %v4032_v60 }
 0x7bd   : > { %v3522_v24 = vrot.slane %v3521_v6, 1 }
 0x7be   : > { %v4034_v58 = vmax.f32 %v3970_v38, 0.0  ;;  %v3978_v38 = vsub.f32 %v9481_v57, %v7876_v35 }
 0x7bf   : > { %v3523_v36 = vadd.f32 %v3522_v24, %v3521_v6  ;;  %v3972_v6 = vsub.f32 %v9512_v62, %v7876_v35 }
 0x7c0   : > { %v4091_v26 = vadd.f32 %v4090_v1, %v4034_v58 }
 0x7c1   : > { %vm3525_vm4 = vcmp.ge.f32.partialorder %v3523_v36, 1.0  ;;  %v4036_v24 = vmax.f32 %v3972_v6, 0.0 }
 0x7c2   : > { %v7894_v23 = vsel %vm3525_vm4, %v7770_v17, %v7758_v59  ;;  %v7898_v12 = vsel %vm3525_vm4, %v7762_v27, %v7770_v17  ;;  %v3976_v27 = vsub.f32 %v9480_v9, %v7876_v35  ;;  %v4038_v17 = vmax.f32 %v3974_v55, 0.0 }
 0x7c3   : > { %v3531_v37 = vadd.f32 %v7898_v12, %v7894_v23  ;;  %v4092_v59 = vadd.f32 %v4091_v26, %v4036_v24  ;;  %v3980_v26 = vsub.f32 %v9482_v19, %v7876_v35  ;;  %v4042_v55 = vmax.f32 %v3978_v38, 0.0 }
 0x7c4   : > { %v4040_v60 = vmax.f32 %v3976_v27, 0.0  ;;  %v9514_v27 = vld [vmem:[#allocation41_spill] sm:$0xff] }
 0x7c5   : > { %v7906_v36 = vmul.f32 0.5, %v3531_v37  ;;  %v4093_v52 = vadd.f32 %v4092_v59, %v4038_v17 }
 0x7c7   : > { %v3535_v49 = vsub.f32 %v9412_v18, %v7906_v36  ;;  %v3537_v11 = vsub.f32 %v9384_v4, %v7906_v36  ;;  %v4094_v58 = vadd.f32 %v4093_v52, %v4040_v60  ;;  %v3539_v37 = vsub.f32 %v9385_v33, %v7906_v36 }
 0x7c8   : > { %v3541_v24 = vsub.f32 %v9386_v51, %v7906_v36  ;;  %v3543_v59 = vsub.f32 %v9387_v39, %v7906_v36  ;;  %v3545_v52 = vsub.f32 %v9388_v34, %v7906_v36  ;;  %v3547_v38 = vsub.f32 %v9413_v63, %v7906_v36 }
 0x7c9   : > { %v3599_v1 = vmax.f32 %v3535_v49, 0.0  ;;  %v3601_v6 = vmax.f32 %v3537_v11, 0.0  ;;  %v4095_v56 = vadd.f32 %v4094_v58, %v4042_v55  ;;  %v3603_v17 = vmax.f32 %v3539_v37, 0.0 }
 0x7ca   : > { %v3982_v49 = vsub.f32 %v9514_v27, %v7876_v35  ;;  %v4044_v11 = vmax.f32 %v3980_v26, 0.0  ;;  %v3605_v60 = vmax.f32 %v3541_v24, 0.0  ;;  %v3607_v62 = vmax.f32 %v3543_v59, 0.0 }
 0x7cb   : > { %v3699_v9 = vadd.f32 %v3601_v6, %v3599_v1  ;;  %v9515_v6 = vld [vmem:[#allocation42_spill] sm:$0xff]  ;;  %v3549_v37 = vsub.f32 %v9414_v28, %v7906_v36  ;;  %v3609_v27 = vmax.f32 %v3545_v52, 0.0  ;;  %v3551_v24 = vsub.f32 %v9415_v7, %v7906_v36 }
 0x7cc   : > { %v4096_v19 = vadd.f32 %v4095_v56, %v4044_v11  ;;  %v3984_v58 = vsub.f32 %v9515_v6, %v7876_v35  ;;  %v4046_v55 = vmax.f32 %v3982_v49, 0.0  ;;  %v3555_v52 = vsub.f32 %v9417_v15, %v7906_v36 }
 0x7cd   : > { %v3700_v57 = vadd.f32 %v3699_v9, %v3603_v17  ;;  %v3611_v9 = vmax.f32 %v3547_v38, 0.0  ;;  %v9516_v17 = vld [vmem:[#allocation43_spill] sm:$0xff] }
 0x7ce   : > { %v4097_v46 = vadd.f32 %v4096_v19, %v4046_v55  ;;  %v3986_v11 = vsub.f32 %v9516_v17, %v7876_v35  ;;  %v4048_v59 = vmax.f32 %v3984_v58, 0.0 }
 0x7cf   : > { %v3701_v1 = vadd.f32 %v3700_v57, %v3605_v60  ;;  %v3553_v57 = vsub.f32 %v9416_v42, %v7906_v36  ;;  %v3613_v60 = vmax.f32 %v3549_v37, 0.0  ;;  %v3559_v37 = vsub.f32 %v9419_v22, %v7906_v36 }
 0x7d0   : > { %v4098_v6 = vadd.f32 %v4097_v46, %v4048_v59  ;;  %v4050_v38 = vmax.f32 %v3986_v11, 0.0 }
 0x7d1   : > { %v3702_v26 = vadd.f32 %v3701_v1, %v3607_v62  ;;  %v3615_v62 = vmax.f32 %v3551_v24, 0.0  ;;  %v9517_v1 = vld [vmem:[#allocation44_spill] sm:$0xff] }
 0x7d2   : > { %v3988_v55 = vsub.f32 %v9517_v1, %v7876_v35  ;;  %v4099_v17 = vadd.f32 %v4098_v6, %v4050_v38 }
 0x7d3   : > { %v3703_v56 = vadd.f32 %v3702_v26, %v3609_v27  ;;  %v3557_v27 = vsub.f32 %v9418_v0, %v7906_v36  ;;  %v3617_v26 = vmax.f32 %v3553_v57, 0.0  ;;  %v3563_v57 = vsub.f32 %v9362_v30, %v7906_v36 }
 0x7d4   : > { %v4052_v24 = vmax.f32 %v3988_v55, 0.0 }
 0x7d5   : > { %v3704_v49 = vadd.f32 %v3703_v56, %v3611_v9  ;;  %v3619_v9 = vmax.f32 %v3555_v52, 0.0  ;;  %v9518_v56 = vld [vmem:[#allocation45_spill] sm:$0xff] }
 0x7d6   : > { %v3990_v59 = vsub.f32 %v9518_v56, %v7876_v35  ;;  %v4100_v1 = vadd.f32 %v4099_v17, %v4052_v24 }
 0x7d7   : > { %v3705_v19 = vadd.f32 %v3704_v49, %v3613_v60  ;;  %v3561_v60 = vsub.f32 %v9361_v3, %v7906_v36  ;;  %v3621_v49 = vmax.f32 %v3557_v27, 0.0  ;;  %v3567_v27 = vsub.f32 %v9420_v29, %v7906_v36 }
 0x7d8   : > { %v4054_v52 = vmax.f32 %v3990_v59, 0.0 }
 0x7d9   : > { %v3706_v58 = vadd.f32 %v3705_v19, %v3615_v62  ;;  %v3623_v62 = vmax.f32 %v3559_v37, 0.0  ;;  %v9519_v19 = vld [vmem:[#allocation46_spill] sm:$0xff] }
 0x7da   : > { %v3992_v38 = vsub.f32 %v9519_v19, %v7876_v35  ;;  %v4101_v56 = vadd.f32 %v4100_v1, %v4054_v52 }
 0x7db   : > { %v3707_v46 = vadd.f32 %v3706_v58, %v3617_v26  ;;  %v3565_v26 = vsub.f32 %v9363_v16, %v7906_v36  ;;  %v3625_v58 = vmax.f32 %v3561_v60, 0.0  ;;  %v3571_v60 = vsub.f32 %v9422_v41, %v7906_v36 }
 0x7dc   : > { %v4056_v37 = vmax.f32 %v3992_v38, 0.0 }
 0x7dd   : > { %v3708_v11 = vadd.f32 %v3707_v46, %v3619_v9  ;;  %v3627_v9 = vmax.f32 %v3563_v57, 0.0  ;;  %v9520_v46 = vld [vmem:[#allocation47_spill] sm:$0xff] }
 0x7de   : > { %v3994_v24 = vsub.f32 %v9520_v46, %v7876_v35  ;;  %v4102_v19 = vadd.f32 %v4101_v56, %v4056_v37  ;;  %v3577_v37 = vsub.f32 %v9425_v45, %v7906_v36 }
 0x7df   : > { %v3709_v6 = vadd.f32 %v3708_v11, %v3621_v49  ;;  %v3569_v49 = vsub.f32 %v9421_v54, %v7906_v36  ;;  %v3629_v11 = vmax.f32 %v3565_v26, 0.0  ;;  %v3575_v26 = vsub.f32 %v9424_v43, %v7906_v36 }
 0x7e0   : > { %v4058_v57 = vmax.f32 %v3994_v24, 0.0 }
 0x7e1   : > { %v3710_v55 = vadd.f32 %v3709_v6, %v3623_v62  ;;  %v3631_v62 = vmax.f32 %v3567_v27, 0.0  ;;  %v9521_v6 = vld [vmem:[#allocation48_spill] sm:$0xff] }
 0x7e2   : > { %v3996_v52 = vsub.f32 %v9521_v6, %v7876_v35  ;;  %v4103_v46 = vadd.f32 %v4102_v19, %v4058_v57  ;;  %v3581_v57 = vsub.f32 %v9448_v2, %v7906_v36 }
 0x7e3   : > { %v3711_v17 = vadd.f32 %v3710_v55, %v3625_v58  ;;  %v3573_v58 = vsub.f32 %v9423_v13, %v7906_v36  ;;  %v3633_v55 = vmax.f32 %v3569_v49, 0.0  ;;  %v3579_v49 = vsub.f32 %v9426_v8, %v7906_v36 }
 0x7e4   : > { %v4060_v27 = vmax.f32 %v3996_v52, 0.0 }
 0x7e5   : > { %v3712_v59 = vadd.f32 %v3711_v17, %v3627_v9  ;;  %v3635_v9 = vmax.f32 %v3571_v60, 0.0  ;;  %v3998_v17 = vsub.f32 %v9491_v40, %v7876_v35 }
 0x7e7   : > { %v3713_v1 = vadd.f32 %v3712_v59, %v3629_v11  ;;  %v3637_v11 = vmax.f32 %v3573_v58, 0.0  ;;  %v4104_v59 = vadd.f32 %v4103_v46, %v4060_v27  ;;  %v4062_v60 = vmax.f32 %v3998_v17, 0.0 }
 0x7e8   : > { %v3583_v58 = vsub.f32 %v9450_v14, %v7906_v36  ;;  %v3585_v27 = vsub.f32 %v9452_v10, %v7906_v36 }
 0x7e9   : > { %v3714_v38 = vadd.f32 %v3713_v1, %v3631_v62  ;;  %v3639_v62 = vmax.f32 %v3575_v26, 0.0  ;;  %v4000_v1 = vsub.f32 %v9492_v61, %v7876_v35 }
 0x7eb   : > { %v3715_v56 = vadd.f32 %v3714_v38, %v3633_v55  ;;  %v3641_v55 = vmax.f32 %v3577_v37, 0.0  ;;  %v4105_v38 = vadd.f32 %v4104_v59, %v4062_v60  ;;  %v4064_v26 = vmax.f32 %v4000_v1, 0.0 }
 0x7ec   : > { %v3587_v37 = vsub.f32 %v9454_v31, %v7906_v36  ;;  %v3589_v60 = vsub.f32 %v9474_v48, %v7906_v36 }
 0x7ed   : > { %v3716_v24 = vadd.f32 %v3715_v56, %v3635_v9  ;;  %v3643_v9 = vmax.f32 %v3579_v49, 0.0  ;;  %v4002_v56 = vsub.f32 %v9493_v21, %v7876_v35 }
 0x7ef   : > { %v3717_v19 = vadd.f32 %v3716_v24, %v3637_v11  ;;  %v3645_v11 = vmax.f32 %v3581_v57, 0.0  ;;  %v4106_v24 = vadd.f32 %v4105_v38, %v4064_v26  ;;  %v4066_v49 = vmax.f32 %v4002_v56, 0.0 }
 0x7f0   : > { %v3591_v57 = vsub.f32 %v9458_v47, %v7906_v36 }
 0x7f1   : > { %v3718_v52 = vadd.f32 %v3717_v19, %v3639_v62  ;;  %v3647_v62 = vmax.f32 %v3583_v58, 0.0  ;;  %v4004_v19 = vsub.f32 %v9463_v53, %v7876_v35 }
 0x7f3   : > { %v3719_v46 = vadd.f32 %v3718_v52, %v3641_v55  ;;  %v3649_v55 = vmax.f32 %v3585_v27, 0.0  ;;  %v4107_v52 = vadd.f32 %v4106_v24, %v4066_v49  ;;  %v4068_v58 = vmax.f32 %v4004_v19, 0.0 }
 0x7f4   : > { %v3595_v27 = vsub.f32 %v9477_v5, %v7906_v36 }
 0x7f5   : > { %v3720_v17 = vadd.f32 %v3719_v46, %v3643_v9  ;;  %v3651_v9 = vmax.f32 %v3587_v37, 0.0  ;;  %v9522_v46 = vld [vmem:[#allocation53_spill] sm:$0xff]  ;;  %v4108_v53 = vadd.f32 %v4107_v52, %v4068_v58 }
 0x7f6   : > { %v4006_v26 = vsub.f32 %v9522_v46, %v7876_v35  ;;  %v3659_v61 = vmax.f32 %v3595_v27, 0.0 }
 0x7f7   : > { %v3721_v59 = vadd.f32 %v3720_v17, %v3645_v11  ;;  %v3593_v11 = vsub.f32 %v9476_v25, %v7906_v36  ;;  %v3653_v17 = vmax.f32 %v3589_v60, 0.0  ;;  %v9525_v60 = vld [vmem:[#allocation55_spill] sm:$0xff] }
 0x7f8   : > { %v4070_v37 = vmax.f32 %v4006_v26, 0.0  ;;  %v4010_v52 = vsub.f32 %v9525_v60, %v7876_v35 }
 0x7f9   : > { %v3722_v1 = vadd.f32 %v3721_v59, %v3647_v62  ;;  %v3655_v62 = vmax.f32 %v3591_v57, 0.0  ;;  %v9523_v59 = vld [vmem:[#allocation54_spill] sm:$0xff]  ;;  %v3657_v46 = vmax.f32 %v3593_v11, 0.0  ;;  %v9527_v11 = vld [vmem:[#allocation57_spill] sm:$0xff] }
 0x7fa   : > { %v4008_v49 = vsub.f32 %v9523_v59, %v7876_v35  ;;  %v4109_v21 = vadd.f32 %v4108_v53, %v4070_v37  ;;  %v4074_v26 = vmax.f32 %v4010_v52, 0.0  ;;  %v4014_v53 = vsub.f32 %v9527_v11, %v7876_v35 }
 0x7fb   : > { %v3723_v38 = vadd.f32 %v3722_v1, %v3649_v55  ;;  %v9524_v55 = vld [vmem:[#allocation78_spill] sm:$0xff] }
 0x7fc   : > { %v3597_v1 = vsub.f32 %v9524_v55, %v7906_v36 }
 0x7fd   : > { %v3724_v56 = vadd.f32 %v3723_v38, %v3651_v9  ;;  %v4072_v9 = vmax.f32 %v4008_v49, 0.0  ;;  %v9528_v49 = vld [vmem:[#allocation58_spill] sm:$0xff] }
 0x7fe   : > { %v3661_v38 = vmax.f32 %v3597_v1, 0.0  ;;  %v4016_v37 = vsub.f32 %v9528_v49, %v7876_v35 }
 0x7ff   : > { %v3725_v24 = vadd.f32 %v3724_v56, %v3653_v17  ;;  %v4110_v57 = vadd.f32 %v4109_v21, %v4072_v9  ;;  %v9526_v56 = vld [vmem:[#allocation56_spill] sm:$0xff] }
 0x800   : > { %v4012_v59 = vsub.f32 %v9526_v56, %v7876_v35  ;;  %v4080_v9 = vmax.f32 %v4016_v37, 0.0 }
 0x801   : > { %v3726_v19 = vadd.f32 %v3725_v24, %v3655_v62  ;;  %v4111_v5 = vadd.f32 %v4110_v57, %v4074_v26 }
 0x802   : > { %v4076_v27 = vmax.f32 %v4012_v59, 0.0  ;;  %v9530_v59 = vld [vmem:[#allocation60_spill] sm:$0xff] }
 0x803   : > { %v3727_v40 = vadd.f32 %v3726_v19, %v3657_v46  ;;  %v9529_v19 = vld [vmem:[#allocation59_spill] sm:$0xff] }
 0x804   : > { %v4112_v62 = vadd.f32 %v4111_v5, %v4076_v27  ;;  %v4018_v52 = vsub.f32 %v9529_v19, %v7876_v35 }
 0x805   : > { %v3728_v58 = vadd.f32 %v3727_v40, %v3659_v61  ;;  %v4078_v40 = vmax.f32 %v4014_v53, 0.0 }
 0x807   : > { %v3729_v17 = vadd.f32 %v3728_v58, %v3661_v38  ;;  %v4113_v21 = vadd.f32 %v4112_v62, %v4078_v40  ;;  %v4082_v58 = vmax.f32 %v4018_v52, 0.0 }
 0x809   : > { %v3730_v6 = vrot.slane %v3729_v17, 4 }
 0x80b   : > { %v3731_v55 = vadd.f32 %v3730_v6, %v3729_v17  ;;  %v4114_v6 = vadd.f32 %v4113_v21, %v4080_v9 }
 0x80d   : > { %v3732_v46 = vrot.slane %v3731_v55, 2  ;;  %v4115_v57 = vadd.f32 %v4114_v6, %v4082_v58 }
 0x80f   : > { %v3733_v24 = vadd.f32 %v3732_v46, %v3731_v55  ;;  %v4020_v55 = vsub.f32 %v9530_v59, %v7876_v35 }
 0x811   : > { %v3734_v61 = vrot.slane %v3733_v24, 1  ;;  %v4084_v26 = vmax.f32 %v4020_v55, 0.0 }
 0x813   : > { %v3735_v1 = vadd.f32 %v3734_v61, %v3733_v24  ;;  %v4116_v53 = vadd.f32 %v4115_v57, %v4084_v26 }
 0x815   : > { %vm3737_vm5 = vcmp.ge.f32.partialorder %v3735_v1, 1.0  ;;  %v4117_v46 = vrot.slane %v4116_v53, 4 }
 0x816   : > { %v8018_v38 = vsel %vm3737_vm5, %v7906_v36, %v7894_v23  ;;  %v8022_v5 = vsel %vm3737_vm5, %v7898_v12, %v7906_v36 }
 0x817   : > { %v3743_v17 = vadd.f32 %v8022_v5, %v8018_v38  ;;  %v4118_v36 = vadd.f32 %v4117_v46, %v4116_v53 }
 0x819   : > { %v8028_v27 = vmul.f32 0.5, %v3743_v17  ;;  %v4119_v61 = vrot.slane %v4118_v36, 2 }
 0x81b   : > { %v3747_v23 = vsub.f32 %v9412_v18, %v8028_v27  ;;  %v3749_v12 = vsub.f32 %v9384_v4, %v8028_v27  ;;  %v3751_v62 = vsub.f32 %v9385_v33, %v8028_v27  ;;  %v3753_v40 = vsub.f32 %v9386_v51, %v8028_v27 }
 0x81c   : > { %v3755_v21 = vsub.f32 %v9387_v39, %v8028_v27  ;;  %v3757_v9 = vsub.f32 %v9388_v34, %v8028_v27  ;;  %v4120_v58 = vadd.f32 %v4119_v61, %v4118_v36  ;;  %v3759_v57 = vsub.f32 %v9413_v63, %v8028_v27 }
 0x81d   : > { %v3811_v24 = vmax.f32 %v3747_v23, 0.0  ;;  %v3813_v37 = vmax.f32 %v3749_v12, 0.0  ;;  %v3815_v1 = vmax.f32 %v3751_v62, 0.0  ;;  %v3817_v6 = vmax.f32 %v3753_v40, 0.0 }
 0x81e   : > { %v3819_v17 = vmax.f32 %v3755_v21, 0.0  ;;  %v3761_v53 = vsub.f32 %v9414_v28, %v8028_v27  ;;  %v3821_v46 = vmax.f32 %v3757_v9, 0.0  ;;  %v4121_v12 = vrot.slane %v4120_v58, 1 }
 0x81f   : > { %v3911_v52 = vadd.f32 %v3813_v37, %v3811_v24  ;;  %v3763_v62 = vsub.f32 %v9415_v7, %v8028_v27  ;;  %v3823_v24 = vmax.f32 %v3759_v57, 0.0  ;;  %v3765_v40 = vsub.f32 %v9416_v42, %v8028_v27 }
 0x820   : > { %v3825_v36 = vmax.f32 %v3761_v53, 0.0  ;;  %v3767_v21 = vsub.f32 %v9417_v15, %v8028_v27  ;;  %v3769_v9 = vsub.f32 %v9418_v0, %v8028_v27  ;;  %v3771_v57 = vsub.f32 %v9419_v22, %v8028_v27 }
 0x821   : > { %v3912_v55 = vadd.f32 %v3911_v52, %v3815_v1  ;;  %v4122_v1 = vadd.f32 %v4121_v12, %v4120_v58  ;;  %v3827_v52 = vmax.f32 %v3763_v62, 0.0  ;;  %v3773_v53 = vsub.f32 %v9361_v3, %v8028_v27  ;;  %v9531_v12 = vld [vmem:[#allocation76_spill] sm:$0xff] }
 0x822   : > { %v3833_v58 = vmax.f32 %v3769_v9, 0.0  ;;  %v3779_v9 = vsub.f32 %v9420_v29, %v8028_v27 }
 0x823   : > { %v3913_v26 = vadd.f32 %v3912_v55, %v3817_v6  ;;  %v3829_v55 = vmax.f32 %v3765_v40, 0.0  ;;  %vm4160_vm6 = vcmp.ge.f32.partialorder %v4122_v1, 1.0  ;;  %v3775_v40 = vsub.f32 %v9362_v30, %v8028_v27 }
 0x824   : > { %v8060_v62 = vsel %vm4160_vm6, %v7876_v35, %v9531_v12  ;;  %v3777_v1 = vsub.f32 %v9363_v16, %v8028_v27 }
 0x825   : > { %v3914_v23 = vadd.f32 %v3913_v26, %v3819_v17  ;;  %v3831_v26 = vmax.f32 %v3767_v21, 0.0  ;;  %9532 = vst [vmem:[#allocation63_spill] sm:$0xff] %v8060_v62  ;;  %v3837_v21 = vmax.f32 %v3773_v53, 0.0 }
 0x827   : > { %v3915_v37 = vadd.f32 %v3914_v23, %v3821_v46 }
 0x829   : > { %v3916_v61 = vadd.f32 %v3915_v37, %v3823_v24  ;;  %v9533_v24 = vld [vmem:[#allocation62_spill] sm:$0xff] }
 0x82a   : > { %v4164_v37 = vsel %vm4160_vm6, %v9533_v24, %v7876_v35  ;;  %v3781_v35 = vsub.f32 %v9421_v54, %v8028_v27 }
 0x82b   : > { %v3917_v6 = vadd.f32 %v3916_v61, %v3825_v36  ;;  %v3835_v36 = vmax.f32 %v3771_v57, 0.0  ;;  %v3783_v57 = vsub.f32 %v9422_v41, %v8028_v27 }
 0x82c   : > { %v3845_v24 = vmax.f32 %v3781_v35, 0.0  ;;  %v3791_v35 = vsub.f32 %v9426_v8, %v8028_v27 }
 0x82d   : > { %v3918_v17 = vadd.f32 %v3917_v6, %v3827_v52  ;;  %v4166_v6 = vadd.f32 %v4164_v37, %v8060_v62 }
 0x82f   : > { %v3919_v46 = vadd.f32 %v3918_v17, %v3829_v55  ;;  %v3839_v55 = vmax.f32 %v3775_v40, 0.0  ;;  %v8073_v12 = vmul.f32 0.5, %v4166_v6  ;;  %v9534_v40 = vld [vmem:[#allocation29_spill] sm:$0xff] }
 0x831   : > { %v3920_v23 = vadd.f32 %v3919_v46, %v3831_v26  ;;  %v3841_v26 = vmax.f32 %v3777_v1, 0.0  ;;  %v3787_v1 = vsub.f32 %v9424_v43, %v8028_v27 }
 0x833   : > { %v3921_v61 = vadd.f32 %v3920_v23, %v3833_v58  ;;  %v3843_v58 = vmax.f32 %v3779_v9, 0.0  ;;  %v3785_v23 = vsub.f32 %v9423_v13, %v8028_v27  ;;  %v3789_v9 = vsub.f32 %v9425_v45, %v8028_v27 }
 0x835   : > { %v3922_v52 = vadd.f32 %v3921_v61, %v3835_v36  ;;  %v4170_v36 = vsub.f32 %v9534_v40, %v8073_v12  ;;  %v9535_v61 = vld [vmem:[#allocation30_spill] sm:$0xff]  ;;  %v3793_v40 = vsub.f32 %v9448_v2, %v8028_v27 }
 0x837   : > { %v3923_v17 = vadd.f32 %v3922_v52, %v3837_v21  ;;  %v4172_v21 = vsub.f32 %v9535_v61, %v8073_v12  ;;  %v3847_v52 = vmax.f32 %v3783_v57, 0.0  ;;  %v4174_v61 = vsub.f32 %v9507_v32, %v8073_v12 }
 0x838   : > { %v3853_v57 = vmax.f32 %v3789_v9, 0.0  ;;  %v3799_v9 = vsub.f32 %v9454_v31, %v8028_v27 }
 0x839   : > { %v3924_v46 = vadd.f32 %v3923_v17, %v3839_v55  ;;  %v3849_v55 = vmax.f32 %v3785_v23, 0.0  ;;  %v3795_v23 = vsub.f32 %v9450_v14, %v8028_v27 }
 0x83b   : > { %v3925_v53 = vadd.f32 %v3924_v46, %v3841_v26  ;;  %v4234_v26 = vmax.f32 %v4170_v36, 0.0  ;;  %v4236_v46 = vmax.f32 %v4172_v21, 0.0  ;;  %v4176_v21 = vsub.f32 %v9508_v50, %v8073_v12 }
 0x83d   : > { %v3926_v37 = vadd.f32 %v3925_v53, %v3843_v58  ;;  %v3851_v58 = vmax.f32 %v3787_v1, 0.0  ;;  %v3797_v1 = vsub.f32 %v9452_v10, %v8028_v27 }
 0x83f   : > { %v3927_v6 = vadd.f32 %v3926_v37, %v3845_v24  ;;  %v4298_v37 = vadd.f32 %v4236_v46, %v4234_v26  ;;  %v4178_v46 = vsub.f32 %v9509_v44, %v8073_v12  ;;  %v9536_v44 = vld [vmem:[#allocation77_spill] sm:$0xff] }
 0x841   : > { %v3928_v17 = vadd.f32 %v3927_v6, %v3847_v52  ;;  %v3855_v52 = vmax.f32 %v3791_v35, 0.0  ;;  %v4238_v6 = vmax.f32 %v4174_v61, 0.0  ;;  %v4240_v35 = vmax.f32 %v4176_v21, 0.0 }
 0x843   : > { %v3929_v53 = vadd.f32 %v3928_v17, %v3849_v55  ;;  %v3857_v55 = vmax.f32 %v3793_v40, 0.0  ;;  %v4299_v32 = vadd.f32 %v4298_v37, %v4238_v6  ;;  %v3803_v40 = vsub.f32 %v9458_v47, %v8028_v27 }
 0x844   : > { %v3805_v6 = vsub.f32 %v9476_v25, %v8028_v27 }
 0x845   : > { %v3930_v24 = vadd.f32 %v3929_v53, %v3851_v58  ;;  %v3859_v58 = vmax.f32 %v3795_v23, 0.0  ;;  %v3801_v53 = vsub.f32 %v9474_v48, %v8028_v27  ;;  %v4242_v23 = vmax.f32 %v4178_v46, 0.0 }
 0x847   : > { %v3931_v36 = vadd.f32 %v3930_v24, %v3853_v57  ;;  %v3861_v57 = vmax.f32 %v3797_v1, 0.0  ;;  %v4300_v24 = vadd.f32 %v4299_v32, %v4240_v35  ;;  %v3807_v1 = vsub.f32 %v9536_v44, %v8028_v27 }
 0x849   : > { %v3932_v17 = vadd.f32 %v3931_v36, %v3855_v52  ;;  %v3863_v52 = vmax.f32 %v3799_v9, 0.0  ;;  %v4180_v36 = vsub.f32 %v9510_v20, %v8073_v12  ;;  %v3869_v20 = vmax.f32 %v3805_v6, 0.0  ;;  %v9541_v6 = vld [vmem:[#allocation38_spill] sm:$0xff] }
 0x84a   : > { %v3871_v62 = vmax.f32 %v3807_v1, 0.0 }
 0x84b   : > { %v3933_v26 = vadd.f32 %v3932_v17, %v3857_v55  ;;  %v3865_v55 = vmax.f32 %v3801_v53, 0.0  ;;  %v4301_v17 = vadd.f32 %v4300_v24, %v4242_v23  ;;  %v4244_v9 = vmax.f32 %v4180_v36, 0.0  ;;  %v9539_v53 = vld [vmem:[#allocation36_spill] sm:$0xff] }
 0x84c   : > { %v4184_v24 = vsub.f32 %v9539_v53, %v8073_v12 }
 0x84d   : > { %v3934_v61 = vadd.f32 %v3933_v26, %v3859_v58  ;;  %v3867_v58 = vmax.f32 %v3803_v40, 0.0  ;;  %v9537_v26 = vld [vmem:[#allocation35_spill] sm:$0xff]  ;;  %v4302_v50 = vadd.f32 %v4301_v17, %v4244_v9  ;;  %v4188_v17 = vsub.f32 %v9541_v6, %v8073_v12 }
 0x84e   : > { %v4182_v35 = vsub.f32 %v9537_v26, %v8073_v12  ;;  %v4248_v36 = vmax.f32 %v4184_v24, 0.0 }
 0x84f   : > { %v3935_v37 = vadd.f32 %v3934_v61, %v3861_v57  ;;  %v9538_v57 = vld [vmem:[#allocation78_spill] sm:$0xff] }
 0x850   : > { %v3809_v61 = vsub.f32 %v9538_v57, %v8028_v27 }
 0x851   : > { %v3936_v21 = vadd.f32 %v3935_v37, %v3863_v52  ;;  %v4246_v52 = vmax.f32 %v4182_v35, 0.0  ;;  %v9542_v35 = vld [vmem:[#allocation39_spill] sm:$0xff] }
 0x852   : > { %v3873_v37 = vmax.f32 %v3809_v61, 0.0  ;;  %v4190_v9 = vsub.f32 %v9542_v35, %v8073_v12 }
 0x853   : > { %v3937_v32 = vadd.f32 %v3936_v21, %v3865_v55  ;;  %v4303_v40 = vadd.f32 %v4302_v50, %v4246_v52  ;;  %v9540_v21 = vld [vmem:[#allocation37_spill] sm:$0xff] }
 0x854   : > { %v4186_v26 = vsub.f32 %v9540_v21, %v8073_v12  ;;  %v4254_v52 = vmax.f32 %v4190_v9, 0.0 }
 0x855   : > { %v3938_v46 = vadd.f32 %v3937_v32, %v3867_v58  ;;  %v4304_v44 = vadd.f32 %v4303_v40, %v4248_v36  ;;  %v9545_v36 = vld [vmem:[#allocation42_spill] sm:$0xff] }
 0x856   : > { %v4250_v1 = vmax.f32 %v4186_v26, 0.0  ;;  %v9544_v26 = vld [vmem:[#allocation41_spill] sm:$0xff] }
 0x857   : > { %v3939_v59 = vadd.f32 %v3938_v46, %v3869_v20  ;;  %v9543_v46 = vld [vmem:[#allocation40_spill] sm:$0xff] }
 0x858   : > { %v4305_v58 = vadd.f32 %v4304_v44, %v4250_v1  ;;  %v4192_v24 = vsub.f32 %v9543_v46, %v8073_v12 }
 0x859   : > { %v3940_v23 = vadd.f32 %v3939_v59, %v3871_v62  ;;  %v4252_v59 = vmax.f32 %v4188_v17, 0.0  ;;  %v4196_v17 = vsub.f32 %v9545_v36, %v8073_v12 }
 0x85b   : > { %v3941_v55 = vadd.f32 %v3940_v23, %v3873_v37  ;;  %v4306_v62 = vadd.f32 %v4305_v58, %v4252_v59  ;;  %v4256_v23 = vmax.f32 %v4192_v24, 0.0 }
 0x85d   : > { %v3942_v19 = vrot.slane %v3941_v55, 4 }
 0x85f   : > { %v3943_v57 = vadd.f32 %v3942_v19, %v3941_v55  ;;  %v4307_v19 = vadd.f32 %v4306_v62, %v4254_v52 }
 0x861   : > { %v3944_v20 = vrot.slane %v3943_v57, 2  ;;  %v4308_v40 = vadd.f32 %v4307_v19, %v4256_v23  ;;  %v9548_v23 = vld [vmem:[#allocation45_spill] sm:$0xff] }
 0x863   : > { %v3945_v32 = vadd.f32 %v3944_v20, %v3943_v57  ;;  %v4194_v57 = vsub.f32 %v9544_v26, %v8073_v12 }
 0x865   : > { %v3946_v50 = vrot.slane %v3945_v32, 1  ;;  %v4258_v1 = vmax.f32 %v4194_v57, 0.0 }
 0x867   : > { %v3947_v61 = vadd.f32 %v3946_v50, %v3945_v32  ;;  %v4309_v20 = vadd.f32 %v4308_v40, %v4258_v1  ;;  %v9547_v50 = vld [vmem:[#allocation44_spill] sm:$0xff]  ;;  %v4202_v40 = vsub.f32 %v9548_v23, %v8073_v12 }
 0x868   : > { %v4200_v62 = vsub.f32 %v9547_v50, %v8073_v12 }
 0x869   : > { %vm3949_vm7 = vcmp.ge.f32.partialorder %v3947_v61, 1.0 }
 0x86a   : > { %v8129_v37 = vsel %vm3949_vm7, %v8028_v27, %v8018_v38  ;;  %v8133_v44 = vsel %vm3949_vm7, %v8022_v5, %v8028_v27  ;;  %v9546_v38 = vld [vmem:[#allocation43_spill] sm:$0xff]  ;;  %v4260_v5 = vmax.f32 %v4196_v17, 0.0 }
 0x86b   : > { %v3955_v55 = vadd.f32 %v8133_v44, %v8129_v37  ;;  %v4198_v32 = vsub.f32 %v9546_v38, %v8073_v12 }
 0x86c   : > { %v4310_v27 = vadd.f32 %v4309_v20, %v4260_v5 }
 0x86d   : > { %v8141_v58 = vmul.f32 0.5, %v3955_v55  ;;  %v4262_v61 = vmax.f32 %v4198_v32, 0.0  ;;  %v4264_v55 = vmax.f32 %v4200_v62, 0.0  ;;  %v9549_v32 = vld [vmem:[#allocation46_spill] sm:$0xff] }
 0x86f   : > { %v3959_v9 = vsub.f32 %v9412_v18, %v8141_v58  ;;  %v3961_v59 = vsub.f32 %v9384_v4, %v8141_v58  ;;  %v4311_v24 = vadd.f32 %v4310_v27, %v4262_v61  ;;  %v3963_v52 = vsub.f32 %v9385_v33, %v8141_v58 }
 0x870   : > { %v3965_v17 = vsub.f32 %v9386_v51, %v8141_v58  ;;  %v3967_v20 = vsub.f32 %v9387_v39, %v8141_v58  ;;  %v4204_v27 = vsub.f32 %v9549_v32, %v8073_v12  ;;  %v4266_v61 = vmax.f32 %v4202_v40, 0.0 }
 0x871   : > { %v4023_v19 = vmax.f32 %v3959_v9, 0.0  ;;  %v4025_v57 = vmax.f32 %v3961_v59, 0.0  ;;  %v4312_v1 = vadd.f32 %v4311_v24, %v4264_v55  ;;  %v4027_v5 = vmax.f32 %v3963_v52, 0.0  ;;  %v9550_v55 = vld [vmem:[#allocation47_spill] sm:$0xff] }
 0x872   : > { %v3969_v9 = vsub.f32 %v9388_v34, %v8141_v58  ;;  %v4029_v59 = vmax.f32 %v3965_v17, 0.0  ;;  %v3971_v62 = vsub.f32 %v9413_v63, %v8141_v58  ;;  %v4031_v36 = vmax.f32 %v3967_v20, 0.0 }
 0x873   : > { %v4123_v50 = vadd.f32 %v4025_v57, %v4023_v19  ;;  %v4313_v23 = vadd.f32 %v4312_v1, %v4266_v61  ;;  %v4206_v26 = vsub.f32 %v9550_v55, %v8073_v12  ;;  %v4268_v52 = vmax.f32 %v4204_v27, 0.0 }
 0x874   : > { %v3973_v19 = vsub.f32 %v9414_v28, %v8141_v58  ;;  %v4033_v57 = vmax.f32 %v3969_v9, 0.0  ;;  %v3975_v17 = vsub.f32 %v9415_v7, %v8141_v58  ;;  %v3979_v9 = vsub.f32 %v9417_v15, %v8141_v58 }
 0x875   : > { %v4124_v38 = vadd.f32 %v4123_v50, %v4027_v5  ;;  %v4314_v32 = vadd.f32 %v4313_v23, %v4268_v52  ;;  %v4035_v50 = vmax.f32 %v3971_v62, 0.0  ;;  %v9551_v5 = vld [vmem:[#allocation48_spill] sm:$0xff]  ;;  %v4270_v20 = vmax.f32 %v4206_v26, 0.0 }
 0x876   : > { %v4208_v61 = vsub.f32 %v9551_v5, %v8073_v12 }
 0x877   : > { %v4125_v24 = vadd.f32 %v4124_v38, %v4029_v59  ;;  %v3977_v38 = vsub.f32 %v9416_v42, %v8141_v58  ;;  %v4037_v59 = vmax.f32 %v3973_v19, 0.0  ;;  %v4315_v55 = vadd.f32 %v4314_v32, %v4270_v20 }
 0x878   : > { %v4272_v62 = vmax.f32 %v4208_v61, 0.0  ;;  %v3983_v19 = vsub.f32 %v9419_v22, %v8141_v58 }
 0x879   : > { %v4126_v40 = vadd.f32 %v4125_v24, %v4031_v36  ;;  %v4039_v36 = vmax.f32 %v3975_v17, 0.0  ;;  %v9552_v24 = vld [vmem:[#allocation49_spill] sm:$0xff] }
 0x87a   : > { %v4210_v52 = vsub.f32 %v9552_v24, %v8073_v12  ;;  %v4316_v5 = vadd.f32 %v4315_v55, %v4272_v62 }
 0x87b   : > { %v4127_v1 = vadd.f32 %v4126_v40, %v4033_v57  ;;  %v3981_v57 = vsub.f32 %v9418_v0, %v8141_v58  ;;  %v4041_v40 = vmax.f32 %v3977_v38, 0.0  ;;  %v3987_v38 = vsub.f32 %v9362_v30, %v8141_v58 }
 0x87c   : > { %v4274_v17 = vmax.f32 %v4210_v52, 0.0 }
 0x87d   : > { %v4128_v27 = vadd.f32 %v4127_v1, %v4035_v50  ;;  %v4043_v50 = vmax.f32 %v3979_v9, 0.0  ;;  %v9553_v1 = vld [vmem:[#allocation50_spill] sm:$0xff] }
 0x87e   : > { %v4212_v20 = vsub.f32 %v9553_v1, %v8073_v12  ;;  %v4317_v24 = vadd.f32 %v4316_v5, %v4274_v17 }
 0x87f   : > { %v4129_v23 = vadd.f32 %v4128_v27, %v4037_v59  ;;  %v3985_v59 = vsub.f32 %v9361_v3, %v8141_v58  ;;  %v4045_v27 = vmax.f32 %v3981_v57, 0.0  ;;  %v3991_v57 = vsub.f32 %v9420_v29, %v8141_v58 }
 0x880   : > { %v4276_v9 = vmax.f32 %v4212_v20, 0.0 }
 0x881   : > { %v4130_v26 = vadd.f32 %v4129_v23, %v4039_v36  ;;  %v4047_v36 = vmax.f32 %v3983_v19, 0.0  ;;  %v9554_v23 = vld [vmem:[#allocation51_spill] sm:$0xff] }
 0x882   : > { %v4214_v62 = vsub.f32 %v9554_v23, %v8073_v12  ;;  %v4318_v1 = vadd.f32 %v4317_v24, %v4276_v9 }
 0x883   : > { %v4131_v32 = vadd.f32 %v4130_v26, %v4041_v40  ;;  %v3989_v40 = vsub.f32 %v9363_v16, %v8141_v58  ;;  %v4049_v26 = vmax.f32 %v3985_v59, 0.0  ;;  %v3995_v59 = vsub.f32 %v9422_v41, %v8141_v58 }
 0x884   : > { %v4278_v19 = vmax.f32 %v4214_v62, 0.0 }
 0x885   : > { %v4132_v61 = vadd.f32 %v4131_v32, %v4043_v50  ;;  %v4051_v50 = vmax.f32 %v3987_v38, 0.0  ;;  %v9555_v32 = vld [vmem:[#allocation52_spill] sm:$0xff] }
 0x886   : > { %v4216_v17 = vsub.f32 %v9555_v32, %v8073_v12  ;;  %v4319_v23 = vadd.f32 %v4318_v1, %v4278_v19 }
 0x887   : > { %v4133_v55 = vadd.f32 %v4132_v61, %v4045_v27  ;;  %v3993_v27 = vsub.f32 %v9421_v54, %v8141_v58  ;;  %v4053_v61 = vmax.f32 %v3989_v40, 0.0  ;;  %v3999_v40 = vsub.f32 %v9424_v43, %v8141_v58 }
 0x888   : > { %v4280_v38 = vmax.f32 %v4216_v17, 0.0 }
 0x889   : > { %v4134_v52 = vadd.f32 %v4133_v55, %v4047_v36  ;;  %v4055_v36 = vmax.f32 %v3991_v57, 0.0  ;;  %v9556_v55 = vld [vmem:[#allocation53_spill] sm:$0xff] }
 0x88a   : > { %v4218_v9 = vsub.f32 %v9556_v55, %v8073_v12  ;;  %v4320_v32 = vadd.f32 %v4319_v23, %v4280_v38  ;;  %v4005_v38 = vsub.f32 %v9448_v2, %v8141_v58 }
 0x88b   : > { %v4135_v5 = vadd.f32 %v4134_v52, %v4049_v26  ;;  %v3997_v26 = vsub.f32 %v9423_v13, %v8141_v58  ;;  %v4057_v52 = vmax.f32 %v3993_v27, 0.0  ;;  %v4003_v27 = vsub.f32 %v9426_v8, %v8141_v58 }
 0x88c   : > { %v4282_v57 = vmax.f32 %v4218_v9, 0.0 }
 0x88d   : > { %v4136_v20 = vadd.f32 %v4135_v5, %v4051_v50  ;;  %v4059_v50 = vmax.f32 %v3995_v59, 0.0  ;;  %v9557_v5 = vld [vmem:[#allocation54_spill] sm:$0xff] }
 0x88e   : > { %v4220_v19 = vsub.f32 %v9557_v5, %v8073_v12  ;;  %v4321_v55 = vadd.f32 %v4320_v32, %v4282_v57  ;;  %v4009_v57 = vsub.f32 %v9452_v10, %v8141_v58 }
 0x88f   : > { %v4137_v24 = vadd.f32 %v4136_v20, %v4053_v61  ;;  %v4001_v61 = vsub.f32 %v9425_v45, %v8141_v58  ;;  %v4061_v20 = vmax.f32 %v3997_v26, 0.0  ;;  %v4007_v26 = vsub.f32 %v9450_v14, %v8141_v58 }
 0x890   : > { %v4284_v59 = vmax.f32 %v4220_v19, 0.0 }
 0x891   : > { %v4138_v62 = vadd.f32 %v4137_v24, %v4055_v36  ;;  %v4063_v36 = vmax.f32 %v3999_v40, 0.0  ;;  %v4222_v24 = vsub.f32 %v9525_v60, %v8073_v12 }
 0x893   : > { %v4139_v1 = vadd.f32 %v4138_v62, %v4057_v52  ;;  %v4065_v52 = vmax.f32 %v4001_v61, 0.0  ;;  %v4322_v62 = vadd.f32 %v4321_v55, %v4284_v59  ;;  %v4286_v40 = vmax.f32 %v4222_v24, 0.0 }
 0x894   : > { %v4011_v61 = vsub.f32 %v9454_v31, %v8141_v58  ;;  %v4013_v59 = vsub.f32 %v9474_v48, %v8141_v58 }
 0x895   : > { %v4140_v17 = vadd.f32 %v4139_v1, %v4059_v50  ;;  %v4067_v50 = vmax.f32 %v4003_v27, 0.0  ;;  %v4224_v1 = vsub.f32 %v9526_v56, %v8073_v12 }
 0x897   : > { %v4141_v23 = vadd.f32 %v4140_v17, %v4061_v20  ;;  %v4069_v20 = vmax.f32 %v4005_v38, 0.0  ;;  %v4323_v17 = vadd.f32 %v4322_v62, %v4286_v40  ;;  %v4288_v27 = vmax.f32 %v4224_v1, 0.0 }
 0x898   : > { %v4015_v38 = vsub.f32 %v9458_v47, %v8141_v58  ;;  %v4017_v40 = vsub.f32 %v9476_v25, %v8141_v58 }
 0x899   : > { %v4142_v9 = vadd.f32 %v4141_v23, %v4063_v36  ;;  %v4071_v36 = vmax.f32 %v4007_v26, 0.0  ;;  %v4226_v23 = vsub.f32 %v9527_v11, %v8073_v12  ;;  %v9558_v11 = vld [vmem:[#allocation77_spill] sm:$0xff] }
 0x89b   : > { %v4143_v32 = vadd.f32 %v4142_v9, %v4065_v52  ;;  %v4073_v52 = vmax.f32 %v4009_v57, 0.0  ;;  %v4324_v9 = vadd.f32 %v4323_v17, %v4288_v27  ;;  %v4290_v26 = vmax.f32 %v4226_v23, 0.0 }
 0x89c   : > { %v4019_v57 = vsub.f32 %v9558_v11, %v8141_v58 }
 0x89d   : > { %v4144_v19 = vadd.f32 %v4143_v32, %v4067_v50  ;;  %v4075_v50 = vmax.f32 %v4011_v61, 0.0  ;;  %v4228_v32 = vsub.f32 %v9528_v49, %v8073_v12  ;;  %v4081_v49 = vmax.f32 %v4017_v40, 0.0 }
 0x89e   : > { %v4083_v60 = vmax.f32 %v4019_v57, 0.0 }
 0x89f   : > { %v4145_v55 = vadd.f32 %v4144_v19, %v4069_v20  ;;  %v4077_v20 = vmax.f32 %v4013_v59, 0.0  ;;  %v4325_v19 = vadd.f32 %v4324_v9, %v4290_v26  ;;  %v4292_v61 = vmax.f32 %v4228_v32, 0.0  ;;  %v9561_v59 = vld [vmem:[#allocation60_spill] sm:$0xff] }
 0x8a0   : > { %v4232_v9 = vsub.f32 %v9561_v59, %v8073_v12 }
 0x8a1   : > { %v4146_v24 = vadd.f32 %v4145_v55, %v4071_v36  ;;  %v4079_v36 = vmax.f32 %v4015_v38, 0.0  ;;  %v9559_v55 = vld [vmem:[#allocation59_spill] sm:$0xff]  ;;  %v4326_v56 = vadd.f32 %v4325_v19, %v4292_v61 }
 0x8a2   : > { %v4230_v27 = vsub.f32 %v9559_v55, %v8073_v12 }
 0x8a3   : > { %v4147_v62 = vadd.f32 %v4146_v24, %v4073_v52  ;;  %v9560_v52 = vld [vmem:[#allocation78_spill] sm:$0xff] }
 0x8a4   : > { %v4021_v24 = vsub.f32 %v9560_v52, %v8141_v58 }
 0x8a5   : > { %v4148_v1 = vadd.f32 %v4147_v62, %v4075_v50  ;;  %v4294_v50 = vmax.f32 %v4230_v27, 0.0 }
 0x8a6   : > { %v4085_v62 = vmax.f32 %v4021_v24, 0.0 }
 0x8a7   : > { %v4149_v17 = vadd.f32 %v4148_v1, %v4077_v20  ;;  %v4327_v38 = vadd.f32 %v4326_v56, %v4294_v50  ;;  %v4296_v1 = vmax.f32 %v4232_v9, 0.0  ;;  %v9563_v50 = vld [vmem:[#allocation29_spill] sm:$0xff] }
 0x8a9   : > { %v4150_v23 = vadd.f32 %v4149_v17, %v4079_v36  ;;  %v4328_v55 = vadd.f32 %v4327_v38, %v4296_v1 }
 0x8ab   : > { %v4151_v5 = vadd.f32 %v4150_v23, %v4081_v49  ;;  %v4329_v47 = vrot.slane %v4328_v55, 4 }
 0x8ad   : > { %v4152_v26 = vadd.f32 %v4151_v5, %v4083_v60  ;;  %v4330_v36 = vadd.f32 %v4329_v47, %v4328_v55 }
 0x8af   : > { %v4153_v20 = vadd.f32 %v4152_v26, %v4085_v62  ;;  %v4331_v49 = vrot.slane %v4330_v36, 2 }
 0x8b1   : > { %v4154_v11 = vrot.slane %v4153_v20, 4  ;;  %v4332_v56 = vadd.f32 %v4331_v49, %v4330_v36 }
 0x8b3   : > { %v4155_v32 = vadd.f32 %v4154_v11, %v4153_v20  ;;  %v4333_v17 = vrot.slane %v4332_v56, 1  ;;  %v9564_v20 = vld [vmem:[#allocation30_spill] sm:$0xff] }
 0x8b5   : > { %v4156_v25 = vrot.slane %v4155_v32, 2  ;;  %v4334_v27 = vadd.f32 %v4333_v17, %v4332_v56 }
 0x8b7   : > { %v4157_v52 = vadd.f32 %v4156_v25, %v4155_v32  ;;  %vm4372_vm9 = vcmp.ge.f32.partialorder %v4334_v27, 1.0 }
 0x8b9   : > { %v4158_v40 = vrot.slane %v4157_v52, 1 }
 0x8bb   : > { %v4159_v19 = vadd.f32 %v4158_v40, %v4157_v52  ;;  %v9565_v40 = vmov 0.0  }
 0x8bd   : > { %vm4161_vm8 = vcmp.ge.f32.partialorder %v4159_v19, 1.0 }
 0x8be   : > { %v8245_v57 = vsel %vm4161_vm8, %v8141_v58, %v8129_v37  ;;  %v4165_v60 = vsel %vm4161_vm8, %v8133_v44, %v8141_v58  ;;  %v9562_v58 = vld [vmem:[#allocation63_spill] sm:$0xff] }
 0x8bf   : > { %v4167_v5 = vadd.f32 %v4165_v60, %v8245_v57  ;;  %v8262_v52 = vsel %vm4372_vm9, %v8073_v12, %v9562_v58 }
 0x8c0   : > { %vm4376_vm10 = vcmp.gt.f32.partialorder %v9563_v50, %v8262_v52  ;;  %vm4378_vm11 = vcmp.gt.f32.partialorder %v9564_v20, %v8262_v52  ;;  %vm4390_vm1 = vcmp.gt.f32.partialorder %v9539_v53, %v8262_v52  ;;  %vm4392_vm2 = vcmp.gt.f32.partialorder %v9540_v21, %v8262_v52 }
 0x8c1   : > { %v8250_v11 = vmul.f32 0.5, %v4167_v5  ;;  %v5245_v36 = vsel %vm4376_vm10, 1.0, %v9565_v40  ;;  %v5247_v19 = vsel %vm4378_vm11, 1.0, %v9565_v40  ;;  %vm4394_vm3 = vcmp.gt.f32.partialorder %v9541_v6, %v8262_v52 }
 0x8c2   : > { %vm4396_vm4 = vcmp.gt.f32.partialorder %v9542_v35, %v8262_v52  ;;  %vm4398_vm5 = vcmp.gt.f32.partialorder %v9543_v46, %v8262_v52 }
 0x8c3   : > { %v4171_v47 = vsub.f32 %v9412_v18, %v8250_v11  ;;  %v4173_v25 = vsub.f32 %v9384_v4, %v8250_v11  ;;  %v4175_v37 = vsub.f32 %v9385_v33, %v8250_v11  ;;  %v4177_v44 = vsub.f32 %v9386_v51, %v8250_v11 }
 0x8c4   : > { %v4179_v24 = vsub.f32 %v9387_v39, %v8250_v11  ;;  %v4181_v62 = vsub.f32 %v9388_v34, %v8250_v11  ;;  %v4183_v12 = vsub.f32 %v9413_v63, %v8250_v11  ;;  %v4185_v49 = vsub.f32 %v9414_v28, %v8250_v11 }
 0x8c5   : > { %v4235_v55 = vmax.f32 %v4171_v47, 0.0  ;;  %v4237_v61 = vmax.f32 %v4173_v25, 0.0  ;;  %v4239_v23 = vmax.f32 %v4175_v37, 0.0  ;;  %v4241_v26 = vmax.f32 %v4177_v44, 0.0  ;;  %v9566_v47 = vld [vmem:[#allocation31_spill] sm:$0xff]  ;;  %v9567_v44 = vld [vmem:[#allocation32_spill] sm:$0xff] }
 0x8c6   : > { %v4243_v1 = vmax.f32 %v4179_v24, 0.0  ;;  %v4245_v60 = vmax.f32 %v4181_v62, 0.0  ;;  %v4187_v5 = vsub.f32 %v9415_v7, %v8250_v11  ;;  %v4247_v17 = vmax.f32 %v4183_v12, 0.0 }
 0x8c7   : > { %v4335_v9 = vadd.f32 %v4237_v61, %v4235_v55  ;;  %vm4380_vm12 = vcmp.gt.f32.partialorder %v9566_v47, %v8262_v52  ;;  %v4568_v25 = vadd.f32 %v5247_v19, %v5245_v36  ;;  %v4189_v37 = vsub.f32 %v9416_v42, %v8250_v11 }
 0x8c8   : > { %v4249_v55 = vmax.f32 %v4185_v49, 0.0  ;;  %vm4382_vm13 = vcmp.gt.f32.partialorder %v9567_v44, %v8262_v52  ;;  %v5249_v58 = vsel %vm4380_vm12, 1.0, %v9565_v40  ;;  %v4191_v24 = vsub.f32 %v9417_v15, %v8250_v11 }
 0x8c9   : > { %v4336_v38 = vadd.f32 %v4335_v9, %v4239_v23  ;;  %v4251_v23 = vmax.f32 %v4187_v5, 0.0  ;;  %v4569_v62 = vadd.f32 %v5249_v58, %v4568_v25  ;;  %v4642_v49 = vmul.f32 %v5245_v36, %v9563_v50 }
 0x8ca   : > { %v4255_v5 = vmax.f32 %v4191_v24, 0.0  ;;  %v4197_v25 = vsub.f32 %v9361_v3, %v8250_v11  ;;  %v4199_v36 = vsub.f32 %v9362_v30, %v8250_v11  ;;  %v4646_v24 = vmul.f32 %v5249_v58, %v9566_v47 }
 0x8cb   : > { %v4337_v32 = vadd.f32 %v4336_v38, %v4241_v26  ;;  %v4193_v26 = vsub.f32 %v9418_v0, %v8250_v11  ;;  %v4253_v38 = vmax.f32 %v4189_v37, 0.0  ;;  %v4205_v58 = vsub.f32 %v9421_v54, %v8250_v11 }
 0x8cd   : > { %v4338_v56 = vadd.f32 %v4337_v32, %v4243_v1  ;;  %v9568_v1 = vld [vmem:[#allocation33_spill] sm:$0xff]  ;;  %v5251_v32 = vsel %vm4382_vm13, 1.0, %v9565_v40  ;;  %v4257_v37 = vmax.f32 %v4193_v26, 0.0 }
 0x8ce   : > { %vm4384_vm14 = vcmp.gt.f32.partialorder %v9568_v1, %v8262_v52 }
 0x8cf   : > { %v4339_v27 = vadd.f32 %v4338_v56, %v4245_v60  ;;  %v4644_v60 = vmul.f32 %v5247_v19, %v9564_v20  ;;  %v4195_v56 = vsub.f32 %v9419_v22, %v8250_v11 }
 0x8d1   : > { %v4340_v61 = vadd.f32 %v4339_v27, %v4247_v17  ;;  %v4570_v27 = vadd.f32 %v5251_v32, %v4569_v62  ;;  %v4259_v19 = vmax.f32 %v4195_v56, 0.0  ;;  %v4201_v62 = vsub.f32 %v9363_v16, %v8250_v11 }
 0x8d3   : > { %v4341_v9 = vadd.f32 %v4340_v61, %v4249_v55  ;;  %v9569_v61 = vld [vmem:[#allocation34_spill] sm:$0xff] }
 0x8d4   : > { %vm4386_vm15 = vcmp.gt.f32.partialorder %v9569_v61, %v8262_v52 }
 0x8d5   : > { %v4342_v12 = vadd.f32 %v4341_v9, %v4251_v23  ;;  %v5253_v23 = vsel %vm4384_vm14, 1.0, %v9565_v40  ;;  %v4706_v9 = vadd.f32 %v4644_v60, %v4642_v49  ;;  %v4203_v49 = vsub.f32 %v9420_v29, %v8250_v11 }
 0x8d6   : > { %v4571_v50 = vadd.f32 %v5253_v23, %v4570_v27  ;;  %v4263_v60 = vmax.f32 %v4199_v36, 0.0  ;;  %v4648_v27 = vmul.f32 %v5251_v32, %v9567_v44  ;;  %v4209_v32 = vsub.f32 %v9423_v13, %v8250_v11  ;;  %v9575_v44 = vld [vmem:[#allocation42_spill] sm:$0xff] }
 0x8d7   : > { %v4343_v17 = vadd.f32 %v4342_v12, %v4253_v38  ;;  %v4261_v38 = vmax.f32 %v4197_v25, 0.0  ;;  %v9570_v12 = vld [vmem:[#allocation35_spill] sm:$0xff]  ;;  %vm4402_vm7 = vcmp.gt.f32.partialorder %v9575_v44, %v8262_v52 }
 0x8d8   : > { %vm4388_vm0 = vcmp.gt.f32.partialorder %v9570_v12, %v8262_v52 }
 0x8d9   : > { %v4344_v55 = vadd.f32 %v4343_v17, %v4255_v5  ;;  %v5255_v5 = vsel %vm4386_vm15, 1.0, %v9565_v40  ;;  %v4707_v17 = vadd.f32 %v4706_v9, %v4646_v24  ;;  %v4207_v9 = vsub.f32 %v9422_v41, %v8250_v11 }
 0x8da   : > { %v4267_v24 = vmax.f32 %v4203_v49, 0.0 }
 0x8db   : > { %v4345_v20 = vadd.f32 %v4344_v55, %v4257_v37  ;;  %v4572_v37 = vadd.f32 %v5255_v5, %v4571_v50  ;;  %v4265_v55 = vmax.f32 %v4201_v62, 0.0  ;;  %v4650_v50 = vmul.f32 %v5253_v23, %v9568_v1 }
 0x8dc   : > { %v4213_v23 = vsub.f32 %v9425_v45, %v8250_v11 }
 0x8dd   : > { %v4346_v26 = vadd.f32 %v4345_v20, %v4259_v19  ;;  %v5257_v20 = vsel %vm4388_vm0, 1.0, %v9565_v40  ;;  %v4708_v19 = vadd.f32 %v4707_v17, %v4648_v27  ;;  %v4211_v17 = vsub.f32 %v9424_v43, %v8250_v11 }
 0x8de   : > { %v4271_v27 = vmax.f32 %v4207_v9, 0.0 }
 0x8df   : > { %v4347_v56 = vadd.f32 %v4346_v26, %v4261_v38  ;;  %v4573_v38 = vadd.f32 %v5257_v20, %v4572_v37  ;;  %v4269_v26 = vmax.f32 %v4205_v58, 0.0  ;;  %v4652_v37 = vmul.f32 %v5255_v5, %v9569_v61  ;;  %v9574_v61 = vld [vmem:[#allocation77_spill] sm:$0xff] }
 0x8e0   : > { %v4217_v5 = vsub.f32 %v9448_v2, %v8250_v11  ;;  %v4231_v1 = vsub.f32 %v9574_v61, %v8250_v11 }
 0x8e1   : > { %v4348_v25 = vadd.f32 %v4347_v56, %v4263_v60  ;;  %v5259_v60 = vsel %vm4390_vm1, 1.0, %v9565_v40  ;;  %v4709_v56 = vadd.f32 %v4708_v19, %v4650_v50  ;;  %v4215_v19 = vsub.f32 %v9426_v8, %v8250_v11 }
 0x8e2   : > { %v4275_v50 = vmax.f32 %v4211_v17, 0.0 }
 0x8e3   : > { %v4349_v36 = vadd.f32 %v4348_v25, %v4265_v55  ;;  %v4574_v55 = vadd.f32 %v5259_v60, %v4573_v38  ;;  %v4273_v25 = vmax.f32 %v4209_v32, 0.0  ;;  %v4654_v38 = vmul.f32 %v5257_v20, %v9570_v12 }
 0x8e4   : > { %v4221_v20 = vsub.f32 %v9452_v10, %v8250_v11 }
 0x8e5   : > { %v4350_v62 = vadd.f32 %v4349_v36, %v4267_v24  ;;  %v5261_v24 = vsel %vm4392_vm2, 1.0, %v9565_v40  ;;  %v4710_v36 = vadd.f32 %v4709_v56, %v4652_v37  ;;  %v4219_v56 = vsub.f32 %v9450_v14, %v8250_v11 }
 0x8e6   : > { %v4279_v37 = vmax.f32 %v4215_v19, 0.0 }
 0x8e7   : > { %v4351_v49 = vadd.f32 %v4350_v62, %v4269_v26  ;;  %v4575_v26 = vadd.f32 %v5261_v24, %v4574_v55  ;;  %v4277_v62 = vmax.f32 %v4213_v23, 0.0  ;;  %v4656_v55 = vmul.f32 %v5259_v60, %v9539_v53 }
 0x8e8   : > { %v4225_v60 = vsub.f32 %v9474_v48, %v8250_v11 }
 0x8e9   : > { %v4352_v58 = vadd.f32 %v4351_v49, %v4271_v27  ;;  %v5263_v27 = vsel %vm4394_vm3, 1.0, %v9565_v40  ;;  %v4711_v49 = vadd.f32 %v4710_v36, %v4654_v38  ;;  %v4223_v36 = vsub.f32 %v9454_v31, %v8250_v11 }
 0x8ea   : > { %v4283_v38 = vmax.f32 %v4219_v56, 0.0 }
 0x8eb   : > { %v4353_v9 = vadd.f32 %v4352_v58, %v4273_v25  ;;  %v4576_v25 = vadd.f32 %v5263_v27, %v4575_v26  ;;  %v4281_v58 = vmax.f32 %v4217_v5, 0.0  ;;  %v4658_v26 = vmul.f32 %v5261_v24, %v9540_v21  ;;  %v9573_v24 = vld [vmem:[#allocation28_spill] sm:$0xff] }
 0x8ec   : > { %v4287_v12 = vmax.f32 %v4223_v36, 0.0  ;;  %v4289_v21 = vmax.f32 %v4225_v60, 0.0 }
 0x8ed   : > { %v4354_v32 = vadd.f32 %v4353_v9, %v4275_v50  ;;  %v5265_v50 = vsel %vm4396_vm4, 1.0, %v9565_v40  ;;  %v4712_v9 = vadd.f32 %v4711_v49, %v4656_v55  ;;  %v9572_v49 = vld [vmem:[#allocation27_spill] sm:$0xff] }
 0x8ee   : > { %v4227_v55 = vsub.f32 %v9572_v49, %v8250_v11 }
 0x8ef   : > { %v4355_v17 = vadd.f32 %v4354_v32, %v4277_v62  ;;  %v4577_v62 = vadd.f32 %v5265_v50, %v4576_v25  ;;  %v4285_v32 = vmax.f32 %v4221_v20, 0.0  ;;  %v4713_v53 = vadd.f32 %v4712_v9, %v4658_v26 }
 0x8f0   : > { %v4660_v25 = vmul.f32 %v5263_v27, %v9541_v6  ;;  %v4291_v9 = vmax.f32 %v4227_v55, 0.0  ;;  %v9576_v27 = vld [vmem:[#allocation78_spill] sm:$0xff]  ;;  %v9577_v6 = vld [vmem:[#allocation43_spill] sm:$0xff] }
 0x8f1   : > { %v4356_v23 = vadd.f32 %v4355_v17, %v4279_v37  ;;  %v9571_v37 = vld [vmem:[#allocation41_spill] sm:$0xff]  ;;  %v5267_v17 = vsel %vm4398_vm5, 1.0, %v9565_v40  ;;  %vm4404_vm8 = vcmp.gt.f32.partialorder %v9577_v6, %v8262_v52 }
 0x8f2   : > { %vm4400_vm6 = vcmp.gt.f32.partialorder %v9571_v37, %v8262_v52  ;;  %v4664_v55 = vmul.f32 %v5267_v17, %v9543_v46 }
 0x8f3   : > { %v4357_v19 = vadd.f32 %v4356_v23, %v4281_v58  ;;  %v4578_v58 = vadd.f32 %v5267_v17, %v4577_v62  ;;  %v4229_v23 = vsub.f32 %v9573_v24, %v8250_v11  ;;  %v4662_v62 = vmul.f32 %v5265_v50, %v9542_v35 }
 0x8f4   : > { %v5273_v50 = vsel %vm4404_vm8, 1.0, %v9565_v40 }
 0x8f5   : > { %v4358_v5 = vadd.f32 %v4357_v19, %v4283_v38  ;;  %v5269_v38 = vsel %vm4400_vm6, 1.0, %v9565_v40  ;;  %v4714_v19 = vadd.f32 %v4713_v53, %v4660_v25  ;;  %v4295_v53 = vmax.f32 %v4231_v1, 0.0 }
 0x8f6   : > { %v4579_v36 = vadd.f32 %v5269_v38, %v4578_v58 }
 0x8f7   : > { %v4359_v56 = vadd.f32 %v4358_v5, %v4285_v32  ;;  %v4233_v32 = vsub.f32 %v9576_v27, %v8250_v11  ;;  %v4293_v5 = vmax.f32 %v4229_v23, 0.0  ;;  %v9578_v23 = vld [vmem:[#allocation44_spill] sm:$0xff] }
 0x8f8   : > { %vm4406_vm9 = vcmp.gt.f32.partialorder %v9578_v23, %v8262_v52 }
 0x8f9   : > { %v4360_v20 = vadd.f32 %v4359_v56, %v4287_v12  ;;  %v5271_v12 = vsel %vm4402_vm7, 1.0, %v9565_v40  ;;  %v4715_v56 = vadd.f32 %v4714_v19, %v4662_v62  ;;  %v4666_v19 = vmul.f32 %v5269_v38, %v9571_v37 }
 0x8fb   : > { %v4361_v26 = vadd.f32 %v4360_v20, %v4289_v21  ;;  %v4580_v21 = vadd.f32 %v5271_v12, %v4579_v36  ;;  %v4297_v20 = vmax.f32 %v4233_v32, 0.0  ;;  %v4716_v35 = vadd.f32 %v4715_v56, %v4664_v55  ;;  %v9579_v36 = vld [vmem:[#allocation45_spill] sm:$0xff] }
 0x8fc   : > { %vm4408_vm10 = vcmp.gt.f32.partialorder %v9579_v36, %v8262_v52  ;;  %v4668_v32 = vmul.f32 %v5271_v12, %v9575_v44  ;;  %v4670_v55 = vmul.f32 %v5273_v50, %v9577_v6  ;;  %v9589_v44 = vld [vmem:[#allocation55_spill] sm:$0xff] }
 0x8fd   : > { %v4362_v60 = vadd.f32 %v4361_v26, %v4291_v9  ;;  %v4581_v9 = vadd.f32 %v5273_v50, %v4580_v21  ;;  %v5275_v26 = vsel %vm4406_vm9, 1.0, %v9565_v40  ;;  %v4717_v62 = vadd.f32 %v4716_v35, %v4666_v19  ;;  %v9580_v21 = vld [vmem:[#allocation46_spill] sm:$0xff] }
 0x8fe   : > { %v5277_v56 = vsel %vm4408_vm10, 1.0, %v9565_v40  ;;  %vm4410_vm11 = vcmp.gt.f32.partialorder %v9580_v21, %v8262_v52  ;;  %v4672_v12 = vmul.f32 %v5275_v26, %v9578_v23  ;;  %v9588_v23 = vld [vmem:[#allocation54_spill] sm:$0xff] }
 0x8ff   : > { %v4363_v25 = vadd.f32 %v4362_v60, %v4293_v5  ;;  %v4582_v17 = vadd.f32 %v5275_v26, %v4581_v9  ;;  %v5279_v35 = vsel %vm4410_vm11, 1.0, %v9565_v40  ;;  %v4674_v50 = vmul.f32 %v5277_v56, %v9579_v36 }
 0x900   : > { %v4676_v26 = vmul.f32 %v5279_v35, %v9580_v21  ;;  %vm4426_vm11 = vcmp.gt.f32.partialorder %v9588_v23, %v8262_v52 }
 0x901   : > { %v4364_v58 = vadd.f32 %v4363_v25, %v4295_v53  ;;  %v4718_v53 = vadd.f32 %v4717_v62, %v4668_v32  ;;  %v4583_v38 = vadd.f32 %v5277_v56, %v4582_v17 }
 0x903   : > { %v4365_v47 = vadd.f32 %v4364_v58, %v4297_v20  ;;  %v9581_v58 = vld [vmem:[#allocation47_spill] sm:$0xff]  ;;  %v4584_v9 = vadd.f32 %v5279_v35, %v4583_v38 }
 0x904   : > { %vm4412_vm12 = vcmp.gt.f32.partialorder %v9581_v58, %v8262_v52 }
 0x905   : > { %v4366_v1 = vrot.slane %v4365_v47, 4  ;;  %v5281_v19 = vsel %vm4412_vm12, 1.0, %v9565_v40 }
 0x906   : > { %v4585_v17 = vadd.f32 %v5281_v19, %v4584_v9  ;;  %v4678_v9 = vmul.f32 %v5281_v19, %v9581_v58 }
 0x907   : > { %v4367_v5 = vadd.f32 %v4366_v1, %v4365_v47  ;;  %v4719_v47 = vadd.f32 %v4718_v53, %v4670_v55  ;;  %v9583_v53 = vld [vmem:[#allocation49_spill] sm:$0xff] }
 0x908   : > { %vm4416_vm15 = vcmp.gt.f32.partialorder %v9583_v53, %v8262_v52 }
 0x909   : > { %v4368_v60 = vrot.slane %v4367_v5, 2  ;;  %v4720_v1 = vadd.f32 %v4719_v47, %v4672_v12 }
 0x90b   : > { %v4369_v25 = vadd.f32 %v4368_v60, %v4367_v5  ;;  %v9582_v5 = vld [vmem:[#allocation48_spill] sm:$0xff]  ;;  %v4721_v60 = vadd.f32 %v4720_v1, %v4674_v50 }
 0x90c   : > { %vm4414_vm13 = vcmp.gt.f32.partialorder %v9582_v5, %v8262_v52 }
 0x90d   : > { %v4370_v20 = vrot.slane %v4369_v25, 1  ;;  %v5283_v32 = vsel %vm4414_vm13, 1.0, %v9565_v40  ;;  %v4722_v47 = vadd.f32 %v4721_v60, %v4676_v26 }
 0x90e   : > { %v4586_v38 = vadd.f32 %v5283_v32, %v4585_v17  ;;  %v4680_v17 = vmul.f32 %v5283_v32, %v9582_v5 }
 0x90f   : > { %v4371_v62 = vadd.f32 %v4370_v20, %v4369_v25  ;;  %v5285_v25 = vsel %vm4416_vm15, 1.0, %v9565_v40  ;;  %v9584_v20 = vld [vmem:[#allocation50_spill] sm:$0xff]  ;;  %v4723_v12 = vadd.f32 %v4722_v47, %v4678_v9  ;;  %v9587_v9 = vld [vmem:[#allocation53_spill] sm:$0xff] }
 0x910   : > { %vm4418_vm0 = vcmp.gt.f32.partialorder %v9584_v20, %v8262_v52  ;;  %v4587_v56 = vadd.f32 %v5285_v25, %v4586_v38  ;;  %v9586_v38 = vld [vmem:[#allocation52_spill] sm:$0xff]  ;;  %vm4424_vm8 = vcmp.gt.f32.partialorder %v9587_v9, %v8262_v52 }
 0x911   : > { %vm4373_vm14 = vcmp.ge.f32.partialorder %v4371_v62, 1.0  ;;  %v5287_v35 = vsel %vm4418_vm0, 1.0, %v9565_v40  ;;  %v4724_v50 = vadd.f32 %v4723_v12, %v4680_v17  ;;  %vm4422_vm6 = vcmp.gt.f32.partialorder %v9586_v38, %v8262_v52 }
 0x912   : > { %v8402_v55 = vsel %vm4373_vm14, %v8250_v11, %v8245_v57  ;;  %v9585_v57 = vld [vmem:[#allocation51_spill] sm:$0xff]  ;;  %v4588_v11 = vadd.f32 %v5287_v35, %v4587_v56  ;;  %v4682_v56 = vmul.f32 %v5285_v25, %v9583_v53  ;;  %v5291_v17 = vsel %vm4422_vm6, 1.0, %v9565_v40 }
 0x913   : > { %vm4377_vm1 = vcmp.gt.f32.partialorder %v9412_v18, %v8402_v55  ;;  %vm4379_vm2 = vcmp.gt.f32.partialorder %v9384_v4, %v8402_v55  ;;  %vm4420_vm3 = vcmp.gt.f32.partialorder %v9585_v57, %v8262_v52  ;;  %vm4381_vm4 = vcmp.gt.f32.partialorder %v9385_v33, %v8402_v55 }
 0x914   : > { %v5246_v1 = vsel %vm4377_vm1, 1.0, %v9565_v40  ;;  %v5248_v62 = vsel %vm4379_vm2, 1.0, %v9565_v40  ;;  %v5289_v19 = vsel %vm4420_vm3, 1.0, %v9565_v40  ;;  %vm4383_vm5 = vcmp.gt.f32.partialorder %v9386_v51, %v8402_v55 }
 0x915   : > { %v4605_v60 = vadd.f32 %v5248_v62, %v5246_v1  ;;  %v4589_v26 = vadd.f32 %v5289_v19, %v4588_v11  ;;  %v5250_v47 = vsel %vm4381_vm4, 1.0, %v9565_v40  ;;  %vm4385_vm7 = vcmp.gt.f32.partialorder %v9387_v39, %v8402_v55 }
 0x916   : > { %v5252_v12 = vsel %vm4383_vm5, 1.0, %v9565_v40  ;;  %v4725_v5 = vadd.f32 %v4724_v50, %v4682_v56  ;;  %vm4387_vm9 = vcmp.gt.f32.partialorder %v9388_v34, %v8402_v55  ;;  %v5254_v21 = vsel %vm4385_vm7, 1.0, %v9565_v40 }
 0x917   : > { %v4606_v32 = vadd.f32 %v5250_v47, %v4605_v60  ;;  %v4590_v58 = vadd.f32 %v5291_v17, %v4589_v26  ;;  %v4643_v25 = vmul.f32 %v5246_v1, %v9412_v18  ;;  %v4645_v53 = vmul.f32 %v5248_v62, %v9384_v4 }
 0x918   : > { %v4684_v60 = vmul.f32 %v5287_v35, %v9584_v20  ;;  %vm4389_vm10 = vcmp.gt.f32.partialorder %v9413_v63, %v8402_v55  ;;  %v5256_v50 = vsel %vm4387_vm9, 1.0, %v9565_v40  ;;  %v5293_v56 = vsel %vm4424_vm8, 1.0, %v9565_v40 }
 0x919   : > { %v4607_v11 = vadd.f32 %v5252_v12, %v4606_v32  ;;  %vm4391_vm12 = vcmp.gt.f32.partialorder %v9414_v28, %v8402_v55  ;;  %v4591_v32 = vadd.f32 %v5293_v56, %v4590_v58  ;;  %v5258_v62 = vsel %vm4389_vm10, 1.0, %v9565_v40 }
 0x91a   : > { %v4726_v26 = vadd.f32 %v4725_v5, %v4684_v60  ;;  %v4647_v35 = vmul.f32 %v5250_v47, %v9385_v33  ;;  %v4743_v20 = vadd.f32 %v4645_v53, %v4643_v25  ;;  %vm4393_vm13 = vcmp.gt.f32.partialorder %v9415_v7, %v8402_v55 }
 0x91b   : > { %v4608_v36 = vadd.f32 %v5254_v21, %v4607_v11  ;;  %v4686_v11 = vmul.f32 %v5289_v19, %v9585_v57  ;;  %vm4428_vm14 = vcmp.gt.f32.partialorder %v9589_v44, %v8262_v52  ;;  %v5260_v5 = vsel %vm4391_vm12, 1.0, %v9565_v40 }
 0x91c   : > { %v4649_v60 = vmul.f32 %v5252_v12, %v9386_v51  ;;  %v5295_v58 = vsel %vm4426_vm11, 1.0, %v9565_v40  ;;  %vm4395_vm15 = vcmp.gt.f32.partialorder %v9416_v42, %v8402_v55  ;;  %v5262_v25 = vsel %vm4393_vm13, 1.0, %v9565_v40  ;;  %v9590_v12 = vld [vmem:[#allocation56_spill] sm:$0xff] }
 0x91d   : > { %v4609_v1 = vadd.f32 %v5256_v50, %v4608_v36  ;;  %v4744_v36 = vadd.f32 %v4743_v20, %v4647_v35  ;;  %v4727_v53 = vadd.f32 %v4726_v26, %v4686_v11  ;;  %v4592_v47 = vadd.f32 %v5295_v58, %v4591_v32 }
 0x91e   : > { %v4688_v37 = vmul.f32 %v5291_v17, %v9586_v38  ;;  %vm4397_vm0 = vcmp.gt.f32.partialorder %v9417_v15, %v8402_v55  ;;  %vm4430_vm1 = vcmp.gt.f32.partialorder %v9590_v12, %v8262_v52  ;;  %v5264_v26 = vsel %vm4395_vm15, 1.0, %v9565_v40 }
 0x91f   : > { %v4610_v6 = vadd.f32 %v5258_v62, %v4609_v1  ;;  %v4651_v1 = vmul.f32 %v5254_v21, %v9387_v39  ;;  %v4745_v57 = vadd.f32 %v4744_v36, %v4649_v60  ;;  %v4653_v35 = vmul.f32 %v5256_v50, %v9388_v34  ;;  %v9591_v50 = vld [vmem:[#allocation57_spill] sm:$0xff] }
 0x920   : > { %v5297_v21 = vsel %vm4428_vm14, 1.0, %v9565_v40  ;;  %v4728_v32 = vadd.f32 %v4727_v53, %v4688_v37  ;;  %vm4399_vm2 = vcmp.gt.f32.partialorder %v9418_v0, %v8402_v55  ;;  %v5266_v60 = vsel %vm4397_vm0, 1.0, %v9565_v40 }
 0x921   : > { %v4611_v19 = vadd.f32 %v5260_v5, %v4610_v6  ;;  %v4746_v6 = vadd.f32 %v4745_v57, %v4651_v1  ;;  %v4593_v11 = vadd.f32 %v5297_v21, %v4592_v47  ;;  %v4655_v36 = vmul.f32 %v5258_v62, %v9413_v63 }
 0x922   : > { %v4690_v38 = vmul.f32 %v5293_v56, %v9587_v9  ;;  %vm4401_vm3 = vcmp.gt.f32.partialorder %v9419_v22, %v8402_v55  ;;  %vm4432_vm4 = vcmp.gt.f32.partialorder %v9591_v50, %v8262_v52  ;;  %v5268_v37 = vsel %vm4399_vm2, 1.0, %v9565_v40 }
 0x923   : > { %v4612_v20 = vadd.f32 %v5262_v25, %v4611_v19  ;;  %v4747_v19 = vadd.f32 %v4746_v6, %v4653_v35  ;;  %v4657_v53 = vmul.f32 %v5260_v5, %v9414_v28  ;;  %v5299_v62 = vsel %vm4430_vm1, 1.0, %v9565_v40 }
 0x924   : > { %v4729_v47 = vadd.f32 %v4728_v32, %v4690_v38  ;;  %vm4403_vm5 = vcmp.gt.f32.partialorder %v9361_v3, %v8402_v55  ;;  %v5270_v35 = vsel %vm4401_vm3, 1.0, %v9565_v40  ;;  %v4659_v6 = vmul.f32 %v5262_v25, %v9415_v7 }
 0x925   : > { %v4613_v17 = vadd.f32 %v5264_v26, %v4612_v20  ;;  %v4748_v1 = vadd.f32 %v4747_v19, %v4655_v36  ;;  %v4594_v20 = vadd.f32 %v5299_v62, %v4593_v11  ;;  %v4692_v9 = vmul.f32 %v5295_v58, %v9588_v23  ;;  %v9592_v36 = vld [vmem:[#allocation58_spill] sm:$0xff] }
 0x926   : > { %vm4405_vm6 = vcmp.gt.f32.partialorder %v9362_v30, %v8402_v55  ;;  %vm4434_vm7 = vcmp.gt.f32.partialorder %v9592_v36, %v8262_v52  ;;  %v5272_v38 = vsel %vm4403_vm5, 1.0, %v9565_v40  ;;  %v4661_v32 = vmul.f32 %v5264_v26, %v9416_v42 }
 0x927   : > { %v4614_v57 = vadd.f32 %v5266_v60, %v4613_v17  ;;  %v4749_v17 = vadd.f32 %v4748_v1, %v4657_v53  ;;  %v5301_v25 = vsel %vm4432_vm4, 1.0, %v9565_v40  ;;  %v4730_v11 = vadd.f32 %v4729_v47, %v4692_v9 }
 0x928   : > { %vm4407_vm8 = vcmp.gt.f32.partialorder %v9363_v16, %v8402_v55  ;;  %v5274_v53 = vsel %vm4405_vm6, 1.0, %v9565_v40  ;;  %v4663_v1 = vmul.f32 %v5266_v60, %v9417_v15  ;;  %v4694_v23 = vmul.f32 %v5297_v21, %v9589_v44 }
 0x929   : > { %v4615_v56 = vadd.f32 %v5268_v37, %v4614_v57  ;;  %v4750_v19 = vadd.f32 %v4749_v17, %v4659_v6  ;;  %v4595_v57 = vadd.f32 %v5301_v25, %v4594_v20  ;;  %vm4409_vm9 = vcmp.gt.f32.partialorder %v9420_v29, %v8402_v55  ;;  %v9593_v6 = vld [vmem:[#allocation59_spill] sm:$0xff] }
 0x92a   : > { %vm4436_vm10 = vcmp.gt.f32.partialorder %v9593_v6, %v8262_v52  ;;  %v5276_v9 = vsel %vm4407_vm8, 1.0, %v9565_v40  ;;  %v4665_v47 = vmul.f32 %v5268_v37, %v9418_v0  ;;  %v5303_v60 = vsel %vm4434_vm7, 1.0, %v9565_v40 }
 0x92b   : > { %v4616_v5 = vadd.f32 %v5270_v35, %v4615_v56  ;;  %v4751_v56 = vadd.f32 %v4750_v19, %v4661_v32  ;;  %v4731_v20 = vadd.f32 %v4730_v11, %v4694_v23  ;;  %vm4411_vm11 = vcmp.gt.f32.partialorder %v9421_v54, %v8402_v55 }
 0x92c   : > { %v5278_v32 = vsel %vm4409_vm9, 1.0, %v9565_v40  ;;  %v4667_v19 = vmul.f32 %v5270_v35, %v9419_v22  ;;  %v4696_v44 = vmul.f32 %v5299_v62, %v9590_v12  ;;  %vm4413_vm12 = vcmp.gt.f32.partialorder %v9422_v41, %v8402_v55 }
 0x92d   : > { %v4617_v58 = vadd.f32 %v5272_v38, %v4616_v5  ;;  %v4752_v17 = vadd.f32 %v4751_v56, %v4663_v1  ;;  %v4596_v5 = vadd.f32 %v5303_v60, %v4595_v57  ;;  %vm4438_vm13 = vcmp.gt.f32.partialorder %v9561_v59, %v8262_v52 }
 0x92e   : > { %v5280_v23 = vsel %vm4411_vm11, 1.0, %v9565_v40  ;;  %v4669_v11 = vmul.f32 %v5272_v38, %v9361_v3  ;;  %v5305_v35 = vsel %vm4436_vm10, 1.0, %v9565_v40  ;;  %v4732_v57 = vadd.f32 %v4731_v20, %v4696_v44 }
 0x92f   : > { %v4618_v26 = vadd.f32 %v5274_v53, %v4617_v58  ;;  %v4753_v58 = vadd.f32 %v4752_v17, %v4665_v47  ;;  %vm4415_vm14 = vcmp.gt.f32.partialorder %v9423_v13, %v8402_v55  ;;  %v4597_v56 = vadd.f32 %v5305_v35, %v4596_v5 }
 0x930   : > { %v4671_v47 = vmul.f32 %v5274_v53, %v9362_v30  ;;  %vm4417_vm15 = vcmp.gt.f32.partialorder %v9424_v43, %v8402_v55  ;;  %v4673_v44 = vmul.f32 %v5276_v9, %v9363_v16  ;;  %v5307_v5 = vsel %vm4438_vm13, 1.0, %v9565_v40 }
 0x931   : > { %v4619_v21 = vadd.f32 %v5276_v9, %v4618_v26  ;;  %v4754_v1 = vadd.f32 %v4753_v58, %v4667_v19  ;;  %v5282_v26 = vsel %vm4413_vm12, 1.0, %v9565_v40  ;;  %v5284_v19 = vsel %vm4415_vm14, 1.0, %v9565_v40 }
 0x932   : > { %vm4419_vm0 = vcmp.gt.f32.partialorder %v9425_v45, %v8402_v55  ;;  %vm4421_vm1 = vcmp.gt.f32.partialorder %v9426_v8, %v8402_v55  ;;  %vm4423_vm2 = vcmp.gt.f32.partialorder %v9448_v2, %v8402_v55  ;;  %vm4425_vm3 = vcmp.gt.f32.partialorder %v9450_v14, %v8402_v55 }
 0x933   : > { %v4620_v37 = vadd.f32 %v5278_v32, %v4619_v21  ;;  %v4755_v17 = vadd.f32 %v4754_v1, %v4669_v11  ;;  %v4698_v21 = vmul.f32 %v5301_v25, %v9591_v50  ;;  %v4598_v25 = vadd.f32 %v5307_v5, %v4597_v56 }
 0x934   : > { %v4675_v11 = vmul.f32 %v5278_v32, %v9420_v29  ;;  %v5288_v52 = vsel %vm4419_vm0, 1.0, %v9565_v40  ;;  %v5290_v32 = vsel %vm4421_vm1, 1.0, %v9565_v40  ;;  %vm4427_vm4 = vcmp.gt.f32.partialorder %v9452_v10, %v8402_v55 }
 0x935   : > { %v4621_v62 = vadd.f32 %v5280_v23, %v4620_v37  ;;  %v4756_v20 = vadd.f32 %v4755_v17, %v4671_v47  ;;  %v4733_v58 = vadd.f32 %v4732_v57, %v4698_v21  ;;  %v5286_v37 = vsel %vm4417_vm15, 1.0, %v9565_v40 }
 0x936   : > { %v4677_v57 = vmul.f32 %v5280_v23, %v9421_v54  ;;  %v4599_v21 = vrot.slane %v4598_v25, 4  ;;  %v5292_v23 = vsel %vm4423_vm2, 1.0, %v9565_v40  ;;  %vm4429_vm5 = vcmp.gt.f32.partialorder %v9454_v31, %v8402_v55 }
 0x937   : > { %v4622_v38 = vadd.f32 %v5282_v26, %v4621_v62  ;;  %v4757_v1 = vadd.f32 %v4756_v20, %v4673_v44  ;;  %v4700_v62 = vmul.f32 %v5303_v60, %v9592_v36  ;;  %v4702_v44 = vmul.f32 %v5305_v35, %v9593_v6 }
 0x938   : > { %vm4431_vm6 = vcmp.gt.f32.partialorder %v9474_v48, %v8402_v55  ;;  %vm4433_vm7 = vcmp.gt.f32.partialorder %v9572_v49, %v8402_v55  ;;  %vm4435_vm8 = vcmp.gt.f32.partialorder %v9573_v24, %v8402_v55  ;;  %vm4437_vm9 = vcmp.gt.f32.partialorder %v9574_v61, %v8402_v55 }
 0x939   : > { %v4623_v53 = vadd.f32 %v5284_v19, %v4622_v38  ;;  %v4758_v47 = vadd.f32 %v4757_v1, %v4675_v11  ;;  %v4734_v17 = vadd.f32 %v4733_v58, %v4700_v62  ;;  %v4679_v38 = vmul.f32 %v5282_v26, %v9422_v41 }
 0x93a   : > { %v4681_v58 = vmul.f32 %v5284_v19, %v9423_v13  ;;  %v4600_v62 = vadd.f32 %v4599_v21, %v4598_v25  ;;  %v5294_v26 = vsel %vm4425_vm3, 1.0, %v9565_v40  ;;  %v5296_v19 = vsel %vm4427_vm4, 1.0, %v9565_v40 }
 0x93b   : > { %v4624_v9 = vadd.f32 %v5286_v37, %v4623_v53  ;;  %v4759_v60 = vadd.f32 %v4758_v47, %v4677_v57  ;;  %v4735_v11 = vadd.f32 %v4734_v17, %v4702_v44  ;;  %v4704_v57 = vmul.f32 %v5307_v5, %v9561_v59 }
 0x93c   : > { %v4685_v17 = vmul.f32 %v5288_v52, %v9425_v45  ;;  %v4601_v21 = vrot.slane %v4600_v62, 2  ;;  %vm4439_vm10 = vcmp.gt.f32.partialorder %v9576_v27, %v8402_v55 }
 0x93d   : > { %v4625_v56 = vadd.f32 %v5288_v52, %v4624_v9  ;;  %v4760_v53 = vadd.f32 %v4759_v60, %v4679_v38  ;;  %v4683_v9 = vmul.f32 %v5286_v37, %v9424_v43  ;;  %v4736_v38 = vadd.f32 %v4735_v11, %v4704_v57 }
 0x93e   : > { %v5298_v37 = vsel %vm4429_vm5, 1.0, %v9565_v40  ;;  %v4687_v60 = vmul.f32 %v5290_v32, %v9426_v8  ;;  %v4689_v52 = vmul.f32 %v5292_v23, %v9448_v2 }
 0x93f   : > { %v4626_v20 = vadd.f32 %v5290_v32, %v4625_v56  ;;  %v4761_v35 = vadd.f32 %v4760_v53, %v4681_v58  ;;  %v4737_v53 = vrot.slane %v4736_v38, 4  ;;  %v4691_v32 = vmul.f32 %v5294_v26, %v9450_v14 }
 0x941   : > { %v4627_v1 = vadd.f32 %v5292_v23, %v4626_v20  ;;  %v4762_v56 = vadd.f32 %v4761_v35, %v4683_v9  ;;  %v5300_v20 = vsel %vm4431_vm6, 1.0, %v9565_v40  ;;  %v5302_v9 = vsel %vm4433_vm7, 1.0, %v9565_v40 }
 0x942   : > { %v4693_v23 = vmul.f32 %v5296_v19, %v9452_v10 }
 0x943   : > { %v4628_v47 = vadd.f32 %v5294_v26, %v4627_v1  ;;  %v4763_v5 = vadd.f32 %v4762_v56, %v4685_v17  ;;  %v4602_v1 = vadd.f32 %v4601_v21, %v4600_v62  ;;  %v4738_v56 = vadd.f32 %v4737_v53, %v4736_v38 }
 0x944   : > { %v5306_v21 = vsel %vm4437_vm9, 1.0, %v9565_v40  ;;  %v4695_v26 = vmul.f32 %v5298_v37, %v9454_v31  ;;  %v4699_v38 = vmul.f32 %v5302_v9, %v9572_v49 }
 0x945   : > { %v4629_v25 = vadd.f32 %v5296_v19, %v4628_v47  ;;  %v4764_v58 = vadd.f32 %v4763_v5, %v4687_v60  ;;  %v5304_v47 = vsel %vm4435_vm8, 1.0, %v9565_v40  ;;  %v4603_v62 = vrot.slane %v4602_v1, 1 }
 0x947   : > { %v4630_v44 = vadd.f32 %v5298_v37, %v4629_v25  ;;  %v4765_v35 = vadd.f32 %v4764_v58, %v4689_v52  ;;  %v4697_v52 = vmul.f32 %v5300_v20, %v9474_v48  ;;  %v4703_v37 = vmul.f32 %v5306_v21, %v9574_v61 }
 0x949   : > { %v4631_v11 = vadd.f32 %v5300_v20, %v4630_v44  ;;  %v4766_v17 = vadd.f32 %v4765_v35, %v4691_v32  ;;  %v5308_v44 = vsel %vm4439_vm10, 1.0, %v9565_v40  ;;  %v4604_v32 = vadd.f32 %v4603_v62, %v4602_v1 }
 0x94a   : > { %v4701_v35 = vmul.f32 %v5304_v47, %v9573_v24  ;;  %v4705_v20 = vmul.f32 %v5308_v44, %v9576_v27 }
 0x94b   : > { %v4632_v57 = vadd.f32 %v5302_v9, %v4631_v11  ;;  %v4767_v60 = vadd.f32 %v4766_v17, %v4693_v23  ;;  %v4739_v11 = vrot.slane %v4738_v56, 2  ;;  %5376 = vrcp.f32 %v4604_v32 }
 0x94d   : > { %v4633_v25 = vadd.f32 %v5304_v47, %v4632_v57  ;;  %v4768_v58 = vadd.f32 %v4767_v60, %v4695_v26  ;;  %v4740_v59 = vadd.f32 %v4739_v11, %v4738_v56 }
 0x94f   : > { %v4634_v5 = vadd.f32 %v5306_v21, %v4633_v25  ;;  %v4769_v53 = vadd.f32 %v4768_v58, %v4697_v52  ;;  %v4741_v25 = vrot.slane %v4740_v59, 1 }
 0x951   : > { %v4635_v19 = vadd.f32 %v5308_v44, %v4634_v5  ;;  %v4770_v57 = vadd.f32 %v4769_v53, %v4699_v38  ;;  %v4742_v60 = vadd.f32 %v4741_v25, %v4740_v59  ;;  %v9594_v44 = vld [vmem:[#allocation29_spill] sm:$0xff]  ;;  %v9596_v25 = vld [vmem:[#allocation31_spill] sm:$0xff] }
 0x953   : > { %v4636_v55 = vrot.slane %v4635_v19, 4  ;;  %v4771_v23 = vadd.f32 %v4770_v57, %v4701_v35  ;;  %v5309_v58 = vadd.f32 -1.0, %v4742_v60 }
 0x955   : > { %v4637_v6 = vadd.f32 %v4636_v55, %v4635_v19  ;;  %v4772_v17 = vadd.f32 %v4771_v23, %v4703_v37  ;;  %v5377_v47 = vpop.eup %5376 }
 0x956   : > { %v8601_v19 = vmul.f32 %v5377_v47, %v5309_v58  ;;  %v9599_v58 = vld [vmem:[#allocation34_spill] sm:$0xff] }
 0x957   : > { %v4638_v40 = vrot.slane %v4637_v6, 2  ;;  %v4773_v1 = vadd.f32 %v4772_v17, %v4705_v20 }
 0x958   : > { %v4786_v38 = vsub.f32 %v9594_v44, %v8601_v19 }
 0x959   : > { %v4639_v26 = vadd.f32 %v4638_v40, %v4637_v6  ;;  %v4774_v9 = vrot.slane %v4773_v1, 4  ;;  %v9595_v6 = vld [vmem:[#allocation30_spill] sm:$0xff] }
 0x95a   : > { %v4788_v53 = vsub.f32 %v9595_v6, %v8601_v19  ;;  %v4850_v57 = vmax.f32 %v4786_v38, 0.0 }
 0x95b   : > { %v4640_v62 = vrot.slane %v4639_v26, 1  ;;  %v4775_v52 = vadd.f32 %v4774_v9, %v4773_v1  ;;  %v9597_v1 = vld [vmem:[#allocation32_spill] sm:$0xff] }
 0x95c   : > { %v4852_v37 = vmax.f32 %v4788_v53, 0.0 }
 0x95d   : > { %v4641_v5 = vadd.f32 %v4640_v62, %v4639_v26  ;;  %v4776_v56 = vrot.slane %v4775_v52, 2  ;;  %v4790_v26 = vsub.f32 %v9596_v25, %v8601_v19  ;;  %v4792_v62 = vsub.f32 %v9597_v1, %v8601_v19 }
 0x95e   : > { %v4914_v47 = vpack.c.bf16 %v4852_v37, %v4850_v57  ;;  %v9601_v57 = vld [vmem:[#allocation36_spill] sm:$0xff] }
 0x95f   : > { %5378 = vrcp.f32 %v4641_v5  ;;  %v4777_v11 = vadd.f32 %v4776_v56, %v4775_v52  ;;  %v4800_v37 = vsub.f32 %v9601_v57, %v8601_v19 }
 0x961   : > { %v4778_v21 = vrot.slane %v4777_v11, 1  ;;  %v4864_v1 = vmax.f32 %v4800_v37, 0.0 }
 0x963   : > { %v4779_v32 = vadd.f32 %v4778_v21, %v4777_v11  ;;  %v4796_v11 = vsub.f32 %v9599_v58, %v8601_v19  ;;  %v4854_v21 = vmax.f32 %v4790_v26, 0.0 }
 0x965   : > { %v5310_v55 = vadd.f32 -1.0, %v4779_v32  ;;  %v4856_v32 = vmax.f32 %v4792_v62, 0.0 }
 0x969   : > { %v5379_v35 = vpop.eup %5378 }
 0x96a   : > { %v8607_v59 = vmul.f32 %v5379_v35, %v5310_v55  ;;  %v9600_v55 = vld [vmem:[#allocation35_spill] sm:$0xff] }
 0x96b   : > { %v4798_v35 = vsub.f32 %v9600_v55, %v8601_v19  ;;  %v9606_v55 = vld [vmem:[#allocation42_spill] sm:$0xff] }
 0x96c   : > { %v4787_v23 = vsub.f32 %v9412_v18, %v8607_v59  ;;  %v4789_v40 = vsub.f32 %v9384_v4, %v8607_v59  ;;  %v4791_v20 = vsub.f32 %v9385_v33, %v8607_v59  ;;  %v4793_v17 = vsub.f32 %v9386_v51, %v8607_v59  ;;  %v9598_v51 = vld [vmem:[#allocation33_spill] sm:$0xff] }
 0x96d   : > { %v4795_v9 = vsub.f32 %v9387_v39, %v8607_v59  ;;  %v4797_v18 = vsub.f32 %v9388_v34, %v8607_v59  ;;  %v4794_v56 = vsub.f32 %v9598_v51, %v8601_v19  ;;  %v4799_v39 = vsub.f32 %v9413_v63, %v8607_v59 }
 0x96e   : > { %v4851_v60 = vmax.f32 %v4787_v23, 0.0  ;;  %v4853_v4 = vmax.f32 %v4789_v40, 0.0  ;;  %v4855_v5 = vmax.f32 %v4791_v20, 0.0  ;;  %v4857_v52 = vmax.f32 %v4793_v17, 0.0 }
 0x96f   : > { %v4801_v34 = vsub.f32 %v9414_v28, %v8607_v59  ;;  %v4859_v38 = vmax.f32 %v4795_v9, 0.0  ;;  %v4861_v6 = vmax.f32 %v4797_v18, 0.0  ;;  %v4858_v53 = vmax.f32 %v4794_v56, 0.0  ;;  %v9602_v18 = vld [vmem:[#allocation37_spill] sm:$0xff] }
 0x970   : > { %v4915_v33 = vpack.c.bf16 %v4853_v4, %v4851_v60  ;;  %v4917_v44 = vpack.c.bf16 %v4857_v52, %v4855_v5  ;;  %v4916_v23 = vpack.c.bf16 %v4856_v32, %v4854_v21  ;;  %v4860_v40 = vmax.f32 %v4796_v11, 0.0  ;;  %v9603_v4 = vld [vmem:[#allocation38_spill] sm:$0xff] }
 0x971   : > { %v4863_v20 = vmax.f32 %v4799_v39, 0.0  ;;  %v4865_v63 = vmax.f32 %v4801_v34, 0.0  ;;  %v4919_v17 = vpack.c.bf16 %v4861_v6, %v4859_v38  ;;  %v4803_v28 = vsub.f32 %v9415_v7, %v8607_v59  ;;  %v9605_v38 = vld [vmem:[#allocation41_spill] sm:$0xff] }
 0x972   : > { %5016 = vmatprep.subr.bf16.mxu0 %v4915_v33  ;;  %v4805_v25 = vsub.f32 %v9416_v42, %v8607_v59  ;;  %v4862_v26 = vmax.f32 %v4798_v35, 0.0  ;;  %v4918_v62 = vpack.c.bf16 %v4860_v40, %v4858_v53  ;;  %v4802_v60 = vsub.f32 %v9602_v18, %v8601_v19 }
 0x973   : > { %5017 = vmatpush1.bf16.msra.mxu0 %v4914_v47  ;;  %v4921_v9 = vpack.c.bf16 %v4865_v63, %v4863_v20  ;;  %v4804_v5 = vsub.f32 %v9603_v4, %v8601_v19  ;;  %v4867_v52 = vmax.f32 %v4803_v28, 0.0  ;;  %v4807_v7 = vsub.f32 %v9417_v15, %v8607_v59  ;;  %v9604_v47 = vld [vmem:[#allocation39_spill] sm:$0xff] }
 0x974   : > { %5018 = vmatprep.subr.bf16.mxu0 %v4917_v44  ;;  %v4869_v33 = vmax.f32 %v4805_v25, 0.0  ;;  %v4809_v42 = vsub.f32 %v9418_v0, %v8607_v59  ;;  %v4806_v51 = vsub.f32 %v9604_v47, %v8601_v19  ;;  %v4808_v56 = vsub.f32 %v9543_v46, %v8601_v19  ;;  %v9607_v20 = vld [vmem:[#allocation43_spill] sm:$0xff]  ;;  %v9608_v25 = vld [vmem:[#allocation44_spill] sm:$0xff] }
 0x975   : > { %v4920_v58 = vpack.c.bf16 %v4864_v1, %v4862_v26  ;;  %v4866_v11 = vmax.f32 %v4802_v60, 0.0  ;;  %v4868_v21 = vmax.f32 %v4804_v5, 0.0  ;;  %v4811_v32 = vsub.f32 %v9419_v22, %v8607_v59  ;;  %v9609_v60 = vld [vmem:[#allocation45_spill] sm:$0xff] }
 0x976   : > { %v4923_v39 = vpack.c.bf16 %v4869_v33, %v4867_v52  ;;  %v4871_v34 = vmax.f32 %v4807_v7, 0.0  ;;  %v4873_v15 = vmax.f32 %v4809_v42, 0.0  ;;  %v4813_v0 = vsub.f32 %v9361_v3, %v8607_v59  ;;  %v9610_v7 = vld [vmem:[#allocation46_spill] sm:$0xff] }
 0x977   : > { %5019 = vmatpush1.bf16.msra.mxu0 %v4916_v23  ;;  %v4870_v44 = vmax.f32 %v4806_v51, 0.0  ;;  %v4810_v6 = vsub.f32 %v9605_v38, %v8601_v19  ;;  %v4922_v53 = vpack.c.bf16 %v4868_v21, %v4866_v11  ;;  %v4872_v46 = vmax.f32 %v4808_v56, 0.0 }
 0x978   : > { %5020 = vmatprep.subr.bf16.mxu0 %v4919_v17  ;;  %v4812_v35 = vsub.f32 %v9606_v55, %v8601_v19  ;;  %v4815_v22 = vsub.f32 %v9362_v30, %v8607_v59  ;;  %v4925_v57 = vpack.c.bf16 %v4873_v15, %v4871_v34  ;;  %v4875_v37 = vmax.f32 %v4811_v32, 0.0 }
 0x979   : > { %v4877_v23 = vmax.f32 %v4813_v0, 0.0  ;;  %v4817_v3 = vsub.f32 %v9363_v16, %v8607_v59  ;;  %v4874_v40 = vmax.f32 %v4810_v6, 0.0  ;;  %v4814_v63 = vsub.f32 %v9607_v20, %v8601_v19  ;;  %v9613_v6 = vld [vmem:[#allocation49_spill] sm:$0xff]  ;;  %v9616_v20 = vld [vmem:[#allocation52_spill] sm:$0xff] }
 0x97a   : > { %v4924_v17 = vpack.c.bf16 %v4872_v46, %v4870_v44  ;;  %v4876_v28 = vmax.f32 %v4812_v35, 0.0  ;;  %v4816_v26 = vsub.f32 %v9608_v25, %v8601_v19  ;;  %v4819_v30 = vsub.f32 %v9420_v29, %v8607_v59  ;;  %v9614_v35 = vld [vmem:[#allocation50_spill] sm:$0xff] }
 0x97b   : > { %5021 = vmatpush1.bf16.msra.mxu0 %v4918_v62  ;;  %v4927_v1 = vpack.c.bf16 %v4877_v23, %v4875_v37  ;;  %v4879_v62 = vmax.f32 %v4815_v22, 0.0  ;;  %v4821_v16 = vsub.f32 %v9421_v54, %v8607_v59  ;;  %v4878_v18 = vmax.f32 %v4814_v63, 0.0 }
 0x97c   : > { %5022 = vmatprep.subr.bf16.mxu0 %v4921_v9  ;;  %v4881_v9 = vmax.f32 %v4817_v3, 0.0  ;;  %v4818_v4 = vsub.f32 %v9609_v60, %v8601_v19  ;;  %v4926_v5 = vpack.c.bf16 %v4876_v28, %v4874_v40  ;;  %v4880_v52 = vmax.f32 %v4816_v26, 0.0  ;;  %v9615_v3 = vld [vmem:[#allocation51_spill] sm:$0xff] }
 0x97d   : > { %v4883_v33 = vmax.f32 %v4819_v30, 0.0  ;;  %v4820_v42 = vsub.f32 %v9610_v7, %v8601_v19  ;;  %v4885_v29 = vmax.f32 %v4821_v16, 0.0  ;;  %v4823_v51 = vsub.f32 %v9422_v41, %v8607_v59  ;;  %v9617_v16 = vld [vmem:[#allocation53_spill] sm:$0xff] }
 0x97e   : > { %v4929_v47 = vpack.c.bf16 %v4881_v9, %v4879_v62  ;;  %v4825_v54 = vsub.f32 %v9423_v13, %v8607_v59  ;;  %v4882_v56 = vmax.f32 %v4818_v4, 0.0  ;;  %v4928_v21 = vpack.c.bf16 %v4880_v52, %v4878_v18 }
 0x97f   : > { %5023 = vmatpush1.bf16.msra.mxu0 %v4920_v58  ;;  %v9611_v58 = vld [vmem:[#allocation47_spill] sm:$0xff]  ;;  %v4884_v32 = vmax.f32 %v4820_v42, 0.0  ;;  %v4827_v15 = vsub.f32 %v9424_v43, %v8607_v59  ;;  %v4931_v0 = vpack.c.bf16 %v4885_v29, %v4883_v33  ;;  %v4887_v44 = vmax.f32 %v4823_v51, 0.0 }
 0x980   : > { %5024 = vmatprep.subr.bf16.mxu0 %v4923_v39  ;;  %v4822_v11 = vsub.f32 %v9611_v58, %v8601_v19  ;;  %v9612_v39 = vld [vmem:[#allocation48_spill] sm:$0xff]  ;;  %v4889_v41 = vmax.f32 %v4825_v54, 0.0  ;;  %v4829_v13 = vsub.f32 %v9425_v45, %v8607_v59  ;;  %v4828_v22 = vsub.f32 %v9614_v35, %v8601_v19  ;;  %v9619_v51 = vld [vmem:[#allocation55_spill] sm:$0xff] }
 0x981   : > { %v4824_v34 = vsub.f32 %v9612_v39, %v8601_v19  ;;  %v4930_v46 = vpack.c.bf16 %v4884_v32, %v4882_v56  ;;  %v4831_v43 = vsub.f32 %v9426_v8, %v8607_v59  ;;  %v4891_v37 = vmax.f32 %v4827_v15, 0.0 }
 0x982   : > { %v4886_v38 = vmax.f32 %v4822_v11, 0.0  ;;  %v4893_v23 = vmax.f32 %v4829_v13, 0.0  ;;  %v4833_v45 = vsub.f32 %v9448_v2, %v8607_v59  ;;  %v4830_v40 = vsub.f32 %v9615_v3, %v8601_v19  ;;  %v9620_v13 = vld [vmem:[#allocation59_spill] sm:$0xff]  ;;  %v5013_v3 = vld [vmem:[%s5551_s22 + $0x8] sm:$0xff] }
 0x983   : > { %5025 = vmatpush1.bf16.msra.mxu0 %v4922_v53  ;;  %v4826_v53 = vsub.f32 %v9613_v6, %v8601_v19  ;;  %v4888_v55 = vmax.f32 %v4824_v34, 0.0  ;;  %v4832_v63 = vsub.f32 %v9616_v20, %v8601_v19  ;;  %v4892_v25 = vmax.f32 %v4828_v22, 0.0  ;;  %v5014_v20 = vld [vmem:[%s5551_s22 + $0x10] sm:$0xff] }
 0x984   : > { %5026 = vmatprep.subr.bf16.mxu0 %v4925_v57  ;;  %v4933_v57 = vpack.c.bf16 %v4889_v41, %v4887_v44  ;;  %v4835_v8 = vsub.f32 %v9450_v14, %v8607_v59  ;;  %v4935_v26 = vpack.c.bf16 %v4893_v23, %v4891_v37  ;;  %v4895_v30 = vmax.f32 %v4831_v43, 0.0  ;;  %v9622_v37 = vld [vmem:[#allocation11_spill] sm:$0xff] }
 0x985   : > { %v4890_v28 = vmax.f32 %v4826_v53, 0.0  ;;  %v4837_v2 = vsub.f32 %v9452_v10, %v8607_v59  ;;  %v4894_v62 = vmax.f32 %v4830_v40, 0.0  ;;  %v4896_v9 = vmax.f32 %v4832_v63, 0.0  ;;  %v9621_v53 = vld [vmem:[#allocation60_spill] sm:$0xff] }
 0x986   : > { %v4834_v18 = vsub.f32 %v9617_v16, %v8601_v19  ;;  %v4899_v4 = vmax.f32 %v4835_v8, 0.0  ;;  %v4839_v7 = vsub.f32 %v9454_v31, %v8607_v59  ;;  %v4841_v10 = vsub.f32 %v9474_v48, %v8607_v59 }
 0x987   : > { %5027 = vmatpush1.bf16.msra.mxu0 %v4924_v17  ;;  %v4932_v17 = vpack.c.bf16 %v4888_v55, %v4886_v38  ;;  %v4934_v60 = vpack.c.bf16 %v4892_v25, %v4890_v28  ;;  %v4901_v14 = vmax.f32 %v4837_v2, 0.0  ;;  %v4936_v42 = vpack.c.bf16 %v4896_v9, %v4894_v62  ;;  %v5015_v28 = vld [vmem:[%s5551_s22 + $0x18] sm:$0xff] }
 0x988   : > { %5028 = vmatprep.subr.bf16.mxu0 %v4927_v1  ;;  %v4897_v1 = vmax.f32 %v4833_v45, 0.0  ;;  %v4838_v54 = vsub.f32 %v9619_v51, %v8601_v19  ;;  %v4840_v56 = vsub.f32 %v9590_v12, %v8601_v19  ;;  %v4843_v58 = vsub.f32 %v9572_v49, %v8607_v59  ;;  %v5012_v45 = vld [vmem:[%s5551_s22] sm:$0xff]  ;;  %s5380_s22 = scalar_lea.vmem %s8743_s5, 512 }
 0x989   : > { %v4939_v11 = vpack.c.bf16 %v4901_v14, %v4899_v4  ;;  %v4905_v31 = vmax.f32 %v4841_v10, 0.0  ;;  %v4845_v48 = vsub.f32 %v9573_v24, %v8607_v59  ;;  %v4842_v32 = vsub.f32 %v9591_v50, %v8601_v19  ;;  %p5381_p13 = scmp.ne.s32.totalorder %s8743_s5, %s5380_s22  ;;  %p5388_p3 = scmp.lt.s32.totalorder %s5386_s13, %s5380_s22 }
 0x98a   : > { %v4937_v33 = vpack.c.bf16 %v4897_v1, %v4895_v30  ;;  %v4844_v39 = vsub.f32 %v9592_v36, %v8601_v19  ;;  %v4902_v15 = vmax.f32 %v4838_v54, 0.0  ;;  %v4904_v12 = vmax.f32 %v4840_v56, 0.0 }
 0x98b   : > { %5029 = vmatpush1.bf16.msra.mxu0 %v4926_v5  ;;  %v9618_v5 = vld [vmem:[#allocation54_spill] sm:$0xff]  ;;  %v4847_v49 = vsub.f32 %v9574_v61, %v8607_v59  ;;  %v4907_v44 = vmax.f32 %v4843_v58, 0.0  ;;  %v4909_v41 = vmax.f32 %v4845_v48, 0.0  ;;  %v4849_v24 = vsub.f32 %v9576_v27, %v8607_v59  ;;  %p5382_p0 = pnand %p5381_p13, %p5515_p6  ;;  %p5389_p4 = por %p5388_p3, %p5387_p2 }
 0x98c   : > { %5030 = vmatprep.subr.bf16.mxu0 %v4929_v47  ;;  %v4836_v52 = vsub.f32 %v9618_v5, %v8601_v19  ;;  %v4898_v47 = vmax.f32 %v4834_v18, 0.0  ;;  %v4846_v50 = vsub.f32 %v9620_v13, %v8601_v19  ;;  %v4940_v38 = vpack.c.bf16 %v4904_v12, %v4902_v15 }
 0x98d   : > { %v4906_v6 = vmax.f32 %v4842_v32, 0.0  ;;  %v4908_v36 = vmax.f32 %v4844_v39, 0.0  ;;  %v4943_v61 = vpack.c.bf16 %v4909_v41, %v4907_v44  ;;  %v4911_v55 = vmax.f32 %v4847_v49, 0.0  ;;  %p5383_p1 = pneg %p5382_p0 }
 0x98e   : > { %v4900_v29 = vmax.f32 %v4836_v52, 0.0  ;;  %v4913_v35 = vmax.f32 %v4849_v24, 0.0  ;;  %v4910_v59 = vmax.f32 %v4846_v50, 0.0 }
 0x98f   : > { %5031 = vmatpush1.bf16.msra.mxu0 %v4928_v21  ;;  %v4903_v21 = vmax.f32 %v4839_v7, 0.0  ;;  %v4942_v27 = vpack.c.bf16 %v4908_v36, %v4906_v6  ;;  %p5390_p5 = pnand %p5389_p4, %p5383_p1 }
 0x990   : > { %5032 = vmatprep.subr.bf16.mxu0 %v4931_v0  ;;  %v4938_v34 = vpack.c.bf16 %v4900_v29, %v4898_v47  ;;  %v4945_v43 = vpack.c.bf16 %v4913_v35, %v4911_v55 }
 0x991   : > { %v4941_v0 = vpack.c.bf16 %v4905_v31, %v4903_v21 }
 0x993   : > { %5033 = vmatpush1.bf16.msra.mxu0 %v4930_v46  ;;  %v4848_v46 = vsub.f32 %v9621_v53, %v8601_v19  ;;  %v9623_v19 = vld [vmem:[#allocation12_spill] sm:$0xff] }
 0x994   : > { %5034 = vmatprep.subr.bf16.mxu0 %v4933_v57  ;;  %v9624_v23 = vpack.c.bf16 %v9622_v37, %v9623_v19 }
 0x995   : > { %v4912_v22 = vmax.f32 %v4848_v46, 0.0 }
 0x997   : > { %5035 = vmatpush1.bf16.msra.mxu0 %v4932_v17  ;;  %v4944_v57 = vpack.c.bf16 %v4912_v22, %v4910_v59 }
 0x998   : > { %5036 = vmatprep.subr.bf16.mxu0 %v4935_v26 }
 0x99b   : > { %5037 = vmatpush1.bf16.msra.mxu0 %v4934_v60 }
 0x99c   : > { %5038 = vmatprep.subr.bf16.mxu0 %v4937_v33 }
 0x99f   : > { %5039 = vmatpush1.bf16.msra.mxu0 %v4936_v42 }
 0x9a0   : > { %5040 = vmatprep.subr.bf16.mxu0 %v4939_v11 }
 0x9a3   : > { %5041 = vmatpush1.bf16.msra.mxu0 %v4938_v34 }
 0x9a4   : > { %5042 = vmatprep.subr.bf16.mxu0 %v4941_v0 }
 0x9a7   : > { %5043 = vmatpush1.bf16.msra.mxu0 %v4940_v38 }
 0x9a8   : > { %5044 = vmatprep.subr.bf16.mxu0 %v4943_v61 }
 0x9ab   : > { %5045 = vmatpush1.bf16.msra.mxu0 %v4942_v27 }
 0x9ac   : > { %5046 = vmatprep.subr.bf16.mxu0 %v4945_v43 }
 0x9af   : > { %5047 = vmatpush1.bf16.msra.mxu0 %v4944_v57 }
 0x9b2   : > { %5049 = vmatmul.mubr.bf16.vlgmr.msra.gmra.mrb[8].mxu0 %v9624_v23 }
 0xa85   : > { %v5050_v40 = vpop.f32.mrb[8].mxu0 }
 0xa86   : > { %v5051_v63 = vadd.f32 %v5050_v40, %v5012_v45  ;;  %v5052_v17 = vpop.f32.mrb[9].mxu0 }
 0xa87   : > { %v5053_v25 = vadd.f32 %v5052_v17, %v5013_v3  ;;  %v5054_v8 = vpop.f32.mrb[10].mxu0 }
 0xa88   : > { %5059 = vst [vmem:[%s221_s30] sm:$0xff] %v5051_v63  ;;  %v5055_v26 = vadd.f32 %v5054_v8, %v5014_v20  ;;  %v5056_v30 = vpop.f32.mrb[11].mxu0 }
 0xa89   : > { %5060 = vst [vmem:[%s221_s30 + $0x8] sm:$0xff] %v5053_v25  ;;  %v5057_v1 = vadd.f32 %v5056_v30, %v5015_v28 }
 0xa8a   : > { %5061 = vst [vmem:[%s221_s30 + $0x10] sm:$0xff] %v5055_v26 }
 0xa8b   : > { %5062 = vst [vmem:[%s221_s30 + $0x18] sm:$0xff] %v5057_v1 }
 0xa8c   : > { %5393 = shalt.err (!%p5390_p5)
}
 0xa8d   : > { %s5394_s8 = scalar_lea.hbm %s8748_s10, 512  ;;  %s5398_s23 = scalar_lea.hbm %s8798_s4, 1024 }
 0xa8e   : > { %p5395_p7 = scmp.ne.s32.totalorder %s8748_s10, %s5394_s8  ;;  %p5399_p12 = scmp.lt.u32.totalorder %s8748_s10, %s8798_s4 }
 0xa8f   : > { %p5400_p13 = scmp.lt.u32.totalorder %s5398_s23, %s5394_s8  ;;  %p5402_p1 = scmp.lt.u32.totalorder %s5394_s8, %s8748_s10 }
 0xa90   : > { %p5396_p10 = pnand %p5395_p7, %p5515_p6 }
 0xa91   : > { %p5401_p0 = por %p5400_p13, %p5399_p12 }
 0xa92   : > { %p5397_p11 = pneg %p5396_p10 }
 0xa93   : > { %p5403_p2 = por %p5402_p1, %p5401_p0 }
 0xa95   : > { %p5404_p3 = pnand %p5403_p2, %p5397_p11 }
 0xa97   : > { %5407 = shalt.err (!%p5404_p3)
}
 0xa98   : > { %s5449_s29 = smov 256   ;;  %s5450_s30 = smov 512  }
 0xa99   : > { %s5451_s6 = smov 16  }
 0xa9a   : > { %5328 = dma.vmem_to_hbm [thread:$0]  (%p5515_p6), %s8743_s5, 512, %s8748_s10, %s8752_s19, %s5449_s29, %s5450_s30, %s5451_s6  }
 0xa9b PF: > { %s5092_s9 = sand.u32 1, %s5430_s15   ;;  %p5331_p4 = pnand %p5147_p9, %p5519_p8 }
 0xa9c   : > { %s5093_s7 = scalar_lea.sflag [#allocation9], %s5092_s9 }
 0xa9d   : > { %5425 = dma.done.wait (!%p5331_p4), %s5093_s7, 512  }
 0xa9e   : > { %5427 = vsyncadd (!%p5331_p4), %s5093_s7, 4294966784  ;;  %p14_p5 = scmp.ge.s32.totalorder %s5500_s21, 4   ;;  %s9625_s15 = smov %s5434_s16 }
 0xa9f   : > { %s9626_s16 = smov %s5438_s17  ;;  %s9627_s17 = smov %s5513_s24 }
 0xaa0   : > { %s9628_s18 = smov %s5500_s21  ;;  %16 = sbr.rel (!%p14_p5) target bundleno = 3 (0x3), region = 99 }
 0xaa7   :  { %5098 = vsyncpa [#allocation9], 1 }
 0xaa8   :  { %5100 = vsyncpa [#allocation9 + $0x1], 1 }

</bundles_post_ra>
